<compile_context>
chip_gen: v6e
topology: v6e:2x2x1
jax: 0.10.0
libtpu: 0.0.40
codegen_flags: <defaults>
</compile_context>

<pallas_src>
import functools

import jax
import jax.numpy as jnp
from jax.experimental import pallas as pl
from jax.experimental.pallas import tpu as pltpu


# --------------------------------------------------------------------------------------
# sizing helpers (review #2, #3, #9)
# --------------------------------------------------------------------------------------
def _pad_to(v, m):
    return ((v + m - 1) // m) * m


def _tile_bytes(rows, cols, itemsize=4):
    """VMEM footprint of a (rows, cols) f32 tile after (8, 128) layout padding."""
    return _pad_to(rows, 8) * _pad_to(cols, 128) * itemsize


def _vmem_estimate(tile_rows, W, Hp_a, Wp_a, C, N, outc):
    """Rough per-tile VMEM working set (padded), used for tile choice + vmem_limit."""
    THW = tile_rows * W
    THW_h = THW + W + 1
    Mr = outc * Hp_a
    b = 0
    b += _tile_bytes(N * Mr, Wp_a)                 # yf: image resident, single buffer
    b += 2 * _tile_bytes(N * C, THW_h)             # c1 halo blocks (double buffered)
    b += 2 * _tile_bytes(2 * N, THW_h)             # base halo blocks (double buffered)
    b += _tile_bytes(2 * N, N * C) + _tile_bytes(2 * N, 1)   # p_conv weights / bias
    b += 2 * _tile_bytes(outc, THW)                # output blocks (double buffered)
    # live in-kernel values: p_all + 4 shifted views, t1, one-hot factors, accumulator
    b += _tile_bytes(2 * N, THW_h) + 4 * _tile_bytes(2 * N, THW)
    b += _tile_bytes(Mr, THW) + _tile_bytes(Wp_a, THW) + _tile_bytes(Hp_a, THW)
    b += 2 * _tile_bytes(outc, THW)
    return b + (2 << 20)                           # slack for compiler-internal scratch


def _pick_tile_rows(H, W, Hp_a, Wp_a, C, N, outc, budget=24 << 20):
    """Largest divisor of H whose working set fits the budget; prefer 256/128-aligned THW."""
    divs = [d for d in range(1, H + 1)
            if H % d == 0 and _vmem_estimate(d, W, Hp_a, Wp_a, C, N, outc) <= budget]
    if not divs:
        return 1
    for align in (256, 128):                       # 256 fills v6e/v7x MXU, 128 fills v5e
        aligned = [d for d in divs if (d * W) % align == 0]
        if aligned:
            return max(aligned)
    return max(divs)


# --------------------------------------------------------------------------------------
# kernel
# --------------------------------------------------------------------------------------
def _make_kernel(W, Hp, Wp, Hp_a, Wp_a, C, ks, outc, tile_rows):
    N = ks * ks
    THW = tile_rows * W          # output pixels per row tile (lane axis)
    HL = W + 1                   # halo lanes prepended to every tile (prev row + 1 spare)
    Mr = outc * Hp_a             # matmul LHS rows per conv tap (multiple of 8)
    rmap = (ks - 1,) + tuple(range(ks - 1))   # conv tap index u -> deform in-cell index

    def kernel(c1_ref, base_ref, pwt_ref, pbt_ref, yf_ref, out_ref):
        t = pl.program_id(1)

        # p_conv offsets (rows 0..N-1 = x coords, N..2N-1 = y coords) for the halo row
        # plus all tile pixels, in ONE fused matmul.
        p_all = (jnp.dot(pwt_ref[...], c1_ref[0, 0],
                         preferred_element_type=jnp.float32)
                 + pbt_ref[...] + base_ref[0])                       # (2N, THW + HL)

        # Coordinate views for the four (row, col) source shifts a conv tap can need:
        #   p_sh[du][dv][:, l] = sampling coords of pixel (i-du, j-dv) of output pixel l.
        # Static lane slices of the halo'd row -- no per-contribution rolls (review #4).
        p_sh = [[p_all[:, HL - du * W - dv: HL - du * W - dv + THW]
                 for dv in (0, 1)] for du in (0, 1)]

        lane = jax.lax.broadcasted_iota(jnp.int32, (1, THW), 1)
        hp_iota = jax.lax.broadcasted_iota(jnp.int32, (Hp_a, THW), 0)
        wp_iota = jax.lax.broadcasted_iota(jnp.int32, (Wp_a, THW), 0)
        # Conv taps that read image col -1 / row -1 hit the stride-3 conv's zero padding.
        m_col0 = jnp.where(lane % W == 0, 0.0, 1.0)                          # j == 0
        m_row0 = jnp.where(jnp.logical_and(lane < W, t == 0), 0.0, 1.0)      # image row 0

        acc = jnp.zeros((outc, THW), jnp.float32)

        for u in range(ks):
            for v in range(ks):
                m = u * ks + v                     # output-conv weight tap
                n = rmap[u] * ks + rmap[v]         # deform kernel point feeding it
                du = 1 if u == 0 else 0            # tap reads previous image row
                dv = 1 if v == 0 else 0            # tap reads previous image col

                p_src = p_sh[du][dv]
                px = p_src[n:n + 1, :]             # (1, THW) sampled row coordinate
                py = p_src[N + n:N + n + 1, :]     # (1, THW) sampled col coordinate

                fx = jnp.floor(px)
                fy = jnp.floor(py)
                x_lt = jnp.clip(fx, 0.0, Hp - 1.0)
                x_rb = jnp.clip(fx + 1.0, 0.0, Hp - 1.0)
                y_lt = jnp.clip(fy, 0.0, Wp - 1.0)
                y_rb = jnp.clip(fy + 1.0, 0.0, Wp - 1.0)
                pcx = jnp.clip(px, 0.0, Hp - 1.0)
                pcy = jnp.clip(py, 0.0, Wp - 1.0)

                gx_lt = 1.0 + (x_lt - pcx)
                gx_rb = 1.0 - (x_rb - pcx)
                gy_lt = 1.0 + (y_lt - pcy)
                gy_rb = 1.0 - (y_rb - pcy)

                # zero the contribution where the conv reads its own zero padding
                if du and dv:
                    zmask = m_row0 * m_col0
                elif du:
                    zmask = m_row0
                elif dv:
                    zmask = m_col0
                else:
                    zmask = None
                if zmask is not None:
                    gx_lt = gx_lt * zmask
                    gx_rb = gx_rb * zmask

                ix_lt = x_lt.astype(jnp.int32)
                ix_rb = x_rb.astype(jnp.int32)
                iy_lt = y_lt.astype(jnp.int32)
                iy_rb = y_rb.astype(jnp.int32)

                # separable weighted one-hots (compares only on the SMALL factors)
                a_fac = (jnp.where(hp_iota == ix_lt, gx_lt, 0.0)
                         + jnp.where(hp_iota == ix_rb, gx_rb, 0.0))          # (Hp_a, THW)
                b_fac = (jnp.where(wp_iota == iy_lt, gy_lt, 0.0)
                         + jnp.where(wp_iota == iy_rb, gy_rb, 0.0))          # (Wp_a, THW)

                # Separable gather with the output conv folded in (review #1b/#5):
                #   MXU contracts the padded-width axis (K = Wp_a, M = outc*Hp_a) ...
                yb = yf_ref[0, pl.ds(m * Mr, Mr), :]                         # (Mr, Wp_a)
                t1 = jnp.dot(yb, b_fac,
                             preferred_element_type=jnp.float32)            # (Mr, THW)
                #   ... then the row one-hot weights it and Hp is reduced on the VPU.
                t1 = t1.reshape(outc, Hp_a, THW)
                acc = acc + jnp.sum(t1 * a_fac[None, :, :], axis=1)         # (outc, THW)

        out_ref[0, 0] = acc.astype(out_ref.dtype)

    return kernel


# --------------------------------------------------------------------------------------
# wrapper
# --------------------------------------------------------------------------------------
@functools.partial(jax.jit, static_argnames=("ks", "padding", "stride", "tile_rows"))
def deform_conv2d_pallas(x, p_conv_w, p_conv_b, conv_w, *, ks=3, padding=1, stride=1,
                         tile_rows=None):
    """x: (B, C, H, W) NCHW float32.  Returns (B, outc, H, W)."""
    assert ks == 3 and padding == 1 and stride == 1, "kernel specialized to module defaults"
    B, C, H, W = x.shape
    N = ks * ks
    outc = conv_w.shape[0]
    Hp, Wp = H + 2 * padding, W + 2 * padding
    Hp_a = _pad_to(Hp, 8)      # sublane-aligned padded height (extra rows are zero)
    Wp_a = _pad_to(Wp, 8)      # 8-aligned padded width (matmul K axis)

    if tile_rows is None:
        tile_rows = _pick_tile_rows(H, W, Hp_a, Wp_a, C, N, outc)
    assert H % tile_rows == 0, "tile_rows must divide H"
    nT = H // tile_rows
    THW = tile_rows * W
    HL = W + 1
    THW_h = THW + HL
    hp = jax.lax.Precision.HIGHEST

    xf = x.astype(jnp.float32)

    # ---- conv-weight-folded, zero-padded input ("yf"): LHS of the gather matmul ----
    # Layout (N*outc*Hp_a, Wp_a) with the padded width minor, as the separable
    # contraction needs (review #5).  Built once per image in the wrapper.
    xpad = jnp.pad(xf, ((0, 0), (0, 0),
                        (padding, padding + Hp_a - Hp),
                        (padding, padding + Wp_a - Wp)))                    # (B,C,Hp_a,Wp_a)
    w2 = jnp.transpose(conv_w, (2, 3, 0, 1)).reshape(N, outc, C).astype(jnp.float32)
    yf = jnp.einsum("moc,bcrw->bmorw", w2, xpad, precision=hp)
    yf = yf.reshape(B, N * outc * Hp_a, Wp_a).astype(jnp.float32)

    # ---- im2col patches of x for p_conv, with a one-row halo per row tile ----
    xpad1 = jnp.pad(xf, ((0, 0), (0, 0), (1, 1), (1, 1)))                   # (B,C,H+2,W+2)
    patches = jnp.stack([xpad1[:, :, u:u + H, v:v + W]
                         for u in range(ks) for v in range(ks)], axis=1)    # (B,9,C,H,W)
    c1 = patches.reshape(B, N * C, H * W)
    c1_ext = jnp.concatenate([jnp.zeros((B, N * C, HL), jnp.float32), c1], axis=-1)
    c1t = jnp.stack([c1_ext[:, :, t * THW: t * THW + THW_h] for t in range(nT)],
                    axis=1)                                                 # (B,nT,9C,THW_h)

    # ---- base sampling grid p_0 + p_n (x rows then y rows), same halo ----
    pn_x = jnp.repeat(jnp.arange(ks, dtype=jnp.float32) - (ks - 1) // 2, ks)     # (9,)
    pn_y = jnp.tile(jnp.arange(ks, dtype=jnp.float32) - (ks - 1) // 2, ks)       # (9,)
    p0_x = jnp.arange(1, H * stride + 1, stride, dtype=jnp.float32)              # (H,)
    p0_y = jnp.arange(1, W * stride + 1, stride, dtype=jnp.float32)              # (W,)
    bx = jnp.broadcast_to(p0_x[:, None, None] + pn_x[None, None, :], (H, W, N))
    by = jnp.broadcast_to(p0_y[None, :, None] + pn_y[None, None, :], (H, W, N))
    base = jnp.concatenate([bx.reshape(H * W, N).T, by.reshape(H * W, N).T], axis=0)
    base_ext = jnp.concatenate([jnp.zeros((2 * N, HL), jnp.float32), base], axis=-1)
    base_t = jnp.stack([base_ext[:, t * THW: t * THW + THW_h] for t in range(nT)],
                       axis=0)                                              # (nT,2N,THW_h)

    # ---- p_conv weights/bias with x and y halves fused; col index = (u*ks+v)*C + c ----
    pwt = jnp.transpose(p_conv_w, (0, 2, 3, 1)).reshape(2 * N, N * C).astype(jnp.float32)
    pbt = p_conv_b.reshape(2 * N, 1).astype(jnp.float32)

    kernel = _make_kernel(W, Hp, Wp, Hp_a, Wp_a, C, ks, outc, tile_rows)

    vmem_est = _vmem_estimate(tile_rows, W, Hp_a, Wp_a, C, N, outc)
    vmem_limit = int(min(64 << 20, max(32 << 20, int(1.5 * vmem_est))))     # review #2/#9

    out_t = pl.pallas_call(
        kernel,
        out_shape=jax.ShapeDtypeStruct((B, nT, outc, THW), jnp.float32),
        grid=(B, nT),
        in_specs=[
            # per-tile, double-buffered streams
            pl.BlockSpec((1, 1, N * C, THW_h), lambda b, t: (b, t, 0, 0)),  # im2col + halo
            pl.BlockSpec((1, 2 * N, THW_h), lambda b, t: (t, 0, 0)),        # base grid + halo
            # grid-/image-invariant operands: single buffer (review #7)
            pl.BlockSpec((2 * N, N * C), lambda b, t: (0, 0),
                         pipeline_mode=pl.Buffered(1)),                     # p_conv weights
            pl.BlockSpec((2 * N, 1), lambda b, t: (0, 0),
                         pipeline_mode=pl.Buffered(1)),                     # p_conv bias
            pl.BlockSpec((1, N * outc * Hp_a, Wp_a), lambda b, t: (b, 0, 0),
                         pipeline_mode=pl.Buffered(1)),                     # folded input yf
        ],
        out_specs=pl.BlockSpec((1, 1, outc, THW), lambda b, t: (b, t, 0, 0)),
        compiler_params=pltpu.CompilerParams(
            dimension_semantics=("parallel", "parallel"),   # no cross-tile state (review #6)
            vmem_limit_bytes=vmem_limit),
    )(c1t, base_t, pwt, pbt, yf)

    return out_t.transpose(0, 2, 1, 3).reshape(B, outc, H, W)               # NCHW


# ------------------------- pure-JAX reference (literal port) -------------------------
def deform_conv2d_ref(x, p_conv_w, p_conv_b, conv_w, ks=3, padding=1, stride=1):
    B, C, H, W = x.shape
    N = ks * ks
    hp = jax.lax.Precision.HIGHEST
    offset = jax.lax.conv_general_dilated(
        x, p_conv_w, (stride, stride), [(1, 1), (1, 1)],
        dimension_numbers=("NCHW", "OIHW", "NCHW"), precision=hp) + p_conv_b[None, :, None, None]
    h, w = offset.shape[2], offset.shape[3]
    xpad = jnp.pad(x, ((0, 0), (0, 0), (padding, padding), (padding, padding)))
    Hp, Wp = xpad.shape[2], xpad.shape[3]

    pn_x = jnp.repeat(jnp.arange(ks) - (ks - 1) // 2, ks).astype(jnp.float32)
    pn_y = jnp.tile(jnp.arange(ks) - (ks - 1) // 2, ks).astype(jnp.float32)
    p0_x = (jnp.arange(h) * stride + 1).astype(jnp.float32)
    p0_y = (jnp.arange(w) * stride + 1).astype(jnp.float32)
    p = jnp.transpose(offset, (0, 2, 3, 1))
    px = p[..., :N] + p0_x[None, :, None, None] + pn_x[None, None, None, :]
    py = p[..., N:] + p0_y[None, None, :, None] + pn_y[None, None, None, :]

    qlt_x = jnp.clip(jnp.floor(px), 0, Hp - 1)
    qlt_y = jnp.clip(jnp.floor(py), 0, Wp - 1)
    qrb_x = jnp.clip(jnp.floor(px) + 1, 0, Hp - 1)
    qrb_y = jnp.clip(jnp.floor(py) + 1, 0, Wp - 1)
    pcx = jnp.clip(px, 0, Hp - 1)
    pcy = jnp.clip(py, 0, Wp - 1)
    g_lt = (1 + (qlt_x - pcx)) * (1 + (qlt_y - pcy))
    g_rb = (1 - (qrb_x - pcx)) * (1 - (qrb_y - pcy))
    g_lb = (1 + (qlt_x - pcx)) * (1 - (qrb_y - pcy))
    g_rt = (1 - (qrb_x - pcx)) * (1 + (qlt_y - pcy))

    xflat = xpad.reshape(B, C, Hp * Wp)

    def gather(qx, qy):
        idx = (qx.astype(jnp.int32) * Wp + qy.astype(jnp.int32)).reshape(B, -1)
        idx = jnp.broadcast_to(idx[:, None, :], (B, C, idx.shape[-1]))
        return jnp.take_along_axis(xflat, idx, axis=2).reshape(B, C, h, w, N)

    xo = (g_lt[:, None] * gather(qlt_x, qlt_y) + g_rb[:, None] * gather(qrb_x, qrb_y)
          + g_lb[:, None] * gather(qlt_x, qrb_y) + g_rt[:, None] * gather(qrb_x, qlt_y))
    xo = jnp.concatenate([xo[..., s:s + ks].reshape(B, C, h, w * ks) for s in range(0, N, ks)], axis=-1)
    xo = xo.reshape(B, C, h * ks, w * ks)
    out = jax.lax.conv_general_dilated(
        xo, conv_w, (ks, ks), [(padding, padding), (padding, padding)],
        dimension_numbers=("NCHW", "OIHW", "NCHW"), precision=hp)
    return out


if __name__ == "__main__":
    key = jax.random.PRNGKey(0)
    B, C, H, W = 2, 4, 16, 16
    outc, ks = 8, 3
    k1, k2, k3, k4 = jax.random.split(key, 4)
    x = jax.random.normal(k1, (B, C, H, W), jnp.float32)
    p_conv_w = jax.random.normal(k2, (2 * ks * ks, C, 3, 3), jnp.float32) * 0.1
    p_conv_b = jax.random.normal(k3, (2 * ks * ks,), jnp.float32) * 0.1
    conv_w = jax.random.normal(k4, (outc, C, ks, ks), jnp.float32) * 0.2

    ref = deform_conv2d_ref(x, p_conv_w, p_conv_b, conv_w)

    # default (single 256-lane tile) and a 2-tile config (exercises the halo / row shifts)
    for tr in (None, 8):
        out = jax.block_until_ready(
            deform_conv2d_pallas(x, p_conv_w, p_conv_b, conv_w, tile_rows=tr))
        assert out.shape == (B, outc, H, W), out.shape
        if not bool(jnp.allclose(out, ref, atol=1e-3, rtol=1e-3)):
            max_err = float(jnp.max(jnp.abs(out - ref)))
            raise SystemExit(f"mismatch vs reference (tile_rows={tr}), max abs err = {max_err}")
    print("KERNEL_OK")
</pallas_src>

<mosaic_0001>
module attributes {stable_mosaic.version = 11 : i64} {
  func.func @kernel(%arg0: i32, %arg1: i32, %arg2: memref<1x1x36x273xf32, #tpu.memory_space<vmem>>, %arg3: memref<1x18x273xf32, #tpu.memory_space<vmem>>, %arg4: memref<18x36xf32, #tpu.memory_space<vmem>>, %arg5: memref<18x1xf32, #tpu.memory_space<vmem>>, %arg6: memref<1x1728x24xf32, #tpu.memory_space<vmem>>, %arg7: memref<1x1x8x256xf32, #tpu.memory_space<vmem>>) attributes {dimension_semantics = [#tpu.dimension_semantics<parallel>, #tpu.dimension_semantics<parallel>], iteration_bounds = array<i64: 2, 1>, scalar_prefetch = 0 : i64, scratch_operands = 0 : i64, tpu.core_type = #tpu.core_type<tc>, window_params = [{transform_indices = @transform_0, window_bounds = array<i64: 1, 1, 36, 273>}, {transform_indices = @transform_1, window_bounds = array<i64: 1, 18, 273>}, {pipeline_mode = #tpu.pipeline_mode<synchronous>, transform_indices = @transform_2, window_bounds = array<i64: 18, 36>}, {pipeline_mode = #tpu.pipeline_mode<synchronous>, transform_indices = @transform_3, window_bounds = array<i64: 18, 1>}, {pipeline_mode = #tpu.pipeline_mode<synchronous>, transform_indices = @transform_4, window_bounds = array<i64: 1, 1728, 24>}, {transform_indices = @transform_5, window_bounds = array<i64: 1, 1, 8, 256>}]} {
    %c0 = arith.constant 0 : index
    %c0_0 = arith.constant 0 : index
    %0 = vector.load %arg4[%c0, %c0_0] : memref<18x36xf32, #tpu.memory_space<vmem>>, vector<18x36xf32>
    %c0_1 = arith.constant 0 : index
    %c0_2 = arith.constant 0 : index
    %c0_3 = arith.constant 0 : index
    %c0_4 = arith.constant 0 : index
    %1 = vector.load %arg2[%c0_1, %c0_2, %c0_3, %c0_4] : memref<1x1x36x273xf32, #tpu.memory_space<vmem>>, vector<1x1x36x273xf32>
    %2 = vector.shape_cast %1 : vector<1x1x36x273xf32> to vector<36x273xf32>
    %cst = arith.constant dense<0.000000e+00> : vector<18x273xf32>
    %3 = tpu.matmul %0, %2, %cst {dimension_numbers = #tpu.dot_dimension_numbers<[1], [0], [0], [1], [0, 0, 1, 1], [], []>} : vector<18x36xf32>, vector<36x273xf32>, vector<18x273xf32> -> vector<18x273xf32>
    %c0_5 = arith.constant 0 : index
    %c0_6 = arith.constant 0 : index
    %4 = vector.load %arg5[%c0_5, %c0_6] : memref<18x1xf32, #tpu.memory_space<vmem>>, vector<18x1xf32>
    %5 = vector.broadcast %4 : vector<18x1xf32> to vector<18x273xf32>
    %6 = arith.addf %3, %5 : vector<18x273xf32>
    %c0_7 = arith.constant 0 : index
    %c0_8 = arith.constant 0 : index
    %c0_9 = arith.constant 0 : index
    %7 = vector.load %arg3[%c0_7, %c0_8, %c0_9] : memref<1x18x273xf32, #tpu.memory_space<vmem>>, vector<1x18x273xf32>
    %8 = vector.shape_cast %7 : vector<1x18x273xf32> to vector<18x273xf32>
    %9 = arith.addf %6, %8 : vector<18x273xf32>
    %10 = vector.extract_strided_slice %9 {offsets = [0, 17], sizes = [18, 256], strides = [1, 1]} : vector<18x273xf32> to vector<18x256xf32>
    %11 = vector.extract_strided_slice %9 {offsets = [0, 16], sizes = [18, 256], strides = [1, 1]} : vector<18x273xf32> to vector<18x256xf32>
    %12 = vector.extract_strided_slice %9 {offsets = [0, 1], sizes = [18, 256], strides = [1, 1]} : vector<18x273xf32> to vector<18x256xf32>
    %13 = vector.extract_strided_slice %9 {offsets = [0, 0], sizes = [18, 256], strides = [1, 1]} : vector<18x273xf32> to vector<18x256xf32>
    %14 = tpu.iota {dimensions = array<i32: 1>} : vector<1x256xi32>
    %15 = tpu.iota {dimensions = array<i32: 0>} : vector<24x256xi32>
    %16 = tpu.iota {dimensions = array<i32: 0>} : vector<24x256xi32>
    %c16_i32 = arith.constant 16 : i32
    %c0_i32 = arith.constant 0 : i32
    %17 = arith.cmpi eq, %c16_i32, %c0_i32 : i32
    %c1_i32 = arith.constant 1 : i32
    %18 = arith.select %17, %c1_i32, %c16_i32 : i32
    %19 = vector.broadcast %18 : i32 to vector<1x256xi32>
    %20 = arith.remsi %14, %19 : vector<1x256xi32>
    %c0_i32_10 = arith.constant 0 : i32
    %21 = vector.broadcast %c0_i32_10 : i32 to vector<1x256xi32>
    %22 = arith.cmpi ne, %20, %21 : vector<1x256xi32>
    %c0_i32_11 = arith.constant 0 : i32
    %23 = vector.broadcast %c0_i32_11 : i32 to vector<1x256xi32>
    %24 = arith.cmpi slt, %20, %23 : vector<1x256xi32>
    %c0_i32_12 = arith.constant 0 : i32
    %25 = arith.cmpi slt, %18, %c0_i32_12 : i32
    %26 = vector.broadcast %25 : i1 to vector<1x256xi1>
    %27 = vector.broadcast %26 : vector<1x256xi1> to vector<1x256xi1>
    %28 = arith.xori %24, %27 : vector<1x256xi1>
    %29 = arith.andi %28, %22 : vector<1x256xi1>
    %30 = vector.broadcast %18 : i32 to vector<1x256xi32>
    %31 = arith.addi %20, %30 : vector<1x256xi32>
    %32 = arith.select %29, %31, %20 : vector<1x256xi1>, vector<1x256xi32>
    %c0_i32_13 = arith.constant 0 : i32
    %33 = vector.broadcast %c0_i32_13 : i32 to vector<1x256xi32>
    %34 = arith.cmpi eq, %32, %33 : vector<1x256xi32>
    %cst_14 = arith.constant 0.000000e+00 : f32
    %cst_15 = arith.constant 1.000000e+00 : f32
    %35 = vector.broadcast %cst_14 : f32 to vector<1x256xf32>
    %36 = vector.broadcast %cst_15 : f32 to vector<1x256xf32>
    %37 = arith.select %34, %35, %36 : vector<1x256xi1>, vector<1x256xf32>
    %c16_i32_16 = arith.constant 16 : i32
    %38 = vector.broadcast %c16_i32_16 : i32 to vector<1x256xi32>
    %39 = arith.cmpi slt, %14, %38 : vector<1x256xi32>
    %c0_i32_17 = arith.constant 0 : i32
    %40 = arith.cmpi eq, %arg1, %c0_i32_17 : i32
    %41 = vector.broadcast %40 : i1 to vector<1x256xi1>
    %42 = arith.andi %39, %41 : vector<1x256xi1>
    %cst_18 = arith.constant 0.000000e+00 : f32
    %cst_19 = arith.constant 1.000000e+00 : f32
    %43 = vector.broadcast %cst_18 : f32 to vector<1x256xf32>
    %44 = vector.broadcast %cst_19 : f32 to vector<1x256xf32>
    %45 = arith.select %42, %43, %44 : vector<1x256xi1>, vector<1x256xf32>
    %cst_20 = arith.constant 0.000000e+00 : f32
    %46 = vector.broadcast %cst_20 : f32 to vector<8x256xf32>
    %47 = vector.extract_strided_slice %13 {offsets = [8, 0], sizes = [1, 256], strides = [1, 1]} : vector<18x256xf32> to vector<1x256xf32>
    %48 = vector.extract_strided_slice %13 {offsets = [17, 0], sizes = [1, 256], strides = [1, 1]} : vector<18x256xf32> to vector<1x256xf32>
    %49 = math.floor %47 : vector<1x256xf32>
    %50 = math.floor %48 : vector<1x256xf32>
    %cst_21 = arith.constant 0.000000e+00 : f32
    %cst_22 = arith.constant 1.700000e+01 : f32
    %51 = vector.broadcast %cst_21 : f32 to vector<1x256xf32>
    %52 = arith.maximumf %51, %49 : vector<1x256xf32>
    %53 = vector.broadcast %cst_22 : f32 to vector<1x256xf32>
    %54 = arith.minimumf %53, %52 : vector<1x256xf32>
    %cst_23 = arith.constant 1.000000e+00 : f32
    %55 = vector.broadcast %cst_23 : f32 to vector<1x256xf32>
    %56 = arith.addf %49, %55 : vector<1x256xf32>
    %cst_24 = arith.constant 0.000000e+00 : f32
    %cst_25 = arith.constant 1.700000e+01 : f32
    %57 = vector.broadcast %cst_24 : f32 to vector<1x256xf32>
    %58 = arith.maximumf %57, %56 : vector<1x256xf32>
    %59 = vector.broadcast %cst_25 : f32 to vector<1x256xf32>
    %60 = arith.minimumf %59, %58 : vector<1x256xf32>
    %cst_26 = arith.constant 0.000000e+00 : f32
    %cst_27 = arith.constant 1.700000e+01 : f32
    %61 = vector.broadcast %cst_26 : f32 to vector<1x256xf32>
    %62 = arith.maximumf %61, %50 : vector<1x256xf32>
    %63 = vector.broadcast %cst_27 : f32 to vector<1x256xf32>
    %64 = arith.minimumf %63, %62 : vector<1x256xf32>
    %cst_28 = arith.constant 1.000000e+00 : f32
    %65 = vector.broadcast %cst_28 : f32 to vector<1x256xf32>
    %66 = arith.addf %50, %65 : vector<1x256xf32>
    %cst_29 = arith.constant 0.000000e+00 : f32
    %cst_30 = arith.constant 1.700000e+01 : f32
    %67 = vector.broadcast %cst_29 : f32 to vector<1x256xf32>
    %68 = arith.maximumf %67, %66 : vector<1x256xf32>
    %69 = vector.broadcast %cst_30 : f32 to vector<1x256xf32>
    %70 = arith.minimumf %69, %68 : vector<1x256xf32>
    %cst_31 = arith.constant 0.000000e+00 : f32
    %cst_32 = arith.constant 1.700000e+01 : f32
    %71 = vector.broadcast %cst_31 : f32 to vector<1x256xf32>
    %72 = arith.maximumf %71, %47 : vector<1x256xf32>
    %73 = vector.broadcast %cst_32 : f32 to vector<1x256xf32>
    %74 = arith.minimumf %73, %72 : vector<1x256xf32>
    %cst_33 = arith.constant 0.000000e+00 : f32
    %cst_34 = arith.constant 1.700000e+01 : f32
    %75 = vector.broadcast %cst_33 : f32 to vector<1x256xf32>
    %76 = arith.maximumf %75, %48 : vector<1x256xf32>
    %77 = vector.broadcast %cst_34 : f32 to vector<1x256xf32>
    %78 = arith.minimumf %77, %76 : vector<1x256xf32>
    %79 = arith.subf %54, %74 : vector<1x256xf32>
    %cst_35 = arith.constant 1.000000e+00 : f32
    %80 = vector.broadcast %cst_35 : f32 to vector<1x256xf32>
    %81 = arith.addf %80, %79 : vector<1x256xf32>
    %82 = arith.subf %60, %74 : vector<1x256xf32>
    %cst_36 = arith.constant 1.000000e+00 : f32
    %83 = vector.broadcast %cst_36 : f32 to vector<1x256xf32>
    %84 = arith.subf %83, %82 : vector<1x256xf32>
    %85 = arith.subf %64, %78 : vector<1x256xf32>
    %cst_37 = arith.constant 1.000000e+00 : f32
    %86 = vector.broadcast %cst_37 : f32 to vector<1x256xf32>
    %87 = arith.addf %86, %85 : vector<1x256xf32>
    %88 = arith.subf %70, %78 : vector<1x256xf32>
    %cst_38 = arith.constant 1.000000e+00 : f32
    %89 = vector.broadcast %cst_38 : f32 to vector<1x256xf32>
    %90 = arith.subf %89, %88 : vector<1x256xf32>
    %91 = arith.mulf %45, %37 : vector<1x256xf32>
    %92 = arith.mulf %81, %91 : vector<1x256xf32>
    %93 = arith.mulf %84, %91 : vector<1x256xf32>
    %94 = arith.fptosi %54 : vector<1x256xf32> to vector<1x256xi32>
    %95 = arith.fptosi %60 : vector<1x256xf32> to vector<1x256xi32>
    %96 = arith.fptosi %64 : vector<1x256xf32> to vector<1x256xi32>
    %97 = arith.fptosi %70 : vector<1x256xf32> to vector<1x256xi32>
    %98 = vector.broadcast %94 : vector<1x256xi32> to vector<24x256xi32>
    %99 = arith.cmpi eq, %15, %98 : vector<24x256xi32>
    %cst_39 = arith.constant 0.000000e+00 : f32
    %100 = vector.shape_cast %92 : vector<1x256xf32> to vector<1x256xf32>
    %101 = vector.broadcast %100 : vector<1x256xf32> to vector<24x256xf32>
    %102 = vector.broadcast %cst_39 : f32 to vector<24x256xf32>
    %103 = arith.select %99, %101, %102 : vector<24x256xi1>, vector<24x256xf32>
    %104 = vector.broadcast %95 : vector<1x256xi32> to vector<24x256xi32>
    %105 = arith.cmpi eq, %15, %104 : vector<24x256xi32>
    %cst_40 = arith.constant 0.000000e+00 : f32
    %106 = vector.shape_cast %93 : vector<1x256xf32> to vector<1x256xf32>
    %107 = vector.broadcast %106 : vector<1x256xf32> to vector<24x256xf32>
    %108 = vector.broadcast %cst_40 : f32 to vector<24x256xf32>
    %109 = arith.select %105, %107, %108 : vector<24x256xi1>, vector<24x256xf32>
    %110 = arith.addf %103, %109 : vector<24x256xf32>
    %111 = vector.broadcast %96 : vector<1x256xi32> to vector<24x256xi32>
    %112 = arith.cmpi eq, %16, %111 : vector<24x256xi32>
    %cst_41 = arith.constant 0.000000e+00 : f32
    %113 = vector.shape_cast %87 : vector<1x256xf32> to vector<1x256xf32>
    %114 = vector.broadcast %113 : vector<1x256xf32> to vector<24x256xf32>
    %115 = vector.broadcast %cst_41 : f32 to vector<24x256xf32>
    %116 = arith.select %112, %114, %115 : vector<24x256xi1>, vector<24x256xf32>
    %117 = vector.broadcast %97 : vector<1x256xi32> to vector<24x256xi32>
    %118 = arith.cmpi eq, %16, %117 : vector<24x256xi32>
    %cst_42 = arith.constant 0.000000e+00 : f32
    %119 = vector.shape_cast %90 : vector<1x256xf32> to vector<1x256xf32>
    %120 = vector.broadcast %119 : vector<1x256xf32> to vector<24x256xf32>
    %121 = vector.broadcast %cst_42 : f32 to vector<24x256xf32>
    %122 = arith.select %118, %120, %121 : vector<24x256xi1>, vector<24x256xf32>
    %123 = arith.addf %116, %122 : vector<24x256xf32>
    %c0_43 = arith.constant 0 : index
    %c0_44 = arith.constant 0 : index
    %c0_45 = arith.constant 0 : index
    %124 = vector.load %arg6[%c0_43, %c0_44, %c0_45] : memref<1x1728x24xf32, #tpu.memory_space<vmem>>, vector<1x192x24xf32>
    %125 = vector.shape_cast %124 : vector<1x192x24xf32> to vector<192x24xf32>
    %cst_46 = arith.constant dense<0.000000e+00> : vector<192x256xf32>
    %126 = tpu.matmul %125, %123, %cst_46 {dimension_numbers = #tpu.dot_dimension_numbers<[1], [0], [0], [1], [0, 0, 1, 1], [], []>} : vector<192x24xf32>, vector<24x256xf32>, vector<192x256xf32> -> vector<192x256xf32>
    %127 = vector.shape_cast %126 : vector<192x256xf32> to vector<8x24x256xf32>
    %128 = vector.shape_cast %110 : vector<24x256xf32> to vector<1x24x256xf32>
    %129 = vector.broadcast %128 : vector<1x24x256xf32> to vector<8x24x256xf32>
    %130 = arith.mulf %127, %129 : vector<8x24x256xf32>
    %cst_47 = arith.constant dense<0.000000e+00> : vector<8x256xf32>
    %131 = vector.multi_reduction <add>, %130, %cst_47 [1] : vector<8x24x256xf32> to vector<8x256xf32>
    %132 = arith.addf %46, %131 : vector<8x256xf32>
    %133 = vector.extract_strided_slice %12 {offsets = [6, 0], sizes = [1, 256], strides = [1, 1]} : vector<18x256xf32> to vector<1x256xf32>
    %134 = vector.extract_strided_slice %12 {offsets = [15, 0], sizes = [1, 256], strides = [1, 1]} : vector<18x256xf32> to vector<1x256xf32>
    %135 = math.floor %133 : vector<1x256xf32>
    %136 = math.floor %134 : vector<1x256xf32>
    %cst_48 = arith.constant 0.000000e+00 : f32
    %cst_49 = arith.constant 1.700000e+01 : f32
    %137 = vector.broadcast %cst_48 : f32 to vector<1x256xf32>
    %138 = arith.maximumf %137, %135 : vector<1x256xf32>
    %139 = vector.broadcast %cst_49 : f32 to vector<1x256xf32>
    %140 = arith.minimumf %139, %138 : vector<1x256xf32>
    %cst_50 = arith.constant 1.000000e+00 : f32
    %141 = vector.broadcast %cst_50 : f32 to vector<1x256xf32>
    %142 = arith.addf %135, %141 : vector<1x256xf32>
    %cst_51 = arith.constant 0.000000e+00 : f32
    %cst_52 = arith.constant 1.700000e+01 : f32
    %143 = vector.broadcast %cst_51 : f32 to vector<1x256xf32>
    %144 = arith.maximumf %143, %142 : vector<1x256xf32>
    %145 = vector.broadcast %cst_52 : f32 to vector<1x256xf32>
    %146 = arith.minimumf %145, %144 : vector<1x256xf32>
    %cst_53 = arith.constant 0.000000e+00 : f32
    %cst_54 = arith.constant 1.700000e+01 : f32
    %147 = vector.broadcast %cst_53 : f32 to vector<1x256xf32>
    %148 = arith.maximumf %147, %136 : vector<1x256xf32>
    %149 = vector.broadcast %cst_54 : f32 to vector<1x256xf32>
    %150 = arith.minimumf %149, %148 : vector<1x256xf32>
    %cst_55 = arith.constant 1.000000e+00 : f32
    %151 = vector.broadcast %cst_55 : f32 to vector<1x256xf32>
    %152 = arith.addf %136, %151 : vector<1x256xf32>
    %cst_56 = arith.constant 0.000000e+00 : f32
    %cst_57 = arith.constant 1.700000e+01 : f32
    %153 = vector.broadcast %cst_56 : f32 to vector<1x256xf32>
    %154 = arith.maximumf %153, %152 : vector<1x256xf32>
    %155 = vector.broadcast %cst_57 : f32 to vector<1x256xf32>
    %156 = arith.minimumf %155, %154 : vector<1x256xf32>
    %cst_58 = arith.constant 0.000000e+00 : f32
    %cst_59 = arith.constant 1.700000e+01 : f32
    %157 = vector.broadcast %cst_58 : f32 to vector<1x256xf32>
    %158 = arith.maximumf %157, %133 : vector<1x256xf32>
    %159 = vector.broadcast %cst_59 : f32 to vector<1x256xf32>
    %160 = arith.minimumf %159, %158 : vector<1x256xf32>
    %cst_60 = arith.constant 0.000000e+00 : f32
    %cst_61 = arith.constant 1.700000e+01 : f32
    %161 = vector.broadcast %cst_60 : f32 to vector<1x256xf32>
    %162 = arith.maximumf %161, %134 : vector<1x256xf32>
    %163 = vector.broadcast %cst_61 : f32 to vector<1x256xf32>
    %164 = arith.minimumf %163, %162 : vector<1x256xf32>
    %165 = arith.subf %140, %160 : vector<1x256xf32>
    %cst_62 = arith.constant 1.000000e+00 : f32
    %166 = vector.broadcast %cst_62 : f32 to vector<1x256xf32>
    %167 = arith.addf %166, %165 : vector<1x256xf32>
    %168 = arith.subf %146, %160 : vector<1x256xf32>
    %cst_63 = arith.constant 1.000000e+00 : f32
    %169 = vector.broadcast %cst_63 : f32 to vector<1x256xf32>
    %170 = arith.subf %169, %168 : vector<1x256xf32>
    %171 = arith.subf %150, %164 : vector<1x256xf32>
    %cst_64 = arith.constant 1.000000e+00 : f32
    %172 = vector.broadcast %cst_64 : f32 to vector<1x256xf32>
    %173 = arith.addf %172, %171 : vector<1x256xf32>
    %174 = arith.subf %156, %164 : vector<1x256xf32>
    %cst_65 = arith.constant 1.000000e+00 : f32
    %175 = vector.broadcast %cst_65 : f32 to vector<1x256xf32>
    %176 = arith.subf %175, %174 : vector<1x256xf32>
    %177 = arith.mulf %167, %45 : vector<1x256xf32>
    %178 = arith.mulf %170, %45 : vector<1x256xf32>
    %179 = arith.fptosi %140 : vector<1x256xf32> to vector<1x256xi32>
    %180 = arith.fptosi %146 : vector<1x256xf32> to vector<1x256xi32>
    %181 = arith.fptosi %150 : vector<1x256xf32> to vector<1x256xi32>
    %182 = arith.fptosi %156 : vector<1x256xf32> to vector<1x256xi32>
    %183 = vector.broadcast %179 : vector<1x256xi32> to vector<24x256xi32>
    %184 = arith.cmpi eq, %15, %183 : vector<24x256xi32>
    %cst_66 = arith.constant 0.000000e+00 : f32
    %185 = vector.shape_cast %177 : vector<1x256xf32> to vector<1x256xf32>
    %186 = vector.broadcast %185 : vector<1x256xf32> to vector<24x256xf32>
    %187 = vector.broadcast %cst_66 : f32 to vector<24x256xf32>
    %188 = arith.select %184, %186, %187 : vector<24x256xi1>, vector<24x256xf32>
    %189 = vector.broadcast %180 : vector<1x256xi32> to vector<24x256xi32>
    %190 = arith.cmpi eq, %15, %189 : vector<24x256xi32>
    %cst_67 = arith.constant 0.000000e+00 : f32
    %191 = vector.shape_cast %178 : vector<1x256xf32> to vector<1x256xf32>
    %192 = vector.broadcast %191 : vector<1x256xf32> to vector<24x256xf32>
    %193 = vector.broadcast %cst_67 : f32 to vector<24x256xf32>
    %194 = arith.select %190, %192, %193 : vector<24x256xi1>, vector<24x256xf32>
    %195 = arith.addf %188, %194 : vector<24x256xf32>
    %196 = vector.broadcast %181 : vector<1x256xi32> to vector<24x256xi32>
    %197 = arith.cmpi eq, %16, %196 : vector<24x256xi32>
    %cst_68 = arith.constant 0.000000e+00 : f32
    %198 = vector.shape_cast %173 : vector<1x256xf32> to vector<1x256xf32>
    %199 = vector.broadcast %198 : vector<1x256xf32> to vector<24x256xf32>
    %200 = vector.broadcast %cst_68 : f32 to vector<24x256xf32>
    %201 = arith.select %197, %199, %200 : vector<24x256xi1>, vector<24x256xf32>
    %202 = vector.broadcast %182 : vector<1x256xi32> to vector<24x256xi32>
    %203 = arith.cmpi eq, %16, %202 : vector<24x256xi32>
    %cst_69 = arith.constant 0.000000e+00 : f32
    %204 = vector.shape_cast %176 : vector<1x256xf32> to vector<1x256xf32>
    %205 = vector.broadcast %204 : vector<1x256xf32> to vector<24x256xf32>
    %206 = vector.broadcast %cst_69 : f32 to vector<24x256xf32>
    %207 = arith.select %203, %205, %206 : vector<24x256xi1>, vector<24x256xf32>
    %208 = arith.addf %201, %207 : vector<24x256xf32>
    %c0_70 = arith.constant 0 : index
    %c192 = arith.constant 192 : index
    %c0_71 = arith.constant 0 : index
    %209 = vector.load %arg6[%c0_70, %c192, %c0_71] : memref<1x1728x24xf32, #tpu.memory_space<vmem>>, vector<1x192x24xf32>
    %210 = vector.shape_cast %209 : vector<1x192x24xf32> to vector<192x24xf32>
    %cst_72 = arith.constant dense<0.000000e+00> : vector<192x256xf32>
    %211 = tpu.matmul %210, %208, %cst_72 {dimension_numbers = #tpu.dot_dimension_numbers<[1], [0], [0], [1], [0, 0, 1, 1], [], []>} : vector<192x24xf32>, vector<24x256xf32>, vector<192x256xf32> -> vector<192x256xf32>
    %212 = vector.shape_cast %211 : vector<192x256xf32> to vector<8x24x256xf32>
    %213 = vector.shape_cast %195 : vector<24x256xf32> to vector<1x24x256xf32>
    %214 = vector.broadcast %213 : vector<1x24x256xf32> to vector<8x24x256xf32>
    %215 = arith.mulf %212, %214 : vector<8x24x256xf32>
    %cst_73 = arith.constant dense<0.000000e+00> : vector<8x256xf32>
    %216 = vector.multi_reduction <add>, %215, %cst_73 [1] : vector<8x24x256xf32> to vector<8x256xf32>
    %217 = arith.addf %132, %216 : vector<8x256xf32>
    %218 = vector.extract_strided_slice %12 {offsets = [7, 0], sizes = [1, 256], strides = [1, 1]} : vector<18x256xf32> to vector<1x256xf32>
    %219 = vector.extract_strided_slice %12 {offsets = [16, 0], sizes = [1, 256], strides = [1, 1]} : vector<18x256xf32> to vector<1x256xf32>
    %220 = math.floor %218 : vector<1x256xf32>
    %221 = math.floor %219 : vector<1x256xf32>
    %cst_74 = arith.constant 0.000000e+00 : f32
    %cst_75 = arith.constant 1.700000e+01 : f32
    %222 = vector.broadcast %cst_74 : f32 to vector<1x256xf32>
    %223 = arith.maximumf %222, %220 : vector<1x256xf32>
    %224 = vector.broadcast %cst_75 : f32 to vector<1x256xf32>
    %225 = arith.minimumf %224, %223 : vector<1x256xf32>
    %cst_76 = arith.constant 1.000000e+00 : f32
    %226 = vector.broadcast %cst_76 : f32 to vector<1x256xf32>
    %227 = arith.addf %220, %226 : vector<1x256xf32>
    %cst_77 = arith.constant 0.000000e+00 : f32
    %cst_78 = arith.constant 1.700000e+01 : f32
    %228 = vector.broadcast %cst_77 : f32 to vector<1x256xf32>
    %229 = arith.maximumf %228, %227 : vector<1x256xf32>
    %230 = vector.broadcast %cst_78 : f32 to vector<1x256xf32>
    %231 = arith.minimumf %230, %229 : vector<1x256xf32>
    %cst_79 = arith.constant 0.000000e+00 : f32
    %cst_80 = arith.constant 1.700000e+01 : f32
    %232 = vector.broadcast %cst_79 : f32 to vector<1x256xf32>
    %233 = arith.maximumf %232, %221 : vector<1x256xf32>
    %234 = vector.broadcast %cst_80 : f32 to vector<1x256xf32>
    %235 = arith.minimumf %234, %233 : vector<1x256xf32>
    %cst_81 = arith.constant 1.000000e+00 : f32
    %236 = vector.broadcast %cst_81 : f32 to vector<1x256xf32>
    %237 = arith.addf %221, %236 : vector<1x256xf32>
    %cst_82 = arith.constant 0.000000e+00 : f32
    %cst_83 = arith.constant 1.700000e+01 : f32
    %238 = vector.broadcast %cst_82 : f32 to vector<1x256xf32>
    %239 = arith.maximumf %238, %237 : vector<1x256xf32>
    %240 = vector.broadcast %cst_83 : f32 to vector<1x256xf32>
    %241 = arith.minimumf %240, %239 : vector<1x256xf32>
    %cst_84 = arith.constant 0.000000e+00 : f32
    %cst_85 = arith.constant 1.700000e+01 : f32
    %242 = vector.broadcast %cst_84 : f32 to vector<1x256xf32>
    %243 = arith.maximumf %242, %218 : vector<1x256xf32>
    %244 = vector.broadcast %cst_85 : f32 to vector<1x256xf32>
    %245 = arith.minimumf %244, %243 : vector<1x256xf32>
    %cst_86 = arith.constant 0.000000e+00 : f32
    %cst_87 = arith.constant 1.700000e+01 : f32
    %246 = vector.broadcast %cst_86 : f32 to vector<1x256xf32>
    %247 = arith.maximumf %246, %219 : vector<1x256xf32>
    %248 = vector.broadcast %cst_87 : f32 to vector<1x256xf32>
    %249 = arith.minimumf %248, %247 : vector<1x256xf32>
    %250 = arith.subf %225, %245 : vector<1x256xf32>
    %cst_88 = arith.constant 1.000000e+00 : f32
    %251 = vector.broadcast %cst_88 : f32 to vector<1x256xf32>
    %252 = arith.addf %251, %250 : vector<1x256xf32>
    %253 = arith.subf %231, %245 : vector<1x256xf32>
    %cst_89 = arith.constant 1.000000e+00 : f32
    %254 = vector.broadcast %cst_89 : f32 to vector<1x256xf32>
    %255 = arith.subf %254, %253 : vector<1x256xf32>
    %256 = arith.subf %235, %249 : vector<1x256xf32>
    %cst_90 = arith.constant 1.000000e+00 : f32
    %257 = vector.broadcast %cst_90 : f32 to vector<1x256xf32>
    %258 = arith.addf %257, %256 : vector<1x256xf32>
    %259 = arith.subf %241, %249 : vector<1x256xf32>
    %cst_91 = arith.constant 1.000000e+00 : f32
    %260 = vector.broadcast %cst_91 : f32 to vector<1x256xf32>
    %261 = arith.subf %260, %259 : vector<1x256xf32>
    %262 = arith.mulf %252, %45 : vector<1x256xf32>
    %263 = arith.mulf %255, %45 : vector<1x256xf32>
    %264 = arith.fptosi %225 : vector<1x256xf32> to vector<1x256xi32>
    %265 = arith.fptosi %231 : vector<1x256xf32> to vector<1x256xi32>
    %266 = arith.fptosi %235 : vector<1x256xf32> to vector<1x256xi32>
    %267 = arith.fptosi %241 : vector<1x256xf32> to vector<1x256xi32>
    %268 = vector.broadcast %264 : vector<1x256xi32> to vector<24x256xi32>
    %269 = arith.cmpi eq, %15, %268 : vector<24x256xi32>
    %cst_92 = arith.constant 0.000000e+00 : f32
    %270 = vector.shape_cast %262 : vector<1x256xf32> to vector<1x256xf32>
    %271 = vector.broadcast %270 : vector<1x256xf32> to vector<24x256xf32>
    %272 = vector.broadcast %cst_92 : f32 to vector<24x256xf32>
    %273 = arith.select %269, %271, %272 : vector<24x256xi1>, vector<24x256xf32>
    %274 = vector.broadcast %265 : vector<1x256xi32> to vector<24x256xi32>
    %275 = arith.cmpi eq, %15, %274 : vector<24x256xi32>
    %cst_93 = arith.constant 0.000000e+00 : f32
    %276 = vector.shape_cast %263 : vector<1x256xf32> to vector<1x256xf32>
    %277 = vector.broadcast %276 : vector<1x256xf32> to vector<24x256xf32>
    %278 = vector.broadcast %cst_93 : f32 to vector<24x256xf32>
    %279 = arith.select %275, %277, %278 : vector<24x256xi1>, vector<24x256xf32>
    %280 = arith.addf %273, %279 : vector<24x256xf32>
    %281 = vector.broadcast %266 : vector<1x256xi32> to vector<24x256xi32>
    %282 = arith.cmpi eq, %16, %281 : vector<24x256xi32>
    %cst_94 = arith.constant 0.000000e+00 : f32
    %283 = vector.shape_cast %258 : vector<1x256xf32> to vector<1x256xf32>
    %284 = vector.broadcast %283 : vector<1x256xf32> to vector<24x256xf32>
    %285 = vector.broadcast %cst_94 : f32 to vector<24x256xf32>
    %286 = arith.select %282, %284, %285 : vector<24x256xi1>, vector<24x256xf32>
    %287 = vector.broadcast %267 : vector<1x256xi32> to vector<24x256xi32>
    %288 = arith.cmpi eq, %16, %287 : vector<24x256xi32>
    %cst_95 = arith.constant 0.000000e+00 : f32
    %289 = vector.shape_cast %261 : vector<1x256xf32> to vector<1x256xf32>
    %290 = vector.broadcast %289 : vector<1x256xf32> to vector<24x256xf32>
    %291 = vector.broadcast %cst_95 : f32 to vector<24x256xf32>
    %292 = arith.select %288, %290, %291 : vector<24x256xi1>, vector<24x256xf32>
    %293 = arith.addf %286, %292 : vector<24x256xf32>
    %c0_96 = arith.constant 0 : index
    %c384 = arith.constant 384 : index
    %c0_97 = arith.constant 0 : index
    %294 = vector.load %arg6[%c0_96, %c384, %c0_97] : memref<1x1728x24xf32, #tpu.memory_space<vmem>>, vector<1x192x24xf32>
    %295 = vector.shape_cast %294 : vector<1x192x24xf32> to vector<192x24xf32>
    %cst_98 = arith.constant dense<0.000000e+00> : vector<192x256xf32>
    %296 = tpu.matmul %295, %293, %cst_98 {dimension_numbers = #tpu.dot_dimension_numbers<[1], [0], [0], [1], [0, 0, 1, 1], [], []>} : vector<192x24xf32>, vector<24x256xf32>, vector<192x256xf32> -> vector<192x256xf32>
    %297 = vector.shape_cast %296 : vector<192x256xf32> to vector<8x24x256xf32>
    %298 = vector.shape_cast %280 : vector<24x256xf32> to vector<1x24x256xf32>
    %299 = vector.broadcast %298 : vector<1x24x256xf32> to vector<8x24x256xf32>
    %300 = arith.mulf %297, %299 : vector<8x24x256xf32>
    %cst_99 = arith.constant dense<0.000000e+00> : vector<8x256xf32>
    %301 = vector.multi_reduction <add>, %300, %cst_99 [1] : vector<8x24x256xf32> to vector<8x256xf32>
    %302 = arith.addf %217, %301 : vector<8x256xf32>
    %303 = vector.extract_strided_slice %11 {offsets = [2, 0], sizes = [1, 256], strides = [1, 1]} : vector<18x256xf32> to vector<1x256xf32>
    %304 = vector.extract_strided_slice %11 {offsets = [11, 0], sizes = [1, 256], strides = [1, 1]} : vector<18x256xf32> to vector<1x256xf32>
    %305 = math.floor %303 : vector<1x256xf32>
    %306 = math.floor %304 : vector<1x256xf32>
    %cst_100 = arith.constant 0.000000e+00 : f32
    %cst_101 = arith.constant 1.700000e+01 : f32
    %307 = vector.broadcast %cst_100 : f32 to vector<1x256xf32>
    %308 = arith.maximumf %307, %305 : vector<1x256xf32>
    %309 = vector.broadcast %cst_101 : f32 to vector<1x256xf32>
    %310 = arith.minimumf %309, %308 : vector<1x256xf32>
    %cst_102 = arith.constant 1.000000e+00 : f32
    %311 = vector.broadcast %cst_102 : f32 to vector<1x256xf32>
    %312 = arith.addf %305, %311 : vector<1x256xf32>
    %cst_103 = arith.constant 0.000000e+00 : f32
    %cst_104 = arith.constant 1.700000e+01 : f32
    %313 = vector.broadcast %cst_103 : f32 to vector<1x256xf32>
    %314 = arith.maximumf %313, %312 : vector<1x256xf32>
    %315 = vector.broadcast %cst_104 : f32 to vector<1x256xf32>
    %316 = arith.minimumf %315, %314 : vector<1x256xf32>
    %cst_105 = arith.constant 0.000000e+00 : f32
    %cst_106 = arith.constant 1.700000e+01 : f32
    %317 = vector.broadcast %cst_105 : f32 to vector<1x256xf32>
    %318 = arith.maximumf %317, %306 : vector<1x256xf32>
    %319 = vector.broadcast %cst_106 : f32 to vector<1x256xf32>
    %320 = arith.minimumf %319, %318 : vector<1x256xf32>
    %cst_107 = arith.constant 1.000000e+00 : f32
    %321 = vector.broadcast %cst_107 : f32 to vector<1x256xf32>
    %322 = arith.addf %306, %321 : vector<1x256xf32>
    %cst_108 = arith.constant 0.000000e+00 : f32
    %cst_109 = arith.constant 1.700000e+01 : f32
    %323 = vector.broadcast %cst_108 : f32 to vector<1x256xf32>
    %324 = arith.maximumf %323, %322 : vector<1x256xf32>
    %325 = vector.broadcast %cst_109 : f32 to vector<1x256xf32>
    %326 = arith.minimumf %325, %324 : vector<1x256xf32>
    %cst_110 = arith.constant 0.000000e+00 : f32
    %cst_111 = arith.constant 1.700000e+01 : f32
    %327 = vector.broadcast %cst_110 : f32 to vector<1x256xf32>
    %328 = arith.maximumf %327, %303 : vector<1x256xf32>
    %329 = vector.broadcast %cst_111 : f32 to vector<1x256xf32>
    %330 = arith.minimumf %329, %328 : vector<1x256xf32>
    %cst_112 = arith.constant 0.000000e+00 : f32
    %cst_113 = arith.constant 1.700000e+01 : f32
    %331 = vector.broadcast %cst_112 : f32 to vector<1x256xf32>
    %332 = arith.maximumf %331, %304 : vector<1x256xf32>
    %333 = vector.broadcast %cst_113 : f32 to vector<1x256xf32>
    %334 = arith.minimumf %333, %332 : vector<1x256xf32>
    %335 = arith.subf %310, %330 : vector<1x256xf32>
    %cst_114 = arith.constant 1.000000e+00 : f32
    %336 = vector.broadcast %cst_114 : f32 to vector<1x256xf32>
    %337 = arith.addf %336, %335 : vector<1x256xf32>
    %338 = arith.subf %316, %330 : vector<1x256xf32>
    %cst_115 = arith.constant 1.000000e+00 : f32
    %339 = vector.broadcast %cst_115 : f32 to vector<1x256xf32>
    %340 = arith.subf %339, %338 : vector<1x256xf32>
    %341 = arith.subf %320, %334 : vector<1x256xf32>
    %cst_116 = arith.constant 1.000000e+00 : f32
    %342 = vector.broadcast %cst_116 : f32 to vector<1x256xf32>
    %343 = arith.addf %342, %341 : vector<1x256xf32>
    %344 = arith.subf %326, %334 : vector<1x256xf32>
    %cst_117 = arith.constant 1.000000e+00 : f32
    %345 = vector.broadcast %cst_117 : f32 to vector<1x256xf32>
    %346 = arith.subf %345, %344 : vector<1x256xf32>
    %347 = arith.mulf %337, %37 : vector<1x256xf32>
    %348 = arith.mulf %340, %37 : vector<1x256xf32>
    %349 = arith.fptosi %310 : vector<1x256xf32> to vector<1x256xi32>
    %350 = arith.fptosi %316 : vector<1x256xf32> to vector<1x256xi32>
    %351 = arith.fptosi %320 : vector<1x256xf32> to vector<1x256xi32>
    %352 = arith.fptosi %326 : vector<1x256xf32> to vector<1x256xi32>
    %353 = vector.broadcast %349 : vector<1x256xi32> to vector<24x256xi32>
    %354 = arith.cmpi eq, %15, %353 : vector<24x256xi32>
    %cst_118 = arith.constant 0.000000e+00 : f32
    %355 = vector.shape_cast %347 : vector<1x256xf32> to vector<1x256xf32>
    %356 = vector.broadcast %355 : vector<1x256xf32> to vector<24x256xf32>
    %357 = vector.broadcast %cst_118 : f32 to vector<24x256xf32>
    %358 = arith.select %354, %356, %357 : vector<24x256xi1>, vector<24x256xf32>
    %359 = vector.broadcast %350 : vector<1x256xi32> to vector<24x256xi32>
    %360 = arith.cmpi eq, %15, %359 : vector<24x256xi32>
    %cst_119 = arith.constant 0.000000e+00 : f32
    %361 = vector.shape_cast %348 : vector<1x256xf32> to vector<1x256xf32>
    %362 = vector.broadcast %361 : vector<1x256xf32> to vector<24x256xf32>
    %363 = vector.broadcast %cst_119 : f32 to vector<24x256xf32>
    %364 = arith.select %360, %362, %363 : vector<24x256xi1>, vector<24x256xf32>
    %365 = arith.addf %358, %364 : vector<24x256xf32>
    %366 = vector.broadcast %351 : vector<1x256xi32> to vector<24x256xi32>
    %367 = arith.cmpi eq, %16, %366 : vector<24x256xi32>
    %cst_120 = arith.constant 0.000000e+00 : f32
    %368 = vector.shape_cast %343 : vector<1x256xf32> to vector<1x256xf32>
    %369 = vector.broadcast %368 : vector<1x256xf32> to vector<24x256xf32>
    %370 = vector.broadcast %cst_120 : f32 to vector<24x256xf32>
    %371 = arith.select %367, %369, %370 : vector<24x256xi1>, vector<24x256xf32>
    %372 = vector.broadcast %352 : vector<1x256xi32> to vector<24x256xi32>
    %373 = arith.cmpi eq, %16, %372 : vector<24x256xi32>
    %cst_121 = arith.constant 0.000000e+00 : f32
    %374 = vector.shape_cast %346 : vector<1x256xf32> to vector<1x256xf32>
    %375 = vector.broadcast %374 : vector<1x256xf32> to vector<24x256xf32>
    %376 = vector.broadcast %cst_121 : f32 to vector<24x256xf32>
    %377 = arith.select %373, %375, %376 : vector<24x256xi1>, vector<24x256xf32>
    %378 = arith.addf %371, %377 : vector<24x256xf32>
    %c0_122 = arith.constant 0 : index
    %c576 = arith.constant 576 : index
    %c0_123 = arith.constant 0 : index
    %379 = vector.load %arg6[%c0_122, %c576, %c0_123] : memref<1x1728x24xf32, #tpu.memory_space<vmem>>, vector<1x192x24xf32>
    %380 = vector.shape_cast %379 : vector<1x192x24xf32> to vector<192x24xf32>
    %cst_124 = arith.constant dense<0.000000e+00> : vector<192x256xf32>
    %381 = tpu.matmul %380, %378, %cst_124 {dimension_numbers = #tpu.dot_dimension_numbers<[1], [0], [0], [1], [0, 0, 1, 1], [], []>} : vector<192x24xf32>, vector<24x256xf32>, vector<192x256xf32> -> vector<192x256xf32>
    %382 = vector.shape_cast %381 : vector<192x256xf32> to vector<8x24x256xf32>
    %383 = vector.shape_cast %365 : vector<24x256xf32> to vector<1x24x256xf32>
    %384 = vector.broadcast %383 : vector<1x24x256xf32> to vector<8x24x256xf32>
    %385 = arith.mulf %382, %384 : vector<8x24x256xf32>
    %cst_125 = arith.constant dense<0.000000e+00> : vector<8x256xf32>
    %386 = vector.multi_reduction <add>, %385, %cst_125 [1] : vector<8x24x256xf32> to vector<8x256xf32>
    %387 = arith.addf %302, %386 : vector<8x256xf32>
    %388 = vector.extract_strided_slice %10 {offsets = [0, 0], sizes = [1, 256], strides = [1, 1]} : vector<18x256xf32> to vector<1x256xf32>
    %389 = vector.extract_strided_slice %10 {offsets = [9, 0], sizes = [1, 256], strides = [1, 1]} : vector<18x256xf32> to vector<1x256xf32>
    %390 = math.floor %388 : vector<1x256xf32>
    %391 = math.floor %389 : vector<1x256xf32>
    %cst_126 = arith.constant 0.000000e+00 : f32
    %cst_127 = arith.constant 1.700000e+01 : f32
    %392 = vector.broadcast %cst_126 : f32 to vector<1x256xf32>
    %393 = arith.maximumf %392, %390 : vector<1x256xf32>
    %394 = vector.broadcast %cst_127 : f32 to vector<1x256xf32>
    %395 = arith.minimumf %394, %393 : vector<1x256xf32>
    %cst_128 = arith.constant 1.000000e+00 : f32
    %396 = vector.broadcast %cst_128 : f32 to vector<1x256xf32>
    %397 = arith.addf %390, %396 : vector<1x256xf32>
    %cst_129 = arith.constant 0.000000e+00 : f32
    %cst_130 = arith.constant 1.700000e+01 : f32
    %398 = vector.broadcast %cst_129 : f32 to vector<1x256xf32>
    %399 = arith.maximumf %398, %397 : vector<1x256xf32>
    %400 = vector.broadcast %cst_130 : f32 to vector<1x256xf32>
    %401 = arith.minimumf %400, %399 : vector<1x256xf32>
    %cst_131 = arith.constant 0.000000e+00 : f32
    %cst_132 = arith.constant 1.700000e+01 : f32
    %402 = vector.broadcast %cst_131 : f32 to vector<1x256xf32>
    %403 = arith.maximumf %402, %391 : vector<1x256xf32>
    %404 = vector.broadcast %cst_132 : f32 to vector<1x256xf32>
    %405 = arith.minimumf %404, %403 : vector<1x256xf32>
    %cst_133 = arith.constant 1.000000e+00 : f32
    %406 = vector.broadcast %cst_133 : f32 to vector<1x256xf32>
    %407 = arith.addf %391, %406 : vector<1x256xf32>
    %cst_134 = arith.constant 0.000000e+00 : f32
    %cst_135 = arith.constant 1.700000e+01 : f32
    %408 = vector.broadcast %cst_134 : f32 to vector<1x256xf32>
    %409 = arith.maximumf %408, %407 : vector<1x256xf32>
    %410 = vector.broadcast %cst_135 : f32 to vector<1x256xf32>
    %411 = arith.minimumf %410, %409 : vector<1x256xf32>
    %cst_136 = arith.constant 0.000000e+00 : f32
    %cst_137 = arith.constant 1.700000e+01 : f32
    %412 = vector.broadcast %cst_136 : f32 to vector<1x256xf32>
    %413 = arith.maximumf %412, %388 : vector<1x256xf32>
    %414 = vector.broadcast %cst_137 : f32 to vector<1x256xf32>
    %415 = arith.minimumf %414, %413 : vector<1x256xf32>
    %cst_138 = arith.constant 0.000000e+00 : f32
    %cst_139 = arith.constant 1.700000e+01 : f32
    %416 = vector.broadcast %cst_138 : f32 to vector<1x256xf32>
    %417 = arith.maximumf %416, %389 : vector<1x256xf32>
    %418 = vector.broadcast %cst_139 : f32 to vector<1x256xf32>
    %419 = arith.minimumf %418, %417 : vector<1x256xf32>
    %420 = arith.subf %395, %415 : vector<1x256xf32>
    %cst_140 = arith.constant 1.000000e+00 : f32
    %421 = vector.broadcast %cst_140 : f32 to vector<1x256xf32>
    %422 = arith.addf %421, %420 : vector<1x256xf32>
    %423 = arith.subf %401, %415 : vector<1x256xf32>
    %cst_141 = arith.constant 1.000000e+00 : f32
    %424 = vector.broadcast %cst_141 : f32 to vector<1x256xf32>
    %425 = arith.subf %424, %423 : vector<1x256xf32>
    %426 = arith.subf %405, %419 : vector<1x256xf32>
    %cst_142 = arith.constant 1.000000e+00 : f32
    %427 = vector.broadcast %cst_142 : f32 to vector<1x256xf32>
    %428 = arith.addf %427, %426 : vector<1x256xf32>
    %429 = arith.subf %411, %419 : vector<1x256xf32>
    %cst_143 = arith.constant 1.000000e+00 : f32
    %430 = vector.broadcast %cst_143 : f32 to vector<1x256xf32>
    %431 = arith.subf %430, %429 : vector<1x256xf32>
    %432 = arith.fptosi %395 : vector<1x256xf32> to vector<1x256xi32>
    %433 = arith.fptosi %401 : vector<1x256xf32> to vector<1x256xi32>
    %434 = arith.fptosi %405 : vector<1x256xf32> to vector<1x256xi32>
    %435 = arith.fptosi %411 : vector<1x256xf32> to vector<1x256xi32>
    %436 = vector.broadcast %432 : vector<1x256xi32> to vector<24x256xi32>
    %437 = arith.cmpi eq, %15, %436 : vector<24x256xi32>
    %cst_144 = arith.constant 0.000000e+00 : f32
    %438 = vector.shape_cast %422 : vector<1x256xf32> to vector<1x256xf32>
    %439 = vector.broadcast %438 : vector<1x256xf32> to vector<24x256xf32>
    %440 = vector.broadcast %cst_144 : f32 to vector<24x256xf32>
    %441 = arith.select %437, %439, %440 : vector<24x256xi1>, vector<24x256xf32>
    %442 = vector.broadcast %433 : vector<1x256xi32> to vector<24x256xi32>
    %443 = arith.cmpi eq, %15, %442 : vector<24x256xi32>
    %cst_145 = arith.constant 0.000000e+00 : f32
    %444 = vector.shape_cast %425 : vector<1x256xf32> to vector<1x256xf32>
    %445 = vector.broadcast %444 : vector<1x256xf32> to vector<24x256xf32>
    %446 = vector.broadcast %cst_145 : f32 to vector<24x256xf32>
    %447 = arith.select %443, %445, %446 : vector<24x256xi1>, vector<24x256xf32>
    %448 = arith.addf %441, %447 : vector<24x256xf32>
    %449 = vector.broadcast %434 : vector<1x256xi32> to vector<24x256xi32>
    %450 = arith.cmpi eq, %16, %449 : vector<24x256xi32>
    %cst_146 = arith.constant 0.000000e+00 : f32
    %451 = vector.shape_cast %428 : vector<1x256xf32> to vector<1x256xf32>
    %452 = vector.broadcast %451 : vector<1x256xf32> to vector<24x256xf32>
    %453 = vector.broadcast %cst_146 : f32 to vector<24x256xf32>
    %454 = arith.select %450, %452, %453 : vector<24x256xi1>, vector<24x256xf32>
    %455 = vector.broadcast %435 : vector<1x256xi32> to vector<24x256xi32>
    %456 = arith.cmpi eq, %16, %455 : vector<24x256xi32>
    %cst_147 = arith.constant 0.000000e+00 : f32
    %457 = vector.shape_cast %431 : vector<1x256xf32> to vector<1x256xf32>
    %458 = vector.broadcast %457 : vector<1x256xf32> to vector<24x256xf32>
    %459 = vector.broadcast %cst_147 : f32 to vector<24x256xf32>
    %460 = arith.select %456, %458, %459 : vector<24x256xi1>, vector<24x256xf32>
    %461 = arith.addf %454, %460 : vector<24x256xf32>
    %c0_148 = arith.constant 0 : index
    %c768 = arith.constant 768 : index
    %c0_149 = arith.constant 0 : index
    %462 = vector.load %arg6[%c0_148, %c768, %c0_149] : memref<1x1728x24xf32, #tpu.memory_space<vmem>>, vector<1x192x24xf32>
    %463 = vector.shape_cast %462 : vector<1x192x24xf32> to vector<192x24xf32>
    %cst_150 = arith.constant dense<0.000000e+00> : vector<192x256xf32>
    %464 = tpu.matmul %463, %461, %cst_150 {dimension_numbers = #tpu.dot_dimension_numbers<[1], [0], [0], [1], [0, 0, 1, 1], [], []>} : vector<192x24xf32>, vector<24x256xf32>, vector<192x256xf32> -> vector<192x256xf32>
    %465 = vector.shape_cast %464 : vector<192x256xf32> to vector<8x24x256xf32>
    %466 = vector.shape_cast %448 : vector<24x256xf32> to vector<1x24x256xf32>
    %467 = vector.broadcast %466 : vector<1x24x256xf32> to vector<8x24x256xf32>
    %468 = arith.mulf %465, %467 : vector<8x24x256xf32>
    %cst_151 = arith.constant dense<0.000000e+00> : vector<8x256xf32>
    %469 = vector.multi_reduction <add>, %468, %cst_151 [1] : vector<8x24x256xf32> to vector<8x256xf32>
    %470 = arith.addf %387, %469 : vector<8x256xf32>
    %471 = vector.extract_strided_slice %10 {offsets = [1, 0], sizes = [1, 256], strides = [1, 1]} : vector<18x256xf32> to vector<1x256xf32>
    %472 = vector.extract_strided_slice %10 {offsets = [10, 0], sizes = [1, 256], strides = [1, 1]} : vector<18x256xf32> to vector<1x256xf32>
    %473 = math.floor %471 : vector<1x256xf32>
    %474 = math.floor %472 : vector<1x256xf32>
    %cst_152 = arith.constant 0.000000e+00 : f32
    %cst_153 = arith.constant 1.700000e+01 : f32
    %475 = vector.broadcast %cst_152 : f32 to vector<1x256xf32>
    %476 = arith.maximumf %475, %473 : vector<1x256xf32>
    %477 = vector.broadcast %cst_153 : f32 to vector<1x256xf32>
    %478 = arith.minimumf %477, %476 : vector<1x256xf32>
    %cst_154 = arith.constant 1.000000e+00 : f32
    %479 = vector.broadcast %cst_154 : f32 to vector<1x256xf32>
    %480 = arith.addf %473, %479 : vector<1x256xf32>
    %cst_155 = arith.constant 0.000000e+00 : f32
    %cst_156 = arith.constant 1.700000e+01 : f32
    %481 = vector.broadcast %cst_155 : f32 to vector<1x256xf32>
    %482 = arith.maximumf %481, %480 : vector<1x256xf32>
    %483 = vector.broadcast %cst_156 : f32 to vector<1x256xf32>
    %484 = arith.minimumf %483, %482 : vector<1x256xf32>
    %cst_157 = arith.constant 0.000000e+00 : f32
    %cst_158 = arith.constant 1.700000e+01 : f32
    %485 = vector.broadcast %cst_157 : f32 to vector<1x256xf32>
    %486 = arith.maximumf %485, %474 : vector<1x256xf32>
    %487 = vector.broadcast %cst_158 : f32 to vector<1x256xf32>
    %488 = arith.minimumf %487, %486 : vector<1x256xf32>
    %cst_159 = arith.constant 1.000000e+00 : f32
    %489 = vector.broadcast %cst_159 : f32 to vector<1x256xf32>
    %490 = arith.addf %474, %489 : vector<1x256xf32>
    %cst_160 = arith.constant 0.000000e+00 : f32
    %cst_161 = arith.constant 1.700000e+01 : f32
    %491 = vector.broadcast %cst_160 : f32 to vector<1x256xf32>
    %492 = arith.maximumf %491, %490 : vector<1x256xf32>
    %493 = vector.broadcast %cst_161 : f32 to vector<1x256xf32>
    %494 = arith.minimumf %493, %492 : vector<1x256xf32>
    %cst_162 = arith.constant 0.000000e+00 : f32
    %cst_163 = arith.constant 1.700000e+01 : f32
    %495 = vector.broadcast %cst_162 : f32 to vector<1x256xf32>
    %496 = arith.maximumf %495, %471 : vector<1x256xf32>
    %497 = vector.broadcast %cst_163 : f32 to vector<1x256xf32>
    %498 = arith.minimumf %497, %496 : vector<1x256xf32>
    %cst_164 = arith.constant 0.000000e+00 : f32
    %cst_165 = arith.constant 1.700000e+01 : f32
    %499 = vector.broadcast %cst_164 : f32 to vector<1x256xf32>
    %500 = arith.maximumf %499, %472 : vector<1x256xf32>
    %501 = vector.broadcast %cst_165 : f32 to vector<1x256xf32>
    %502 = arith.minimumf %501, %500 : vector<1x256xf32>
    %503 = arith.subf %478, %498 : vector<1x256xf32>
    %cst_166 = arith.constant 1.000000e+00 : f32
    %504 = vector.broadcast %cst_166 : f32 to vector<1x256xf32>
    %505 = arith.addf %504, %503 : vector<1x256xf32>
    %506 = arith.subf %484, %498 : vector<1x256xf32>
    %cst_167 = arith.constant 1.000000e+00 : f32
    %507 = vector.broadcast %cst_167 : f32 to vector<1x256xf32>
    %508 = arith.subf %507, %506 : vector<1x256xf32>
    %509 = arith.subf %488, %502 : vector<1x256xf32>
    %cst_168 = arith.constant 1.000000e+00 : f32
    %510 = vector.broadcast %cst_168 : f32 to vector<1x256xf32>
    %511 = arith.addf %510, %509 : vector<1x256xf32>
    %512 = arith.subf %494, %502 : vector<1x256xf32>
    %cst_169 = arith.constant 1.000000e+00 : f32
    %513 = vector.broadcast %cst_169 : f32 to vector<1x256xf32>
    %514 = arith.subf %513, %512 : vector<1x256xf32>
    %515 = arith.fptosi %478 : vector<1x256xf32> to vector<1x256xi32>
    %516 = arith.fptosi %484 : vector<1x256xf32> to vector<1x256xi32>
    %517 = arith.fptosi %488 : vector<1x256xf32> to vector<1x256xi32>
    %518 = arith.fptosi %494 : vector<1x256xf32> to vector<1x256xi32>
    %519 = vector.broadcast %515 : vector<1x256xi32> to vector<24x256xi32>
    %520 = arith.cmpi eq, %15, %519 : vector<24x256xi32>
    %cst_170 = arith.constant 0.000000e+00 : f32
    %521 = vector.shape_cast %505 : vector<1x256xf32> to vector<1x256xf32>
    %522 = vector.broadcast %521 : vector<1x256xf32> to vector<24x256xf32>
    %523 = vector.broadcast %cst_170 : f32 to vector<24x256xf32>
    %524 = arith.select %520, %522, %523 : vector<24x256xi1>, vector<24x256xf32>
    %525 = vector.broadcast %516 : vector<1x256xi32> to vector<24x256xi32>
    %526 = arith.cmpi eq, %15, %525 : vector<24x256xi32>
    %cst_171 = arith.constant 0.000000e+00 : f32
    %527 = vector.shape_cast %508 : vector<1x256xf32> to vector<1x256xf32>
    %528 = vector.broadcast %527 : vector<1x256xf32> to vector<24x256xf32>
    %529 = vector.broadcast %cst_171 : f32 to vector<24x256xf32>
    %530 = arith.select %526, %528, %529 : vector<24x256xi1>, vector<24x256xf32>
    %531 = arith.addf %524, %530 : vector<24x256xf32>
    %532 = vector.broadcast %517 : vector<1x256xi32> to vector<24x256xi32>
    %533 = arith.cmpi eq, %16, %532 : vector<24x256xi32>
    %cst_172 = arith.constant 0.000000e+00 : f32
    %534 = vector.shape_cast %511 : vector<1x256xf32> to vector<1x256xf32>
    %535 = vector.broadcast %534 : vector<1x256xf32> to vector<24x256xf32>
    %536 = vector.broadcast %cst_172 : f32 to vector<24x256xf32>
    %537 = arith.select %533, %535, %536 : vector<24x256xi1>, vector<24x256xf32>
    %538 = vector.broadcast %518 : vector<1x256xi32> to vector<24x256xi32>
    %539 = arith.cmpi eq, %16, %538 : vector<24x256xi32>
    %cst_173 = arith.constant 0.000000e+00 : f32
    %540 = vector.shape_cast %514 : vector<1x256xf32> to vector<1x256xf32>
    %541 = vector.broadcast %540 : vector<1x256xf32> to vector<24x256xf32>
    %542 = vector.broadcast %cst_173 : f32 to vector<24x256xf32>
    %543 = arith.select %539, %541, %542 : vector<24x256xi1>, vector<24x256xf32>
    %544 = arith.addf %537, %543 : vector<24x256xf32>
    %c0_174 = arith.constant 0 : index
    %c960 = arith.constant 960 : index
    %c0_175 = arith.constant 0 : index
    %545 = vector.load %arg6[%c0_174, %c960, %c0_175] : memref<1x1728x24xf32, #tpu.memory_space<vmem>>, vector<1x192x24xf32>
    %546 = vector.shape_cast %545 : vector<1x192x24xf32> to vector<192x24xf32>
    %cst_176 = arith.constant dense<0.000000e+00> : vector<192x256xf32>
    %547 = tpu.matmul %546, %544, %cst_176 {dimension_numbers = #tpu.dot_dimension_numbers<[1], [0], [0], [1], [0, 0, 1, 1], [], []>} : vector<192x24xf32>, vector<24x256xf32>, vector<192x256xf32> -> vector<192x256xf32>
    %548 = vector.shape_cast %547 : vector<192x256xf32> to vector<8x24x256xf32>
    %549 = vector.shape_cast %531 : vector<24x256xf32> to vector<1x24x256xf32>
    %550 = vector.broadcast %549 : vector<1x24x256xf32> to vector<8x24x256xf32>
    %551 = arith.mulf %548, %550 : vector<8x24x256xf32>
    %cst_177 = arith.constant dense<0.000000e+00> : vector<8x256xf32>
    %552 = vector.multi_reduction <add>, %551, %cst_177 [1] : vector<8x24x256xf32> to vector<8x256xf32>
    %553 = arith.addf %470, %552 : vector<8x256xf32>
    %554 = vector.extract_strided_slice %11 {offsets = [5, 0], sizes = [1, 256], strides = [1, 1]} : vector<18x256xf32> to vector<1x256xf32>
    %555 = vector.extract_strided_slice %11 {offsets = [14, 0], sizes = [1, 256], strides = [1, 1]} : vector<18x256xf32> to vector<1x256xf32>
    %556 = math.floor %554 : vector<1x256xf32>
    %557 = math.floor %555 : vector<1x256xf32>
    %cst_178 = arith.constant 0.000000e+00 : f32
    %cst_179 = arith.constant 1.700000e+01 : f32
    %558 = vector.broadcast %cst_178 : f32 to vector<1x256xf32>
    %559 = arith.maximumf %558, %556 : vector<1x256xf32>
    %560 = vector.broadcast %cst_179 : f32 to vector<1x256xf32>
    %561 = arith.minimumf %560, %559 : vector<1x256xf32>
    %cst_180 = arith.constant 1.000000e+00 : f32
    %562 = vector.broadcast %cst_180 : f32 to vector<1x256xf32>
    %563 = arith.addf %556, %562 : vector<1x256xf32>
    %cst_181 = arith.constant 0.000000e+00 : f32
    %cst_182 = arith.constant 1.700000e+01 : f32
    %564 = vector.broadcast %cst_181 : f32 to vector<1x256xf32>
    %565 = arith.maximumf %564, %563 : vector<1x256xf32>
    %566 = vector.broadcast %cst_182 : f32 to vector<1x256xf32>
    %567 = arith.minimumf %566, %565 : vector<1x256xf32>
    %cst_183 = arith.constant 0.000000e+00 : f32
    %cst_184 = arith.constant 1.700000e+01 : f32
    %568 = vector.broadcast %cst_183 : f32 to vector<1x256xf32>
    %569 = arith.maximumf %568, %557 : vector<1x256xf32>
    %570 = vector.broadcast %cst_184 : f32 to vector<1x256xf32>
    %571 = arith.minimumf %570, %569 : vector<1x256xf32>
    %cst_185 = arith.constant 1.000000e+00 : f32
    %572 = vector.broadcast %cst_185 : f32 to vector<1x256xf32>
    %573 = arith.addf %557, %572 : vector<1x256xf32>
    %cst_186 = arith.constant 0.000000e+00 : f32
    %cst_187 = arith.constant 1.700000e+01 : f32
    %574 = vector.broadcast %cst_186 : f32 to vector<1x256xf32>
    %575 = arith.maximumf %574, %573 : vector<1x256xf32>
    %576 = vector.broadcast %cst_187 : f32 to vector<1x256xf32>
    %577 = arith.minimumf %576, %575 : vector<1x256xf32>
    %cst_188 = arith.constant 0.000000e+00 : f32
    %cst_189 = arith.constant 1.700000e+01 : f32
    %578 = vector.broadcast %cst_188 : f32 to vector<1x256xf32>
    %579 = arith.maximumf %578, %554 : vector<1x256xf32>
    %580 = vector.broadcast %cst_189 : f32 to vector<1x256xf32>
    %581 = arith.minimumf %580, %579 : vector<1x256xf32>
    %cst_190 = arith.constant 0.000000e+00 : f32
    %cst_191 = arith.constant 1.700000e+01 : f32
    %582 = vector.broadcast %cst_190 : f32 to vector<1x256xf32>
    %583 = arith.maximumf %582, %555 : vector<1x256xf32>
    %584 = vector.broadcast %cst_191 : f32 to vector<1x256xf32>
    %585 = arith.minimumf %584, %583 : vector<1x256xf32>
    %586 = arith.subf %561, %581 : vector<1x256xf32>
    %cst_192 = arith.constant 1.000000e+00 : f32
    %587 = vector.broadcast %cst_192 : f32 to vector<1x256xf32>
    %588 = arith.addf %587, %586 : vector<1x256xf32>
    %589 = arith.subf %567, %581 : vector<1x256xf32>
    %cst_193 = arith.constant 1.000000e+00 : f32
    %590 = vector.broadcast %cst_193 : f32 to vector<1x256xf32>
    %591 = arith.subf %590, %589 : vector<1x256xf32>
    %592 = arith.subf %571, %585 : vector<1x256xf32>
    %cst_194 = arith.constant 1.000000e+00 : f32
    %593 = vector.broadcast %cst_194 : f32 to vector<1x256xf32>
    %594 = arith.addf %593, %592 : vector<1x256xf32>
    %595 = arith.subf %577, %585 : vector<1x256xf32>
    %cst_195 = arith.constant 1.000000e+00 : f32
    %596 = vector.broadcast %cst_195 : f32 to vector<1x256xf32>
    %597 = arith.subf %596, %595 : vector<1x256xf32>
    %598 = arith.mulf %588, %37 : vector<1x256xf32>
    %599 = arith.mulf %591, %37 : vector<1x256xf32>
    %600 = arith.fptosi %561 : vector<1x256xf32> to vector<1x256xi32>
    %601 = arith.fptosi %567 : vector<1x256xf32> to vector<1x256xi32>
    %602 = arith.fptosi %571 : vector<1x256xf32> to vector<1x256xi32>
    %603 = arith.fptosi %577 : vector<1x256xf32> to vector<1x256xi32>
    %604 = vector.broadcast %600 : vector<1x256xi32> to vector<24x256xi32>
    %605 = arith.cmpi eq, %15, %604 : vector<24x256xi32>
    %cst_196 = arith.constant 0.000000e+00 : f32
    %606 = vector.shape_cast %598 : vector<1x256xf32> to vector<1x256xf32>
    %607 = vector.broadcast %606 : vector<1x256xf32> to vector<24x256xf32>
    %608 = vector.broadcast %cst_196 : f32 to vector<24x256xf32>
    %609 = arith.select %605, %607, %608 : vector<24x256xi1>, vector<24x256xf32>
    %610 = vector.broadcast %601 : vector<1x256xi32> to vector<24x256xi32>
    %611 = arith.cmpi eq, %15, %610 : vector<24x256xi32>
    %cst_197 = arith.constant 0.000000e+00 : f32
    %612 = vector.shape_cast %599 : vector<1x256xf32> to vector<1x256xf32>
    %613 = vector.broadcast %612 : vector<1x256xf32> to vector<24x256xf32>
    %614 = vector.broadcast %cst_197 : f32 to vector<24x256xf32>
    %615 = arith.select %611, %613, %614 : vector<24x256xi1>, vector<24x256xf32>
    %616 = arith.addf %609, %615 : vector<24x256xf32>
    %617 = vector.broadcast %602 : vector<1x256xi32> to vector<24x256xi32>
    %618 = arith.cmpi eq, %16, %617 : vector<24x256xi32>
    %cst_198 = arith.constant 0.000000e+00 : f32
    %619 = vector.shape_cast %594 : vector<1x256xf32> to vector<1x256xf32>
    %620 = vector.broadcast %619 : vector<1x256xf32> to vector<24x256xf32>
    %621 = vector.broadcast %cst_198 : f32 to vector<24x256xf32>
    %622 = arith.select %618, %620, %621 : vector<24x256xi1>, vector<24x256xf32>
    %623 = vector.broadcast %603 : vector<1x256xi32> to vector<24x256xi32>
    %624 = arith.cmpi eq, %16, %623 : vector<24x256xi32>
    %cst_199 = arith.constant 0.000000e+00 : f32
    %625 = vector.shape_cast %597 : vector<1x256xf32> to vector<1x256xf32>
    %626 = vector.broadcast %625 : vector<1x256xf32> to vector<24x256xf32>
    %627 = vector.broadcast %cst_199 : f32 to vector<24x256xf32>
    %628 = arith.select %624, %626, %627 : vector<24x256xi1>, vector<24x256xf32>
    %629 = arith.addf %622, %628 : vector<24x256xf32>
    %c0_200 = arith.constant 0 : index
    %c1152 = arith.constant 1152 : index
    %c0_201 = arith.constant 0 : index
    %630 = vector.load %arg6[%c0_200, %c1152, %c0_201] : memref<1x1728x24xf32, #tpu.memory_space<vmem>>, vector<1x192x24xf32>
    %631 = vector.shape_cast %630 : vector<1x192x24xf32> to vector<192x24xf32>
    %cst_202 = arith.constant dense<0.000000e+00> : vector<192x256xf32>
    %632 = tpu.matmul %631, %629, %cst_202 {dimension_numbers = #tpu.dot_dimension_numbers<[1], [0], [0], [1], [0, 0, 1, 1], [], []>} : vector<192x24xf32>, vector<24x256xf32>, vector<192x256xf32> -> vector<192x256xf32>
    %633 = vector.shape_cast %632 : vector<192x256xf32> to vector<8x24x256xf32>
    %634 = vector.shape_cast %616 : vector<24x256xf32> to vector<1x24x256xf32>
    %635 = vector.broadcast %634 : vector<1x24x256xf32> to vector<8x24x256xf32>
    %636 = arith.mulf %633, %635 : vector<8x24x256xf32>
    %cst_203 = arith.constant dense<0.000000e+00> : vector<8x256xf32>
    %637 = vector.multi_reduction <add>, %636, %cst_203 [1] : vector<8x24x256xf32> to vector<8x256xf32>
    %638 = arith.addf %553, %637 : vector<8x256xf32>
    %639 = vector.extract_strided_slice %10 {offsets = [3, 0], sizes = [1, 256], strides = [1, 1]} : vector<18x256xf32> to vector<1x256xf32>
    %640 = vector.extract_strided_slice %10 {offsets = [12, 0], sizes = [1, 256], strides = [1, 1]} : vector<18x256xf32> to vector<1x256xf32>
    %641 = math.floor %639 : vector<1x256xf32>
    %642 = math.floor %640 : vector<1x256xf32>
    %cst_204 = arith.constant 0.000000e+00 : f32
    %cst_205 = arith.constant 1.700000e+01 : f32
    %643 = vector.broadcast %cst_204 : f32 to vector<1x256xf32>
    %644 = arith.maximumf %643, %641 : vector<1x256xf32>
    %645 = vector.broadcast %cst_205 : f32 to vector<1x256xf32>
    %646 = arith.minimumf %645, %644 : vector<1x256xf32>
    %cst_206 = arith.constant 1.000000e+00 : f32
    %647 = vector.broadcast %cst_206 : f32 to vector<1x256xf32>
    %648 = arith.addf %641, %647 : vector<1x256xf32>
    %cst_207 = arith.constant 0.000000e+00 : f32
    %cst_208 = arith.constant 1.700000e+01 : f32
    %649 = vector.broadcast %cst_207 : f32 to vector<1x256xf32>
    %650 = arith.maximumf %649, %648 : vector<1x256xf32>
    %651 = vector.broadcast %cst_208 : f32 to vector<1x256xf32>
    %652 = arith.minimumf %651, %650 : vector<1x256xf32>
    %cst_209 = arith.constant 0.000000e+00 : f32
    %cst_210 = arith.constant 1.700000e+01 : f32
    %653 = vector.broadcast %cst_209 : f32 to vector<1x256xf32>
    %654 = arith.maximumf %653, %642 : vector<1x256xf32>
    %655 = vector.broadcast %cst_210 : f32 to vector<1x256xf32>
    %656 = arith.minimumf %655, %654 : vector<1x256xf32>
    %cst_211 = arith.constant 1.000000e+00 : f32
    %657 = vector.broadcast %cst_211 : f32 to vector<1x256xf32>
    %658 = arith.addf %642, %657 : vector<1x256xf32>
    %cst_212 = arith.constant 0.000000e+00 : f32
    %cst_213 = arith.constant 1.700000e+01 : f32
    %659 = vector.broadcast %cst_212 : f32 to vector<1x256xf32>
    %660 = arith.maximumf %659, %658 : vector<1x256xf32>
    %661 = vector.broadcast %cst_213 : f32 to vector<1x256xf32>
    %662 = arith.minimumf %661, %660 : vector<1x256xf32>
    %cst_214 = arith.constant 0.000000e+00 : f32
    %cst_215 = arith.constant 1.700000e+01 : f32
    %663 = vector.broadcast %cst_214 : f32 to vector<1x256xf32>
    %664 = arith.maximumf %663, %639 : vector<1x256xf32>
    %665 = vector.broadcast %cst_215 : f32 to vector<1x256xf32>
    %666 = arith.minimumf %665, %664 : vector<1x256xf32>
    %cst_216 = arith.constant 0.000000e+00 : f32
    %cst_217 = arith.constant 1.700000e+01 : f32
    %667 = vector.broadcast %cst_216 : f32 to vector<1x256xf32>
    %668 = arith.maximumf %667, %640 : vector<1x256xf32>
    %669 = vector.broadcast %cst_217 : f32 to vector<1x256xf32>
    %670 = arith.minimumf %669, %668 : vector<1x256xf32>
    %671 = arith.subf %646, %666 : vector<1x256xf32>
    %cst_218 = arith.constant 1.000000e+00 : f32
    %672 = vector.broadcast %cst_218 : f32 to vector<1x256xf32>
    %673 = arith.addf %672, %671 : vector<1x256xf32>
    %674 = arith.subf %652, %666 : vector<1x256xf32>
    %cst_219 = arith.constant 1.000000e+00 : f32
    %675 = vector.broadcast %cst_219 : f32 to vector<1x256xf32>
    %676 = arith.subf %675, %674 : vector<1x256xf32>
    %677 = arith.subf %656, %670 : vector<1x256xf32>
    %cst_220 = arith.constant 1.000000e+00 : f32
    %678 = vector.broadcast %cst_220 : f32 to vector<1x256xf32>
    %679 = arith.addf %678, %677 : vector<1x256xf32>
    %680 = arith.subf %662, %670 : vector<1x256xf32>
    %cst_221 = arith.constant 1.000000e+00 : f32
    %681 = vector.broadcast %cst_221 : f32 to vector<1x256xf32>
    %682 = arith.subf %681, %680 : vector<1x256xf32>
    %683 = arith.fptosi %646 : vector<1x256xf32> to vector<1x256xi32>
    %684 = arith.fptosi %652 : vector<1x256xf32> to vector<1x256xi32>
    %685 = arith.fptosi %656 : vector<1x256xf32> to vector<1x256xi32>
    %686 = arith.fptosi %662 : vector<1x256xf32> to vector<1x256xi32>
    %687 = vector.broadcast %683 : vector<1x256xi32> to vector<24x256xi32>
    %688 = arith.cmpi eq, %15, %687 : vector<24x256xi32>
    %cst_222 = arith.constant 0.000000e+00 : f32
    %689 = vector.shape_cast %673 : vector<1x256xf32> to vector<1x256xf32>
    %690 = vector.broadcast %689 : vector<1x256xf32> to vector<24x256xf32>
    %691 = vector.broadcast %cst_222 : f32 to vector<24x256xf32>
    %692 = arith.select %688, %690, %691 : vector<24x256xi1>, vector<24x256xf32>
    %693 = vector.broadcast %684 : vector<1x256xi32> to vector<24x256xi32>
    %694 = arith.cmpi eq, %15, %693 : vector<24x256xi32>
    %cst_223 = arith.constant 0.000000e+00 : f32
    %695 = vector.shape_cast %676 : vector<1x256xf32> to vector<1x256xf32>
    %696 = vector.broadcast %695 : vector<1x256xf32> to vector<24x256xf32>
    %697 = vector.broadcast %cst_223 : f32 to vector<24x256xf32>
    %698 = arith.select %694, %696, %697 : vector<24x256xi1>, vector<24x256xf32>
    %699 = arith.addf %692, %698 : vector<24x256xf32>
    %700 = vector.broadcast %685 : vector<1x256xi32> to vector<24x256xi32>
    %701 = arith.cmpi eq, %16, %700 : vector<24x256xi32>
    %cst_224 = arith.constant 0.000000e+00 : f32
    %702 = vector.shape_cast %679 : vector<1x256xf32> to vector<1x256xf32>
    %703 = vector.broadcast %702 : vector<1x256xf32> to vector<24x256xf32>
    %704 = vector.broadcast %cst_224 : f32 to vector<24x256xf32>
    %705 = arith.select %701, %703, %704 : vector<24x256xi1>, vector<24x256xf32>
    %706 = vector.broadcast %686 : vector<1x256xi32> to vector<24x256xi32>
    %707 = arith.cmpi eq, %16, %706 : vector<24x256xi32>
    %cst_225 = arith.constant 0.000000e+00 : f32
    %708 = vector.shape_cast %682 : vector<1x256xf32> to vector<1x256xf32>
    %709 = vector.broadcast %708 : vector<1x256xf32> to vector<24x256xf32>
    %710 = vector.broadcast %cst_225 : f32 to vector<24x256xf32>
    %711 = arith.select %707, %709, %710 : vector<24x256xi1>, vector<24x256xf32>
    %712 = arith.addf %705, %711 : vector<24x256xf32>
    %c0_226 = arith.constant 0 : index
    %c1344 = arith.constant 1344 : index
    %c0_227 = arith.constant 0 : index
    %713 = vector.load %arg6[%c0_226, %c1344, %c0_227] : memref<1x1728x24xf32, #tpu.memory_space<vmem>>, vector<1x192x24xf32>
    %714 = vector.shape_cast %713 : vector<1x192x24xf32> to vector<192x24xf32>
    %cst_228 = arith.constant dense<0.000000e+00> : vector<192x256xf32>
    %715 = tpu.matmul %714, %712, %cst_228 {dimension_numbers = #tpu.dot_dimension_numbers<[1], [0], [0], [1], [0, 0, 1, 1], [], []>} : vector<192x24xf32>, vector<24x256xf32>, vector<192x256xf32> -> vector<192x256xf32>
    %716 = vector.shape_cast %715 : vector<192x256xf32> to vector<8x24x256xf32>
    %717 = vector.shape_cast %699 : vector<24x256xf32> to vector<1x24x256xf32>
    %718 = vector.broadcast %717 : vector<1x24x256xf32> to vector<8x24x256xf32>
    %719 = arith.mulf %716, %718 : vector<8x24x256xf32>
    %cst_229 = arith.constant dense<0.000000e+00> : vector<8x256xf32>
    %720 = vector.multi_reduction <add>, %719, %cst_229 [1] : vector<8x24x256xf32> to vector<8x256xf32>
    %721 = arith.addf %638, %720 : vector<8x256xf32>
    %722 = vector.extract_strided_slice %10 {offsets = [4, 0], sizes = [1, 256], strides = [1, 1]} : vector<18x256xf32> to vector<1x256xf32>
    %723 = vector.extract_strided_slice %10 {offsets = [13, 0], sizes = [1, 256], strides = [1, 1]} : vector<18x256xf32> to vector<1x256xf32>
    %724 = math.floor %722 : vector<1x256xf32>
    %725 = math.floor %723 : vector<1x256xf32>
    %cst_230 = arith.constant 0.000000e+00 : f32
    %cst_231 = arith.constant 1.700000e+01 : f32
    %726 = vector.broadcast %cst_230 : f32 to vector<1x256xf32>
    %727 = arith.maximumf %726, %724 : vector<1x256xf32>
    %728 = vector.broadcast %cst_231 : f32 to vector<1x256xf32>
    %729 = arith.minimumf %728, %727 : vector<1x256xf32>
    %cst_232 = arith.constant 1.000000e+00 : f32
    %730 = vector.broadcast %cst_232 : f32 to vector<1x256xf32>
    %731 = arith.addf %724, %730 : vector<1x256xf32>
    %cst_233 = arith.constant 0.000000e+00 : f32
    %cst_234 = arith.constant 1.700000e+01 : f32
    %732 = vector.broadcast %cst_233 : f32 to vector<1x256xf32>
    %733 = arith.maximumf %732, %731 : vector<1x256xf32>
    %734 = vector.broadcast %cst_234 : f32 to vector<1x256xf32>
    %735 = arith.minimumf %734, %733 : vector<1x256xf32>
    %cst_235 = arith.constant 0.000000e+00 : f32
    %cst_236 = arith.constant 1.700000e+01 : f32
    %736 = vector.broadcast %cst_235 : f32 to vector<1x256xf32>
    %737 = arith.maximumf %736, %725 : vector<1x256xf32>
    %738 = vector.broadcast %cst_236 : f32 to vector<1x256xf32>
    %739 = arith.minimumf %738, %737 : vector<1x256xf32>
    %cst_237 = arith.constant 1.000000e+00 : f32
    %740 = vector.broadcast %cst_237 : f32 to vector<1x256xf32>
    %741 = arith.addf %725, %740 : vector<1x256xf32>
    %cst_238 = arith.constant 0.000000e+00 : f32
    %cst_239 = arith.constant 1.700000e+01 : f32
    %742 = vector.broadcast %cst_238 : f32 to vector<1x256xf32>
    %743 = arith.maximumf %742, %741 : vector<1x256xf32>
    %744 = vector.broadcast %cst_239 : f32 to vector<1x256xf32>
    %745 = arith.minimumf %744, %743 : vector<1x256xf32>
    %cst_240 = arith.constant 0.000000e+00 : f32
    %cst_241 = arith.constant 1.700000e+01 : f32
    %746 = vector.broadcast %cst_240 : f32 to vector<1x256xf32>
    %747 = arith.maximumf %746, %722 : vector<1x256xf32>
    %748 = vector.broadcast %cst_241 : f32 to vector<1x256xf32>
    %749 = arith.minimumf %748, %747 : vector<1x256xf32>
    %cst_242 = arith.constant 0.000000e+00 : f32
    %cst_243 = arith.constant 1.700000e+01 : f32
    %750 = vector.broadcast %cst_242 : f32 to vector<1x256xf32>
    %751 = arith.maximumf %750, %723 : vector<1x256xf32>
    %752 = vector.broadcast %cst_243 : f32 to vector<1x256xf32>
    %753 = arith.minimumf %752, %751 : vector<1x256xf32>
    %754 = arith.subf %729, %749 : vector<1x256xf32>
    %cst_244 = arith.constant 1.000000e+00 : f32
    %755 = vector.broadcast %cst_244 : f32 to vector<1x256xf32>
    %756 = arith.addf %755, %754 : vector<1x256xf32>
    %757 = arith.subf %735, %749 : vector<1x256xf32>
    %cst_245 = arith.constant 1.000000e+00 : f32
    %758 = vector.broadcast %cst_245 : f32 to vector<1x256xf32>
    %759 = arith.subf %758, %757 : vector<1x256xf32>
    %760 = arith.subf %739, %753 : vector<1x256xf32>
    %cst_246 = arith.constant 1.000000e+00 : f32
    %761 = vector.broadcast %cst_246 : f32 to vector<1x256xf32>
    %762 = arith.addf %761, %760 : vector<1x256xf32>
    %763 = arith.subf %745, %753 : vector<1x256xf32>
    %cst_247 = arith.constant 1.000000e+00 : f32
    %764 = vector.broadcast %cst_247 : f32 to vector<1x256xf32>
    %765 = arith.subf %764, %763 : vector<1x256xf32>
    %766 = arith.fptosi %729 : vector<1x256xf32> to vector<1x256xi32>
    %767 = arith.fptosi %735 : vector<1x256xf32> to vector<1x256xi32>
    %768 = arith.fptosi %739 : vector<1x256xf32> to vector<1x256xi32>
    %769 = arith.fptosi %745 : vector<1x256xf32> to vector<1x256xi32>
    %770 = vector.broadcast %766 : vector<1x256xi32> to vector<24x256xi32>
    %771 = arith.cmpi eq, %15, %770 : vector<24x256xi32>
    %cst_248 = arith.constant 0.000000e+00 : f32
    %772 = vector.shape_cast %756 : vector<1x256xf32> to vector<1x256xf32>
    %773 = vector.broadcast %772 : vector<1x256xf32> to vector<24x256xf32>
    %774 = vector.broadcast %cst_248 : f32 to vector<24x256xf32>
    %775 = arith.select %771, %773, %774 : vector<24x256xi1>, vector<24x256xf32>
    %776 = vector.broadcast %767 : vector<1x256xi32> to vector<24x256xi32>
    %777 = arith.cmpi eq, %15, %776 : vector<24x256xi32>
    %cst_249 = arith.constant 0.000000e+00 : f32
    %778 = vector.shape_cast %759 : vector<1x256xf32> to vector<1x256xf32>
    %779 = vector.broadcast %778 : vector<1x256xf32> to vector<24x256xf32>
    %780 = vector.broadcast %cst_249 : f32 to vector<24x256xf32>
    %781 = arith.select %777, %779, %780 : vector<24x256xi1>, vector<24x256xf32>
    %782 = arith.addf %775, %781 : vector<24x256xf32>
    %783 = vector.broadcast %768 : vector<1x256xi32> to vector<24x256xi32>
    %784 = arith.cmpi eq, %16, %783 : vector<24x256xi32>
    %cst_250 = arith.constant 0.000000e+00 : f32
    %785 = vector.shape_cast %762 : vector<1x256xf32> to vector<1x256xf32>
    %786 = vector.broadcast %785 : vector<1x256xf32> to vector<24x256xf32>
    %787 = vector.broadcast %cst_250 : f32 to vector<24x256xf32>
    %788 = arith.select %784, %786, %787 : vector<24x256xi1>, vector<24x256xf32>
    %789 = vector.broadcast %769 : vector<1x256xi32> to vector<24x256xi32>
    %790 = arith.cmpi eq, %16, %789 : vector<24x256xi32>
    %cst_251 = arith.constant 0.000000e+00 : f32
    %791 = vector.shape_cast %765 : vector<1x256xf32> to vector<1x256xf32>
    %792 = vector.broadcast %791 : vector<1x256xf32> to vector<24x256xf32>
    %793 = vector.broadcast %cst_251 : f32 to vector<24x256xf32>
    %794 = arith.select %790, %792, %793 : vector<24x256xi1>, vector<24x256xf32>
    %795 = arith.addf %788, %794 : vector<24x256xf32>
    %c0_252 = arith.constant 0 : index
    %c1536 = arith.constant 1536 : index
    %c0_253 = arith.constant 0 : index
    %796 = vector.load %arg6[%c0_252, %c1536, %c0_253] : memref<1x1728x24xf32, #tpu.memory_space<vmem>>, vector<1x192x24xf32>
    %797 = vector.shape_cast %796 : vector<1x192x24xf32> to vector<192x24xf32>
    %cst_254 = arith.constant dense<0.000000e+00> : vector<192x256xf32>
    %798 = tpu.matmul %797, %795, %cst_254 {dimension_numbers = #tpu.dot_dimension_numbers<[1], [0], [0], [1], [0, 0, 1, 1], [], []>} : vector<192x24xf32>, vector<24x256xf32>, vector<192x256xf32> -> vector<192x256xf32>
    %799 = vector.shape_cast %798 : vector<192x256xf32> to vector<8x24x256xf32>
    %800 = vector.shape_cast %782 : vector<24x256xf32> to vector<1x24x256xf32>
    %801 = vector.broadcast %800 : vector<1x24x256xf32> to vector<8x24x256xf32>
    %802 = arith.mulf %799, %801 : vector<8x24x256xf32>
    %cst_255 = arith.constant dense<0.000000e+00> : vector<8x256xf32>
    %803 = vector.multi_reduction <add>, %802, %cst_255 [1] : vector<8x24x256xf32> to vector<8x256xf32>
    %804 = arith.addf %721, %803 : vector<8x256xf32>
    %c0_256 = arith.constant 0 : index
    %c0_257 = arith.constant 0 : index
    %c0_258 = arith.constant 0 : index
    %c0_259 = arith.constant 0 : index
    %805 = vector.load %arg7[%c0_256, %c0_257, %c0_258, %c0_259] : memref<1x1x8x256xf32, #tpu.memory_space<vmem>>, vector<1x1x8x256xf32>
    %806 = vector.shape_cast %805 : vector<1x1x8x256xf32> to vector<8x256xf32>
    %807 = vector.shape_cast %804 : vector<8x256xf32> to vector<1x1x8x256xf32>
    tpu.vector_store %arg7[%c0_256, %c0_257, %c0_258, %c0_259], %807 {strides = array<i32>} : memref<1x1x8x256xf32, #tpu.memory_space<vmem>>, vector<1x1x8x256xf32>,
    return
  }
  func.func @transform_0(%arg0: i32, %arg1: i32) -> (i32, i32, i32, i32) {
    %c0_i32 = arith.constant 0 : i32
    %c0_i32_0 = arith.constant 0 : i32
    %c0_i32_1 = arith.constant 0 : i32
    return %arg0, %arg1, %c0_i32, %c0_i32_0 : i32, i32, i32, i32
  }
  func.func @transform_1(%arg0: i32, %arg1: i32) -> (i32, i32, i32) {
    %c0_i32 = arith.constant 0 : i32
    %c0_i32_0 = arith.constant 0 : i32
    %c0_i32_1 = arith.constant 0 : i32
    return %arg1, %c0_i32, %c0_i32_0 : i32, i32, i32
  }
  func.func @transform_2(%arg0: i32, %arg1: i32) -> (i32, i32) {
    %c0_i32 = arith.constant 0 : i32
    %c0_i32_0 = arith.constant 0 : i32
    %c0_i32_1 = arith.constant 0 : i32
    return %c0_i32, %c0_i32_0 : i32, i32
  }
  func.func @transform_3(%arg0: i32, %arg1: i32) -> (i32, i32) {
    %c0_i32 = arith.constant 0 : i32
    %c0_i32_0 = arith.constant 0 : i32
    %c0_i32_1 = arith.constant 0 : i32
    return %c0_i32, %c0_i32_0 : i32, i32
  }
  func.func @transform_4(%arg0: i32, %arg1: i32) -> (i32, i32, i32) {
    %c0_i32 = arith.constant 0 : i32
    %c0_i32_0 = arith.constant 0 : i32
    %c0_i32_1 = arith.constant 0 : i32
    return %arg0, %c0_i32, %c0_i32_0 : i32, i32, i32
  }
  func.func @transform_5(%arg0: i32, %arg1: i32) -> (i32, i32, i32, i32) {
    %c0_i32 = arith.constant 0 : i32
    %c0_i32_0 = arith.constant 0 : i32
    %c0_i32_1 = arith.constant 0 : i32
    return %arg0, %arg1, %c0_i32, %c0_i32_0 : i32, i32, i32, i32
  }
}

</mosaic_0001>

<bundles_post_ra>
// kernel: tile.8
= control target key start
LH: loop header
LB: loop body
LE: loop exit
PB: predicated region body
PF: predicated region fallthrough
CT: control target
= control target key end

     0   :  { %s22_s0 = inlined_call_operand.vmem [shape: f32[3], index: 0, kind: input, shape index: {}]   ;;  %s23_s1 = inlined_call_operand.vmem [shape: f32[3,3], index: 1, kind: output, shape index: {}]  }
   0x1   :  { %v4_v0 = vld [vmem:[%s22_s0] ss:$0 sm:$0xff] }
   0x2   :  { %5 = vst [vmem:[%s23_s1] sm:$0xf] %v4_v0 }

// kernel: deform_conv2d_pallas.1
= control target key start
LH: loop header
LB: loop body
LE: loop exit
PB: predicated region body
PF: predicated region fallthrough
CT: control target
= control target key end

     0   :  { %s8042_s18 = smov 0   ;;  %s8044_s19 = smov 0   ;;  %s14104_s0 = inlined_call_operand.vmem [shape: f32[2,1,36,273], index: 0, kind: input, shape index: {}]   ;;  %s14105_s1 = inlined_call_operand.vmem [shape: f32[1,18,273], index: 1, kind: input, shape index: {}]   ;;  %s14106_s2 = inlined_call_operand.vmem [shape: f32[18,36], index: 2, kind: input, shape index: {}]   ;;  %s14107_s3 = inlined_call_operand.vmem [shape: f32[18,1], index: 3, kind: input, shape index: {}]   ;;  %s14108_s4 = inlined_call_operand.vmem [shape: f32[2,1728,24], index: 4, kind: input, shape index: {}]   ;;  %s14109_s5 = inlined_call_operand.vmem [shape: f32[2,1,8,256], index: 5, kind: output, shape index: {}]  }
   0x1   :  { %s8046_s20 = smov 0  }
   0x2 LB: > { %s27_s21 = sadd.s32 1, %s7997_s19  ;;  %p7631_p0 = scmp.ge.s32.totalorder %s8001_s20, 1  ;;  %s8001_s20 = sphi %s8046_s20, %s15_s20   ;;  %s7997_s19 = sphi %s8044_s19, %s14892_s19   ;;  %s7993_s18 = sphi %s8042_s18, %s14891_s18  }
   0x3   : > { %p29_p1 = scmp.ge.s32.totalorder %s27_s21, 2  ;;  %p227_p2 = scmp.lt.s32.totalorder %s8001_s20, 3 }
   0x5   : > { %s14894_s21 = smov (%p29_p1, %s27_s21), 0  ;;  %p228_p3 = pnand %p7631_p0, %p227_p2 }
   0x7   : > { %231 = sbr.rel (%p228_p3) target bundleno = 1106 (0x452), region = 40 }
   0xc   : > { %p273_p4 = scmp.lt.s32.totalorder %s7993_s18, 1  ;;  %v14116_v0 = vmov 0.0   ;;  %vm8004_vm0 = vmmov 0   ;;  %v320_v1 = vld [vmem:[%s14107_s3 + $0x8] sm:$0xff]  ;;  %v8005_v2 = vmov 0   ;;  %vm347_vm1 = vcmask 1043456  }
   0xd   : > { %7872 = vmatprep.subr.mxu1 %v14116_v0  ;;  %7882 = vmatprep.mubr.msk.f32.mxu1 %vm8004_vm0, %v14116_v0  ;;  %v321_v3 = vld [vmem:[%s14107_s3 + $0x10] sm:$0x3]  ;;  %v301_v19 = vld [vmem:[%s14106_s2] sm:$0xff]  ;;  %vm337_vm2 = vcmask 293888   ;;  %v302_v20 = vld [vmem:[%s14106_s2 + $0x8] sm:$0xff]  ;;  %v538_v24 = vlaneseq  ;;  %s8006_s27 = smov 127  }
   0xe   : > { %s14896_s18 = smov (!%p273_p4, %s7993_s18), 1  ;;  %421 = vmatprep.mubr.f32.mxu0 %v14116_v0  ;;  %7968 = vset.pattern.permute.xlu0 %v8005_v2  ;;  %v303_v21 = vld [vmem:[%s14106_s2 + $0x10] sm:$0x3]  ;;  %v525_v30 = vld [vmem:[%s14105_s1 + $0x28] sm:$0xff]  ;;  %v523_v33 = vld [vmem:[%s14105_s1 + $0x18] sm:$0xff]  ;;  %s8007_s7 = smov 112  }
   0xf   : > { %329 = vperm.xlu0 %7968, %v320_v1   ;;  %s7897_s24 = smul.u32 120, %s14896_s18  ;;  %v8110_v28 = vshrl.u32 %v538_v24, 7  ;;  %v524_v38 = vld [vmem:[%s14105_s1 + $0x20] sm:$0xff]  ;;  %s8008_s8 = smov 111  }
  0x10   : > { %v528_v45 = vld [vmem:[%s14105_s1 + $0x40] sm:$0x3]  ;;  %s7898_s28 = smul.u32 1728, %s14896_s18  ;;  %s8010_s11 = smov 16  }
  0x11   : > { %s281_s29 = scalar_lea.vmem %s14104_s0, %s7897_s24  ;;  %14186 = vst [vmem:[#allocation3_spill] sm:$0xff] %v8110_v28  ;;  %v8122_v39 = vsub.s32 1, %v8110_v28  ;;  %v8125_v40 = vsub.s32 7, %v8110_v28  ;;  %v8133_v46 = vadd.s32 16, %v8110_v28  ;;  %v8136_v47 = vadd.s32 8, %v8110_v28  ;;  %s8011_s12 = smov 1  }
  0x12   : > { %v317_v4 = vld [vmem:[%s281_s29 + $0x68] sm:$0xf]  ;;  %v318_v5 = vld [vmem:[%s281_s29 + $0x70] sm:$0xf]  ;;  %v316_v6 = vld [vmem:[%s281_s29 + $0x60] sm:$0xf]  ;;  %s8280_s6 = scalar_lea.vmem %s14108_s4, %s7898_s28 }
  0x13   : > { %334 = vperm.xlu0 %7968, %v321_v3   ;;  %7636 = vmatprep.subr.msk.mxu0 %vm347_vm1, %v317_v4  ;;  %v314_v7 = vld [vmem:[%s281_s29 + $0x50] sm:$0xff]  ;;  %v315_v8 = vld [vmem:[%s281_s29 + $0x58] sm:$0xff]  ;;  %v313_v9 = vld [vmem:[%s281_s29 + $0x48] sm:$0xff]  ;;  %14187 = vst [vmem:[#allocation4_spill] sm:$0xff] %v8122_v39  ;;  %v8140_v52 = vsub.s32 0, %v8110_v28  ;;  %s7863_s23 = sshll.u32 %s14896_s18, 4 }
  0x14   : > { %7873 = vmatpush3.msk.msra.mxu1 %vm347_vm1, %v318_v5  ;;  %7637 = vmatpush1.msk.msra.mxu0 %vm347_vm1, %v316_v6  ;;  %v311_v10 = vld [vmem:[%s281_s29 + $0x38] sm:$0xff]  ;;  %v312_v11 = vld [vmem:[%s281_s29 + $0x40] sm:$0xff]  ;;  %v310_v12 = vld [vmem:[%s281_s29 + $0x30] sm:$0xff]  ;;  %14188 = vst [vmem:[#allocation5_spill] sm:$0xff] %v8125_v40  ;;  %s300_s26 = scalar_lea.vmem %s14109_s5, %s7863_s23 }
  0x15   : > { %7874 = vmatprep.subr.mxu1 %v14116_v0  ;;  %381 = vmatprep.subr.mxu0 %v314_v7  ;;  %v308_v13 = vld [vmem:[%s281_s29 + $0x20] sm:$0xff]  ;;  %v309_v14 = vld [vmem:[%s281_s29 + $0x28] sm:$0xff]  ;;  %v307_v15 = vld [vmem:[%s281_s29 + $0x18] sm:$0xff]  ;;  %14189 = vst [vmem:[#allocation6_spill] sm:$0xff] %v8136_v47 }
  0x16   : > { %7875 = vmatpush3.msra.mxu1 %v315_v8  ;;  %382 = vmatpush1.msra.mxu0 %v313_v9  ;;  %v305_v16 = vld [vmem:[%s281_s29 + $0x8] sm:$0xff]  ;;  %v306_v17 = vld [vmem:[%s281_s29 + $0x10] sm:$0xff]  ;;  %v304_v18 = vld [vmem:[%s281_s29] sm:$0xff]  ;;  %14190 = vst [vmem:[#allocation7_spill] sm:$0xff] %v8140_v52 }
  0x17   : > { %7876 = vmatprep.subr.mxu1 %v14116_v0  ;;  %383 = vmatprep.subr.mxu0 %v311_v10 }
  0x18   : > { %7877 = vmatpush3.msra.mxu1 %v312_v11  ;;  %384 = vmatpush1.msra.mxu0 %v310_v12 }
  0x19   : > { %7878 = vmatprep.subr.mxu1 %v14116_v0  ;;  %385 = vmatprep.subr.mxu0 %v308_v13 }
  0x1a   : > { %7879 = vmatpush3.msra.mxu1 %v309_v14  ;;  %386 = vmatpush1.msra.mxu0 %v307_v15 }
  0x1b   : > { %7880 = vmatprep.subr.mxu1 %v14116_v0  ;;  %387 = vmatprep.subr.mxu0 %v305_v16 }
  0x1c   : > { %7881 = vmatpush3.msra.mxu1 %v306_v17  ;;  %388 = vmatpush1.msra.mxu0 %v304_v18 }
  0x1d   : > { %7883 = vmatmul.mubr.msk.f32.vlgmr.msra.gmra.mxu1 %vm337_vm2, %v301_v19  ;;  %7638 = vmatmul.mubr.msk.f32.vlgmr.msra.gmra.mxu0 %vm337_vm2, %v301_v19 }
  0x1e   : > { %7885 = vmatprep.mubr.msk.f32.mxu1 %vm8004_vm0, %v14116_v0  ;;  %427 = vmatprep.mubr.f32.mxu0 %v14116_v0 }
  0x21   : > { %7886 = vmatmul.mubr.msk.f32.gmra.mxu1 %vm337_vm2, %v302_v20  ;;  %7639 = vmatmul.mubr.msk.f32.gmra.mxu0 %vm337_vm2, %v302_v20 }
  0x22   : > { %7888 = vmatprep.mubr.msk.f32.mxu1 %vm8004_vm0, %v14116_v0  ;;  %433 = vmatprep.mubr.f32.mxu0 %v14116_v0 }
  0x25   : > { %7889 = vmatmul.mubr.msk.f32.gmra.mxu1 %vm337_vm2, %v303_v21  ;;  %7640 = vmatmul.mubr.msk.f32.gmra.mxu0 %vm337_vm2, %v303_v21 }
  0x26   : > { %1002 = vmatprep.mubr.f32.mxu1 %v14116_v0  ;;  %930 = vmatprep.mubr.f32.mxu0 %v14116_v0 }
  0x8a   : > { %v330_v25 = vpop.permute.xlu0 %329 }
  0x8e   : > { %v8127_v41 = vpop.permute.xlu0 %334 }
  0xdd   : > { %v8103_v22 = vpop.f32.mrf.mxu1  ;;  %v8105_v23 = vpop.f32.mrf.mxu0 }
  0xde   : > { %14185 = vst [vmem:[#allocation2_spill] sm:$0xff] %v8103_v22 }
  0xdf   : > { %v7884_v26 = vpop.f32.mrf.mxu1  ;;  %v8107_v27 = vpop.f32.mrf.mxu0 }
  0xe1   : > { %v511_v29 = vpop.f32.mrf.mxu1  ;;  %v429_v32 = vpop.f32.mrf.mxu0 }
  0xe2   : > { %v512_v31 = vadd.f32 %v511_v29, %v330_v25  ;;  %v430_v34 = vadd.f32 %v429_v32, %v330_v25 }
  0xe3   : > { %v7887_v35 = vpop.f32.mrf.mxu1  ;;  %v431_v37 = vpop.f32.mrf.mxu0 }
  0xe4   : > { %v534_v36 = vadd.f32 %v525_v30, %v512_v31  ;;  %v532_v42 = vadd.f32 %v523_v33, %v430_v34  ;;  %v432_v43 = vadd.f32 %v431_v37, %v330_v25 }
  0xe5   : > { %v516_v44 = vpop.f32.mrf.mxu1  ;;  %v435_v51 = vpop.f32.mrf.mxu0 }
  0xe6   : > { %v1270_v48 = vfloor.f32 %v534_v36  ;;  %v1297_v49 = vmax.f32 %v534_v36, 0.0  ;;  %v517_v50 = vadd.f32 %v516_v44, %v8127_v41  ;;  %v583_v53 = vfloor.f32 %v532_v42  ;;  %v526_v36 = vld [vmem:[%s14105_s1 + $0x30] sm:$0x3] }
  0xe7   : > { %v607_v54 = vmax.f32 %v532_v42, 0.0  ;;  %v533_v55 = vadd.f32 %v524_v38, %v432_v43  ;;  %v436_v56 = vadd.f32 %v435_v51, %v8127_v41  ;;  %v7890_v57 = vpop.f32.mrf.mxu1  ;;  %v437_v37 = vpop.f32.mrf.mxu0  ;;  %v527_v51 = vld [vmem:[%s14105_s1 + $0x38] sm:$0x3] }
  0xe8   : > { %v1286_v58 = vmax.f32 %v1270_v48, 0.0  ;;  %v1288_v59 = vadd.f32 1.0, %v1270_v48  ;;  %v1298_v60 = vmin.f32 %v1297_v49, 17.0  ;;  %v537_v61 = vadd.f32 %v528_v45, %v517_v50 }
  0xe9   : > { %v587_v62 = vmax.f32 %v583_v53, 0.0  ;;  %v591_v63 = vadd.f32 1.0, %v583_v53  ;;  %v609_v1 = vmin.f32 %v607_v54, 17.0  ;;  %v584_v2 = vfloor.f32 %v533_v55 }
  0xea   : > { %v1287_v3 = vmin.f32 %v1286_v58, 17.0  ;;  %v1289_v4 = vmax.f32 %v1288_v59, 0.0  ;;  %v608_v5 = vmax.f32 %v533_v55, 0.0  ;;  %v2102_v6 = vfloor.f32 %v537_v61 }
  0xeb   : > { %v589_v7 = vmin.f32 %v587_v62, 17.0  ;;  %v593_v8 = vmax.f32 %v591_v63, 0.0  ;;  %v588_v9 = vmax.f32 %v584_v2, 0.0  ;;  %v592_v10 = vadd.f32 1.0, %v584_v2 }
  0xec   : > { %v1290_v11 = vmin.f32 %v1289_v4, 17.0  ;;  %v1311_v12 = vsub.f32 %v1287_v3, %v1298_v60  ;;  %v7927_v13 = vtrunc.f32 %v1287_v3  ;;  %v610_v14 = vmin.f32 %v608_v5, 17.0 }
  0xed   : > { %v595_v15 = vmin.f32 %v593_v8, 17.0  ;;  %v615_v16 = vsub.f32 %v589_v7, %v609_v1  ;;  %v7899_v17 = vtrunc.f32 %v589_v7  ;;  %v590_v18 = vmin.f32 %v588_v9, 17.0 }
  0xee   : > { %v8143_v19 = vadd.f32 1.0, %v1311_v12  ;;  %v1313_v20 = vsub.f32 %v1290_v11, %v1298_v60  ;;  %v8145_v21 = vcvt.f32.s32 %v7927_v13  ;;  %v7929_v25 = vtrunc.f32 %v1290_v11 }
  0xef   : > { %v8147_v26 = vadd.f32 1.0, %v615_v16  ;;  %v619_v29 = vsub.f32 %v595_v15, %v609_v1  ;;  %v8149_v30 = vcvt.f32.s32 %v7899_v17  ;;  %v7903_v31 = vtrunc.f32 %v595_v15 }
  0xf0   : > { %v8151_v32 = vsub.f32 1.0, %v1313_v20  ;;  %v8153_v33 = vcvt.f32.s32 %v7929_v25  ;;  %v594_v34 = vmax.f32 %v592_v10, 0.0  ;;  %v616_v35 = vsub.f32 %v590_v18, %v610_v14 }
  0xf1   : > { %v8158_v38 = vsub.f32 1.0, %v619_v29  ;;  %v8160_v42 = vcvt.f32.s32 %v7903_v31  ;;  %v7901_v43 = vtrunc.f32 %v590_v18  ;;  %v2103_v44 = vmax.f32 %v2102_v6, 0.0 }
  0xf2   : > { %v596_v45 = vmin.f32 %v594_v34, 17.0  ;;  %v8162_v48 = vadd.f32 1.0, %v616_v35  ;;  %v2105_v49 = vadd.f32 1.0, %v2102_v6  ;;  %v2108_v50 = vmax.f32 %v537_v61, 0.0 }
  0xf3   : > { %v8167_v53 = vcvt.f32.s32 %v7901_v43  ;;  %v2104_v54 = vmin.f32 %v2103_v44, 17.0  ;;  %v535_v55 = vadd.f32 %v526_v36, %v436_v56  ;;  %v438_v57 = vadd.f32 %v437_v37, %v8127_v41 }
  0xf4   : > { %v620_v58 = vsub.f32 %v596_v45, %v610_v14  ;;  %v7905_v59 = vtrunc.f32 %v596_v45  ;;  %v2106_v60 = vmax.f32 %v2105_v49, 0.0  ;;  %v2109_v62 = vmin.f32 %v2108_v50, 17.0 }
  0xf5   : > { %v8170_v63 = vtrunc.f32 %v2104_v54  ;;  %v585_v1 = vfloor.f32 %v535_v55  ;;  %v611_v2 = vmax.f32 %v535_v55, 0.0  ;;  %v536_v3 = vadd.f32 %v527_v51, %v438_v57 }
  0xf6   : > { %v8172_v61 = vsub.f32 1.0, %v620_v58  ;;  %v8174_v4 = vcvt.f32.s32 %v7905_v59  ;;  %v2107_v5 = vmin.f32 %v2106_v60, 17.0  ;;  %v2110_v6 = vsub.f32 %v2104_v54, %v2109_v62 }
  0xf7   : > { %v7932_v7 = vcvt.f32.s32 %v8170_v63  ;;  %v597_v56 = vmax.f32 %v585_v1, 0.0  ;;  %v601_v8 = vadd.f32 1.0, %v585_v1  ;;  %v613_v41 = vmin.f32 %v611_v2, 17.0 }
  0xf8   : > { %v8177_v9 = vadd.f32 1.0, %v2110_v6  ;;  %v2112_v10 = vsub.f32 %v2107_v5, %v2109_v62  ;;  %v7933_v11 = vtrunc.f32 %v2107_v5  ;;  %v586_v12 = vfloor.f32 %v536_v3 }
  0xf9   : > { %v599_v13 = vmin.f32 %v597_v56, 17.0  ;;  %v603_v14 = vmax.f32 %v601_v8, 0.0  ;;  %v612_v15 = vmax.f32 %v536_v3, 0.0  ;;  %v1444_v16 = vrot.slane %v8145_v21, %v8125_v40 }
  0xfa   : > { %v8181_v17 = vsub.f32 1.0, %v2112_v10  ;;  %v8183_v18 = vcvt.f32.s32 %v7933_v11  ;;  %v598_v20 = vmax.f32 %v586_v12, 0.0  ;;  %v602_v25 = vadd.f32 1.0, %v586_v12 }
  0xfb   : > { %v605_v29 = vmin.f32 %v603_v14, 17.0  ;;  %v623_v31 = vsub.f32 %v599_v13, %v613_v41  ;;  %v8185_v34 = vtrunc.f32 %v599_v13  ;;  %v614_v35 = vmin.f32 %v612_v15, 17.0 }
  0xfc   : > { %v600_v36 = vmin.f32 %v598_v20, 17.0  ;;  %v604_v37 = vmax.f32 %v602_v25, 0.0  ;;  %vm1453_vm3 = vcmp.eq.s32.totalorder %v8133_v46, %v1444_v16  ;;  %v1465_v43 = vrot.slane %v8143_v19, %v8125_v40 }
  0xfd   : > { %v8190_v44 = vadd.f32 1.0, %v623_v31  ;;  %v627_v45 = vsub.f32 %v605_v29, %v613_v41  ;;  %v7908_v49 = vcvt.f32.s32 %v8185_v34  ;;  %v7911_v50 = vtrunc.f32 %v605_v29  ;;  %v783_v34 = vld [vmem:[%s8280_s6 + $0x70] sm:$0xff] }
  0xfe   : > { %v606_v51 = vmin.f32 %v604_v37, 17.0  ;;  %v624_v54 = vsub.f32 %v600_v36, %v614_v35  ;;  %v8193_v55 = vtrunc.f32 %v600_v36  ;;  %v1474_v57 = vsel %vm1453_vm3, %v1465_v43, 0.0 }
  0xff   : > { %v8195_v58 = vsub.f32 1.0, %v627_v45  ;;  %v8197_v59 = vcvt.f32.s32 %v7911_v50  ;;  %v8202_v60 = vrot.slane %v7908_v49, %v8122_v39  ;;  %v8206_v62 = vrot.slane %v8190_v44, %v8122_v39 }
 0x100   : > { %v8208_v1 = vadd.f32 1.0, %v624_v54  ;;  %v628_v2 = vsub.f32 %v606_v51, %v614_v35  ;;  %v7910_v3 = vcvt.f32.s32 %v8193_v55  ;;  %v7913_v5 = vtrunc.f32 %v606_v51 }
 0x101   : > { %v8213_v6 = vrot.slane %v8197_v59, %v8122_v39  ;;  %v8217_v56 = vrot.slane %v8195_v58, %v8122_v39  ;;  %v1486_v8 = vrot.slane %v8153_v33, %v8125_v40  ;;  %v1507_v41 = vrot.slane %v8151_v32, %v8125_v40 }
 0x102   : > { %v8223_v10 = vsub.f32 1.0, %v628_v2  ;;  %v8225_v11 = vcvt.f32.s32 %v7913_v5  ;;  %vm1450_vm4 = vcmp.eq.s32.totalorder %v8136_v47, %v1444_v16  ;;  %vm1447_vm5 = vcmp.eq.s32.totalorder %v8110_v28, %v1444_v16 }
 0x103   : > { %vm1495_vm6 = vcmp.eq.s32.totalorder %v8133_v46, %v1486_v8  ;;  %v1471_v12 = vsel %vm1450_vm4, %v1465_v43, 0.0  ;;  %vm1492_vm7 = vcmp.eq.s32.totalorder %v8136_v47, %v1486_v8  ;;  %v1468_v13 = vsel %vm1447_vm5, %v1465_v43, 0.0 }
 0x104   : > { %v1516_v14 = vsel %vm1495_vm6, %v1507_v41, 0.0  ;;  %v1513_v15 = vsel %vm1492_vm7, %v1507_v41, 0.0  ;;  %vm1489_vm8 = vcmp.eq.s32.totalorder %v8110_v28, %v1486_v8  ;;  %v1436_v20 = vrot.slane %v8149_v30, %v8125_v40 }
 0x105   : > { %v1525_v25 = vadd.f32 %v1516_v14, %v1474_v57  ;;  %v1522_v29 = vadd.f32 %v1513_v15, %v1471_v12  ;;  %v1510_v31 = vsel %vm1489_vm8, %v1507_v41, 0.0  ;;  %v1457_v35 = vrot.slane %v8147_v26, %v8125_v40 }
 0x106   : > { %v1519_v16 = vadd.f32 %v1510_v31, %v1468_v13  ;;  %vm1448_vm9 = vcmp.eq.s32.totalorder %v8136_v47, %v1436_v20  ;;  %v1478_v36 = vrot.slane %v8160_v42, %v8125_v40  ;;  %v1499_v37 = vrot.slane %v8158_v38, %v8125_v40 }
 0x107   : > { %1575 = vrot.lane.b32.xlu1 %v1525_v25, %s8006_s27  ;;  %1569 = vrot.lane.b32.xlu0 %v1522_v29, %s8006_s27  ;;  %v1469_v43 = vsel %vm1448_vm9, %v1457_v35, 0.0  ;;  %v714_v45 = vrot.slane %v7910_v3, %v8122_v39  ;;  %v728_v50 = vrot.slane %v8208_v1, %v8122_v39  ;;  %v742_v51 = vrot.slane %v8225_v11, %v8122_v39 }
 0x108   : > { %vm1490_vm10 = vcmp.eq.s32.totalorder %v8136_v47, %v1478_v36  ;;  %v756_v54 = vrot.slane %v8223_v10, %v8122_v39  ;;  %vm719_vm11 = vcmp.eq.s32.totalorder %v8133_v46, %v8202_v60  ;;  %vm747_vm12 = vcmp.eq.s32.totalorder %v8133_v46, %v8213_v6 }
 0x109   : > { %v1511_v57 = vsel %vm1490_vm10, %v1499_v37, 0.0  ;;  %vm720_vm13 = vcmp.eq.s32.totalorder %v8133_v46, %v714_v45  ;;  %vm748_vm14 = vcmp.eq.s32.totalorder %v8133_v46, %v742_v51  ;;  %v733_v2 = vsel %vm719_vm11, %v8206_v62, 0.0 }
 0x10a   : > { %v1520_v5 = vadd.f32 %v1511_v57, %v1469_v43  ;;  %v734_v8 = vsel %vm720_vm13, %v728_v50, 0.0  ;;  %v762_v41 = vsel %vm748_vm14, %v756_v54, 0.0  ;;  %v761_v12 = vsel %vm747_vm12, %v8217_v56, 0.0 }
 0x10b   : > { %1563 = vrot.lane.b32.xlu0 %v1519_v16, %s8006_s27  ;;  %v768_v13 = vadd.f32 %v762_v41, %v734_v8  ;;  %v767_v14 = vadd.f32 %v761_v12, %v733_v2  ;;  %vm1451_vm15 = vcmp.eq.s32.totalorder %v8133_v46, %v1436_v20  ;;  %vm1493_vm0 = vcmp.eq.s32.totalorder %v8133_v46, %v1478_v36 }
 0x10c   : > { %1565 = vrot.lane.b32.xlu1 %v1520_v5, %s8006_s27  ;;  %v1472_v15 = vsel %vm1451_vm15, %v1457_v35, 0.0  ;;  %v1514_v25 = vsel %vm1493_vm0, %v1499_v37, 0.0  ;;  %vm1445_vm1 = vcmp.eq.s32.totalorder %v8110_v28, %v1436_v20  ;;  %vm1487_vm2 = vcmp.eq.s32.totalorder %v8110_v28, %v1478_v36 }
 0x10d   : > { %892 = vmatprep.subr.mxu0 %v768_v13  ;;  %7891 = vmatprep.subr.mxu1 %v768_v13  ;;  %v1523_v29 = vadd.f32 %v1514_v25, %v1472_v15  ;;  %v1466_v31 = vsel %vm1445_vm1, %v1457_v35, 0.0  ;;  %v1508_v16 = vsel %vm1487_vm2, %v1499_v37, 0.0  ;;  %vm718_vm3 = vcmp.eq.s32.totalorder %v8136_v47, %v714_v45  ;;  %v770_v15 = vld [vmem:[%s8280_s6 + $0x8] sm:$0xff] }
 0x10e   : > { %893 = vmatpush1.msra.mxu0 %v767_v14  ;;  %7894 = vmatpush1.msra.mxu1 %v767_v14  ;;  %v1517_v43 = vadd.f32 %v1508_v16, %v1466_v31  ;;  %v732_v57 = vsel %vm718_vm3, %v728_v50, 0.0  ;;  %vm746_vm4 = vcmp.eq.s32.totalorder %v8136_v47, %v742_v51  ;;  %vm717_vm5 = vcmp.eq.s32.totalorder %v8136_v47, %v8202_v60  ;;  %v782_v25 = vld [vmem:[%s8280_s6 + $0x68] sm:$0xff] }
 0x10f   : > { %1571 = vrot.lane.b32.xlu0 %v1523_v29, %s8006_s27  ;;  %v760_v20 = vsel %vm746_vm4, %v756_v54, 0.0  ;;  %v731_v36 = vsel %vm717_vm5, %v8206_v62, 0.0  ;;  %vm745_vm6 = vcmp.eq.s32.totalorder %v8136_v47, %v8213_v6  ;;  %vm716_vm7 = vcmp.eq.s32.totalorder %v8110_v28, %v714_v45 }
 0x110   : > { %1559 = vrot.lane.b32.xlu1 %v1517_v43, %s8006_s27  ;;  %v766_v35 = vadd.f32 %v760_v20, %v732_v57  ;;  %v759_v37 = vsel %vm745_vm6, %v8217_v56, 0.0  ;;  %v730_v2 = vsel %vm716_vm7, %v728_v50, 0.0  ;;  %vm744_vm8 = vcmp.eq.s32.totalorder %v8110_v28, %v742_v51 }
 0x111   : > { %v765_v5 = vadd.f32 %v759_v37, %v731_v36  ;;  %v758_v8 = vsel %vm744_vm8, %v756_v54, 0.0  ;;  %vm715_vm9 = vcmp.eq.s32.totalorder %v8110_v28, %v8202_v60  ;;  %vm743_vm10 = vcmp.eq.s32.totalorder %v8110_v28, %v8213_v6  ;;  %v769_v54 = vld [vmem:[%s8280_s6] sm:$0xff] }
 0x112   : > { %894 = vmatprep.subr.mxu0 %v766_v35  ;;  %7892 = vmatprep.subr.mxu1 %v766_v35  ;;  %v764_v45 = vadd.f32 %v758_v8, %v730_v2  ;;  %v729_v41 = vsel %vm715_vm9, %v8206_v62, 0.0  ;;  %v757_v12 = vsel %vm743_vm10, %v8217_v56, 0.0  ;;  %v8294_v50 = vrot.slane %v7932_v7, %v8140_v52  ;;  %v781_v62 = vld [vmem:[%s8280_s6 + $0x60] sm:$0xff]  ;;  %v771_v8 = vld [vmem:[%s8280_s6 + $0x10] sm:$0xff] }
 0x113   : > { %895 = vmatpush1.msra.mxu0 %v765_v5  ;;  %7895 = vmatpush1.msra.mxu1 %v765_v5  ;;  %v763_v51 = vadd.f32 %v757_v12, %v729_v41  ;;  %v8298_v60 = vrot.slane %v8177_v9, %v8140_v52  ;;  %v8302_v6 = vrot.slane %v8183_v18, %v8140_v52  ;;  %vm793_vm11 = vcmask 195584  }
 0x114   : > { %896 = vmatprep.subr.mxu0 %v764_v45  ;;  %7893 = vmatprep.subr.mxu1 %v764_v45  ;;  %vm2229_vm12 = vcmp.eq.s32.totalorder %v8133_v46, %v8294_v50  ;;  %v8310_v63 = vrot.slane %v8181_v17, %v8140_v52  ;;  %v1440_v7 = vrot.slane %v8167_v53, %v8125_v40 }
 0x115   : > { %897 = vmatpush1.msra.mxu0 %v763_v51  ;;  %7896 = vmatpush1.msra.mxu1 %v763_v51  ;;  %v2250_v9 = vsel %vm2229_vm12, %v8298_v60, 0.0  ;;  %vm2271_vm13 = vcmp.eq.s32.totalorder %v8133_v46, %v8302_v6  ;;  %v1461_v18 = vrot.slane %v8162_v48, %v8125_v40  ;;  %v1482_v56 = vrot.slane %v8174_v4, %v8125_v40 }
 0x116   : > { %v2292_v17 = vsel %vm2271_vm13, %v8310_v63, 0.0  ;;  %vm1452_vm14 = vcmp.eq.s32.totalorder %v8133_v46, %v1440_v7  ;;  %v1503_v13 = vrot.slane %v8172_v61, %v8125_v40  ;;  %7645 = vmatmul.mubr.msk.f32.vlgmr.msra.gmra.mxu0 %vm793_vm11, %v769_v54  ;;  %7657 = vmatmul.mubr.msk.f32.vlgmr.msra.gmra.mxu1 %vm793_vm11, %v781_v62  ;;  %vm2226_vm15 = vcmp.eq.s32.totalorder %v8136_v47, %v8294_v50  ;;  %v772_v62 = vld [vmem:[%s8280_s6 + $0x18] sm:$0xff] }
 0x117   : > { %v2301_v14 = vadd.f32 %v2292_v17, %v2250_v9  ;;  %vm1494_vm0 = vcmp.eq.s32.totalorder %v8133_v46, %v1482_v56  ;;  %936 = vmatprep.mubr.f32.mxu0 %v14116_v0  ;;  %1008 = vmatprep.mubr.f32.mxu1 %v14116_v0  ;;  %v1473_v29 = vsel %vm1452_vm14, %v1461_v18, 0.0  ;;  %vm2268_vm1 = vcmp.eq.s32.totalorder %v8136_v47, %v8302_v6 }
 0x118   : > { %v1515_v31 = vsel %vm1494_vm0, %v1503_v13, 0.0  ;;  %vm1491_vm2 = vcmp.eq.s32.totalorder %v8136_v47, %v1482_v56  ;;  %v2247_v43 = vsel %vm2226_vm15, %v8298_v60, 0.0  ;;  %v2289_v57 = vsel %vm2268_vm1, %v8310_v63, 0.0 }
 0x119   : > { %2351 = vrot.lane.b32.xlu0 %v2301_v14, %s8006_s27  ;;  %v1524_v16 = vadd.f32 %v1515_v31, %v1473_v29  ;;  %vm1449_vm3 = vcmp.eq.s32.totalorder %v8136_v47, %v1440_v7  ;;  %v2298_v20 = vadd.f32 %v2289_v57, %v2247_v43  ;;  %v1512_v36 = vsel %vm1491_vm2, %v1503_v13, 0.0  ;;  %v774_v57 = vld [vmem:[%s8280_s6 + $0x28] sm:$0xff] }
 0x11a   : > { %7646 = vmatmul.mubr.msk.f32.gmra.mxu0 %vm793_vm11, %v770_v15  ;;  %7658 = vmatmul.mubr.msk.f32.gmra.mxu1 %vm793_vm11, %v782_v25  ;;  %v8346_v35 = vrot.slane %v7908_v49, %v8140_v52  ;;  %v8352_v37 = vrot.slane %v8190_v44, %v8140_v52  ;;  %v8356_v2 = vrot.slane %v8197_v59, %v8140_v52  ;;  %v1470_v49 = vsel %vm1449_vm3, %v1461_v18, 0.0 }
 0x11b   : > { %1573 = vrot.lane.b32.xlu1 %v1524_v16, %s8006_s27  ;;  %942 = vmatprep.mubr.f32.mxu0 %v14116_v0  ;;  %v8360_v5 = vrot.slane %v8195_v58, %v8140_v52  ;;  %vm1446_vm5 = vcmp.eq.s32.totalorder %v8110_v28, %v1440_v7  ;;  %vm1488_vm6 = vcmp.eq.s32.totalorder %v8110_v28, %v1482_v56  ;;  %v8373_v58 = vsub.s32 3, %v8110_v28  ;;  %v784_v7 = vld [vmem:[%s8280_s6 + $0x78] sm:$0xff] }
 0x11c   : > { %1014 = vmatprep.mubr.f32.mxu1 %v14116_v0  ;;  %vm2227_vm4 = vcmp.eq.s32.totalorder %v8133_v46, %v8346_v35  ;;  %v1521_v44 = vadd.f32 %v1512_v36, %v1470_v49  ;;  %vm2269_vm7 = vcmp.eq.s32.totalorder %v8133_v46, %v8356_v2  ;;  %v1509_v41 = vsel %vm1488_vm6, %v1503_v13, 0.0  ;;  %v773_v13 = vld [vmem:[%s8280_s6 + $0x20] sm:$0xff] }
 0x11d   : > { %2345 = vrot.lane.b32.xlu0 %v2298_v20, %s8006_s27  ;;  %14191 = vst [vmem:[#allocation8_spill] sm:$0xff] %v8373_v58  ;;  %v2248_v59 = vsel %vm2227_vm4, %v8352_v37, 0.0  ;;  %v2290_v45 = vsel %vm2269_vm7, %v8360_v5, 0.0  ;;  %vm2266_vm8 = vcmp.eq.s32.totalorder %v8136_v47, %v8356_v2  ;;  %v1467_v51 = vsel %vm1446_vm5, %v1461_v18, 0.0  ;;  %v786_v20 = vld [vmem:[%s8280_s6 + $0x88] sm:$0xff] }
 0x11e   : > { %7647 = vmatmul.mubr.msk.f32.gmra.mxu0 %vm793_vm11, %v771_v8  ;;  %7659 = vmatmul.mubr.msk.f32.gmra.mxu1 %vm793_vm11, %v783_v34  ;;  %v2299_v12 = vadd.f32 %v2290_v45, %v2248_v59  ;;  %vm2224_vm9 = vcmp.eq.s32.totalorder %v8136_v47, %v8346_v35  ;;  %v2216_v54 = vrot.slane %v7910_v3, %v8140_v52  ;;  %v2287_v9 = vsel %vm2266_vm8, %v8360_v5, 0.0 }
 0x11f   : > { %1567 = vrot.lane.b32.xlu1 %v1521_v44, %s8006_s27  ;;  %948 = vmatprep.mubr.f32.mxu0 %v14116_v0  ;;  %v2237_v56 = vrot.slane %v8208_v1, %v8140_v52  ;;  %v2258_v18 = vrot.slane %v8225_v11, %v8140_v52  ;;  %v2279_v17 = vrot.slane %v8223_v10, %v8140_v52  ;;  %v2245_v1 = vsel %vm2224_vm9, %v8352_v37, 0.0 }
 0x120   : > { %1020 = vmatprep.mubr.f32.mxu1 %v14116_v0  ;;  %v1518_v55 = vadd.f32 %v1509_v41, %v1467_v51  ;;  %vm2228_vm10 = vcmp.eq.s32.totalorder %v8133_v46, %v2216_v54  ;;  %vm2223_vm12 = vcmp.eq.s32.totalorder %v8110_v28, %v8294_v50  ;;  %vm2265_vm13 = vcmp.eq.s32.totalorder %v8110_v28, %v8302_v6  ;;  %v785_v6 = vld [vmem:[%s8280_s6 + $0x80] sm:$0xff] }
 0x121   : > { %2347 = vrot.lane.b32.xlu0 %v2299_v12, %s8006_s27  ;;  %vm2270_vm14 = vcmp.eq.s32.totalorder %v8133_v46, %v2258_v18  ;;  %v2286_v3 = vsel %vm2265_vm13, %v8310_v63, 0.0  ;;  %v2296_v10 = vadd.f32 %v2287_v9, %v2245_v1  ;;  %vm2267_vm15 = vcmp.eq.s32.totalorder %v8136_v47, %v2258_v18  ;;  %v787_v9 = vld [vmem:[%s8280_s6 + $0x90] sm:$0xff] }
 0x122   : > { %7648 = vmatmul.mubr.msk.f32.gmra.mxu0 %vm793_vm11, %v772_v62  ;;  %7660 = vmatmul.mubr.msk.f32.gmra.mxu1 %vm793_vm11, %v784_v7  ;;  %v2291_v11 = vsel %vm2270_vm14, %v2279_v17, 0.0  ;;  %v8416_v14 = vrot.slane %v8167_v53, %v8373_v58  ;;  %v2249_v15 = vsel %vm2228_vm10, %v2237_v56, 0.0  ;;  %v2244_v63 = vsel %vm2223_vm12, %v8298_v60, 0.0  ;;  %v775_v7 = vld [vmem:[%s8280_s6 + $0x30] sm:$0xff] }
 0x123   : > { %1561 = vrot.lane.b32.xlu1 %v1518_v55, %s8006_s27  ;;  %954 = vmatprep.mubr.f32.mxu0 %v14116_v0  ;;  %vm2225_vm0 = vcmp.eq.s32.totalorder %v8136_v47, %v2216_v54  ;;  %v8428_v25 = vrot.slane %v8174_v4, %v8373_v58  ;;  %v2300_v29 = vadd.f32 %v2291_v11, %v2249_v15  ;;  %v2288_v43 = vsel %vm2267_vm15, %v2279_v17, 0.0 }
 0x124   : > { %1026 = vmatprep.mubr.f32.mxu1 %v14116_v0  ;;  %v2295_v31 = vadd.f32 %v2286_v3, %v2244_v63  ;;  %v8433_v16 = vrot.slane %v8172_v61, %v8373_v58  ;;  %v8439_v50 = vrot.slane %v8162_v48, %v8373_v58  ;;  %vm2264_vm2 = vcmp.eq.s32.totalorder %v8110_v28, %v2258_v18 }
 0x125   : > { %2341 = vrot.lane.b32.xlu0 %v2296_v10, %s8006_s27  ;;  %vm3048_vm1 = vcmp.eq.s32.totalorder %v8133_v46, %v8428_v25  ;;  %v2246_v60 = vsel %vm2225_vm0, %v2237_v56, 0.0  ;;  %vm3006_vm3 = vcmp.eq.s32.totalorder %v8133_v46, %v8416_v14  ;;  %vm2222_vm4 = vcmp.eq.s32.totalorder %v8110_v28, %v2216_v54 }
 0x126   : > { %7649 = vmatmul.mubr.msk.f32.gmra.mxu0 %vm793_vm11, %v773_v13  ;;  %7661 = vmatmul.mubr.msk.f32.gmra.mxu1 %vm793_vm11, %v785_v6  ;;  %v8453_v36 = vrot.slane %v8149_v30, %v8373_v58  ;;  %v3069_v8 = vsel %vm3048_vm1, %v8433_v16, 0.0  ;;  %v2285_v34 = vsel %vm2264_vm2, %v2279_v17, 0.0  ;;  %v8459_v49 = vrot.slane %v8160_v42, %v8373_v58  ;;  %v776_v13 = vld [vmem:[%s8280_s6 + $0x38] sm:$0xff] }
 0x127   : > { %2349 = vrot.lane.b32.xlu1 %v2300_v29, %s8006_s27  ;;  %960 = vmatprep.mubr.f32.mxu0 %v14116_v0  ;;  %v8463_v44 = vrot.slane %v8158_v38, %v8373_v58  ;;  %v2297_v59 = vadd.f32 %v2288_v43, %v2246_v60  ;;  %v8468_v45 = vrot.slane %v8147_v26, %v8373_v58  ;;  %v3027_v12 = vsel %vm3006_vm3, %v8439_v50, 0.0  ;;  %v788_v6 = vld [vmem:[%s8280_s6 + $0x98] sm:$0xff] }
 0x128   : > { %1032 = vmatprep.mubr.f32.mxu1 %v14116_v0  ;;  %v8472_v41 = vrot.slane %v8145_v21, %v8373_v58  ;;  %v2243_v51 = vsel %vm2222_vm4, %v2237_v56, 0.0  ;;  %vm3005_vm5 = vcmp.eq.s32.totalorder %v8133_v46, %v8453_v36  ;;  %vm3047_vm6 = vcmp.eq.s32.totalorder %v8133_v46, %v8459_v49 }
 0x129   : > { %2339 = vrot.lane.b32.xlu0 %v2295_v31, %s8006_s27  ;;  %v3078_v54 = vadd.f32 %v3069_v8, %v3027_v12  ;;  %v2294_v62 = vadd.f32 %v2285_v34, %v2243_v51  ;;  %vm2263_vm7 = vcmp.eq.s32.totalorder %v8110_v28, %v8356_v2  ;;  %v3068_v56 = vsel %vm3047_vm6, %v8463_v44, 0.0 }
 0x12a   : > { %7650 = vmatmul.mubr.msk.f32.gmra.mxu0 %vm793_vm11, %v774_v57  ;;  %7662 = vmatmul.mubr.msk.f32.gmra.mxu1 %vm793_vm11, %v786_v20  ;;  %vm2221_vm8 = vcmp.eq.s32.totalorder %v8110_v28, %v8346_v35  ;;  %v8493_v18 = vrot.slane %v8153_v33, %v8373_v58  ;;  %v8497_v17 = vrot.slane %v8151_v32, %v8373_v58  ;;  %v3026_v2 = vsel %vm3005_vm5, %v8468_v45, 0.0  ;;  %v777_v57 = vld [vmem:[%s8280_s6 + $0x40] sm:$0xff] }
 0x12b   : > { %2343 = vrot.lane.b32.xlu1 %v2297_v59, %s8006_s27  ;;  %966 = vmatprep.mubr.f32.mxu0 %v14116_v0  ;;  %vm3004_vm9 = vcmp.eq.s32.totalorder %v8136_v47, %v8472_v41  ;;  %v8508_v55 = vrot.slane %v8143_v19, %v8373_v58  ;;  %v8512_v1 = vrot.slane %v8145_v21, %v8122_v39  ;;  %v2284_v3 = vsel %vm2263_vm7, %v8360_v5, 0.0  ;;  %v789_v20 = vld [vmem:[%s8280_s6 + $0xa0] sm:$0xff] }
 0x12c   : > { %1038 = vmatprep.mubr.f32.mxu1 %v14116_v0  ;;  %vm3046_vm10 = vcmp.eq.s32.totalorder %v8136_v47, %v8493_v18  ;;  %vm3049_vm12 = vcmp.eq.s32.totalorder %v8133_v46, %v8493_v18  ;;  %v8523_v10 = vrot.slane %v8153_v33, %v8122_v39  ;;  %v3077_v11 = vadd.f32 %v3068_v56, %v3026_v2 }
 0x12d   : > { %3127 = vrot.lane.b32.xlu0 %v3078_v54, %s8007_s7  ;;  %v3067_v5 = vsel %vm3046_vm10, %v8497_v17, 0.0  ;;  %v2242_v15 = vsel %vm2221_vm8, %v8352_v37, 0.0  ;;  %vm3007_vm13 = vcmp.eq.s32.totalorder %v8133_v46, %v8472_v41  ;;  %v8539_v63 = vrot.slane %v8151_v32, %v8122_v39 }
 0x12e   : > { %7651 = vmatmul.mubr.msk.f32.gmra.mxu0 %vm793_vm11, %v775_v7  ;;  %7663 = vmatmul.mubr.msk.f32.gmra.mxu1 %vm793_vm11, %v787_v9  ;;  %v2293_v29 = vadd.f32 %v2284_v3, %v2242_v15  ;;  %v3025_v35 = vsel %vm3004_vm9, %v8508_v55, 0.0  ;;  %v3070_v37 = vsel %vm3049_vm12, %v8497_v17, 0.0  ;;  %vm3811_vm14 = vcmp.eq.s32.totalorder %v8133_v46, %v8523_v10 }
 0x12f   : > { %2337 = vrot.lane.b32.xlu1 %v2294_v62, %s8006_s27  ;;  %972 = vmatprep.mubr.f32.mxu0 %v14116_v0  ;;  %v3076_v31 = vadd.f32 %v3067_v5, %v3025_v35  ;;  %vm3769_vm15 = vcmp.eq.s32.totalorder %v8133_v46, %v8512_v1  ;;  %v8555_v43 = vrot.slane %v8143_v19, %v8122_v39  ;;  %v3028_v60 = vsel %vm3007_vm13, %v8508_v55, 0.0  ;;  %v790_v5 = vld [vmem:[%s8280_s6 + $0xa8] sm:$0xff] }
 0x130   : > { %1044 = vmatprep.mubr.f32.mxu1 %v14116_v0  ;;  %vm3045_vm0 = vcmp.eq.s32.totalorder %v8136_v47, %v8428_v25  ;;  %v8566_v8 = vrot.slane %v8149_v30, %v8122_v39  ;;  %v8570_v34 = vrot.slane %v8160_v42, %v8122_v39  ;;  %v3079_v59 = vadd.f32 %v3070_v37, %v3028_v60  ;;  %v791_v60 = vld [vmem:[%s8280_s6 + $0xb0] sm:$0xff] }
 0x131   : > { %3125 = vrot.lane.b32.xlu0 %v3077_v11, %s8007_s7  ;;  %v3832_v12 = vsel %vm3811_vm14, %v8539_v63, 0.0  ;;  %v8579_v51 = vrot.slane %v8158_v38, %v8122_v39  ;;  %vm3003_vm1 = vcmp.eq.s32.totalorder %v8136_v47, %v8416_v14  ;;  %v8588_v54 = vrot.slane %v8167_v53, %v8122_v39  ;;  %v778_v11 = vld [vmem:[%s8280_s6 + $0x48] sm:$0xff] }
 0x132   : > { %7652 = vmatmul.mubr.msk.f32.gmra.mxu0 %vm793_vm11, %v776_v13  ;;  %7664 = vmatmul.mubr.msk.f32.gmra.mxu1 %vm793_vm11, %v788_v6  ;;  %vm3809_vm2 = vcmp.eq.s32.totalorder %v8133_v46, %v8570_v34  ;;  %v8592_v62 = vrot.slane %v8174_v4, %v8122_v39  ;;  %v3790_v7 = vsel %vm3769_vm15, %v8555_v43, 0.0  ;;  %v3066_v9 = vsel %vm3045_vm0, %v8433_v16, 0.0 }
 0x133   : > { %2335 = vrot.lane.b32.xlu1 %v2293_v29, %s8006_s27  ;;  %978 = vmatprep.mubr.f32.mxu0 %v14116_v0  ;;  %v8603_v56 = vrot.slane %v8147_v26, %v8122_v39  ;;  %v8607_v2 = vrot.slane %v8172_v61, %v8122_v39  ;;  %v3841_v3 = vadd.f32 %v3832_v12, %v3790_v7  ;;  %v3024_v13 = vsel %vm3003_vm1, %v8439_v50, 0.0  ;;  %v780_v7 = vld [vmem:[%s8280_s6 + $0x58] sm:$0xff] }
 0x134   : > { %1050 = vmatprep.mubr.f32.mxu1 %v14116_v0  ;;  %vm3767_vm3 = vcmp.eq.s32.totalorder %v8133_v46, %v8566_v8  ;;  %vm3810_vm4 = vcmp.eq.s32.totalorder %v8133_v46, %v8592_v62  ;;  %v3830_v6 = vsel %vm3809_vm2, %v8579_v51, 0.0  ;;  %v8628_v15 = vrot.slane %v8162_v48, %v8122_v39 }
 0x135   : > { %3123 = vrot.lane.b32.xlu0 %v3076_v31, %s8007_s7  ;;  %v3075_v29 = vadd.f32 %v3066_v9, %v3024_v13  ;;  %vm3768_vm5 = vcmp.eq.s32.totalorder %v8133_v46, %v8588_v54  ;;  %vm3043_vm6 = vcmp.eq.s32.totalorder %v8110_v28, %v8493_v18  ;;  %v3788_v35 = vsel %vm3767_vm3, %v8603_v56, 0.0  ;;  %v779_v18 = vld [vmem:[%s8280_s6 + $0x50] sm:$0xff]  ;;  %v792_v9 = vld [vmem:[%s8280_s6 + $0xb8] sm:$0xff] }
 0x136   : > { %7653 = vmatmul.mubr.msk.f32.gmra.mxu0 %vm793_vm11, %v777_v57  ;;  %7665 = vmatmul.mubr.msk.f32.gmra.mxu1 %vm793_vm11, %v789_v20  ;;  %v3831_v37 = vsel %vm3810_vm4, %v8607_v2, 0.0  ;;  %v3839_v31 = vadd.f32 %v3830_v6, %v3788_v35  ;;  %vm3001_vm7 = vcmp.eq.s32.totalorder %v8110_v28, %v8472_v41  ;;  %vm3044_vm8 = vcmp.eq.s32.totalorder %v8136_v47, %v8459_v49 }
 0x137   : > { %3129 = vrot.lane.b32.xlu1 %v3079_v59, %s8007_s7  ;;  %984 = vmatprep.mubr.f32.mxu0 %v14116_v0  ;;  %v3789_v57 = vsel %vm3768_vm5, %v8628_v15, 0.0  ;;  %v3064_v20 = vsel %vm3043_vm6, %v8497_v17, 0.0  ;;  %vm3002_vm9 = vcmp.eq.s32.totalorder %v8136_v47, %v8453_v36  ;;  %vm3808_vm10 = vcmp.eq.s32.totalorder %v8136_v47, %v8523_v10 }
 0x138   : > { %1056 = vmatprep.mubr.f32.mxu1 %v14116_v0  ;;  %v3840_v59 = vadd.f32 %v3831_v37, %v3789_v57  ;;  %v3022_v41 = vsel %vm3001_vm7, %v8508_v55, 0.0  ;;  %v3065_v12 = vsel %vm3044_vm8, %v8463_v44, 0.0  ;;  %vm3766_vm12 = vcmp.eq.s32.totalorder %v8136_v47, %v8512_v1 }
 0x139   : > { %3891 = vrot.lane.b32.xlu0 %v3841_v3, %s8008_s8  ;;  %v3073_v17 = vadd.f32 %v3064_v20, %v3022_v41  ;;  %vm3042_vm13 = vcmp.eq.s32.totalorder %v8110_v28, %v8428_v25  ;;  %v3023_v55 = vsel %vm3002_vm9, %v8468_v45, 0.0  ;;  %v3829_v3 = vsel %vm3808_vm10, %v8539_v63, 0.0 }
 0x13a   : > { %7654 = vmatmul.mubr.msk.f32.gmra.mxu0 %vm793_vm11, %v778_v11  ;;  %7666 = vmatmul.mubr.msk.f32.gmra.mxu1 %vm793_vm11, %v790_v5  ;;  %v3074_v11 = vadd.f32 %v3065_v12, %v3023_v55  ;;  %vm3000_vm14 = vcmp.eq.s32.totalorder %v8110_v28, %v8416_v14  ;;  %vm3806_vm15 = vcmp.eq.s32.totalorder %v8136_v47, %v8570_v34  ;;  %v3787_v5 = vsel %vm3766_vm12, %v8555_v43, 0.0 }
 0x13b   : > { %3121 = vrot.lane.b32.xlu1 %v3075_v29, %s8007_s7  ;;  %990 = vmatprep.mubr.f32.mxu0 %v14116_v0  ;;  %v3063_v25 = vsel %vm3042_vm13, %v8433_v16, 0.0  ;;  %v3838_v13 = vadd.f32 %v3829_v3, %v3787_v5  ;;  %vm3764_vm0 = vcmp.eq.s32.totalorder %v8136_v47, %v8566_v8  ;;  %vm3807_vm1 = vcmp.eq.s32.totalorder %v8136_v47, %v8592_v62 }
 0x13c   : > { %1062 = vmatprep.mubr.f32.mxu1 %v14116_v0  ;;  %v8685_v14 = vsub.s32 2, %v8110_v28  ;;  %v3021_v16 = vsel %vm3000_vm14, %v8439_v50, 0.0  ;;  %v3827_v6 = vsel %vm3806_vm15, %v8579_v51, 0.0  ;;  %vm3765_vm2 = vcmp.eq.s32.totalorder %v8136_v47, %v8588_v54 }
 0x13d   : > { %3887 = vrot.lane.b32.xlu0 %v3839_v31, %s8008_s8  ;;  %v3072_v29 = vadd.f32 %v3063_v25, %v3021_v16  ;;  %vm3805_vm3 = vcmp.eq.s32.totalorder %v8110_v28, %v8523_v10  ;;  %v3785_v37 = vsel %vm3764_vm0, %v8603_v56, 0.0  ;;  %v3828_v50 = vsel %vm3807_vm1, %v8607_v2, 0.0 }
 0x13e   : > { %7655 = vmatmul.mubr.msk.f32.gmra.mxu0 %vm793_vm11, %v779_v18  ;;  %7667 = vmatmul.mubr.msk.f32.gmra.mxu1 %vm793_vm11, %v791_v60  ;;  %14192 = vst [vmem:[#allocation9_spill] sm:$0xff] %v8685_v14  ;;  %v8698_v35 = vrot.slane %v8174_v4, %v8685_v14  ;;  %v3836_v31 = vadd.f32 %v3827_v6, %v3785_v37  ;;  %v3786_v18 = vsel %vm3765_vm2, %v8628_v15, 0.0  ;;  %v3826_v60 = vsel %vm3805_vm3, %v8539_v63, 0.0 }
 0x13f   : > { %3889 = vrot.lane.b32.xlu1 %v3840_v59, %s8008_s8  ;;  %996 = vmatprep.mubr.f32.mxu0 %v14116_v0  ;;  %vm3763_vm4 = vcmp.eq.s32.totalorder %v8110_v28, %v8512_v1  ;;  %vm3041_vm5 = vcmp.eq.s32.totalorder %v8110_v28, %v8459_v49  ;;  %v8709_v10 = vrot.slane %v8167_v53, %v8685_v14  ;;  %v8763_v55 = vsub.s32 6, %v8110_v28 }
 0x140   : > { %1068 = vmatprep.mubr.f32.mxu1 %v14116_v0  ;;  %v8715_v57 = vrot.slane %v8172_v61, %v8685_v14  ;;  %v3837_v20 = vadd.f32 %v3828_v50, %v3786_v18  ;;  %vm2999_vm6 = vcmp.eq.s32.totalorder %v8110_v28, %v8453_v36  ;;  %vm4572_vm7 = vcmp.eq.s32.totalorder %v8133_v46, %v8698_v35 }
 0x141   : > { %3117 = vrot.lane.b32.xlu0 %v3073_v17, %s8007_s7  ;;  %v8724_v49 = vrot.slane %v8160_v42, %v8685_v14  ;;  %v3784_v1 = vsel %vm3763_vm4, %v8555_v43, 0.0  ;;  %v3062_v63 = vsel %vm3041_vm5, %v8463_v44, 0.0  ;;  %v8730_v59 = vrot.slane %v8162_v48, %v8685_v14  ;;  %14193 = vst [vmem:[#allocation10_spill] sm:$0xff] %v8763_v55 }
 0x142   : > { %7656 = vmatmul.mubr.msk.f32.gmra.mxu0 %vm793_vm11, %v780_v7  ;;  %7668 = vmatmul.mubr.msk.f32.gmra.mxu1 %vm793_vm11, %v792_v9  ;;  %v3835_v41 = vadd.f32 %v3826_v60, %v3784_v1  ;;  %vm4530_vm8 = vcmp.eq.s32.totalorder %v8133_v46, %v8709_v10  ;;  %vm3804_vm9 = vcmp.eq.s32.totalorder %v8110_v28, %v8592_v62  ;;  %v3020_v43 = vsel %vm2999_vm6, %v8468_v45, 0.0 }
 0x143   : > { %3119 = vrot.lane.b32.xlu1 %v3074_v11, %s8007_s7  ;;  %1726 = vmatprep.mubr.f32.mxu1 %v14116_v0  ;;  %v8739_v36 = vrot.slane %v8149_v30, %v8685_v14  ;;  %v4593_v44 = vsel %vm4572_vm7, %v8715_v57, 0.0  ;;  %v8745_v12 = vrot.slane %v8158_v38, %v8685_v14  ;;  %v3071_v17 = vadd.f32 %v3062_v63, %v3020_v43 }
 0x144   : > { %2501 = vmatprep.mubr.f32.mxu0 %v14116_v0  ;;  %vm3762_vm10 = vcmp.eq.s32.totalorder %v8110_v28, %v8588_v54  ;;  %vm4571_vm12 = vcmp.eq.s32.totalorder %v8133_v46, %v8724_v49  ;;  %v8754_v62 = vrot.slane %v8153_v33, %v8685_v14  ;;  %v4551_v45 = vsel %vm4530_vm8, %v8730_v59, 0.0 }
 0x145   : > { %3885 = vrot.lane.b32.xlu0 %v3838_v13, %s8008_s8  ;;  %v3825_v7 = vsel %vm3804_vm9, %v8607_v2, 0.0  ;;  %v8760_v9 = vrot.slane %v8147_v26, %v8685_v14  ;;  %v4602_v54 = vadd.f32 %v4593_v44, %v4551_v45  ;;  %vm4529_vm13 = vcmp.eq.s32.totalorder %v8133_v46, %v8739_v36 }
 0x146   : > { %vm3803_vm14 = vcmp.eq.s32.totalorder %v8110_v28, %v8570_v34  ;;  %v8772_v3 = vrot.slane %v8145_v21, %v8685_v14  ;;  %v3783_v2 = vsel %vm3762_vm10, %v8628_v15, 0.0  ;;  %v4592_v11 = vsel %vm4571_vm12, %v8745_v12, 0.0 }
 0x147   : > { %3115 = vrot.lane.b32.xlu1 %v3072_v29, %s8007_s7  ;;  %v4585_v5 = vrot.slane %v8151_v32, %v8685_v14  ;;  %v3834_v25 = vadd.f32 %v3825_v7, %v3783_v2  ;;  %vm3761_vm15 = vcmp.eq.s32.totalorder %v8110_v28, %v8566_v8  ;;  %vm4570_vm0 = vcmp.eq.s32.totalorder %v8136_v47, %v8754_v62 }
 0x148   : > { %v8785_v34 = vrot.slane %v8153_v33, %v8763_v55  ;;  %v4550_v15 = vsel %vm4529_vm13, %v8760_v9, 0.0  ;;  %v3824_v13 = vsel %vm3803_vm14, %v8579_v51, 0.0  ;;  %v4543_v16 = vrot.slane %v8143_v19, %v8685_v14 }
 0x149   : > { %3881 = vrot.lane.b32.xlu0 %v3836_v31, %s8008_s8  ;;  %v8793_v6 = vrot.slane %v8145_v21, %v8763_v55  ;;  %v4601_v8 = vadd.f32 %v4592_v11, %v4550_v15  ;;  %vm4528_vm1 = vcmp.eq.s32.totalorder %v8136_v47, %v8772_v3  ;;  %vm4573_vm2 = vcmp.eq.s32.totalorder %v8133_v46, %v8754_v62 }
 0x14a   : > { %v3782_v29 = vsel %vm3761_vm15, %v8603_v56, 0.0  ;;  %v4591_v37 = vsel %vm4570_vm0, %v4585_v5, 0.0  ;;  %v8803_v51 = vrot.slane %v8151_v32, %v8763_v55  ;;  %vm4531_vm3 = vcmp.eq.s32.totalorder %v8133_v46, %v8772_v3 }
 0x14b   : > { %3883 = vrot.lane.b32.xlu1 %v3837_v20, %s8008_s8  ;;  %v3833_v50 = vadd.f32 %v3824_v13, %v3782_v29  ;;  %vm5334_vm4 = vcmp.eq.s32.totalorder %v8133_v46, %v8785_v34  ;;  %v8812_v31 = vrot.slane %v8160_v42, %v8763_v55  ;;  %v4549_v18 = vsel %vm4528_vm1, %v4543_v16, 0.0 }
 0x14c   : > { %v4594_v56 = vsel %vm4573_vm2, %v4585_v5, 0.0  ;;  %vm5292_vm5 = vcmp.eq.s32.totalorder %v8133_v46, %v8793_v6  ;;  %v8818_v60 = vrot.slane %v8143_v19, %v8763_v55  ;;  %v4600_v20 = vadd.f32 %v4591_v37, %v4549_v18 }
 0x14d   : > { %3879 = vrot.lane.b32.xlu0 %v3835_v41, %s8008_s8  ;;  %vm4569_vm6 = vcmp.eq.s32.totalorder %v8136_v47, %v8698_v35  ;;  %v8825_v1 = vrot.slane %v8149_v30, %v8763_v55  ;;  %v8829_v63 = vrot.slane %v8174_v4, %v8763_v55  ;;  %v4552_v41 = vsel %vm4531_vm3, %v4543_v16, 0.0 }
 0x14e   : > { %v5355_v43 = vsel %vm5334_vm4, %v8803_v51, 0.0  ;;  %v8834_v44 = vrot.slane %v8158_v38, %v8763_v55  ;;  %vm4527_vm7 = vcmp.eq.s32.totalorder %v8136_v47, %v8709_v10  ;;  %vm5332_vm8 = vcmp.eq.s32.totalorder %v8133_v46, %v8812_v31 }
 0x14f   : > { %3113 = vrot.lane.b32.xlu1 %v3071_v17, %s8007_s7  ;;  %v4603_v17 = vadd.f32 %v4594_v56, %v4552_v41  ;;  %v8843_v45 = vrot.slane %v8167_v53, %v8763_v55  ;;  %v5313_v7 = vsel %vm5292_vm5, %v8818_v60, 0.0  ;;  %v8849_v2 = vrot.slane %v8147_v26, %v8763_v55 }
 0x150   : > { %v8853_v11 = vrot.slane %v8172_v61, %v8763_v55  ;;  %vm5290_vm9 = vcmp.eq.s32.totalorder %v8133_v46, %v8825_v1  ;;  %vm5333_vm10 = vcmp.eq.s32.totalorder %v8133_v46, %v8829_v63  ;;  %v4548_v15 = vsel %vm4527_vm7, %v8730_v59, 0.0 }
 0x151   : > { %4651 = vrot.lane.b32.xlu0 %v4602_v54, %s8008_s8  ;;  %v4590_v54 = vsel %vm4569_vm6, %v8715_v57, 0.0  ;;  %v5353_v13 = vsel %vm5332_vm8, %v8834_v44, 0.0  ;;  %vm5291_vm12 = vcmp.eq.s32.totalorder %v8133_v46, %v8843_v45  ;;  %vm4567_vm13 = vcmp.eq.s32.totalorder %v8110_v28, %v8754_v62 }
 0x152   : > { %v4599_v29 = vadd.f32 %v4590_v54, %v4548_v15  ;;  %v5311_v37 = vsel %vm5290_vm9, %v8849_v2, 0.0  ;;  %vm4525_vm14 = vcmp.eq.s32.totalorder %v8110_v28, %v8772_v3  ;;  %vm4568_vm15 = vcmp.eq.s32.totalorder %v8136_v47, %v8724_v49 }
 0x153   : > { %3877 = vrot.lane.b32.xlu1 %v3834_v25, %s8008_s8  ;;  %v5364_v25 = vadd.f32 %v5355_v43, %v5313_v7  ;;  %v5362_v18 = vadd.f32 %v5353_v13, %v5311_v37  ;;  %vm4526_vm0 = vcmp.eq.s32.totalorder %v8136_v47, %v8739_v36  ;;  %vm5331_vm1 = vcmp.eq.s32.totalorder %v8136_v47, %v8785_v34 }
 0x154   : > { %v4546_v62 = vsel %vm4525_vm14, %v4543_v16, 0.0  ;;  %v4589_v43 = vsel %vm4568_vm15, %v8745_v12, 0.0  ;;  %vm5289_vm2 = vcmp.eq.s32.totalorder %v8136_v47, %v8793_v6  ;;  %vm4566_vm3 = vcmp.eq.s32.totalorder %v8110_v28, %v8698_v35 }
 0x155   : > { %4649 = vrot.lane.b32.xlu0 %v4601_v8, %s8008_s8  ;;  %v8864_v8 = vrot.slane %v8162_v48, %v8763_v55  ;;  %vm4524_vm4 = vcmp.eq.s32.totalorder %v8110_v28, %v8709_v10  ;;  %vm5329_vm5 = vcmp.eq.s32.totalorder %v8136_v47, %v8812_v31  ;;  %v5310_v16 = vsel %vm5289_vm2, %v8818_v60, 0.0 }
 0x156   : > { %v4587_v54 = vsel %vm4566_vm3, %v8715_v57, 0.0  ;;  %vm5287_vm6 = vcmp.eq.s32.totalorder %v8136_v47, %v8825_v1  ;;  %vm5330_vm7 = vcmp.eq.s32.totalorder %v8136_v47, %v8829_v63  ;;  %v4545_v10 = vsel %vm4524_vm4, %v8730_v59, 0.0 }
 0x157   : > { %3875 = vrot.lane.b32.xlu1 %v3833_v50, %s8008_s8  ;;  %v5354_v50 = vsel %vm5333_vm10, %v8853_v11, 0.0  ;;  %v5312_v56 = vsel %vm5291_vm12, %v8864_v8, 0.0  ;;  %v5350_v15 = vsel %vm5329_vm5, %v8834_v44, 0.0  ;;  %v4596_v13 = vadd.f32 %v4587_v54, %v4545_v10 }
 0x158   : > { %v5363_v41 = vadd.f32 %v5354_v50, %v5312_v56  ;;  %vm5288_vm8 = vcmp.eq.s32.totalorder %v8136_v47, %v8843_v45  ;;  %vm5328_vm9 = vcmp.eq.s32.totalorder %v8110_v28, %v8785_v34  ;;  %v5351_v37 = vsel %vm5330_vm7, %v8853_v11, 0.0 }
 0x159   : > { %4647 = vrot.lane.b32.xlu0 %v4600_v20, %s8008_s8  ;;  %v4588_v20 = vsel %vm4567_vm13, %v4585_v5, 0.0  ;;  %v4547_v5 = vsel %vm4526_vm0, %v8760_v9, 0.0  ;;  %vm5286_vm10 = vcmp.eq.s32.totalorder %v8110_v28, %v8793_v6  ;;  %vm4565_vm12 = vcmp.eq.s32.totalorder %v8110_v28, %v8724_v49 }
 0x15a   : > { %v4597_v3 = vadd.f32 %v4588_v20, %v4546_v62  ;;  %v4598_v7 = vadd.f32 %v4589_v43, %v4547_v5  ;;  %v5309_v50 = vsel %vm5288_vm8, %v8864_v8, 0.0  ;;  %vm4523_vm13 = vcmp.eq.s32.totalorder %v8110_v28, %v8739_v36 }
 0x15b   : > { %4653 = vrot.lane.b32.xlu1 %v4603_v17, %s8008_s8  ;;  %v5352_v17 = vsel %vm5331_vm1, %v8803_v51, 0.0  ;;  %v5360_v20 = vadd.f32 %v5351_v37, %v5309_v50  ;;  %v5307_v6 = vsel %vm5286_vm10, %v8818_v60, 0.0  ;;  %vm5327_vm15 = vcmp.eq.s32.totalorder %v8110_v28, %v8829_v63 }
 0x15c   : > { %v5361_v35 = vadd.f32 %v5352_v17, %v5310_v16  ;;  %v8960_v60 = vsub.s32 5, %v8110_v28  ;;  %vm5285_vm1 = vcmp.eq.s32.totalorder %v8110_v28, %v8843_v45  ;;  %v5348_v5 = vsel %vm5327_vm15, %v8853_v11, 0.0 }
 0x15d   : > { %5414 = vrot.lane.b32.xlu0 %v5364_v25, %s8007_s7  ;;  %v8905_v25 = vsub.s32 4, %v8110_v28  ;;  %vm5326_vm3 = vcmp.eq.s32.totalorder %v8110_v28, %v8812_v31  ;;  %v5306_v16 = vsel %vm5285_vm1, %v8864_v8, 0.0  ;;  %vm5284_vm5 = vcmp.eq.s32.totalorder %v8110_v28, %v8825_v1 }
 0x15e   : > { %14195 = vst [vmem:[#allocation12_spill] sm:$0xff] %v8960_v60  ;;  %v5347_v31 = vsel %vm5326_vm3, %v8834_v44, 0.0  ;;  %v9009_v8 = vrot.slane %v8145_v21, %v8960_v60  ;;  %v9036_v50 = vrot.slane %v8151_v32, %v8960_v60 }
 0x15f   : > { %4645 = vrot.lane.b32.xlu1 %v4599_v29, %s8008_s8  ;;  %14194 = vst [vmem:[#allocation11_spill] sm:$0xff] %v8905_v25  ;;  %v8916_v57 = vrot.slane %v8174_v4, %v8905_v25  ;;  %v5308_v29 = vsel %vm5287_vm6, %v8849_v2, 0.0  ;;  %v8927_v34 = vrot.slane %v8167_v53, %v8905_v25  ;;  %v8933_v56 = vrot.slane %v8172_v61, %v8905_v25 }
 0x160   : > { %v5359_v59 = vadd.f32 %v5350_v15, %v5308_v29  ;;  %v8942_v49 = vrot.slane %v8160_v42, %v8905_v25  ;;  %v8957_v62 = vrot.slane %v8149_v30, %v8905_v25  ;;  %v8968_v63 = vrot.slane %v8158_v38, %v8905_v25 }
 0x161   : > { %5410 = vrot.lane.b32.xlu0 %v5362_v18, %s8007_s7  ;;  %v5349_v18 = vsel %vm5328_vm9, %v8803_v51, 0.0  ;;  %vm6094_vm14 = vcmp.eq.s32.totalorder %v8133_v46, %v8916_v57  ;;  %v4586_v51 = vsel %vm4565_vm12, %v8745_v12, 0.0  ;;  %vm6052_vm0 = vcmp.eq.s32.totalorder %v8133_v46, %v8927_v34 }
 0x162   : > { %v5358_v36 = vadd.f32 %v5349_v18, %v5307_v6  ;;  %v4544_v12 = vsel %vm4523_vm13, %v8760_v9, 0.0  ;;  %v6115_v43 = vsel %vm6094_vm14, %v8933_v56, 0.0  ;;  %vm6093_vm2 = vcmp.eq.s32.totalorder %v8133_v46, %v8942_v49 }
 0x163   : > { %5412 = vrot.lane.b32.xlu1 %v5363_v41, %s8007_s7  ;;  %v8948_v41 = vrot.slane %v8162_v48, %v8905_v25  ;;  %v8976_v9 = vrot.slane %v8153_v33, %v8905_v25  ;;  %v8981_v45 = vrot.slane %v8147_v26, %v8905_v25  ;;  %vm6051_vm4 = vcmp.eq.s32.totalorder %v8133_v46, %v8957_v62 }
 0x164   : > { %v8994_v54 = vrot.slane %v8145_v21, %v8905_v25  ;;  %v6114_v10 = vsel %vm6093_vm2, %v8968_v63, 0.0  ;;  %v9013_v15 = vrot.slane %v8153_v33, %v8960_v60  ;;  %v5305_v21 = vsel %vm5284_vm5, %v8849_v2, 0.0 }
 0x165   : > { %4641 = vrot.lane.b32.xlu0 %v4597_v3, %s8008_s8  ;;  %v4595_v3 = vadd.f32 %v4586_v51, %v4544_v12  ;;  %v6073_v17 = vsel %vm6052_vm0, %v8948_v41, 0.0  ;;  %vm6092_vm6 = vcmp.eq.s32.totalorder %v8136_v47, %v8976_v9  ;;  %v6072_v1 = vsel %vm6051_vm4, %v8981_v45, 0.0 }
 0x166   : > { %v6124_v11 = vadd.f32 %v6115_v43, %v6073_v17  ;;  %vm6095_vm7 = vcmp.eq.s32.totalorder %v8133_v46, %v8976_v9  ;;  %v6123_v29 = vadd.f32 %v6114_v10, %v6072_v1  ;;  %vm6050_vm8 = vcmp.eq.s32.totalorder %v8136_v47, %v8994_v54 }
 0x167   : > { %4643 = vrot.lane.b32.xlu1 %v4598_v7, %s8008_s8  ;;  %v8986_v7 = vand.u32 127, %v538_v24  ;;  %v9001_v24 = vrot.slane %v8151_v32, %v8905_v25  ;;  %vm6053_vm9 = vcmp.eq.s32.totalorder %v8133_v46, %v8994_v54  ;;  %v5356_v33 = vadd.f32 %v5347_v31, %v5305_v21 }
 0x168   : > { %vm6814_vm10 = vcmp.eq.s32.totalorder %v8133_v46, %v9009_v8  ;;  %vm6856_vm12 = vcmp.eq.s32.totalorder %v8133_v46, %v9013_v15  ;;  %vm6091_vm14 = vcmp.eq.s32.totalorder %v8136_v47, %v8916_v57  ;;  %v9063_v12 = vrot.slane %v8149_v30, %v8960_v60 }
 0x169   : > { %5408 = vrot.lane.b32.xlu0 %v5361_v35, %s8007_s7  ;;  %v5357_v35 = vadd.f32 %v5348_v5, %v5306_v16  ;;  %v549_v44 = vand.u32 15, %v8986_v7  ;;  %v6113_v37 = vsel %vm6092_vm6, %v9001_v24, 0.0  ;;  %v6116_v2 = vsel %vm6095_vm7, %v9001_v24, 0.0 }
 0x16a   : > { %v9067_v43 = vrot.slane %v8174_v4, %v8960_v60  ;;  %v6877_v17 = vsel %vm6856_vm12, %v9036_v50, 0.0  ;;  %vm6049_vm15 = vcmp.eq.s32.totalorder %v8136_v47, %v8927_v34  ;;  %v9082_v16 = vrot.slane %v8167_v53, %v8960_v60 }
 0x16b   : > { %4639 = vrot.lane.b32.xlu1 %v4596_v13, %s8008_s8  ;;  %v9018_v13 = vrot.slane %v8143_v19, %v8905_v25  ;;  %vm9052_vm13 = vcmp.eq.s32.totalorder %v549_v44, 0  ;;  %v9087_v10 = vrot.slane %v8147_v26, %v8960_v60  ;;  %v9091_v31 = vrot.slane %v8172_v61, %v8960_v60 }
 0x16c   : > { %vm573_vm1 = vcmp.lt.s32.totalorder %v8986_v7, 16  ;;  %vm6812_vm2 = vcmp.eq.s32.totalorder %v8133_v46, %v9063_v12  ;;  %vm6855_vm3 = vcmp.eq.s32.totalorder %v8133_v46, %v9067_v43  ;;  %vm6813_vm4 = vcmp.eq.s32.totalorder %v8133_v46, %v9082_v16 }
 0x16d   : > { %5404 = vrot.lane.b32.xlu0 %v5359_v59, %s8007_s7  ;;  %v9032_v59 = vrot.slane %v8143_v19, %v8960_v60  ;;  %v9048_v19 = vrot.slane %v8160_v42, %v8960_v60  ;;  %v6074_v32 = vsel %vm6053_vm9, %v9018_v13, 0.0  ;;  %vm6089_vm5 = vcmp.eq.s32.totalorder %v8110_v28, %v8976_v9 }
 0x16e   : > { %vm6047_vm6 = vcmp.eq.s32.totalorder %v8110_v28, %v8994_v54  ;;  %vm6090_vm7 = vcmp.eq.s32.totalorder %v8136_v47, %v8942_v49  ;;  %vm6853_vm9 = vcmp.eq.s32.totalorder %v8136_v47, %v9013_v15  ;;  %vm6088_vm12 = vcmp.eq.s32.totalorder %v8110_v28, %v8916_v57 }
 0x16f   : > { %5406 = vrot.lane.b32.xlu1 %v5360_v20, %s8007_s7  ;;  %v6071_v20 = vsel %vm6050_vm8, %v9018_v13, 0.0  ;;  %v6835_v5 = vsel %vm6814_vm10, %v9032_v59, 0.0  ;;  %vm6854_vm0 = vcmp.eq.s32.totalorder %v8133_v46, %v9048_v19  ;;  %vm6048_vm8 = vcmp.eq.s32.totalorder %v8136_v47, %v8957_v62 }
 0x170   : > { %v6122_v51 = vadd.f32 %v6113_v37, %v6071_v20  ;;  %v6886_v1 = vadd.f32 %v6877_v17, %v6835_v5  ;;  %v6111_v54 = vsel %vm6090_vm7, %v8968_v63, 0.0  ;;  %vm6811_vm10 = vcmp.eq.s32.totalorder %v8136_v47, %v9009_v8 }
 0x171   : > { %5402 = vrot.lane.b32.xlu0 %v5358_v36, %s8007_s7  ;;  %vm6849_vm7 = vcmp.eq.s32.totalorder %v8110_v28, %v9067_v43 }
 0x173   : > { %4637 = vrot.lane.b32.xlu1 %v4595_v3, %s8008_s8  ;;  %v6125_v3 = vadd.f32 %v6116_v2, %v6074_v32  ;;  %v9110_v2 = vrot.slane %v8162_v48, %v8960_v60 }
 0x175   : > { %6173 = vrot.lane.b32.xlu0 %v6124_v11, %s8008_s8  ;;  %v9073_v11 = vrot.slane %v8158_v38, %v8960_v60  ;;  %v6834_v9 = vsel %vm6813_vm4, %v9110_v2, 0.0  ;;  %vm6808_vm4 = vcmp.eq.s32.totalorder %v8110_v28, %v9009_v8 }
 0x177   : > { %5400 = vrot.lane.b32.xlu1 %v5357_v35, %s8007_s7  ;;  %v6112_v35 = vsel %vm6091_vm14, %v8933_v56, 0.0  ;;  %v6875_v37 = vsel %vm6854_vm0, %v9073_v11, 0.0  ;;  %vm6851_vm14 = vcmp.eq.s32.totalorder %v8136_v47, %v9048_v19  ;;  %vm6809_vm0 = vcmp.eq.s32.totalorder %v8136_v47, %v9063_v12 }
 0x179   : > { %6171 = vrot.lane.b32.xlu0 %v6123_v29, %s8008_s8  ;;  %v9040_v18 = vpop.permute.xlu0 %1569  ;;  %v9057_v36 = vpop.permute.xlu1 %1575  ;;  %v8009_v29 = vmov 1.0  }
 0x17a   : > { %v9104_v21 = vsel %vm9052_vm13, 0.0, %v8009_v29  ;;  %v9122_v6 = vsel %vm573_vm1, 0.0, %v8009_v29  ;;  %vm6046_vm13 = vcmp.eq.s32.totalorder %v8110_v28, %v8927_v34  ;;  %vm6852_vm1 = vcmp.eq.s32.totalorder %v8136_v47, %v9067_v43  ;;  %v319_v43 = vld [vmem:[%s14107_s3] sm:$0xff] }
 0x17b   : > { %5398 = vrot.lane.b32.xlu1 %v5356_v33, %s8007_s7  ;;  %v6070_v33 = vsel %vm6049_vm15, %v8948_v41, 0.0  ;;  %v9128_v5 = vmul.f32 %v9122_v6, %v9104_v21  ;;  %vm1577_vm15 = vcmask 1039360   ;;  %v6067_v34 = vsel %vm6046_vm13, %v8948_v41, 0.0 }
 0x17c   : > { %v6121_v20 = vadd.f32 %v6112_v35, %v6070_v33  ;;  %v6110_v35 = vsel %vm6089_vm5, %v9001_v24, 0.0  ;;  %v6069_v24 = vsel %vm6048_vm8, %v8981_v45, 0.0  ;;  %v6830_v41 = vsel %vm6809_vm0, %v9087_v10, 0.0 }
 0x17d   : > { %6169 = vrot.lane.b32.xlu0 %v6122_v51, %s8008_s8  ;;  %v9095_v44 = vpop.permute.xlu0 %1563  ;;  %v6833_v51 = vsel %vm6812_vm2, %v9087_v10, 0.0  ;;  %vm6810_vm2 = vcmp.eq.s32.totalorder %v8136_v47, %v9082_v16  ;;  %vm6087_vm5 = vcmp.eq.s32.totalorder %v8110_v28, %v8942_v49  ;;  %v6829_v49 = vsel %vm6808_vm4, %v9032_v59, 0.0 }
 0x17e   : > { %v9113_v32 = vpop.permute.xlu1 %1565  ;;  %v6884_v17 = vadd.f32 %v6875_v37, %v6833_v51  ;;  %v6068_v37 = vsel %vm6047_vm6, %v9018_v13, 0.0  ;;  %v6832_v13 = vsel %vm6811_vm10, %v9032_v59, 0.0  ;;  %vm6045_vm6 = vcmp.eq.s32.totalorder %v8110_v28, %v8957_v62 }
 0x17f   : > { %6175 = vrot.lane.b32.xlu1 %v6125_v3, %s8008_s8  ;;  %v6876_v3 = vsel %vm6855_vm3, %v9091_v31, 0.0  ;;  %v6119_v51 = vadd.f32 %v6110_v35, %v6068_v37  ;;  %vm6850_vm3 = vcmp.eq.s32.totalorder %v8110_v28, %v9013_v15  ;;  %v6066_v62 = vsel %vm6045_vm6, %v8981_v45, 0.0 }
 0x180   : > { %v6871_v15 = vsel %vm6850_vm3, %v9036_v50, 0.0  ;;  %vm6807_vm8 = vcmp.eq.s32.totalorder %v8110_v28, %v9082_v16  ;;  %v6870_v45 = vsel %vm6849_vm7, %v9091_v31, 0.0  ;;  %vm6848_vm10 = vcmp.eq.s32.totalorder %v8110_v28, %v9048_v19 }
 0x181   : > { %6936 = vrot.lane.b32.xlu0 %v6886_v1, %s8008_s8  ;;  %v6885_v1 = vadd.f32 %v6876_v3, %v6834_v9  ;;  %v1572_v33 = vpop.permute.xlu0 %1571  ;;  %v6874_v3 = vsel %vm6853_vm9, %v9036_v50, 0.0  ;;  %v6109_v9 = vsel %vm6088_vm12, %v8933_v56, 0.0  ;;  %v6828_v16 = vsel %vm6807_vm8, %v9110_v2, 0.0 }
 0x182   : > { %v6883_v35 = vadd.f32 %v6874_v3, %v6832_v13  ;;  %v6118_v56 = vadd.f32 %v6109_v9, %v6067_v34  ;;  %v6873_v3 = vsel %vm6852_vm1, %v9091_v31, 0.0  ;;  %v6108_v34 = vsel %vm6087_vm5, %v8968_v63, 0.0 }
 0x183   : > { %6167 = vrot.lane.b32.xlu1 %v6121_v20, %s8008_s8  ;;  %v1560_v20 = vpop.permute.xlu1 %1559  ;;  %vm6806_vm12 = vcmp.eq.s32.totalorder %v8110_v28, %v9063_v12  ;;  %vm3131_vm13 = vcmask 916480  }
 0x184   : > { %v6827_v12 = vsel %vm6806_vm12, %v9087_v10, 0.0  ;;  %v7969_v10 = vpack.i.bf16 %v8009_v29, %v9122_v6 }
 0x185   : > { %6932 = vrot.lane.b32.xlu0 %v6884_v17, %s8008_s8  ;;  %v6120_v17 = vadd.f32 %v6111_v54, %v6069_v24  ;;  %v540_v54 = vadd.s32 128, %v8986_v7  ;;  %v6831_v7 = vsel %vm6810_vm2, %v9110_v2, 0.0 }
 0x187   : > { %6934 = vrot.lane.b32.xlu1 %v6885_v1, %s8008_s8  ;;  %v6872_v1 = vsel %vm6851_vm14, %v9073_v11, 0.0  ;;  %v556_v9 = vand.u32 15, %v540_v54  ;;  %v6879_v54 = vadd.f32 %v6870_v45, %v6828_v16  ;;  %vm3893_vm14 = vcmask 908288  }
 0x188   : > { %v6881_v13 = vadd.f32 %v6872_v1, %v6830_v41  ;;  %v6880_v1 = vadd.f32 %v6871_v15, %v6829_v49 }
 0x189   : > { %6163 = vrot.lane.b32.xlu0 %v6119_v51, %s8008_s8  ;;  %vm570_vm9 = vcmp.eq.s32.totalorder %v556_v9, 0 }
 0x18b   : > { %6165 = vrot.lane.b32.xlu1 %v6120_v17, %s8008_s8  ;;  %v9159_v57 = vpop.permute.xlu0 %2351 }
 0x18d   : > { %v1574_v37 = vpop.permute.xlu1 %1573  ;;  %6930 = vrot.lane.b32.xlu0 %v6883_v35, %s8008_s8 }
 0x18e   : > { %v1583_v51 = vsel %vm1577_vm15, %v1574_v37, %v9057_v36  ;;  %v1582_v24 = vsel %vm1577_vm15, %v1572_v33, %v1574_v37  ;;  %v6882_v33 = vadd.f32 %v6873_v3, %v6831_v7  ;;  %v1526_v37 = vld [vmem:[%s8280_s6 + $0xc0] sm:$0xff] }
 0x18f   : > { %6161 = vrot.lane.b32.xlu1 %v6118_v56, %s8008_s8  ;;  %1688 = vmatprep.subr.mxu1 %v1583_v51  ;;  %v2346_v17 = vpop.permute.xlu0 %2345  ;;  %v1527_v51 = vld [vmem:[%s8280_s6 + $0xc8] sm:$0xff] }
 0x190   : > { %1689 = vmatpush1.msra.mxu1 %v1582_v24  ;;  %v6869_v24 = vsel %vm6848_vm10, %v9073_v11, 0.0 }
 0x191   : > { %v1568_v36 = vpop.permute.xlu1 %1567  ;;  %6926 = vrot.lane.b32.xlu0 %v6881_v13, %s8008_s8  ;;  %v6878_v3 = vadd.f32 %v6869_v24, %v6827_v12  ;;  %v1528_v13 = vld [vmem:[%s8280_s6 + $0xd0] sm:$0xff]  ;;  %v1534_v24 = vld [vmem:[%s8280_s6 + $0x100] sm:$0xff] }
 0x192   : > { %v1581_v35 = vsel %vm1577_vm15, %v1568_v36, %v9040_v18  ;;  %v1580_v8 = vsel %vm1577_vm15, %v9113_v32, %v1568_v36  ;;  %v6117_v32 = vadd.f32 %v6108_v34, %v6066_v62  ;;  %v1529_v36 = vld [vmem:[%s8280_s6 + $0xd8] sm:$0xff]  ;;  %v2303_v34 = vld [vmem:[%s8280_s6 + $0x188] sm:$0xff] }
 0x193   : > { %6928 = vrot.lane.b32.xlu1 %v6882_v33, %s8008_s8  ;;  %1690 = vmatprep.subr.mxu1 %v1581_v35  ;;  %v2348_v50 = vpop.permute.xlu0 %2347  ;;  %v1530_v35 = vld [vmem:[%s8280_s6 + $0xe0] sm:$0xff] }
 0x194   : > { %1691 = vmatpush1.msra.mxu1 %v1580_v8 }
 0x195   : > { %v1562_v18 = vpop.permute.xlu1 %1561  ;;  %6924 = vrot.lane.b32.xlu0 %v6880_v1, %s8008_s8  ;;  %v1531_v1 = vld [vmem:[%s8280_s6 + $0xe8] sm:$0xff] }
 0x196   : > { %v1579_v63 = vsel %vm1577_vm15, %v1562_v18, %v9095_v44  ;;  %v1578_v59 = vsel %vm1577_vm15, %v1560_v20, %v1562_v18  ;;  %v9214_v44 = vsel %vm570_vm9, 0.0, %v8009_v29  ;;  %v2302_v29 = vld [vmem:[%s8280_s6 + $0x180] sm:$0xff] }
 0x197   : > { %6159 = vrot.lane.b32.xlu1 %v6117_v32, %s8008_s8  ;;  %1692 = vmatprep.subr.mxu1 %v1579_v63  ;;  %v2342_v56 = vpop.permute.xlu0 %2341  ;;  %v7974_v31 = vpack.i.bf16 %v9214_v44, %v9104_v21  ;;  %v2304_v63 = vld [vmem:[%s8280_s6 + $0x190] sm:$0xff] }
 0x198   : > { %1693 = vmatpush1.msra.mxu1 %v1578_v59 }
 0x199   : > { %7669 = vmatmul.mubr.msk.f32.vlgmr.msra.gmra.mxu1 %vm793_vm11, %v1526_v37  ;;  %v2350_v20 = vpop.permute.xlu1 %2349  ;;  %324 = vperm.xlu0 %7968, %v319_v43   ;;  %v1532_v37 = vld [vmem:[%s8280_s6 + $0xf0] sm:$0xff] }
 0x19a   : > { %v2358_v19 = vsel %vm1577_vm15, %v2350_v20, %v9159_v57  ;;  %1732 = vmatprep.mubr.f32.mxu1 %v14116_v0  ;;  %v2357_v2 = vsel %vm1577_vm15, %v2348_v50, %v2350_v20 }
 0x19b   : > { %6922 = vrot.lane.b32.xlu1 %v6879_v54, %s8008_s8  ;;  %2463 = vmatprep.subr.mxu0 %v2358_v19  ;;  %v2340_v41 = vpop.permute.xlu0 %2339  ;;  %v1533_v54 = vld [vmem:[%s8280_s6 + $0xf8] sm:$0xff] }
 0x19c   : > { %2464 = vmatpush1.msra.mxu0 %v2357_v2  ;;  %v2306_v2 = vld [vmem:[%s8280_s6 + $0x1a0] sm:$0xff] }
 0x19d   : > { %7670 = vmatmul.mubr.msk.f32.gmra.mxu1 %vm793_vm11, %v1527_v51  ;;  %v2344_v21 = vpop.permute.xlu1 %2343  ;;  %7975 = vrot.lane.b32.xlu0 %v7974_v31, %s8010_s11 }
 0x19e   : > { %v2356_v57 = vsel %vm1577_vm15, %v2344_v21, %v2346_v17  ;;  %1738 = vmatprep.mubr.f32.mxu1 %v14116_v0  ;;  %v2355_v11 = vsel %vm1577_vm15, %v2342_v56, %v2344_v21  ;;  %v2305_v56 = vld [vmem:[%s8280_s6 + $0x198] sm:$0xff]  ;;  %v2307_v21 = vld [vmem:[%s8280_s6 + $0x1a8] sm:$0xff] }
 0x19f   : > { %6920 = vrot.lane.b32.xlu1 %v6878_v3, %s8008_s8  ;;  %2465 = vmatprep.subr.mxu0 %v2356_v57  ;;  %v3128_v7 = vpop.permute.xlu0 %3127  ;;  %v1535_v57 = vld [vmem:[%s8280_s6 + $0x108] sm:$0xff] }
 0x1a0   : > { %2466 = vmatpush1.msra.mxu0 %v2355_v11 }
 0x1a1   : > { %7671 = vmatmul.mubr.msk.f32.gmra.mxu1 %vm793_vm11, %v1528_v13  ;;  %v2338_v15 = vpop.permute.xlu1 %2337 }
 0x1a2   : > { %v2354_v17 = vsel %vm1577_vm15, %v2338_v15, %v2340_v41  ;;  %1744 = vmatprep.mubr.f32.mxu1 %v14116_v0 }
 0x1a3   : > { %2467 = vmatprep.subr.mxu0 %v2354_v17  ;;  %v3126_v33 = vpop.permute.xlu0 %3125  ;;  %7970 = vrot.lane.b32.xlu1 %v7969_v10, %s8011_s12  ;;  %v1536_v17 = vld [vmem:[%s8280_s6 + $0x110] sm:$0xff] }
 0x1a4   : > { %v3136_v62 = vsel %vm3131_vm13, %v3126_v33, %v3128_v7 }
 0x1a5   : > { %7672 = vmatmul.mubr.msk.f32.gmra.mxu1 %vm793_vm11, %v1529_v36  ;;  %v2336_v9 = vpop.permute.xlu1 %2335 }
 0x1a6   : > { %v2353_v6 = vsel %vm1577_vm15, %v2336_v9, %v2338_v15  ;;  %1750 = vmatprep.mubr.f32.mxu1 %v14116_v0  ;;  %v2309_v9 = vld [vmem:[%s8280_s6 + $0x1b8] sm:$0xff] }
 0x1a7   : > { %2468 = vmatpush1.msra.mxu0 %v2353_v6  ;;  %v3124_v8 = vpop.permute.xlu0 %3123  ;;  %v1537_v6 = vld [vmem:[%s8280_s6 + $0x118] sm:$0xff] }
 0x1a8   : > { %7693 = vmatmul.mubr.msk.f32.vlgmr.msra.gmra.mxu0 %vm793_vm11, %v2302_v29 }
 0x1a9   : > { %7673 = vmatmul.mubr.msk.f32.gmra.mxu1 %vm793_vm11, %v1530_v35  ;;  %v3130_v49 = vpop.permute.xlu1 %3129  ;;  %2507 = vmatprep.mubr.f32.mxu0 %v14116_v0 }
 0x1aa   : > { %v3137_v50 = vsel %vm3131_vm13, %v3128_v7, %v3130_v49  ;;  %1756 = vmatprep.mubr.f32.mxu1 %v14116_v0  ;;  %v2308_v7 = vld [vmem:[%s8280_s6 + $0x1b0] sm:$0xff]  ;;  %v2310_v49 = vld [vmem:[%s8280_s6 + $0x1c0] sm:$0xff] }
 0x1ab   : > { %3242 = vmatprep.subr.mxu1 %v3137_v50  ;;  %v3892_v18 = vpop.permute.xlu0 %3891  ;;  %v1538_v50 = vld [vmem:[%s8280_s6 + $0x120] sm:$0xff] }
 0x1ac   : > { %7694 = vmatmul.mubr.msk.f32.gmra.mxu0 %vm793_vm11, %v2303_v34  ;;  %3243 = vmatpush1.msra.mxu1 %v3136_v62 }
 0x1ad   : > { %7674 = vmatmul.mubr.msk.f32.gmra.mxu1 %vm793_vm11, %v1531_v1  ;;  %v3122_v32 = vpop.permute.xlu1 %3121  ;;  %2513 = vmatprep.mubr.f32.mxu0 %v14116_v0 }
 0x1ae   : > { %v3135_v59 = vsel %vm3131_vm13, %v3122_v32, %v3124_v8  ;;  %1762 = vmatprep.mubr.f32.mxu1 %v14116_v0 }
 0x1af   : > { %3244 = vmatprep.subr.mxu1 %v3135_v59  ;;  %v3888_v43 = vpop.permute.xlu0 %3887  ;;  %v1539_v59 = vld [vmem:[%s8280_s6 + $0x128] sm:$0xff] }
 0x1b0   : > { %7695 = vmatmul.mubr.msk.f32.gmra.mxu0 %vm793_vm11, %v2304_v63 }
 0x1b1   : > { %7675 = vmatmul.mubr.msk.f32.gmra.mxu1 %vm793_vm11, %v1532_v37  ;;  %v3890_v45 = vpop.permute.xlu1 %3889  ;;  %2519 = vmatprep.mubr.f32.mxu0 %v14116_v0  ;;  %v676_v37 = vrot.slane %v8160_v42, %v8140_v52 }
 0x1b2   : > { %v3899_v16 = vsel %vm3893_vm14, %v3890_v45, %v3892_v18  ;;  %1768 = vmatprep.mubr.f32.mxu1 %v14116_v0  ;;  %v3898_v20 = vsel %vm3893_vm14, %v3888_v43, %v3890_v45  ;;  %v2311_v18 = vld [vmem:[%s8280_s6 + $0x1c8] sm:$0xff]  ;;  %v633_v45 = vmul.f32 %v9128_v5, %v8147_v26  ;;  %v1540_v26 = vld [vmem:[%s8280_s6 + $0x130] sm:$0xff] }
 0x1b3   : > { %4004 = vmatprep.subr.mxu0 %v3899_v16  ;;  %v3118_v31 = vpop.permute.xlu0 %3117  ;;  %v2312_v16 = vld [vmem:[%s8280_s6 + $0x1d0] sm:$0xff]  ;;  %vm681_vm0 = vcmp.eq.s32.totalorder %v8110_v28, %v676_v37  ;;  %vm683_vm2 = vcmp.eq.s32.totalorder %v8136_v47, %v676_v37  ;;  %vm685_vm4 = vcmp.eq.s32.totalorder %v8133_v46, %v676_v37 }
 0x1b4   : > { %7696 = vmatmul.mubr.msk.f32.gmra.mxu0 %vm793_vm11, %v2305_v56 }
 0x1b5   : > { %4005 = vmatpush1.msra.mxu0 %v3898_v20  ;;  %7676 = vmatmul.mubr.msk.f32.gmra.mxu1 %vm793_vm11, %v1533_v54  ;;  %v3120_v19 = vpop.permute.xlu1 %3119 }
 0x1b6   : > { %v3134_v51 = vsel %vm3131_vm13, %v3120_v19, %v3122_v32  ;;  %2525 = vmatprep.mubr.f32.mxu0 %v14116_v0  ;;  %1774 = vmatprep.mubr.f32.mxu1 %v14116_v0  ;;  %v635_v32 = vmul.f32 %v9128_v5, %v8158_v38  ;;  %v648_v38 = vrot.slane %v8149_v30, %v8140_v52 }
 0x1b7   : > { %3245 = vmatpush1.msra.mxu1 %v3134_v51  ;;  %v3886_v41 = vpop.permute.xlu0 %3885  ;;  %v662_v5 = vrot.slane %v633_v45, %v8140_v52 }
 0x1b8   : > { %7697 = vmatmul.mubr.msk.f32.gmra.mxu0 %vm793_vm11, %v2306_v2  ;;  %v690_v42 = vrot.slane %v635_v32, %v8140_v52  ;;  %vm653_vm1 = vcmp.eq.s32.totalorder %v8110_v28, %v648_v38  ;;  %v1541_v2 = vld [vmem:[%s8280_s6 + $0x138] sm:$0xff]  ;;  %vm655_vm3 = vcmp.eq.s32.totalorder %v8136_v47, %v648_v38  ;;  %vm657_vm5 = vcmp.eq.s32.totalorder %v8133_v46, %v648_v38 }
 0x1b9   : > { %7677 = vmatmul.mubr.msk.f32.gmra.mxu1 %vm793_vm11, %v1534_v24  ;;  %v3116_v12 = vpop.permute.xlu1 %3115  ;;  %2531 = vmatprep.mubr.f32.mxu0 %v14116_v0  ;;  %v667_v24 = vsel %vm653_vm1, %v662_v5, 0.0 }
 0x1ba   : > { %v3133_v3 = vsel %vm3131_vm13, %v3116_v12, %v3118_v31  ;;  %1780 = vmatprep.mubr.f32.mxu1 %v14116_v0  ;;  %v2313_v31 = vld [vmem:[%s8280_s6 + $0x1d8] sm:$0xff]  ;;  %v695_v19 = vsel %vm681_vm0, %v690_v42, 0.0  ;;  %vm1321_vm0 = vcmask 7168  }
 0x1bb   : > { %3246 = vmatprep.subr.mxu1 %v3133_v3  ;;  %v3882_v11 = vpop.permute.xlu0 %3881  ;;  %v697_v3 = vsel %vm683_vm2, %v690_v42, 0.0 }
 0x1bc   : > { %7698 = vmatmul.mubr.msk.f32.gmra.mxu0 %vm793_vm11, %v2307_v21  ;;  %v2314_v21 = vld [vmem:[%s8280_s6 + $0x1e0] sm:$0xff] }
 0x1bd   : > { %7678 = vmatmul.mubr.msk.f32.gmra.mxu1 %vm793_vm11, %v1535_v57  ;;  %v3884_v13 = vpop.permute.xlu1 %3883  ;;  %2537 = vmatprep.mubr.f32.mxu0 %v14116_v0 }
 0x1be   : > { %v3897_v10 = vsel %vm3893_vm14, %v3884_v13, %v3886_v41  ;;  %1786 = vmatprep.mubr.f32.mxu1 %v14116_v0  ;;  %v3896_v15 = vsel %vm3893_vm14, %v3882_v11, %v3884_v13  ;;  %v9351_v41 = vadd.f32 %v695_v19, %v667_v24  ;;  %v1542_v11 = vld [vmem:[%s8280_s6 + $0x140] sm:$0xff] }
 0x1bf   : > { %4006 = vmatprep.subr.mxu0 %v3897_v10  ;;  %v3880_v36 = vpop.permute.xlu0 %3879 }
 0x1c0   : > { %7699 = vmatmul.mubr.msk.f32.gmra.mxu0 %vm793_vm11, %v2308_v7 }
 0x1c1   : > { %4007 = vmatpush1.msra.mxu0 %v3896_v15  ;;  %7679 = vmatmul.mubr.msk.f32.gmra.mxu1 %vm793_vm11, %v1536_v17  ;;  %v3114_v33 = vpop.permute.xlu1 %3113 }
 0x1c2   : > { %v3132_v29 = vsel %vm3131_vm13, %v3114_v33, %v3116_v12  ;;  %2543 = vmatprep.mubr.f32.mxu0 %v14116_v0  ;;  %1792 = vmatprep.mubr.f32.mxu1 %v14116_v0 }
 0x1c3   : > { %3247 = vmatpush1.msra.mxu1 %v3132_v29  ;;  %v9298_v35 = vpop.permute.xlu0 %4651 }
 0x1c4   : > { %7700 = vmatmul.mubr.msk.f32.gmra.mxu0 %vm793_vm11, %v2309_v9 }
 0x1c5   : > { %7680 = vmatmul.mubr.msk.f32.gmra.mxu1 %vm793_vm11, %v1537_v6  ;;  %v3878_v8 = vpop.permute.xlu1 %3877  ;;  %2549 = vmatprep.mubr.f32.mxu0 %v14116_v0 }
 0x1c6   : > { %v3895_v34 = vsel %vm3893_vm14, %v3878_v8, %v3880_v36  ;;  %1798 = vmatprep.mubr.f32.mxu1 %v14116_v0  ;;  %v669_v36 = vsel %vm655_vm3, %v662_v5, 0.0 }
 0x1c7   : > { %4008 = vmatprep.subr.mxu0 %v3895_v34  ;;  %v9307_v1 = vpop.permute.xlu0 %4649  ;;  %v9375_v29 = vadd.f32 %v697_v3, %v669_v36  ;;  %v1543_v34 = vld [vmem:[%s8280_s6 + $0x148] sm:$0xff] }
 0x1c8   : > { %7701 = vmatmul.mubr.msk.f32.gmra.mxu0 %vm793_vm11, %v2310_v49  ;;  %v699_v49 = vsel %vm685_vm4, %v690_v42, 0.0 }
 0x1c9   : > { %7681 = vmatmul.mubr.msk.f32.gmra.mxu1 %vm793_vm11, %v1538_v50  ;;  %v3876_v62 = vpop.permute.xlu1 %3875  ;;  %2555 = vmatprep.mubr.f32.mxu0 %v14116_v0 }
 0x1ca   : > { %v3894_v63 = vsel %vm3893_vm14, %v3876_v62, %v3878_v8  ;;  %1804 = vmatprep.mubr.f32.mxu1 %v14116_v0  ;;  %v2315_v8 = vld [vmem:[%s8280_s6 + $0x1e8] sm:$0xff] }
 0x1cb   : > { %4009 = vmatpush1.msra.mxu0 %v3894_v63  ;;  %v9320_v43 = vpop.permute.xlu0 %4647 }
 0x1cc   : > { %7702 = vmatmul.mubr.msk.f32.gmra.mxu0 %vm793_vm11, %v2311_v18 }
 0x1cd   : > { %7682 = vmatmul.mubr.msk.f32.gmra.mxu1 %vm793_vm11, %v1539_v59  ;;  %v4654_v56 = vpop.permute.xlu1 %4653  ;;  %2561 = vmatprep.mubr.f32.mxu0 %v14116_v0  ;;  %v671_v59 = vsel %vm657_vm5, %v662_v5, 0.0 }
 0x1ce   : > { %v4660_v20 = vsel %vm3893_vm14, %v9298_v35, %v4654_v56  ;;  %1810 = vmatprep.mubr.f32.mxu1 %v14116_v0  ;;  %v9393_v38 = vadd.f32 %v699_v49, %v671_v59 }
 0x1cf   : > { %4765 = vmatprep.subr.mxu1 %v4660_v20  ;;  %v5415_v30 = vpop.permute.xlu0 %5414  ;;  %v2316_v20 = vld [vmem:[%s8280_s6 + $0x1f0] sm:$0xff] }
 0x1d0   : > { %7703 = vmatmul.mubr.msk.f32.gmra.mxu0 %vm793_vm11, %v2312_v16 }
 0x1d1   : > { %7683 = vmatmul.mubr.msk.f32.gmra.mxu1 %vm793_vm11, %v1540_v26  ;;  %v9340_v54 = vpop.permute.xlu1 %4645  ;;  %2567 = vmatprep.mubr.f32.mxu0 %v14116_v0  ;;  %v1544_v26 = vld [vmem:[%s8280_s6 + $0x150] sm:$0xff] }
 0x1d2   : > { %1816 = vmatprep.mubr.f32.mxu1 %v14116_v0 }
 0x1d3   : > { %v9347_v51 = vpop.permute.xlu0 %5410 }
 0x1d4   : > { %7704 = vmatmul.mubr.msk.f32.gmra.mxu0 %vm793_vm11, %v2313_v31 }
 0x1d5   : > { %7684 = vmatmul.mubr.msk.f32.gmra.mxu1 %vm793_vm11, %v1541_v2  ;;  %v9354_v12 = vpop.permute.xlu1 %5412  ;;  %2573 = vmatprep.mubr.f32.mxu0 %v14116_v0 }
 0x1d6   : > { %v5421_v57 = vsel %vm3131_vm13, %v9354_v12, %v5415_v30  ;;  %1822 = vmatprep.mubr.f32.mxu1 %v14116_v0  ;;  %v932_v13 = vpop.f32.mrf.mxu0  ;;  %v1004_v7 = vpop.f32.mrf.mxu1 }
 0x1d7   : > { %5526 = vmatprep.subr.mxu0 %v5421_v57  ;;  %v9363_v10 = vpop.permute.xlu0 %4641  ;;  %v1075_v15 = vmul.f32 %v932_v13, %v9351_v41  ;;  %v1099_v17 = vmul.f32 %v1004_v7, %v9351_v41  ;;  %v2317_v13 = vld [vmem:[%s8280_s6 + $0x1f8] sm:$0xff] }
 0x1d8   : > { %7705 = vmatmul.mubr.msk.f32.gmra.mxu0 %vm793_vm11, %v2314_v21  ;;  %v9370_v33 = vpop.f32.mrf.mxu0  ;;  %v9372_v9 = vpop.f32.mrf.mxu1  ;;  %v1545_v7 = vld [vmem:[%s8280_s6 + $0x158] sm:$0xff] }
 0x1d9   : > { %7685 = vmatmul.mubr.msk.f32.gmra.mxu1 %vm793_vm11, %v1542_v11  ;;  %v9378_v6 = vpop.permute.xlu1 %4643  ;;  %2579 = vmatprep.mubr.f32.mxu0 %v14116_v0 }
 0x1da   : > { %1828 = vmatprep.mubr.f32.mxu1 %v14116_v0  ;;  %v938_v50 = vpop.f32.mrf.mxu0  ;;  %v1010_v62 = vpop.f32.mrf.mxu1 }
 0x1db   : > { %v9384_v18 = vpop.permute.xlu0 %5408  ;;  %v1077_v32 = vmul.f32 %v938_v50, %v9375_v29  ;;  %v1101_v63 = vmul.f32 %v1010_v62, %v9375_v29 }
 0x1dc   : > { %7706 = vmatmul.mubr.msk.f32.gmra.mxu0 %vm793_vm11, %v2315_v8  ;;  %v9389_v37 = vpop.f32.mrf.mxu0  ;;  %v9391_v45 = vpop.f32.mrf.mxu1 }
 0x1dd   : > { %7686 = vmatmul.mubr.msk.f32.gmra.mxu1 %vm793_vm11, %v1543_v34  ;;  %v9396_v56 = vpop.permute.xlu1 %4639  ;;  %2585 = vmatprep.mubr.f32.mxu0 %v14116_v0  ;;  %v1123_v16 = vadd.f32 %v1077_v32, %v1075_v15  ;;  %v1187_v42 = vadd.f32 %v1101_v63, %v1099_v17  ;;  %v2318_v32 = vld [vmem:[%s8280_s6 + $0x200] sm:$0xff] }
 0x1de   : > { %1834 = vmatprep.mubr.f32.mxu1 %v14116_v0  ;;  %v944_v30 = vpop.f32.mrf.mxu0  ;;  %v1016_v5 = vpop.f32.mrf.mxu1  ;;  %v1546_v63 = vld [vmem:[%s8280_s6 + $0x160] sm:$0xff] }
 0x1df   : > { %v9402_v31 = vpop.permute.xlu0 %5404  ;;  %v1079_v19 = vmul.f32 %v944_v30, %v9393_v38  ;;  %v1103_v2 = vmul.f32 %v1016_v5, %v9393_v38 }
 0x1e0   : > { %7707 = vmatmul.mubr.msk.f32.gmra.mxu0 %vm793_vm11, %v2316_v20  ;;  %v9407_v24 = vpop.f32.mrf.mxu0  ;;  %v9409_v21 = vpop.f32.mrf.mxu1 }
 0x1e1   : > { %7687 = vmatmul.mubr.msk.f32.gmra.mxu1 %vm793_vm11, %v1544_v26  ;;  %v9412_v3 = vpop.permute.xlu1 %5406  ;;  %2591 = vmatprep.mubr.f32.mxu0 %v14116_v0  ;;  %v9415_v57 = vadd.f32 %v1123_v16, %v1079_v19  ;;  %v9417_v11 = vadd.f32 %v1187_v42, %v1103_v2 }
 0x1e2   : > { %1840 = vmatprep.mubr.f32.mxu1 %v14116_v0  ;;  %v950_v15 = vpop.f32.mrf.mxu0  ;;  %v1022_v17 = vpop.f32.mrf.mxu1 }
 0x1e3   : > { %v9422_v36 = vpop.permute.xlu0 %5402  ;;  %v1081_v8 = vmul.f32 %v950_v15, %v9351_v41  ;;  %v1105_v49 = vmul.f32 %v1022_v17, %v9351_v41  ;;  %v1547_v17 = vld [vmem:[%s8280_s6 + $0x168] sm:$0xff] }
 0x1e4   : > { %7708 = vmatmul.mubr.msk.f32.gmra.mxu0 %vm793_vm11, %v2317_v13  ;;  %v9427_v34 = vpop.f32.mrf.mxu0  ;;  %v9429_v50 = vpop.f32.mrf.mxu1  ;;  %v2319_v13 = vld [vmem:[%s8280_s6 + $0x208] sm:$0xff] }
 0x1e5   : > { %7688 = vmatmul.mubr.msk.f32.gmra.mxu1 %vm793_vm11, %v1545_v7  ;;  %v9432_v62 = vpop.permute.xlu1 %4637  ;;  %2597 = vmatprep.mubr.f32.mxu0 %v14116_v0  ;;  %v636_v7 = vmul.f32 %v8172_v61, %v9214_v44 }
 0x1e6   : > { %1846 = vmatprep.mubr.f32.mxu1 %v14116_v0  ;;  %v956_v59 = vpop.f32.mrf.mxu0  ;;  %v1028_v16 = vpop.f32.mrf.mxu1 }
 0x1e7   : > { %v9438_v42 = vpop.permute.xlu0 %6173  ;;  %v1083_v20 = vmul.f32 %v956_v59, %v9375_v29  ;;  %v1107_v26 = vmul.f32 %v1028_v16, %v9375_v29  ;;  %v680_v16 = vrot.slane %v8174_v4, %v8140_v52  ;;  %v652_v4 = vrot.slane %v8167_v53, %v8140_v52 }
 0x1e8   : > { %7709 = vmatmul.mubr.msk.f32.gmra.mxu0 %vm793_vm11, %v2318_v32  ;;  %v9443_v30 = vpop.f32.mrf.mxu0  ;;  %v9445_v5 = vpop.f32.mrf.mxu1 }
 0x1e9   : > { %7689 = vmatmul.mubr.msk.f32.gmra.mxu1 %vm793_vm11, %v1546_v63  ;;  %v9448_v19 = vpop.permute.xlu1 %5400  ;;  %2603 = vmatprep.mubr.f32.mxu0 %v14116_v0  ;;  %v1139_v2 = vadd.f32 %v1083_v20, %v1081_v8  ;;  %v1203_v15 = vadd.f32 %v1107_v26, %v1105_v49  ;;  %v634_v8 = vmul.f32 %v8162_v48, %v9214_v44  ;;  %v2320_v44 = vld [vmem:[%s8280_s6 + $0x210] sm:$0xff] }
 0x1ea   : > { %1852 = vmatprep.mubr.f32.mxu1 %v14116_v0  ;;  %v962_v32 = vpop.f32.mrf.mxu0  ;;  %v1034_v59 = vpop.f32.mrf.mxu1  ;;  %vm684_vm6 = vcmp.eq.s32.totalorder %v8136_v47, %v680_v16  ;;  %vm656_vm7 = vcmp.eq.s32.totalorder %v8136_v47, %v652_v4  ;;  %vm682_vm8 = vcmp.eq.s32.totalorder %v8110_v28, %v680_v16  ;;  %vm686_vm9 = vcmp.eq.s32.totalorder %v8133_v46, %v680_v16  ;;  %v2322_v47 = vld [vmem:[%s8280_s6 + $0x220] sm:$0xff] }
 0x1eb   : > { %v6172_v63 = vpop.permute.xlu0 %6171  ;;  %v1085_v25 = vmul.f32 %v962_v32, %v9393_v38  ;;  %v1109_v32 = vmul.f32 %v1034_v59, %v9393_v38  ;;  %vm654_vm10 = vcmp.eq.s32.totalorder %v8110_v28, %v652_v4  ;;  %vm658_vm12 = vcmp.eq.s32.totalorder %v8133_v46, %v652_v4 }
 0x1ec   : > { %7710 = vmatmul.mubr.msk.f32.gmra.mxu0 %vm793_vm11, %v2319_v13  ;;  %v9464_v61 = vsel %vm3893_vm14, %v6172_v63, %v9438_v42  ;;  %v9466_v49 = vpop.f32.mrf.mxu0  ;;  %v9468_v20 = vpop.f32.mrf.mxu1  ;;  %v694_v13 = vrot.slane %v636_v7, %v8140_v52  ;;  %v1548_v63 = vld [vmem:[%s8280_s6 + $0x170] sm:$0xff] }
 0x1ed   : > { %14198 = vst [vmem:[#allocation13_spill] sm:$0xff] %v9464_v61  ;;  %7690 = vmatmul.mubr.msk.f32.gmra.mxu1 %vm793_vm11, %v1547_v17  ;;  %v9473_v26 = vpop.permute.xlu1 %5398  ;;  %2609 = vmatprep.mubr.f32.mxu0 %v14116_v0  ;;  %v9476_v48 = vadd.f32 %v1139_v2, %v1085_v25  ;;  %v666_v25 = vrot.slane %v634_v8, %v8140_v52  ;;  %v2321_v8 = vld [vmem:[%s8280_s6 + $0x218] sm:$0xff] }
 0x1ee   : > { %1858 = vmatprep.mubr.f32.mxu1 %v14116_v0  ;;  %v968_v58 = vpop.f32.mrf.mxu0  ;;  %v1040_v60 = vpop.f32.mrf.mxu1  ;;  %v9488_v2 = vadd.f32 %v1203_v15, %v1109_v32  ;;  %v14201_v15 = vmov 0.0   ;;  %v696_v40 = vsel %vm682_vm8, %v694_v13, 0.0  ;;  %v700_v55 = vsel %vm686_vm9, %v694_v13, 0.0 }
 0x1ef   : > { %v9484_v53 = vpop.permute.xlu0 %6169  ;;  %v1087_v17 = vmul.f32 %v968_v58, %v9351_v41  ;;  %v1111_v7 = vmul.f32 %v1040_v60, %v9351_v41  ;;  %v698_v60 = vsel %vm684_vm6, %v694_v13, 0.0  ;;  %v670_v14 = vsel %vm656_vm7, %v666_v25, 0.0 }
 0x1f0   : > { %7711 = vmatmul.mubr.msk.f32.gmra.mxu0 %vm793_vm11, %v2320_v44  ;;  %v9492_v59 = vpop.f32.mrf.mxu0  ;;  %v9494_v0 = vpop.f32.mrf.mxu1  ;;  %v1549_v44 = vld [vmem:[%s8280_s6 + $0x178] sm:$0xff]  ;;  %v9525_v22 = vadd.f32 %v698_v60, %v670_v14  ;;  %v668_v16 = vsel %vm654_vm10, %v666_v25, 0.0  ;;  %v672_v13 = vsel %vm658_vm12, %v666_v25, 0.0 }
 0x1f1   : > { %14199 = vst [vmem:[#allocation14_spill] sm:$0xff] %v9492_v59  ;;  %14200 = vst [vmem:[#allocation15_spill] sm:$0xff] %v9494_v0  ;;  %7691 = vmatmul.mubr.msk.f32.gmra.mxu1 %vm793_vm11, %v1548_v63  ;;  %v9500_v58 = vpop.permute.xlu1 %6175  ;;  %2615 = vmatprep.mubr.f32.mxu0 %v14201_v15 }
 0x1f2   : > { %1864 = vmatprep.mubr.f32.mxu1 %v14201_v15  ;;  %v974_v32 = vpop.f32.mrf.mxu0  ;;  %v1046_v39 = vpop.f32.mrf.mxu1 }
 0x1f3   : > { %v9510_v52 = vpop.permute.xlu0 %6936  ;;  %v1089_v63 = vmul.f32 %v974_v32, %v9375_v29  ;;  %v1113_v61 = vmul.f32 %v1046_v39, %v9375_v29 }
 0x1f4   : > { %7712 = vmatmul.mubr.msk.f32.gmra.mxu0 %vm793_vm11, %v2321_v8  ;;  %v9521_v0 = vpop.f32.mrf.mxu0  ;;  %v9523_v59 = vpop.f32.mrf.mxu1 }
 0x1f5   : > { %14202 = vst [vmem:[#allocation16_spill] sm:$0xff] %v9521_v0  ;;  %14203 = vst [vmem:[#allocation17_spill] sm:$0xff] %v9523_v59  ;;  %7692 = vmatmul.mubr.msk.f32.gmra.mxu1 %vm793_vm11, %v1549_v44  ;;  %v9528_v39 = vpop.permute.xlu1 %6167  ;;  %2621 = vmatprep.mubr.f32.mxu0 %v14201_v15  ;;  %v1155_v32 = vadd.f32 %v1089_v63, %v1087_v17  ;;  %v1219_v8 = vadd.f32 %v1113_v61, %v1111_v7  ;;  %v3080_v59 = vld [vmem:[%s8280_s6 + $0x240] sm:$0xff] }
 0x1f6   : > { %3280 = vmatprep.mubr.f32.mxu1 %v14201_v15  ;;  %v980_v14 = vpop.f32.mrf.mxu0  ;;  %v1052_v60 = vpop.f32.mrf.mxu1  ;;  %v9538_v0 = vadd.f32 %v696_v40, %v668_v16  ;;  %v9540_v44 = vadd.f32 %v700_v55, %v672_v13  ;;  %v1078_v17 = vmul.f32 %v9389_v37, %v9525_v22  ;;  %v4659_v61 = vsel %vm3893_vm14, %v9307_v1, %v9298_v35  ;;  %v2323_v1 = vld [vmem:[%s8280_s6 + $0x228] sm:$0xff] }
 0x1f7   : > { %v6933_v63 = vpop.permute.xlu0 %6932  ;;  %v1091_v28 = vmul.f32 %v980_v14, %v9393_v38  ;;  %v4658_v40 = vsel %vm3893_vm14, %v9340_v54, %v9320_v43  ;;  %v1115_v55 = vmul.f32 %v1052_v60, %v9393_v38  ;;  %v1102_v7 = vmul.f32 %v9391_v45, %v9525_v22  ;;  %v3081_v45 = vld [vmem:[%s8280_s6 + $0x248] sm:$0xff] }
 0x1f8   : > { %7713 = vmatmul.mubr.msk.f32.gmra.mxu0 %vm793_vm11, %v2322_v47  ;;  %v9553_v4 = vpop.f32.mrf.mxu0  ;;  %v9555_v25 = vpop.f32.mrf.mxu1  ;;  %v1076_v37 = vmul.f32 %v9370_v33, %v9538_v0  ;;  %v1080_v47 = vmul.f32 %v9407_v24, %v9540_v44  ;;  %v1100_v43 = vmul.f32 %v9372_v9, %v9538_v0  ;;  %v4657_v13 = vsel %vm3893_vm14, %v9378_v6, %v9340_v54 }
 0x1f9   : > { %7717 = vmatmul.mubr.msk.f32.vlgmr.msra.gmra.mxu1 %vm793_vm11, %v3080_v59  ;;  %v9564_v35 = vpop.permute.xlu1 %6934  ;;  %2627 = vmatprep.mubr.f32.mxu0 %v14201_v15  ;;  %v9574_v16 = vadd.f32 %v1155_v32, %v1091_v28  ;;  %v1104_v9 = vmul.f32 %v9409_v21, %v9540_v44  ;;  %v9583_v60 = vadd.f32 %v1219_v8, %v1115_v55  ;;  %v1125_v8 = vrot.slane %v9415_v57, 4 }
 0x1fa   : > { %4766 = vmatpush1.msra.mxu1 %v4659_v61  ;;  %v9572_v33 = vsel %vm3893_vm14, %v6933_v63, %v9564_v35  ;;  %3286 = vmatprep.mubr.f32.mxu1 %v14201_v15  ;;  %v986_v24 = vpop.f32.mrf.mxu0  ;;  %v1058_v59 = vpop.f32.mrf.mxu1  ;;  %v1131_v14 = vadd.f32 %v1078_v17, %v1076_v37  ;;  %v4656_v28 = vsel %vm3893_vm14, %v9396_v56, %v9363_v10  ;;  %v2324_v10 = vld [vmem:[%s8280_s6 + $0x230] sm:$0xff] }
 0x1fb   : > { %4767 = vmatprep.subr.mxu1 %v4658_v40  ;;  %v9585_v63 = vpop.permute.xlu0 %6163  ;;  %v1093_v32 = vmul.f32 %v986_v24, %v9351_v41  ;;  %v1195_v21 = vadd.f32 %v1102_v7, %v1100_v43  ;;  %v4655_v17 = vsel %vm3893_vm14, %v9432_v62, %v9396_v56  ;;  %v6182_v37 = vsel %vm3893_vm14, %v9438_v42, %v9500_v58  ;;  %v3082_v56 = vld [vmem:[%s8280_s6 + $0x250] sm:$0xff] }
 0x1fc   : > { %4768 = vmatpush1.msra.mxu1 %v4657_v13  ;;  %7714 = vmatmul.mubr.msk.f32.gmra.mxu0 %vm793_vm11, %v2323_v1  ;;  %v9592_v54 = vpop.f32.mrf.mxu0  ;;  %v9594_v6 = vpop.f32.mrf.mxu1  ;;  %v1132_v61 = vadd.f32 %v1131_v14, %v1080_v47  ;;  %v1117_v7 = vmul.f32 %v1058_v59, %v9351_v41  ;;  %v1126_v59 = vadd.f32 %v1125_v8, %v9415_v57 }
 0x1fd   : > { %4769 = vmatprep.subr.mxu1 %v4656_v28  ;;  %7718 = vmatmul.mubr.msk.f32.gmra.mxu1 %vm793_vm11, %v3081_v45  ;;  %v6166_v40 = vpop.permute.xlu1 %6165  ;;  %v1196_v1 = vadd.f32 %v1195_v21, %v1104_v9  ;;  %v1189_v45 = vrot.slane %v9417_v11, 4  ;;  %v2325_v9 = vld [vmem:[%s8280_s6 + $0x238] sm:$0xff]  ;;  %v1084_v57 = vmul.f32 %v9443_v30, %v9525_v22  ;;  %v3842_v30 = vld [vmem:[%s8280_s6 + $0x300] sm:$0xff] }
 0x1fe   : > { %4770 = vmatpush1.msra.mxu1 %v4655_v17  ;;  %v9604_v55 = vsel %vm3893_vm14, %v6166_v40, %v9528_v39  ;;  %2633 = vmatprep.mubr.f32.mxu0 %v14201_v15  ;;  %v992_v62 = vpop.f32.mrf.mxu0  ;;  %v1064_v47 = vpop.f32.mrf.mxu1  ;;  %v1133_v13 = vrot.slane %v1132_v61, 4  ;;  %v3083_v17 = vld [vmem:[%s8280_s6 + $0x258] sm:$0xff] }
 0x1ff   : > { %6287 = vmatprep.subr.mxu1 %v6182_v37  ;;  %3292 = vmatprep.mubr.f32.mxu1 %v14201_v15  ;;  %v9613_v43 = vpop.permute.xlu0 %6930  ;;  %v1095_v42 = vmul.f32 %v992_v62, %v9375_v29  ;;  %v1119_v58 = vmul.f32 %v1064_v47, %v9375_v29  ;;  %v1190_v62 = vadd.f32 %v1189_v45, %v9417_v11 }
 0x200   : > { %7715 = vmatmul.mubr.msk.f32.gmra.mxu0 %vm793_vm11, %v2324_v10  ;;  %v9619_v41 = vpop.f32.mrf.mxu0  ;;  %v9621_v24 = vpop.f32.mrf.mxu1  ;;  %v1197_v10 = vrot.slane %v1196_v1, 4  ;;  %v1082_v47 = vmul.f32 %v9427_v34, %v9538_v0  ;;  %v1086_v45 = vmul.f32 %v9466_v49, %v9540_v44  ;;  %v3084_v34 = vld [vmem:[%s8280_s6 + $0x260] sm:$0xff]  ;;  %v5419_v49 = vsel %vm3131_vm13, %v9412_v3, %v9384_v18 }
 0x201   : > { %7719 = vmatmul.mubr.msk.f32.gmra.mxu1 %vm793_vm11, %v3082_v56  ;;  %v6162_v14 = vpop.permute.xlu1 %6161  ;;  %2639 = vmatprep.mubr.f32.mxu0 %v14201_v15  ;;  %v1171_v28 = vadd.f32 %v1095_v42, %v1093_v32  ;;  %v1235_v21 = vadd.f32 %v1119_v58, %v1117_v7  ;;  %v1127_v7 = vrot.slane %v1126_v59, 2  ;;  %v1134_v56 = vadd.f32 %v1133_v13, %v1132_v61 }
 0x202   : > { %3298 = vmatprep.mubr.f32.mxu1 %v14201_v15  ;;  %v998_v40 = vpop.f32.mrf.mxu0  ;;  %v1070_v29 = vpop.f32.mrf.mxu1  ;;  %v1108_v42 = vmul.f32 %v9445_v5, %v9525_v22  ;;  %v1198_v5 = vadd.f32 %v1197_v10, %v1196_v1  ;;  %v1106_v13 = vmul.f32 %v9429_v50, %v9538_v0  ;;  %v1110_v1 = vmul.f32 %v9468_v20, %v9540_v44 }
 0x203   : > { %v6927_v37 = vpop.permute.xlu0 %6926  ;;  %v1097_v8 = vmul.f32 %v998_v40, %v9393_v38  ;;  %v1121_v32 = vmul.f32 %v1070_v29, %v9393_v38  ;;  %v1128_v50 = vadd.f32 %v1127_v7, %v1126_v59  ;;  %v9672_v18 = vsel %vm3893_vm14, %v9528_v39, %v9484_v53  ;;  %v3843_v59 = vld [vmem:[%s8280_s6 + $0x308] sm:$0xff] }
 0x204   : > { %7716 = vmatmul.mubr.msk.f32.gmra.mxu0 %vm793_vm11, %v2325_v9  ;;  %v5420_v9 = vsel %vm3131_vm13, %v9347_v51, %v9354_v12  ;;  %v5418_v12 = vsel %vm3131_vm13, %v9402_v31, %v9412_v3  ;;  %v1135_v40 = vrot.slane %v1134_v56, 2  ;;  %v1211_v29 = vadd.f32 %v1108_v42, %v1106_v13  ;;  %v3086_v42 = vld [vmem:[%s8280_s6 + $0x270] sm:$0xff] }
 0x205   : > { %7720 = vmatmul.mubr.msk.f32.gmra.mxu1 %vm793_vm11, %v3083_v17  ;;  %v6929_v11 = vpop.permute.xlu1 %6928  ;;  %4042 = vmatprep.mubr.f32.mxu0 %v14201_v15  ;;  %v9647_v38 = vadd.f32 %v1171_v28, %v1097_v8  ;;  %v9649_v61 = vadd.f32 %v1235_v21, %v1121_v32  ;;  %v1191_v17 = vrot.slane %v1190_v62, 2  ;;  %v1147_v28 = vadd.f32 %v1084_v57, %v1082_v47  ;;  %v3844_v47 = vld [vmem:[%s8280_s6 + $0x310] sm:$0xff] }
 0x206   : > { %v9645_v58 = vsel %vm3893_vm14, %v6927_v37, %v6929_v11  ;;  %3304 = vmatprep.mubr.f32.mxu1 %v14201_v15  ;;  %v1141_v21 = vrot.slane %v9476_v48, 4  ;;  %v3085_v37 = vld [vmem:[%s8280_s6 + $0x268] sm:$0xff]  ;;  %v1199_v57 = vrot.slane %v1198_v5, 2  ;;  %v5417_v31 = vsel %vm3131_vm13, %v9448_v19, %v9422_v36 }
 0x207   : > { %14204 = vst [vmem:[#allocation18_spill] sm:$0xff] %v9645_v58  ;;  %v1148_v10 = vadd.f32 %v1147_v28, %v1086_v45  ;;  %v9685_v3 = vsel %vm3893_vm14, %v6162_v14, %v9585_v63  ;;  %v9689_v53 = vsel %vm3893_vm14, %v6929_v11, %v9613_v43  ;;  %v1192_v39 = vadd.f32 %v1191_v17, %v1190_v62  ;;  %v6925_v7 = vpop.permute.xlu0 %6924 }
 0x208   : > { %7741 = vmatmul.mubr.msk.f32.vlgmr.msra.gmra.mxu0 %vm793_vm11, %v3842_v30  ;;  %14205 = vst [vmem:[#allocation19_spill] sm:$0xff] %v9689_v53  ;;  %v1142_v8 = vadd.f32 %v1141_v21, %v9476_v48  ;;  %v1212_v32 = vadd.f32 %v1211_v29, %v1110_v1  ;;  %v5416_v36 = vsel %vm3131_vm13, %v9473_v26, %v9448_v19 }
 0x209   : > { %5527 = vmatpush1.msra.mxu0 %v5420_v9  ;;  %7721 = vmatmul.mubr.msk.f32.gmra.mxu1 %vm793_vm11, %v3084_v34  ;;  %v6160_v51 = vpop.permute.xlu1 %6159  ;;  %v1136_v43 = vadd.f32 %v1135_v40, %v1134_v56  ;;  %v1149_v62 = vrot.slane %v1148_v10, 4  ;;  %v6943_v48 = vsel %vm3893_vm14, %v9564_v35, %v9510_v52  ;;  %v1200_v19 = vadd.f32 %v1199_v57, %v1198_v5  ;;  %v3845_v9 = vld [vmem:[%s8280_s6 + $0x318] sm:$0xff]  ;;  %v522_v40 = vld [vmem:[%s14105_s1 + $0x10] sm:$0xff] }
 0x20a   : > { %5528 = vmatprep.subr.mxu0 %v5419_v49  ;;  %v9675_v20 = vsel %vm3893_vm14, %v6160_v51, %v6162_v14  ;;  %4048 = vmatprep.mubr.f32.mxu0 %v14201_v15  ;;  %v1205_v14 = vrot.slane %v9488_v2, 4  ;;  %v1129_v56 = vrot.slane %v1128_v50, 1  ;;  %v1193_v11 = vrot.slane %v1192_v39, 1  ;;  %v3087_v49 = vld [vmem:[%s8280_s6 + $0x278] sm:$0xff] }
 0x20b   : > { %5529 = vmatpush1.msra.mxu0 %v5418_v12  ;;  %3310 = vmatprep.mubr.f32.mxu1 %v14201_v15  ;;  %v1143_v30 = vrot.slane %v1142_v8, 2  ;;  %v1213_v45 = vrot.slane %v1212_v32, 4  ;;  %v1137_v35 = vrot.slane %v1136_v43, 1  ;;  %v1150_v5 = vadd.f32 %v1149_v62, %v1148_v10  ;;  %v521_v12 = vld [vmem:[%s14105_s1 + $0x8] sm:$0xff] }
 0x20c   : > { %5530 = vmatprep.subr.mxu0 %v5417_v31  ;;  %7742 = vmatmul.mubr.msk.f32.gmra.mxu0 %vm793_vm11, %v3843_v59  ;;  %v1206_v34 = vadd.f32 %v1205_v14, %v9488_v2  ;;  %v1201_v17 = vrot.slane %v1200_v19, 1  ;;  %v9719_v28 = vadd.f32 %v1129_v56, %v1128_v50  ;;  %v9721_v21 = vadd.f32 %v1193_v11, %v1192_v39  ;;  %v520_v2 = vld [vmem:[%s14105_s1] sm:$0xff]  ;;  %v14216_v11 = vld [vmem:[#allocation17_spill] sm:$0xff] }
 0x20d   : > { %7722 = vmatmul.mubr.msk.f32.gmra.mxu1 %vm793_vm11, %v3085_v37  ;;  %v6923_v63 = vpop.permute.xlu1 %6922  ;;  %5531 = vmatpush1.msra.mxu0 %v5416_v36  ;;  %v1144_v1 = vadd.f32 %v1143_v30, %v1142_v8  ;;  %v1214_v51 = vadd.f32 %v1213_v45, %v1212_v32  ;;  %v14210_v59 = vld [vmem:[#allocation2_spill] sm:$0xff]  ;;  %v9737_v57 = vadd.f32 %v1137_v35, %v1136_v43  ;;  %v1151_v39 = vrot.slane %v1150_v5, 2  ;;  %v14212_v8 = vld [vmem:[#allocation16_spill] sm:$0xff] }
 0x20e   : > { %4054 = vmatprep.mubr.f32.mxu0 %v14201_v15  ;;  %7048 = vmatprep.subr.mxu0 %v6943_v48  ;;  %v9707_v26 = vsel %vm3893_vm14, %v6923_v63, %v6925_v7  ;;  %14208 = vst [vmem:[#allocation22_spill] sm:$0xff] %v9719_v28  ;;  %14209 = vst [vmem:[#allocation23_spill] sm:$0xff] %v9721_v21  ;;  %v1207_v31 = vrot.slane %v1206_v34, 2  ;;  %v1090_v32 = vmul.f32 %v14212_v8, %v9525_v22  ;;  %v3846_v36 = vld [vmem:[%s8280_s6 + $0x320] sm:$0xff] }
 0x20f   : > { %3316 = vmatprep.mubr.f32.mxu1 %v14201_v15  ;;  %14206 = vst [vmem:[#allocation20_spill] sm:$0xff] %v9707_v26  ;;  %14211 = vst [vmem:[#allocation2_spill] sm:$0xff] %v9737_v57  ;;  %v9745_v14 = vadd.f32 %v1201_v17, %v1200_v19  ;;  %v1145_v7 = vrot.slane %v1144_v1, 1  ;;  %v1215_v43 = vrot.slane %v1214_v51, 2  ;;  %v14214_v48 = vld [vmem:[#allocation14_spill] sm:$0xff]  ;;  %v1114_v30 = vmul.f32 %v14216_v11, %v9525_v22  ;;  %v3847_v17 = vld [vmem:[%s8280_s6 + $0x328] sm:$0xff] }
 0x210   : > { %7743 = vmatmul.mubr.msk.f32.gmra.mxu0 %vm793_vm11, %v3844_v47  ;;  %v1088_v47 = vmul.f32 %v14214_v48, %v9538_v0  ;;  %v1208_v35 = vadd.f32 %v1207_v31, %v1206_v34  ;;  %v14223_v28 = vld [vmem:[#allocation6_spill] sm:$0xff]  ;;  %v3095_v26 = vld [vmem:[%s8280_s6 + $0x2b8] sm:$0xff] }
 0x211   : > { %7723 = vmatmul.mubr.msk.f32.gmra.mxu1 %vm793_vm11, %v3086_v42  ;;  %v6921_v52 = vpop.permute.xlu1 %6920  ;;  %4060 = vmatprep.mubr.f32.mxu0 %v14201_v15  ;;  %14213 = vst [vmem:[#allocation16_spill] sm:$0xff] %v9745_v14  ;;  %v14215_v42 = vld [vmem:[#allocation15_spill] sm:$0xff]  ;;  %v9761_v34 = vadd.f32 %v1145_v7, %v1144_v1  ;;  %v9934_v14 = vmul.f32 %v9592_v54, %v9538_v0 }
 0x212   : > { %v9713_v13 = vsel %vm3893_vm14, %v6921_v52, %v6923_v63  ;;  %3322 = vmatprep.mubr.f32.mxu1 %v14201_v15  ;;  %v3088_v63 = vld [vmem:[%s8280_s6 + $0x280] sm:$0xff]  ;;  %v1112_v56 = vmul.f32 %v14215_v42, %v9538_v0  ;;  %v9949_v54 = vmul.f32 %v9594_v6, %v9538_v0 }
 0x213   : > { %14207 = vst [vmem:[#allocation21_spill] sm:$0xff] %v9713_v13  ;;  %14217 = vst [vmem:[#allocation14_spill] sm:$0xff] %v9761_v34  ;;  %v3853_v13 = vld [vmem:[%s8280_s6 + $0x358] sm:$0xff] }
 0x214   : > { %v325_v50 = vpop.permute.xlu0 %324  ;;  %7744 = vmatmul.mubr.msk.f32.gmra.mxu0 %vm793_vm11, %v3845_v9  ;;  %v1152_v9 = vadd.f32 %v1151_v39, %v1150_v5 }
 0x215   : > { %7724 = vmatmul.mubr.msk.f32.gmra.mxu1 %vm793_vm11, %v3087_v49  ;;  %v424_v29 = vadd.f32 %v8105_v23, %v325_v50  ;;  %v426_v10 = vadd.f32 %v8107_v27, %v325_v50  ;;  %v507_v37 = vadd.f32 %v14210_v59, %v325_v50  ;;  %4066 = vmatprep.mubr.f32.mxu0 %v14201_v15 }
 0x216   : > { %3328 = vmatprep.mubr.f32.mxu1 %v14201_v15  ;;  %v9755_v49 = vadd.f32 %v1090_v32, %v1088_v47  ;;  %v1209_v32 = vrot.slane %v1208_v35, 1  ;;  %v1153_v1 = vrot.slane %v1152_v9, 1 }
 0x217   : > { %v529_v23 = vadd.f32 %v520_v2, %v424_v29  ;;  %v530_v62 = vadd.f32 %v521_v12, %v426_v10  ;;  %v531_v27 = vadd.f32 %v522_v40, %v507_v37  ;;  %v3089_v2 = vld [vmem:[%s8280_s6 + $0x288] sm:$0xff]  ;;  %v1216_v10 = vadd.f32 %v1215_v43, %v1214_v51  ;;  %v3848_v51 = vld [vmem:[%s8280_s6 + $0x330] sm:$0xff] }
 0x218   : > { %7745 = vmatmul.mubr.msk.f32.gmra.mxu0 %vm793_vm11, %v3846_v36  ;;  %v3090_v43 = vld [vmem:[%s8280_s6 + $0x290] sm:$0xff] }
 0x219   : > { %v1267_v45 = vfloor.f32 %v529_v23  ;;  %v1268_v52 = vfloor.f32 %v530_v62  ;;  %v1269_v19 = vfloor.f32 %v531_v27  ;;  %7725 = vmatmul.mubr.msk.f32.gmra.mxu1 %vm793_vm11, %v3088_v63  ;;  %4072 = vmatprep.mubr.f32.mxu0 %v14201_v15  ;;  %v1293_v8 = vmax.f32 %v531_v27, 0.0  ;;  %v7971_v27 = vpop.permute.xlu1 %7970 }
 0x21a   : > { %3334 = vmatprep.mubr.f32.mxu1 %v14201_v15  ;;  %v1291_v31 = vmax.f32 %v529_v23, 0.0  ;;  %v1292_v39 = vmax.f32 %v530_v62, 0.0  ;;  %v1217_v62 = vrot.slane %v1216_v10, 1 }
 0x21b   : > { %v1271_v12 = vmax.f32 %v1267_v45, 0.0  ;;  %v1272_v40 = vmax.f32 %v1268_v52, 0.0  ;;  %v1273_v50 = vmax.f32 %v1269_v19, 0.0  ;;  %v1277_v29 = vadd.f32 1.0, %v1267_v45 }
 0x21c   : > { %v1278_v59 = vadd.f32 1.0, %v1268_v52  ;;  %v1279_v37 = vadd.f32 1.0, %v1269_v19  ;;  %7746 = vmatmul.mubr.msk.f32.gmra.mxu0 %vm793_vm11, %v3847_v17  ;;  %v1296_v45 = vmin.f32 %v1293_v8, 17.0  ;;  %v1294_v52 = vmin.f32 %v1291_v31, 17.0 }
 0x21d   : > { %v1280_v5 = vmax.f32 %v1277_v29, 0.0  ;;  %7726 = vmatmul.mubr.msk.f32.gmra.mxu1 %vm793_vm11, %v3089_v2  ;;  %v1276_v36 = vmin.f32 %v1273_v50, 17.0  ;;  %4078 = vmatprep.mubr.f32.mxu0 %v14201_v15  ;;  %v1274_v7 = vmin.f32 %v1271_v12, 17.0  ;;  %v1275_v47 = vmin.f32 %v1272_v40, 17.0  ;;  %v3849_v29 = vld [vmem:[%s8280_s6 + $0x338] sm:$0xff] }
 0x21e   : > { %v1281_v63 = vmax.f32 %v1278_v59, 0.0  ;;  %v1282_v48 = vmax.f32 %v1279_v37, 0.0  ;;  %3340 = vmatprep.mubr.f32.mxu1 %v14201_v15  ;;  %v1295_v19 = vmin.f32 %v1292_v39, 17.0  ;;  %v7973_v17 = vunpack.i.h.bf16 %v7971_v27  ;;  %v3091_v59 = vld [vmem:[%s8280_s6 + $0x298] sm:$0xff] }
 0x21f   : > { %v1283_v23 = vmin.f32 %v1280_v5, 17.0  ;;  %v7972_v2 = vunpack.i.l.bf16 %v7971_v27  ;;  %v1227_v50 = vadd.f32 %v1114_v30, %v1112_v56  ;;  %v1092_v12 = vmul.f32 %v9553_v4, %v9540_v44 }
 0x220   : > { %v1284_v42 = vmin.f32 %v1281_v63, 17.0  ;;  %v9769_v11 = vmin.f32 %v1282_v48, 17.0  ;;  %7747 = vmatmul.mubr.msk.f32.gmra.mxu0 %vm793_vm11, %v3848_v51  ;;  %v1301_v40 = vsub.f32 %v1276_v36, %v1296_v45  ;;  %v1116_v37 = vmul.f32 %v9555_v25, %v9540_v44 }
 0x221   : > { %7727 = vmatmul.mubr.msk.f32.gmra.mxu1 %vm793_vm11, %v3090_v43  ;;  %4084 = vmatprep.mubr.f32.mxu0 %v14201_v15  ;;  %v1299_v8 = vsub.f32 %v1274_v7, %v1294_v52  ;;  %v1300_v5 = vsub.f32 %v1275_v47, %v1295_v19  ;;  %v1305_v31 = vsub.f32 %v1283_v23, %v1294_v52  ;;  %v7915_v30 = vtrunc.f32 %v1274_v7 }
 0x222   : > { %3346 = vmatprep.mubr.f32.mxu1 %v14201_v15  ;;  %v9781_v39 = vadd.f32 %v1209_v32, %v1208_v35  ;;  %v1306_v56 = vsub.f32 %v1284_v42, %v1295_v19  ;;  %v1307_v4 = vsub.f32 %v9769_v11, %v1296_v45  ;;  %v9784_v63 = vadd.f32 %v1153_v1, %v1152_v9  ;;  %v3850_v9 = vld [vmem:[%s8280_s6 + $0x340] sm:$0xff] }
 0x223   : > { %v9786_v48 = vadd.f32 %v1217_v62, %v1216_v10  ;;  %v1157_v51 = vrot.slane %v9574_v16, 4  ;;  %v1322_v43 = vsel %vm1321_vm0, %v7972_v2, %v7973_v17  ;;  %v9792_v25 = vadd.f32 1.0, %v1301_v40  ;;  %v3092_v45 = vld [vmem:[%s8280_s6 + $0x2a0] sm:$0xff] }
 0x224   : > { %14218 = vst [vmem:[#allocation15_spill] sm:$0xff] %v9781_v39  ;;  %14219 = vst [vmem:[#allocation17_spill] sm:$0xff] %v9784_v63  ;;  %7748 = vmatmul.mubr.msk.f32.gmra.mxu0 %vm793_vm11, %v3849_v29  ;;  %v7917_v35 = vtrunc.f32 %v1275_v47  ;;  %v7919_v32 = vtrunc.f32 %v1276_v36  ;;  %v7921_v27 = vtrunc.f32 %v1283_v23  ;;  %v9797_v10 = vadd.f32 1.0, %v1299_v8 }
 0x225   : > { %14220 = vst [vmem:[#allocation24_spill] sm:$0xff] %v9786_v48  ;;  %7728 = vmatmul.mubr.msk.f32.gmra.mxu1 %vm793_vm11, %v3091_v59  ;;  %4090 = vmatprep.mubr.f32.mxu0 %v14201_v15  ;;  %v9799_v1 = vadd.f32 1.0, %v1300_v5  ;;  %v9801_v7 = vsub.f32 1.0, %v1305_v31  ;;  %v7923_v62 = vtrunc.f32 %v1284_v42  ;;  %v9804_v52 = vsub.f32 1.0, %v1306_v56 }
 0x226   : > { %3352 = vmatprep.mubr.f32.mxu1 %v14201_v15  ;;  %v9806_v19 = vsub.f32 1.0, %v1307_v4  ;;  %v9808_v36 = vcvt.f32.s32 %v7915_v30  ;;  %v7925_v47 = vtrunc.f32 %v9769_v11  ;;  %v9812_v23 = vadd.f32 %v1157_v51, %v9574_v16  ;;  %v3851_v16 = vld [vmem:[%s8280_s6 + $0x348] sm:$0xff]  ;;  %v14221_v51 = vld [vmem:[#allocation10_spill] sm:$0xff] }
 0x227   : > { %v1221_v40 = vrot.slane %v9583_v60, 4  ;;  %v9816_v29 = vadd.f32 %v9755_v49, %v1092_v12  ;;  %v9818_v42 = vadd.f32 %v1227_v50, %v1116_v37  ;;  %v9821_v59 = vcvt.f32.s32 %v7917_v35  ;;  %v3093_v37 = vld [vmem:[%s8280_s6 + $0x2a8] sm:$0xff] }
 0x228   : > { %7749 = vmatmul.mubr.msk.f32.gmra.mxu0 %vm793_vm11, %v3850_v9  ;;  %v9823_v8 = vcvt.f32.s32 %v7919_v32  ;;  %v9825_v5 = vcvt.f32.s32 %v7921_v27  ;;  %v9828_v11 = vmul.f32 %v7973_v17, %v9792_v25  ;;  %v9832_v31 = vcvt.f32.s32 %v7923_v62  ;;  %v3094_v32 = vld [vmem:[%s8280_s6 + $0x2b0] sm:$0xff] }
 0x229   : > { %7729 = vmatmul.mubr.msk.f32.gmra.mxu1 %vm793_vm11, %v3092_v45  ;;  %v9835_v49 = vmul.f32 %v7972_v2, %v9797_v10  ;;  %v9838_v50 = vmul.f32 %v1322_v43, %v9799_v1  ;;  %v9841_v12 = vmul.f32 %v7972_v2, %v9801_v7  ;;  %4096 = vmatprep.mubr.f32.mxu0 %v14201_v15  ;;  %v9845_v56 = vcvt.f32.s32 %v7925_v47  ;;  %v3852_v45 = vld [vmem:[%s8280_s6 + $0x350] sm:$0xff]  ;;  %v14222_v47 = vld [vmem:[#allocation3_spill] sm:$0xff] }
 0x22a   : > { %v9848_v4 = vmul.f32 %v7973_v17, %v9806_v19  ;;  %v9851_v30 = vmul.f32 %v1322_v43, %v9804_v52  ;;  %3358 = vmatprep.mubr.f32.mxu1 %v14201_v15  ;;  %v9856_v35 = vrot.slane %v9808_v36, %v14221_v51  ;;  %v9859_v2 = vadd.f32 %v1221_v40, %v9583_v60 }
 0x22b   : > { %v9865_v17 = vrot.slane %v9835_v49, %v14221_v51  ;;  %v9870_v43 = vrot.slane %v9828_v11, %v14221_v51  ;;  %v9874_v9 = vrot.slane %v9838_v50, %v14221_v51  ;;  %v9878_v60 = vrot.slane %v9841_v12, %v14221_v51 }
 0x22c   : > { %7750 = vmatmul.mubr.msk.f32.gmra.mxu0 %vm793_vm11, %v3851_v16  ;;  %v9882_v62 = vrot.slane %v9851_v30, %v14221_v51  ;;  %vm1352_vm1 = vcmp.eq.s32.totalorder %v14222_v47, %v9856_v35  ;;  %v9890_v40 = vrot.slane %v9825_v5, %v14221_v51  ;;  %v9894_v16 = vrot.slane %v9821_v59, %v14221_v51 }
 0x22d   : > { %7730 = vmatmul.mubr.msk.f32.gmra.mxu1 %vm793_vm11, %v3093_v37  ;;  %v9898_v27 = vrot.slane %v9832_v31, %v14221_v51  ;;  %4102 = vmatprep.mubr.f32.mxu0 %v14201_v15  ;;  %v9904_v37 = vrot.slane %v9848_v4, %v14221_v51  ;;  %v1373_v63 = vsel %vm1352_vm1, %v9865_v17, 0.0  ;;  %v9910_v34 = vrot.slane %v9823_v8, %v14221_v51 }
 0x22e   : > { %3364 = vmatprep.mubr.f32.mxu1 %v14201_v15  ;;  %v9914_v57 = vrot.slane %v9845_v56, %v14221_v51  ;;  %vm1394_vm2 = vcmp.eq.s32.totalorder %v14222_v47, %v9890_v40  ;;  %vm1353_vm3 = vcmp.eq.s32.totalorder %v14222_v47, %v9894_v16  ;;  %vm1355_vm5 = vcmp.eq.s32.totalorder %v14223_v28, %v9856_v35 }
 0x22f   : > { %vm1395_vm4 = vcmp.eq.s32.totalorder %v14222_v47, %v9898_v27  ;;  %v1415_v48 = vsel %vm1394_vm2, %v9878_v60, 0.0  ;;  %v1374_v51 = vsel %vm1353_vm3, %v9874_v9, 0.0  ;;  %vm1354_vm6 = vcmp.eq.s32.totalorder %v14222_v47, %v9910_v34 }
 0x230   : > { %7751 = vmatmul.mubr.msk.f32.gmra.mxu0 %vm793_vm11, %v3852_v45  ;;  %v1416_v39 = vsel %vm1395_vm4, %v9882_v62, 0.0  ;;  %v1424_v45 = vadd.f32 %v1415_v48, %v1373_v63  ;;  %vm1396_vm7 = vcmp.eq.s32.totalorder %v14222_v47, %v9914_v57  ;;  %vm1397_vm8 = vcmp.eq.s32.totalorder %v14223_v28, %v9890_v40 }
 0x231   : > { %7731 = vmatmul.mubr.msk.f32.gmra.mxu1 %vm793_vm11, %v3094_v32  ;;  %4108 = vmatprep.mubr.f32.mxu0 %v14201_v15  ;;  %v1425_v21 = vadd.f32 %v1416_v39, %v1374_v51  ;;  %v1159_v32 = vrot.slane %v9812_v23, 2  ;;  %v1417_v58 = vsel %vm1396_vm7, %v9904_v37, 0.0  ;;  %vm1398_vm9 = vcmp.eq.s32.totalorder %v14223_v28, %v9898_v27 }
 0x232   : > { %3370 = vmatprep.mubr.f32.mxu1 %v14201_v15  ;;  %1880 = vrot.lane.b32.xlu1 %v1424_v45, %s8006_s27  ;;  %v1375_v39 = vsel %vm1354_vm6, %v9870_v43, 0.0  ;;  %v1376_v63 = vsel %vm1355_vm5, %v9865_v17, 0.0  ;;  %v1418_v48 = vsel %vm1397_vm8, %v9878_v60, 0.0  ;;  %vm1356_vm10 = vcmp.eq.s32.totalorder %v14223_v28, %v9894_v16  ;;  %v3096_v45 = vld [vmem:[%s8280_s6 + $0x2c0] sm:$0xff] }
 0x233   : > { %1882 = vrot.lane.b32.xlu0 %v1425_v21, %s8006_s27  ;;  %v1426_v6 = vadd.f32 %v1417_v58, %v1375_v39  ;;  %v1427_v51 = vadd.f32 %v1418_v48, %v1376_v63  ;;  %v1419_v21 = vsel %vm1398_vm9, %v9882_v62, 0.0  ;;  %vm1357_vm12 = vcmp.eq.s32.totalorder %v14223_v28, %v9910_v34  ;;  %v3854_v58 = vld [vmem:[%s8280_s6 + $0x360] sm:$0xff] }
 0x234   : > { %7752 = vmatmul.mubr.msk.f32.gmra.mxu0 %vm793_vm11, %v3853_v13  ;;  %vm1399_vm0 = vcmp.eq.s32.totalorder %v14223_v28, %v9914_v57  ;;  %vm1400_vm1 = vcmp.eq.s32.totalorder %v8133_v46, %v9890_v40  ;;  %v14225_v39 = vrot.slane %v9818_v42, 4  ;;  %v9990_v48 = vmul.f32 %v9619_v41, %v9525_v22 }
 0x235   : > { %7732 = vmatmul.mubr.msk.f32.gmra.mxu1 %vm793_vm11, %v3095_v26  ;;  %4114 = vmatprep.mubr.f32.mxu0 %v14201_v15  ;;  %v14224_v26 = vrot.slane %v9816_v29, 4  ;;  %v1420_v0 = vsel %vm1399_vm0, %v9904_v37, 0.0  ;;  %v9994_v53 = vadd.f32 %v1159_v32, %v9812_v23  ;;  %vm2883_vm2 = vcmask 130048   ;;  %v7976_v32 = vpop.permute.xlu0 %7975 }
 0x236   : > { %3376 = vmatprep.mubr.f32.mxu1 %v14201_v15  ;;  %v9986_v63 = vadd.f32 %v14225_v39, %v9818_v42  ;;  %1884 = vrot.lane.b32.xlu1 %v1426_v6, %s8006_s27  ;;  %vm1358_vm3 = vcmp.eq.s32.totalorder %v8133_v46, %v9856_v35  ;;  %vm1401_vm4 = vcmp.eq.s32.totalorder %v8133_v46, %v9898_v27  ;;  %v1378_v23 = vsel %vm1357_vm12, %v9870_v43, 0.0  ;;  %v3098_v39 = vld [vmem:[%s8280_s6 + $0x2d0] sm:$0xff] }
 0x237   : > { %v9981_v13 = vadd.f32 %v14224_v26, %v9816_v29  ;;  %1886 = vrot.lane.b32.xlu0 %v1427_v51, %s8006_s27  ;;  %v1377_v29 = vsel %vm1356_vm10, %v9874_v9, 0.0  ;;  %v1421_v42 = vsel %vm1400_vm1, %v9878_v60, 0.0  ;;  %vm1359_vm5 = vcmp.eq.s32.totalorder %v8133_v46, %v9894_v16  ;;  %v3855_v51 = vld [vmem:[%s8280_s6 + $0x368] sm:$0xff]  ;;  %v3856_v16 = vld [vmem:[%s8280_s6 + $0x370] sm:$0xff] }
 0x238   : > { %v1428_v41 = vadd.f32 %v1419_v21, %v1377_v29  ;;  %7753 = vmatmul.mubr.msk.f32.gmra.mxu0 %vm793_vm11, %v3854_v58  ;;  %v1429_v27 = vadd.f32 %v1420_v0, %v1378_v23  ;;  %v1422_v6 = vsel %vm1401_vm4, %v9882_v62, 0.0  ;;  %v3097_v21 = vld [vmem:[%s8280_s6 + $0x2c8] sm:$0xff]  ;;  %v14226_v58 = vld [vmem:[#allocation5_spill] sm:$0xff]  ;;  %v1379_v0 = vsel %vm1358_vm3, %v9865_v17, 0.0 }
 0x239   : > { %7733 = vmatmul.mubr.msk.f32.gmra.mxu1 %vm793_vm11, %v3096_v45  ;;  %4120 = vmatprep.mubr.f32.mxu0 %v14201_v15  ;;  %v10025_v45 = vrot.slane %v9808_v36, %v14226_v58  ;;  %v10029_v60 = vrot.slane %v9825_v5, %v14226_v58  ;;  %v10033_v40 = vrot.slane %v9835_v49, %v14226_v58  ;;  %v1380_v49 = vsel %vm1359_vm5, %v9874_v9, 0.0 }
 0x23a   : > { %3382 = vmatprep.mubr.f32.mxu1 %v14201_v15  ;;  %v10037_v62 = vrot.slane %v9841_v12, %v14226_v58  ;;  %vm1402_vm6 = vcmp.eq.s32.totalorder %v8133_v46, %v9914_v57  ;;  %1888 = vrot.lane.b32.xlu1 %v1428_v41, %s8006_s27  ;;  %v10055_v12 = vrot.slane %v9832_v31, %v14226_v58  ;;  %v10061_v35 = vunpack.i.h.bf16 %v7976_v32 }
 0x23b   : > { %1890 = vrot.lane.b32.xlu0 %v1429_v27, %s8006_s27  ;;  %vm2170_vm7 = vcmp.eq.s32.totalorder %v14222_v47, %v10029_v60  ;;  %v10059_v57 = vrot.slane %v9845_v56, %v14226_v58  ;;  %v1430_v17 = vadd.f32 %v1421_v42, %v1379_v0  ;;  %v1431_v26 = vadd.f32 %v1422_v6, %v1380_v49 }
 0x23c   : > { %7754 = vmatmul.mubr.msk.f32.gmra.mxu0 %vm793_vm11, %v3855_v51  ;;  %vm1360_vm8 = vcmp.eq.s32.totalorder %v8133_v46, %v9910_v34  ;;  %v1423_v9 = vsel %vm1402_vm6, %v9904_v37, 0.0  ;;  %vm2128_vm9 = vcmp.eq.s32.totalorder %v14222_v47, %v10025_v45  ;;  %v10076_v29 = vrot.slane %v9821_v59, %v14226_v58 }
 0x23d   : > { %7734 = vmatmul.mubr.msk.f32.gmra.mxu1 %vm793_vm11, %v3097_v21  ;;  %4126 = vmatprep.mubr.f32.mxu0 %v14201_v15  ;;  %v10080_v41 = vrot.slane %v9823_v8, %v14226_v58  ;;  %v7977_v23 = vunpack.i.l.bf16 %v7976_v32  ;;  %v10084_v37 = vrot.slane %v9848_v4, %v14226_v58  ;;  %v10088_v42 = vrot.slane %v9851_v30, %v14226_v58 }
 0x23e   : > { %3388 = vmatprep.mubr.f32.mxu1 %v14201_v15  ;;  %v2191_v27 = vsel %vm2170_vm7, %v10037_v62, 0.0  ;;  %v10096_v6 = vmul.f32 %v9621_v24, %v9525_v22  ;;  %1892 = vrot.lane.b32.xlu1 %v1430_v17, %s8006_s27  ;;  %v1381_v4 = vsel %vm1360_vm8, %v9870_v43, 0.0  ;;  %vm2171_vm10 = vcmp.eq.s32.totalorder %v14222_v47, %v10055_v12 }
 0x23f   : > { %1894 = vrot.lane.b32.xlu0 %v1431_v26, %s8006_s27  ;;  %vm2172_vm12 = vcmp.eq.s32.totalorder %v14222_v47, %v10059_v57  ;;  %v10110_v22 = vrot.slane %v9828_v11, %v14226_v58  ;;  %v10114_v24 = vrot.slane %v9838_v50, %v14226_v58  ;;  %v1432_v30 = vadd.f32 %v1423_v9, %v1381_v4  ;;  %v3857_v11 = vld [vmem:[%s8280_s6 + $0x378] sm:$0xff] }
 0x240   : > { %v2149_v34 = vsel %vm2128_vm9, %v10033_v40, 0.0  ;;  %7755 = vmatmul.mubr.msk.f32.gmra.mxu0 %vm793_vm11, %v3856_v16  ;;  %vm2129_vm0 = vcmp.eq.s32.totalorder %v14222_v47, %v10076_v29  ;;  %vm2130_vm1 = vcmp.eq.s32.totalorder %v14222_v47, %v10080_v41  ;;  %v3099_v50 = vld [vmem:[%s8280_s6 + $0x2d8] sm:$0xff]  ;;  %v14227_v32 = vrot.slane %v9859_v2, 2 }
 0x241   : > { %7735 = vmatmul.mubr.msk.f32.gmra.mxu1 %vm793_vm11, %v3098_v39  ;;  %v2200_v43 = vadd.f32 %v2191_v27, %v2149_v34  ;;  %4132 = vmatprep.mubr.f32.mxu0 %v14201_v15  ;;  %v2884_v21 = vsel %vm2883_vm2, %v7977_v23, %v10061_v35  ;;  %v2192_v58 = vsel %vm2171_vm10, %v10088_v42, 0.0  ;;  %v2193_v0 = vsel %vm2172_vm12, %v10084_v37, 0.0  ;;  %v3858_v39 = vld [vmem:[%s8280_s6 + $0x380] sm:$0xff] }
 0x242   : > { %3394 = vmatprep.mubr.f32.mxu1 %v14201_v15  ;;  %v10133_v51 = vadd.f32 %v14227_v32, %v9859_v2  ;;  %v10147_v49 = vmul.f32 %v10061_v35, %v9792_v25  ;;  %1896 = vrot.lane.b32.xlu1 %v1432_v30, %s8006_s27  ;;  %vm2173_vm2 = vcmp.eq.s32.totalorder %v14223_v28, %v10029_v60  ;;  %v2150_v17 = vsel %vm2129_vm0, %v10114_v24, 0.0  ;;  %v3100_v27 = vld [vmem:[%s8280_s6 + $0x2e0] sm:$0xff] }
 0x243   : > { %2655 = vrot.lane.b32.xlu0 %v2200_v43, %s8006_s27  ;;  %vm2174_vm3 = vcmp.eq.s32.totalorder %v14223_v28, %v10055_v12  ;;  %v10156_v2 = vmul.f32 %v7977_v23, %v9797_v10  ;;  %v2151_v26 = vsel %vm2130_vm1, %v10110_v22, 0.0  ;;  %vm2131_vm4 = vcmp.eq.s32.totalorder %v14223_v28, %v10025_v45 }
 0x244   : > { %7756 = vmatmul.mubr.msk.f32.gmra.mxu0 %vm793_vm11, %v3857_v11  ;;  %v2201_v9 = vadd.f32 %v2192_v58, %v2150_v17  ;;  %v2202_v16 = vadd.f32 %v2193_v0, %v2151_v26  ;;  %vm2132_vm5 = vcmp.eq.s32.totalorder %v14223_v28, %v10076_v29  ;;  %v2194_v4 = vsel %vm2173_vm2, %v10037_v62, 0.0  ;;  %v3859_v0 = vld [vmem:[%s8280_s6 + $0x388] sm:$0xff] }
 0x245   : > { %7736 = vmatmul.mubr.msk.f32.gmra.mxu1 %vm793_vm11, %v3099_v50  ;;  %4138 = vmatprep.mubr.f32.mxu0 %v14201_v15  ;;  %v2195_v30 = vsel %vm2174_vm3, %v10088_v42, 0.0  ;;  %vm2175_vm6 = vcmp.eq.s32.totalorder %v14223_v28, %v10059_v57  ;;  %vm2176_vm7 = vcmp.eq.s32.totalorder %v8133_v46, %v10029_v60  ;;  %v10184_v34 = vmul.f32 %v10061_v35, %v9806_v19  ;;  %v3101_v17 = vld [vmem:[%s8280_s6 + $0x2e8] sm:$0xff] }
 0x246   : > { %3400 = vmatprep.mubr.f32.mxu1 %v14201_v15  ;;  %v10187_v43 = vmul.f32 %v2884_v21, %v9799_v1  ;;  %2657 = vrot.lane.b32.xlu1 %v2201_v9, %s8006_s27  ;;  %vm2133_vm8 = vcmp.eq.s32.totalorder %v14223_v28, %v10080_v41  ;;  %v10194_v11 = vmul.f32 %v7977_v23, %v9801_v7  ;;  %v2152_v60 = vsel %vm2131_vm4, %v10033_v40, 0.0 }
 0x247   : > { %2659 = vrot.lane.b32.xlu0 %v2202_v16, %s8006_s27  ;;  %v2153_v35 = vsel %vm2132_vm5, %v10114_v24, 0.0  ;;  %vm2134_vm9 = vcmp.eq.s32.totalorder %v8133_v46, %v10025_v45  ;;  %v2203_v50 = vadd.f32 %v2194_v4, %v2152_v60  ;;  %v2196_v32 = vsel %vm2175_vm6, %v10084_v37, 0.0  ;;  %v3102_v4 = vld [vmem:[%s8280_s6 + $0x2f0] sm:$0xff] }
 0x248   : > { %7757 = vmatmul.mubr.msk.f32.gmra.mxu0 %vm793_vm11, %v3858_v39  ;;  %v2204_v23 = vadd.f32 %v2195_v30, %v2153_v35  ;;  %v2197_v58 = vsel %vm2176_vm7, %v10037_v62, 0.0  ;;  %v10215_v26 = vmul.f32 %v2884_v21, %v9804_v52  ;;  %v2154_v45 = vsel %vm2133_vm8, %v10110_v22, 0.0  ;;  %v14228_v21 = vld [vmem:[#allocation9_spill] sm:$0xff] }
 0x249   : > { %7737 = vmatmul.mubr.msk.f32.gmra.mxu1 %vm793_vm11, %v3100_v27  ;;  %4144 = vmatprep.mubr.f32.mxu0 %v14201_v15  ;;  %vm2177_vm10 = vcmp.eq.s32.totalorder %v8133_v46, %v10055_v12  ;;  %vm2178_vm12 = vcmp.eq.s32.totalorder %v8133_v46, %v10059_v57  ;;  %v2155_v62 = vsel %vm2134_vm9, %v10033_v40, 0.0  ;;  %vm2135_vm0 = vcmp.eq.s32.totalorder %v8133_v46, %v10076_v29  ;;  %v3860_v27 = vld [vmem:[%s8280_s6 + $0x390] sm:$0xff] }
 0x24a   : > { %3406 = vmatprep.mubr.f32.mxu1 %v14201_v15  ;;  %2661 = vrot.lane.b32.xlu1 %v2203_v50, %s8006_s27  ;;  %v10232_v9 = vrot.slane %v9825_v5, %v14228_v21  ;;  %v10236_v12 = vrot.slane %v9832_v31, %v14228_v21  ;;  %v2205_v57 = vadd.f32 %v2196_v32, %v2154_v45  ;;  %v2198_v40 = vsel %vm2177_vm10, %v10088_v42, 0.0 }
 0x24b   : > { %2663 = vrot.lane.b32.xlu0 %v2204_v23, %s8006_s27  ;;  %v2206_v16 = vadd.f32 %v2197_v58, %v2155_v62  ;;  %vm2136_vm1 = vcmp.eq.s32.totalorder %v8133_v46, %v10080_v41  ;;  %v2199_v39 = vsel %vm2178_vm12, %v10084_v37, 0.0  ;;  %v10250_v30 = vrot.slane %v9808_v36, %v14228_v21  ;;  %v3103_v58 = vld [vmem:[%s8280_s6 + $0x2f8] sm:$0xff] }
 0x24c   : > { %7758 = vmatmul.mubr.msk.f32.gmra.mxu0 %vm793_vm11, %v3859_v0  ;;  %v10254_v60 = vrot.slane %v9821_v59, %v14228_v21  ;;  %v10258_v41 = vrot.slane %v10156_v2, %v14228_v21  ;;  %v10262_v37 = vrot.slane %v10194_v11, %v14228_v21  ;;  %v10266_v42 = vrot.slane %v10215_v26, %v14228_v21 }
 0x24d   : > { %7738 = vmatmul.mubr.msk.f32.gmra.mxu1 %vm793_vm11, %v3101_v17  ;;  %4150 = vmatprep.mubr.f32.mxu0 %v14201_v15  ;;  %v2156_v35 = vsel %vm2135_vm0, %v10114_v24, 0.0  ;;  %v2157_v50 = vsel %vm2136_vm1, %v10110_v22, 0.0  ;;  %vm2948_vm2 = vcmp.eq.s32.totalorder %v14222_v47, %v10232_v9  ;;  %vm2949_vm3 = vcmp.eq.s32.totalorder %v14222_v47, %v10236_v12  ;;  %v3861_v22 = vld [vmem:[%s8280_s6 + $0x398] sm:$0xff] }
 0x24e   : > { %3412 = vmatprep.mubr.f32.mxu1 %v14201_v15  ;;  %2665 = vrot.lane.b32.xlu1 %v2205_v57, %s8006_s27  ;;  %v10281_v23 = vrot.slane %v9845_v56, %v14228_v21  ;;  %v10285_v29 = vrot.slane %v10187_v43, %v14228_v21  ;;  %v2207_v24 = vadd.f32 %v2198_v40, %v2156_v35  ;;  %v1167_v17 = vrot.slane %v9981_v13, 2 }
 0x24f   : > { %2667 = vrot.lane.b32.xlu0 %v2206_v16, %s8006_s27  ;;  %v2208_v32 = vadd.f32 %v2199_v39, %v2157_v50  ;;  %vm2906_vm4 = vcmp.eq.s32.totalorder %v14222_v47, %v10250_v30  ;;  %vm2907_vm5 = vcmp.eq.s32.totalorder %v14222_v47, %v10254_v60  ;;  %v10299_v0 = vrot.slane %v9823_v8, %v14228_v21  ;;  %v1000_v39 = vpop.f32.mrf.mxu0 }
 0x250   : > { %7759 = vmatmul.mubr.msk.f32.gmra.mxu0 %vm793_vm11, %v3860_v27  ;;  %v10304_v45 = vrot.slane %v10184_v34, %v14228_v21  ;;  %v2969_v62 = vsel %vm2948_vm2, %v10262_v37, 0.0  ;;  %v2970_v57 = vsel %vm2949_vm3, %v10266_v42, 0.0  ;;  %v1231_v16 = vrot.slane %v9986_v63, 2 }
 0x251   : > { %7739 = vmatmul.mubr.msk.f32.gmra.mxu1 %vm793_vm11, %v3102_v4  ;;  %4156 = vmatprep.mubr.f32.mxu0 %v14201_v15  ;;  %v1179_v40 = vadd.f32 %v9990_v48, %v9934_v14  ;;  %vm2950_vm6 = vcmp.eq.s32.totalorder %v14222_v47, %v10281_v23  ;;  %vm2951_vm7 = vcmp.eq.s32.totalorder %v14223_v28, %v10232_v9  ;;  %v2927_v14 = vsel %vm2906_vm4, %v10258_v41, 0.0  ;;  %v10340_v4 = vpop.f32.mrf.mxu1 }
 0x252   : > { %3418 = vmatprep.mubr.f32.mxu1 %v14201_v15  ;;  %2669 = vrot.lane.b32.xlu1 %v2207_v24, %s8006_s27  ;;  %v10325_v27 = vrot.slane %v10147_v49, %v14228_v21  ;;  %v2928_v48 = vsel %vm2907_vm5, %v10285_v29, 0.0  ;;  %vm2909_vm8 = vcmp.eq.s32.totalorder %v14223_v28, %v10250_v30  ;;  %v1161_v21 = vrot.slane %v9994_v53, 1  ;;  %v3862_v24 = vld [vmem:[%s8280_s6 + $0x3a0] sm:$0xff] }
 0x253   : > { %2671 = vrot.lane.b32.xlu0 %v2208_v32, %s8006_s27  ;;  %v2978_v35 = vadd.f32 %v2969_v62, %v2927_v14  ;;  %v2979_v50 = vadd.f32 %v2970_v57, %v2928_v48  ;;  %vm2908_vm9 = vcmp.eq.s32.totalorder %v14222_v47, %v10299_v0  ;;  %v4604_v32 = vld [vmem:[%s8280_s6 + $0x3c0] sm:$0xff]  ;;  %v2972_v62 = vsel %vm2951_vm7, %v10262_v37, 0.0 }
 0x254   : > { %7760 = vmatmul.mubr.msk.f32.gmra.mxu0 %vm793_vm11, %v3861_v22  ;;  %v10350_v22 = vadd.f32 %v10096_v6, %v9949_v54  ;;  %vm2952_vm10 = vcmp.eq.s32.totalorder %v14223_v28, %v10236_v12  ;;  %v1225_v57 = vrot.slane %v10133_v51, 1  ;;  %v10364_v14 = vadd.f32 %v1167_v17, %v9981_v13 }
 0x255   : > { %7740 = vmatmul.mubr.msk.f32.gmra.mxu1 %vm793_vm11, %v3103_v58  ;;  %4162 = vmatprep.mubr.f32.mxu0 %v14201_v15  ;;  %v2971_v58 = vsel %vm2950_vm6, %v10304_v45, 0.0  ;;  %v1098_v54 = vmul.f32 %v1000_v39, %v9540_v44  ;;  %vm2953_vm12 = vcmp.eq.s32.totalorder %v14223_v28, %v10281_v23  ;;  %v10374_v48 = vadd.f32 %v1231_v16, %v9986_v63  ;;  %v14230_v39 = vld [vmem:[#allocation13_spill] sm:$0xff] }
 0x256   : > { %4803 = vmatprep.mubr.f32.mxu1 %v14201_v15  ;;  %3434 = vrot.lane.b32.xlu1 %v2978_v35, %s8007_s7  ;;  %v2929_v13 = vsel %vm2908_vm9, %v10325_v27, 0.0  ;;  %v2930_v17 = vsel %vm2909_vm8, %v10258_v41, 0.0  ;;  %vm2910_vm0 = vcmp.eq.s32.totalorder %v14223_v28, %v10254_v60  ;;  %v2973_v35 = vsel %vm2952_vm10, %v10266_v42, 0.0 }
 0x257   : > { %3436 = vrot.lane.b32.xlu0 %v2979_v50, %s8007_s7  ;;  %14229 = vst [vmem:[#allocation10_spill] sm:$0xff] %v10374_v48  ;;  %v2980_v63 = vadd.f32 %v2971_v58, %v2929_v13  ;;  %v2981_v16 = vadd.f32 %v2972_v62, %v2930_v17  ;;  %vm2911_vm1 = vcmp.eq.s32.totalorder %v14223_v28, %v10299_v0  ;;  %v2974_v58 = vsel %vm2953_vm12, %v10304_v45, 0.0  ;;  %v4605_v62 = vld [vmem:[%s8280_s6 + $0x3c8] sm:$0xff] }
 0x258   : > { %7761 = vmatmul.mubr.msk.f32.gmra.mxu0 %vm793_vm11, %v3862_v24  ;;  %v3863_v24 = vld [vmem:[%s8280_s6 + $0x3a8] sm:$0xff]  ;;  %vm2954_vm2 = vcmp.eq.s32.totalorder %v8133_v46, %v10232_v9  ;;  %vm2955_vm3 = vcmp.eq.s32.totalorder %v8133_v46, %v10236_v12  ;;  %v10413_v13 = vadd.f32 %v1179_v40, %v1098_v54  ;;  %vm2912_vm4 = vcmp.eq.s32.totalorder %v8133_v46, %v10250_v30  ;;  %v4606_v9 = vld [vmem:[%s8280_s6 + $0x3d0] sm:$0xff] }
 0x259   : > { %v10369_v6 = vpop.f32.mrf.mxu1  ;;  %7765 = vmatmul.mubr.msk.f32.vlgmr.msra.gmra.mxu1 %vm793_vm11, %v4604_v32  ;;  %4168 = vmatprep.mubr.f32.mxu0 %v14201_v15  ;;  %v10400_v32 = vadd.f32 %v1161_v21, %v9994_v53  ;;  %v14232_v21 = vld [vmem:[#allocation7_spill] sm:$0xff]  ;;  %v1173_v40 = vrot.slane %v9647_v38, 4  ;;  %vm2913_vm5 = vcmp.eq.s32.totalorder %v8133_v46, %v10254_v60  ;;  %vm2914_vm6 = vcmp.eq.s32.totalorder %v8133_v46, %v10299_v0 }
 0x25a   : > { %6288 = vmatpush1.msra.mxu1 %v14230_v39  ;;  %4809 = vmatprep.mubr.f32.mxu1 %v14201_v15  ;;  %v10427_v17 = vrot.slane %v9825_v5, %v14232_v21  ;;  %v2975_v39 = vsel %vm2954_vm2, %v10262_v37, 0.0  ;;  %vm2956_vm7 = vcmp.eq.s32.totalorder %v8133_v46, %v10281_v23  ;;  %v10468_v12 = vrot.slane %v9801_v7, %v14232_v21 }
 0x25b   : > { %v10395_v50 = vpop.f32.mrf.mxu1  ;;  %14231 = vst [vmem:[#allocation3_spill] sm:$0xff] %v10400_v32  ;;  %6289 = vmatprep.subr.mxu1 %v9672_v18  ;;  %3438 = vrot.lane.b32.xlu1 %v2980_v63, %s8007_s7  ;;  %v2931_v18 = vsel %vm2910_vm0, %v10285_v29, 0.0  ;;  %v2932_v63 = vsel %vm2911_vm1, %v10325_v27, 0.0  ;;  %v10486_v37 = vrot.slane %v9845_v56, %v14232_v21  ;;  %v1122_v23 = vmul.f32 %v10340_v4, %v9540_v44 }
 0x25c   : > { %3440 = vrot.lane.b32.xlu0 %v2981_v16, %s8007_s7  ;;  %v2982_v54 = vadd.f32 %v2973_v35, %v2931_v18  ;;  %6290 = vmatpush1.msra.mxu1 %v9604_v55  ;;  %v2983_v16 = vadd.f32 %v2974_v58, %v2932_v63  ;;  %v2976_v55 = vsel %vm2955_vm3, %v10266_v42, 0.0  ;;  %v10453_v58 = vrot.slane %v9808_v36, %v14232_v21  ;;  %v3865_v63 = vld [vmem:[%s8280_s6 + $0x3b8] sm:$0xff] }
 0x25d   : > { %v10421_v53 = vpop.f32.mrf.mxu1  ;;  %7762 = vmatmul.mubr.msk.f32.gmra.mxu0 %vm793_vm11, %v3863_v24  ;;  %6291 = vmatprep.subr.mxu1 %v9685_v3  ;;  %v3864_v24 = vld [vmem:[%s8280_s6 + $0x3b0] sm:$0xff]  ;;  %v2933_v3 = vsel %vm2912_vm4, %v10258_v41, 0.0  ;;  %vm3710_vm8 = vcmp.eq.s32.totalorder %v14222_v47, %v10427_v17  ;;  %v10482_v41 = vrot.slane %v9832_v31, %v14232_v21  ;;  %v1237_v42 = vrot.slane %v9649_v61, 4 }
 0x25e   : > { %7766 = vmatmul.mubr.msk.f32.gmra.mxu1 %vm793_vm11, %v4605_v62  ;;  %4174 = vmatprep.mubr.f32.mxu0 %v14201_v15  ;;  %v2984_v62 = vadd.f32 %v2975_v39, %v2933_v3  ;;  %v2977_v18 = vsel %vm2956_vm7, %v10304_v45, 0.0  ;;  %vm3668_vm9 = vcmp.eq.s32.totalorder %v14222_v47, %v10453_v58  ;;  %v10512_v39 = vrot.slane %v9823_v8, %v14232_v21 }
 0x25f   : > { %v10448_v35 = vpop.f32.mrf.mxu1  ;;  %6292 = vmatpush1.msra.mxu1 %v9675_v20  ;;  %3442 = vrot.lane.b32.xlu1 %v2982_v54, %s8007_s7  ;;  %v2934_v20 = vsel %vm2913_vm5, %v10285_v29, 0.0  ;;  %v10493_v29 = vrot.slane %v9797_v10, %v14232_v21  ;;  %v3731_v45 = vsel %vm3710_vm8, %v10468_v12, 0.0  ;;  %v10528_v3 = vrot.slane %v9806_v19, %v14232_v21 }
 0x260   : > { %14233 = vst [vmem:[#allocation6_spill] sm:$0xff] %v10448_v35  ;;  %3444 = vrot.lane.b32.xlu0 %v2983_v16, %s8007_s7  ;;  %v2985_v60 = vadd.f32 %v2976_v55, %v2934_v20  ;;  %4815 = vmatprep.mubr.f32.mxu1 %v14201_v15  ;;  %v10508_v16 = vrot.slane %v9821_v59, %v14232_v21  ;;  %v4607_v55 = vld [vmem:[%s8280_s6 + $0x3d8] sm:$0xff]  ;;  %v2935_v44 = vsel %vm2914_vm6, %v10325_v27, 0.0 }
 0x261   : > { %v10476_v30 = vpop.f32.mrf.mxu1  ;;  %7763 = vmatmul.mubr.msk.f32.gmra.mxu0 %vm793_vm11, %v3864_v24  ;;  %v10524_v24 = vrot.slane %v9804_v52, %v14232_v21  ;;  %vm3711_vm10 = vcmp.eq.s32.totalorder %v14222_v47, %v10482_v41  ;;  %vm3712_vm12 = vcmp.eq.s32.totalorder %v14222_v47, %v10486_v37  ;;  %v10552_v0 = vrot.slane %v9799_v1, %v14232_v21 }
 0x262   : > { %14234 = vst [vmem:[#allocation5_spill] sm:$0xff] %v10476_v30  ;;  %7767 = vmatmul.mubr.msk.f32.gmra.mxu1 %vm793_vm11, %v4606_v9  ;;  %4180 = vmatprep.mubr.f32.mxu0 %v14201_v15  ;;  %v10531_v9 = vadd.f32 %v1173_v40, %v9647_v38  ;;  %v2986_v38 = vadd.f32 %v2977_v18, %v2935_v44  ;;  %v3689_v40 = vsel %vm3668_vm9, %v10493_v29, 0.0  ;;  %v4608_v44 = vld [vmem:[%s8280_s6 + $0x3e0] sm:$0xff] }
 0x263   : > { %v10502_v54 = vpop.f32.mrf.mxu1  ;;  %4821 = vmatprep.mubr.f32.mxu1 %v14201_v15  ;;  %3446 = vrot.lane.b32.xlu1 %v2984_v62, %s8007_s7  ;;  %v10556_v27 = vrot.slane %v9792_v25, %v14232_v21  ;;  %v3740_v20 = vadd.f32 %v3731_v45, %v3689_v40  ;;  %vm3669_vm0 = vcmp.eq.s32.totalorder %v14222_v47, %v10508_v16  ;;  %v1169_v21 = vrot.slane %v10364_v14, 1 }
 0x264   : > { %14235 = vst [vmem:[#allocation9_spill] sm:$0xff] %v10502_v54  ;;  %3448 = vrot.lane.b32.xlu0 %v2985_v60, %s8007_s7  ;;  %vm3670_vm1 = vcmp.eq.s32.totalorder %v14222_v47, %v10512_v39  ;;  %v5365_v60 = vld [vmem:[%s8280_s6 + $0x480] sm:$0xff]  ;;  %v10570_v18 = vadd.f32 %v1225_v57, %v10133_v51  ;;  %v3733_v45 = vsel %vm3712_vm12, %v10528_v3, 0.0  ;;  %v10586_v51 = vadd.f32 %v1237_v42, %v9649_v61 }
 0x265   : > { %v10539_v4 = vpop.f32.mrf.mxu1  ;;  %7764 = vmatmul.mubr.msk.f32.gmra.mxu0 %vm793_vm11, %v3865_v63  ;;  %v3732_v63 = vsel %vm3711_vm10, %v10524_v24, 0.0  ;;  %v1181_v57 = vrot.slane %v10413_v13, 4  ;;  %vm3713_vm2 = vcmp.eq.s32.totalorder %v14223_v28, %v10427_v17  ;;  %vm3714_vm3 = vcmp.eq.s32.totalorder %v14223_v28, %v10482_v41  ;;  %v14244_v54 = vld [vmem:[#allocation18_spill] sm:$0xff] }
 0x266   : > { %7768 = vmatmul.mubr.msk.f32.gmra.mxu1 %vm793_vm11, %v4607_v55  ;;  %5564 = vmatprep.mubr.f32.mxu0 %v14201_v15  ;;  %14236 = vst [vmem:[#allocation13_spill] sm:$0xff] %v10570_v18  ;;  %v10598_v18 = vadd.f32 %v10350_v22, %v1122_v23  ;;  %v3690_v61 = vsel %vm3669_vm0, %v10552_v0, 0.0  ;;  %v3691_v42 = vsel %vm3670_vm1, %v10556_v27, 0.0  ;;  %vm3671_vm4 = vcmp.eq.s32.totalorder %v14223_v28, %v10453_v58 }
 0x267   : > { %v10563_v62 = vpop.f32.mrf.mxu1  ;;  %4827 = vmatprep.mubr.f32.mxu1 %v14201_v15  ;;  %3450 = vrot.lane.b32.xlu1 %v2986_v38, %s8007_s7  ;;  %v1175_v22 = vrot.slane %v10531_v9, 2  ;;  %v3741_v23 = vadd.f32 %v3732_v63, %v3690_v61  ;;  %vm3672_vm5 = vcmp.eq.s32.totalorder %v14223_v28, %v10508_v16  ;;  %vm3715_vm6 = vcmp.eq.s32.totalorder %v14223_v28, %v10486_v37 }
 0x268   : > { %v10581_v55 = vpop.f32.mrf.mxu0  ;;  %4196 = vrot.lane.b32.xlu0 %v3740_v20, %s8008_s8  ;;  %v3742_v20 = vadd.f32 %v3733_v45, %v3691_v42  ;;  %v5366_v45 = vld [vmem:[%s8280_s6 + $0x488] sm:$0xff]  ;;  %vm3716_vm7 = vcmp.eq.s32.totalorder %v8133_v46, %v10427_v17  ;;  %v1239_v61 = vrot.slane %v10586_v51, 2  ;;  %v10642_v42 = vadd.f32 %v1181_v57, %v10413_v13  ;;  %v14251_v17 = vld [vmem:[#allocation4_spill] sm:$0xff] }
 0x269   : > { %14237 = vst [vmem:[#allocation7_spill] sm:$0xff] %v10581_v55  ;;  %v10591_v40 = vpop.f32.mrf.mxu1  ;;  %7789 = vmatmul.mubr.msk.f32.vlgmr.msra.gmra.mxu0 %vm793_vm11, %v5365_v60  ;;  %v14240_v60 = vld [vmem:[#allocation19_spill] sm:$0xff]  ;;  %vm3673_vm8 = vcmp.eq.s32.totalorder %v14223_v28, %v10512_v39  ;;  %v3693_v13 = vsel %vm3672_vm5, %v10552_v0, 0.0  ;;  %vm3674_vm9 = vcmp.eq.s32.totalorder %v8133_v46, %v10453_v58  ;;  %v3737_v55 = vsel %vm3716_vm7, %v10468_v12, 0.0 }
 0x26a   : > { %v10609_v38 = vpop.f32.mrf.mxu0  ;;  %7049 = vmatpush1.msra.mxu0 %v9572_v33  ;;  %7769 = vmatmul.mubr.msk.f32.gmra.mxu1 %vm793_vm11, %v4608_v44  ;;  %v3735_v33 = vsel %vm3714_vm3, %v10524_v24, 0.0  ;;  %v10638_v44 = vadd.f32 %v1169_v21, %v10364_v14  ;;  %v3692_v14 = vsel %vm3671_vm4, %v10493_v29, 0.0  ;;  %vm3717_vm10 = vcmp.eq.s32.totalorder %v8133_v46, %v10482_v41 }
 0x26b   : > { %14238 = vst [vmem:[#allocation25_spill] sm:$0xff] %v10609_v38  ;;  %v10618_v32 = vpop.f32.mrf.mxu1  ;;  %7050 = vmatprep.subr.mxu0 %v14240_v60  ;;  %v3734_v38 = vsel %vm3713_vm2, %v10468_v12, 0.0  ;;  %5570 = vmatprep.mubr.f32.mxu0 %v14201_v15  ;;  %v10694_v12 = vrot.slane %v9825_v5, %v14251_v17  ;;  %vm3675_vm12 = vcmp.eq.s32.totalorder %v8133_v46, %v10508_v16 }
 0x26c   : > { %14239 = vst [vmem:[#allocation26_spill] sm:$0xff] %v10618_v32  ;;  %v10630_v63 = vpop.f32.mrf.mxu0  ;;  %14242 = vst [vmem:[#allocation27_spill] sm:$0xff] %v10638_v44  ;;  %4198 = vrot.lane.b32.xlu1 %v3741_v23, %s8008_s8  ;;  %4200 = vrot.lane.b32.xlu0 %v3742_v20, %s8008_s8  ;;  %v3743_v57 = vadd.f32 %v3734_v38, %v3692_v14  ;;  %v14246_v23 = vld [vmem:[#allocation20_spill] sm:$0xff]  ;;  %v3736_v20 = vsel %vm3715_vm6, %v10528_v3, 0.0  ;;  %v10679_v38 = vadd.f32 %v1175_v22, %v10531_v9 }
 0x26d   : > { %14241 = vst [vmem:[#allocation19_spill] sm:$0xff] %v10630_v63  ;;  %v10646_v60 = vpop.f32.mrf.mxu1  ;;  %v4609_v63 = vld [vmem:[%s8280_s6 + $0x3e8] sm:$0xff]  ;;  %7051 = vmatpush1.msra.mxu0 %v14244_v54  ;;  %4833 = vmatprep.mubr.f32.mxu1 %v14201_v15  ;;  %v3744_v54 = vadd.f32 %v3735_v33, %v3693_v13  ;;  %v14249_v33 = vld [vmem:[#allocation21_spill] sm:$0xff]  ;;  %v5367_v13 = vld [vmem:[%s8280_s6 + $0x490] sm:$0xff]  ;;  %v3695_v9 = vsel %vm3674_vm9, %v10493_v29, 0.0  ;;  %vm3718_vm0 = vcmp.eq.s32.totalorder %v8133_v46, %v10486_v37  ;;  %v3696_v37 = vsel %vm3675_vm12, %v10552_v0, 0.0 }
 0x26e   : > { %14243 = vst [vmem:[#allocation28_spill] sm:$0xff] %v10646_v60  ;;  %v10662_v21 = vpop.f32.mrf.mxu0  ;;  %7052 = vmatprep.subr.mxu0 %v14246_v23  ;;  %7790 = vmatmul.mubr.msk.f32.gmra.mxu0 %vm793_vm11, %v5366_v45  ;;  %14248 = vst [vmem:[#allocation29_spill] sm:$0xff] %v10679_v38  ;;  %v3694_v45 = vsel %vm3673_vm8, %v10556_v27, 0.0  ;;  %v10711_v23 = vrot.slane %v9832_v31, %v14251_v17  ;;  %v10720_v29 = vrot.slane %v9808_v36, %v14251_v17 }
 0x26f   : > { %14245 = vst [vmem:[#allocation18_spill] sm:$0xff] %v10662_v21  ;;  %v10676_v44 = vpop.f32.mrf.mxu1  ;;  %7053 = vmatpush1.msra.mxu0 %v14249_v33  ;;  %7770 = vmatmul.mubr.msk.f32.gmra.mxu1 %vm793_vm11, %v4609_v63  ;;  %v4610_v63 = vld [vmem:[%s8280_s6 + $0x3f0] sm:$0xff]  ;;  %v3746_v33 = vadd.f32 %v3737_v55, %v3695_v9  ;;  %vm3676_vm1 = vcmp.eq.s32.totalorder %v8133_v46, %v10512_v39  ;;  %v3739_v41 = vsel %vm3718_vm0, %v10528_v3, 0.0  ;;  %v5368_v9 = vld [vmem:[%s8280_s6 + $0x498] sm:$0xff] }
 0x270   : > { %14247 = vst [vmem:[#allocation20_spill] sm:$0xff] %v10676_v44  ;;  %v10687_v14 = vpop.f32.mrf.mxu0  ;;  %4202 = vrot.lane.b32.xlu1 %v3743_v57, %s8008_s8  ;;  %4204 = vrot.lane.b32.xlu0 %v3744_v54, %s8008_s8  ;;  %v1183_v57 = vrot.slane %v10642_v42, 2  ;;  %v3745_v54 = vadd.f32 %v3736_v20, %v3694_v45  ;;  %v10733_v20 = vrot.slane %v9801_v7, %v14251_v17  ;;  %v3697_v16 = vsel %vm3676_vm1, %v10556_v27, 0.0 }
 0x271   : > { %14250 = vst [vmem:[#allocation21_spill] sm:$0xff] %v10687_v14  ;;  %v10702_v22 = vpop.f32.mrf.mxu1  ;;  %5576 = vmatprep.mubr.f32.mxu0 %v14201_v15  ;;  %4839 = vmatprep.mubr.f32.mxu1 %v14201_v15  ;;  %v3738_v14 = vsel %vm3717_vm10, %v10524_v24, 0.0  ;;  %v10737_v45 = vrot.slane %v9821_v59, %v14251_v17  ;;  %vm4472_vm2 = vcmp.eq.s32.totalorder %v14222_v47, %v10694_v12 }
 0x272   : > { %v10716_v58 = vpop.f32.mrf.mxu0  ;;  %7791 = vmatmul.mubr.msk.f32.gmra.mxu0 %vm793_vm11, %v5367_v13  ;;  %v10740_v13 = vadd.f32 %v1239_v61, %v10586_v51  ;;  %v4611_v51 = vld [vmem:[%s8280_s6 + $0x3f8] sm:$0xff]  ;;  %v10768_v61 = vrot.slane %v9797_v10, %v14251_v17  ;;  %vm4473_vm3 = vcmp.eq.s32.totalorder %v14222_v47, %v10711_v23  ;;  %vm4430_vm4 = vcmp.eq.s32.totalorder %v14222_v47, %v10720_v29 }
 0x273   : > { %14252 = vst [vmem:[#allocation4_spill] sm:$0xff] %v10716_v58  ;;  %v10729_v55 = vpop.f32.mrf.mxu1  ;;  %7771 = vmatmul.mubr.msk.f32.gmra.mxu1 %vm793_vm11, %v4610_v63  ;;  %5582 = vmatprep.mubr.f32.mxu0 %v14201_v15  ;;  %v10755_v58 = vrot.slane %v9804_v52, %v14251_v17  ;;  %v10774_v63 = vrot.slane %v9845_v56, %v14251_v17  ;;  %v4493_v39 = vsel %vm4472_vm2, %v10733_v20, 0.0 }
 0x274   : > { %14253 = vst [vmem:[#allocation30_spill] sm:$0xff] %v10740_v13  ;;  %v10748_v24 = vpop.f32.mrf.mxu0  ;;  %4206 = vrot.lane.b32.xlu1 %v3745_v54, %s8008_s8  ;;  %4208 = vrot.lane.b32.xlu0 %v3746_v33, %s8008_s8  ;;  %v3747_v54 = vadd.f32 %v3738_v14, %v3696_v37  ;;  %v10787_v33 = vrot.slane %v9799_v1, %v14251_v17 }
 0x275   : > { %14254 = vst [vmem:[#allocation31_spill] sm:$0xff] %v10748_v24  ;;  %v10763_v3 = vpop.f32.mrf.mxu1  ;;  %4845 = vmatprep.mubr.f32.mxu1 %v14201_v15  ;;  %v3748_v21 = vadd.f32 %v3739_v41, %v3697_v16  ;;  %vm4431_vm5 = vcmp.eq.s32.totalorder %v14222_v47, %v10737_v45  ;;  %v10800_v14 = vrot.slane %v9823_v8, %v14251_v17  ;;  %v14258_v41 = vrot.slane %v10598_v18, 4  ;;  %v5369_v24 = vld [vmem:[%s8280_s6 + $0x4a0] sm:$0xff] }
 0x276   : > { %v10781_v0 = vpop.f32.mrf.mxu0  ;;  %7792 = vmatmul.mubr.msk.f32.gmra.mxu0 %vm793_vm11, %v5368_v9  ;;  %v10803_v37 = vadd.f32 %v1183_v57, %v10642_v42  ;;  %v4494_v16 = vsel %vm4473_vm3, %v10755_v58, 0.0  ;;  %v10821_v42 = vrot.slane %v9806_v19, %v14251_v17  ;;  %v14260_v57 = vld [vmem:[#allocation12_spill] sm:$0xff]  ;;  %vm4474_vm6 = vcmp.eq.s32.totalorder %v14222_v47, %v10774_v63 }
 0x277   : > { %14255 = vst [vmem:[#allocation32_spill] sm:$0xff] %v10781_v0  ;;  %v10796_v27 = vpop.f32.mrf.mxu1  ;;  %v10808_v9 = vadd.f32 %v14258_v41, %v10598_v18  ;;  %7772 = vmatmul.mubr.msk.f32.gmra.mxu1 %vm793_vm11, %v4611_v51  ;;  %5588 = vmatprep.mubr.f32.mxu0 %v14201_v15  ;;  %v10825_v18 = vrot.slane %v10147_v49, %v14260_v57  ;;  %v4451_v51 = vsel %vm4430_vm4, %v10768_v61, 0.0 }
 0x278   : > { %14256 = vst [vmem:[#allocation33_spill] sm:$0xff] %v10796_v27  ;;  %14257 = vst [vmem:[#allocation34_spill] sm:$0xff] %v10803_v37  ;;  %v10816_v0 = vpop.f32.mrf.mxu0  ;;  %4210 = vrot.lane.b32.xlu1 %v3747_v54, %s8008_s8  ;;  %4212 = vrot.lane.b32.xlu0 %v3748_v21, %s8008_s8  ;;  %vm4475_vm7 = vcmp.eq.s32.totalorder %v14223_v28, %v10694_v12  ;;  %v10842_v49 = vrot.slane %v10184_v34, %v14260_v57  ;;  %v4452_v21 = vsel %vm4431_vm5, %v10787_v33, 0.0 }
 0x279   : > { %14259 = vst [vmem:[#allocation35_spill] sm:$0xff] %v10816_v0  ;;  %v10833_v41 = vpop.f32.mrf.mxu1  ;;  %v4612_v0 = vld [vmem:[%s8280_s6 + $0x400] sm:$0xff]  ;;  %v4502_v54 = vadd.f32 %v4493_v39, %v4451_v51  ;;  %4851 = vmatprep.mubr.f32.mxu1 %v14201_v15  ;;  %v10853_v37 = vrot.slane %v9792_v25, %v14251_v17  ;;  %v4503_v13 = vadd.f32 %v4494_v16, %v4452_v21  ;;  %v4495_v17 = vsel %vm4474_vm6, %v10821_v42, 0.0  ;;  %v5370_v51 = vld [vmem:[%s8280_s6 + $0x4a8] sm:$0xff] }
 0x27a   : > { %14261 = vst [vmem:[#allocation12_spill] sm:$0xff] %v10833_v41  ;;  %v10849_v44 = vpop.f32.mrf.mxu0  ;;  %7793 = vmatmul.mubr.msk.f32.gmra.mxu0 %vm793_vm11, %v5369_v24  ;;  %vm4432_vm8 = vcmp.eq.s32.totalorder %v14222_v47, %v10800_v14  ;;  %vm4433_vm9 = vcmp.eq.s32.totalorder %v14223_v28, %v10720_v29  ;;  %vm4476_vm10 = vcmp.eq.s32.totalorder %v14223_v28, %v10711_v23  ;;  %v4496_v24 = vsel %vm4475_vm7, %v10733_v20, 0.0 }
 0x27b   : > { %14262 = vst [vmem:[#allocation36_spill] sm:$0xff] %v10849_v44  ;;  %v10860_v34 = vpop.f32.mrf.mxu1  ;;  %v10866_v39 = vrot.slane %v10156_v2, %v14260_v57  ;;  %7773 = vmatmul.mubr.msk.f32.gmra.mxu1 %vm793_vm11, %v4612_v0  ;;  %5594 = vmatprep.mubr.f32.mxu0 %v14201_v15  ;;  %vm4434_vm12 = vcmp.eq.s32.totalorder %v14223_v28, %v10737_v45  ;;  %v4613_v44 = vld [vmem:[%s8280_s6 + $0x408] sm:$0xff] }
 0x27c   : > { %14263 = vst [vmem:[#allocation37_spill] sm:$0xff] %v10860_v34  ;;  %v10878_v16 = vpop.f32.mrf.mxu0  ;;  %v10885_v2 = vrot.slane %v10187_v43, %v14260_v57  ;;  %v10889_v0 = vrot.slane %v10194_v11, %v14260_v57  ;;  %4957 = vrot.lane.b32.xlu1 %v4502_v54, %s8008_s8  ;;  %4959 = vrot.lane.b32.xlu0 %v4503_v13, %s8008_s8  ;;  %v4453_v43 = vsel %vm4432_vm8, %v10853_v37, 0.0  ;;  %v4454_v11 = vsel %vm4433_vm9, %v10768_v61, 0.0 }
 0x27d   : > { %14264 = vst [vmem:[#allocation38_spill] sm:$0xff] %v10878_v16  ;;  %v10893_v21 = vpop.f32.mrf.mxu1  ;;  %vm4477_vm0 = vcmp.eq.s32.totalorder %v14223_v28, %v10774_v63  ;;  %4857 = vmatprep.mubr.f32.mxu1 %v14201_v15  ;;  %v4497_v54 = vsel %vm4476_vm10, %v10755_v58, 0.0  ;;  %vm4435_vm1 = vcmp.eq.s32.totalorder %v14223_v28, %v10800_v14  ;;  %v10917_v16 = vrot.slane %v10215_v26, %v14260_v57 }
 0x27e   : > { %v10907_v13 = vpop.f32.mrf.mxu0  ;;  %v4504_v34 = vadd.f32 %v4495_v17, %v4453_v43  ;;  %v4505_v38 = vadd.f32 %v4496_v24, %v4454_v11  ;;  %7794 = vmatmul.mubr.msk.f32.gmra.mxu0 %vm793_vm11, %v5370_v51  ;;  %v4498_v60 = vsel %vm4477_vm0, %v10821_v42, 0.0  ;;  %v5371_v17 = vld [vmem:[%s8280_s6 + $0x4b0] sm:$0xff]  ;;  %vm4478_vm2 = vcmp.eq.s32.totalorder %v8133_v46, %v10694_v12 }
 0x27f   : > { %14265 = vst [vmem:[#allocation39_spill] sm:$0xff] %v10907_v13  ;;  %v4455_v13 = vsel %vm4434_vm12, %v10787_v33, 0.0  ;;  %v10924_v41 = vpop.f32.mrf.mxu1  ;;  %7774 = vmatmul.mubr.msk.f32.gmra.mxu1 %vm793_vm11, %v4613_v44  ;;  %5600 = vmatprep.mubr.f32.mxu0 %v14201_v15  ;;  %vm4479_vm3 = vcmp.eq.s32.totalorder %v8133_v46, %v10711_v23  ;;  %v10938_v24 = vrot.slane %v9825_v5, %v14260_v57  ;;  %v4456_v51 = vsel %vm4435_vm1, %v10853_v37, 0.0  ;;  %v4614_v11 = vld [vmem:[%s8280_s6 + $0x410] sm:$0xff] }
 0x280   : > { %v10929_v26 = vpop.f32.mrf.mxu0  ;;  %4961 = vrot.lane.b32.xlu1 %v4504_v34, %s8008_s8  ;;  %4963 = vrot.lane.b32.xlu0 %v4505_v38, %s8008_s8  ;;  %v4506_v44 = vadd.f32 %v4497_v54, %v4455_v13  ;;  %vm4436_vm4 = vcmp.eq.s32.totalorder %v8133_v46, %v10720_v29  ;;  %vm4437_vm5 = vcmp.eq.s32.totalorder %v8133_v46, %v10737_v45  ;;  %v4500_v30 = vsel %vm4479_vm3, %v10755_v58, 0.0 }
 0x281   : > { %14266 = vst [vmem:[#allocation40_spill] sm:$0xff] %v10929_v26  ;;  %v10946_v43 = vpop.f32.mrf.mxu1  ;;  %v10953_v26 = vrot.slane %v9808_v36, %v14260_v57  ;;  %4863 = vmatprep.mubr.f32.mxu1 %v14201_v15  ;;  %vm4480_vm6 = vcmp.eq.s32.totalorder %v8133_v46, %v10774_v63  ;;  %v10964_v34 = vrot.slane %v9832_v31, %v14260_v57  ;;  %v4457_v58 = vsel %vm4436_vm4, %v10768_v61, 0.0 }
 0x282   : > { %v10956_v38 = vpop.f32.mrf.mxu0  ;;  %v10968_v13 = vrot.slane %v9845_v56, %v14260_v57  ;;  %v4507_v54 = vadd.f32 %v4498_v60, %v4456_v51  ;;  %7795 = vmatmul.mubr.msk.f32.gmra.mxu0 %vm793_vm11, %v5371_v17  ;;  %v10983_v32 = vrot.slane %v9821_v59, %v14260_v57  ;;  %vm4438_vm7 = vcmp.eq.s32.totalorder %v8133_v46, %v10800_v14 }
 0x283   : > { %14267 = vst [vmem:[#allocation41_spill] sm:$0xff] %v10956_v38  ;;  %v4499_v38 = vsel %vm4478_vm2, %v10733_v20, 0.0  ;;  %v10979_v27 = vpop.f32.mrf.mxu1  ;;  %7775 = vmatmul.mubr.msk.f32.gmra.mxu1 %vm793_vm11, %v4614_v11  ;;  %5606 = vmatprep.mubr.f32.mxu0 %v14201_v15  ;;  %v5372_v20 = vld [vmem:[%s8280_s6 + $0x4b8] sm:$0xff]  ;;  %vm5233_vm8 = vcmp.eq.s32.totalorder %v14222_v47, %v10938_v24  ;;  %v10997_v23 = vrot.slane %v9823_v8, %v14260_v57  ;;  %v4458_v17 = vsel %vm4437_vm5, %v10787_v33, 0.0 }
 0x284   : > { %14268 = vst [vmem:[#allocation42_spill] sm:$0xff] %v10979_v27  ;;  %v10988_v12 = vpop.f32.mrf.mxu0  ;;  %4965 = vrot.lane.b32.xlu1 %v4506_v44, %s8008_s8  ;;  %4967 = vrot.lane.b32.xlu0 %v4507_v54, %s8008_s8  ;;  %v4615_v11 = vld [vmem:[%s8280_s6 + $0x418] sm:$0xff]  ;;  %v4501_v57 = vsel %vm4480_vm6, %v10821_v42, 0.0  ;;  %vm5191_vm9 = vcmp.eq.s32.totalorder %v14222_v47, %v10953_v26  ;;  %v4508_v44 = vadd.f32 %v4499_v38, %v4457_v58  ;;  %v4459_v45 = vsel %vm4438_vm7, %v10853_v37, 0.0  ;;  %v5373_v37 = vld [vmem:[%s8280_s6 + $0x4c0] sm:$0xff] }
 0x285   : > { %14269 = vst [vmem:[#allocation43_spill] sm:$0xff] %v10988_v12  ;;  %v11009_v51 = vpop.f32.mrf.mxu1  ;;  %v4509_v54 = vadd.f32 %v4500_v30, %v4458_v17  ;;  %4869 = vmatprep.mubr.f32.mxu1 %v14201_v15  ;;  %vm5234_vm10 = vcmp.eq.s32.totalorder %v14222_v47, %v10964_v34  ;;  %vm5235_vm12 = vcmp.eq.s32.totalorder %v14222_v47, %v10968_v13  ;;  %v5254_v30 = vsel %vm5233_vm8, %v10889_v0, 0.0  ;;  %v4616_v38 = vld [vmem:[%s8280_s6 + $0x420] sm:$0xff] }
 0x286   : > { %14270 = vst [vmem:[#allocation44_spill] sm:$0xff] %v11009_v51  ;;  %v11019_v29 = vpop.f32.mrf.mxu0  ;;  %7796 = vmatmul.mubr.msk.f32.gmra.mxu0 %vm793_vm11, %v5372_v20  ;;  %vm5192_vm0 = vcmp.eq.s32.totalorder %v14222_v47, %v10983_v32  ;;  %vm5236_vm1 = vcmp.eq.s32.totalorder %v14223_v28, %v10938_v24  ;;  %v4510_v63 = vadd.f32 %v4501_v57, %v4459_v45  ;;  %v5212_v33 = vsel %vm5191_vm9, %v10866_v39, 0.0 }
 0x287   : > { %14271 = vst [vmem:[#allocation45_spill] sm:$0xff] %v11019_v29  ;;  %v11034_v61 = vpop.f32.mrf.mxu1  ;;  %7776 = vmatmul.mubr.msk.f32.gmra.mxu1 %vm793_vm11, %v4615_v11  ;;  %5612 = vmatprep.mubr.f32.mxu0 %v14201_v15  ;;  %vm5193_vm2 = vcmp.eq.s32.totalorder %v14222_v47, %v10997_v23  ;;  %vm5194_vm3 = vcmp.eq.s32.totalorder %v14223_v28, %v10953_v26  ;;  %v5255_v20 = vsel %vm5234_vm10, %v10917_v16, 0.0  ;;  %v5256_v58 = vsel %vm5235_vm12, %v10842_v49, 0.0 }
 0x288   : > { %14272 = vst [vmem:[#allocation46_spill] sm:$0xff] %v11034_v61  ;;  %v11043_v14 = vpop.f32.mrf.mxu0  ;;  %4969 = vrot.lane.b32.xlu1 %v4508_v44, %s8008_s8  ;;  %4971 = vrot.lane.b32.xlu0 %v4509_v54, %s8008_s8  ;;  %vm5237_vm4 = vcmp.eq.s32.totalorder %v14223_v28, %v10964_v34  ;;  %vm5238_vm5 = vcmp.eq.s32.totalorder %v14223_v28, %v10968_v13  ;;  %v5213_v57 = vsel %vm5192_vm0, %v10885_v2, 0.0  ;;  %v5257_v44 = vsel %vm5236_vm1, %v10889_v0, 0.0 }
 0x289   : > { %14273 = vst [vmem:[#allocation47_spill] sm:$0xff] %v11043_v14  ;;  %v11052_v42 = vpop.f32.mrf.mxu1  ;;  %v5263_v17 = vadd.f32 %v5254_v30, %v5212_v33  ;;  %4875 = vmatprep.mubr.f32.mxu1 %v14201_v15  ;;  %vm5195_vm6 = vcmp.eq.s32.totalorder %v14223_v28, %v10983_v32  ;;  %v5214_v54 = vsel %vm5193_vm2, %v10825_v18, 0.0  ;;  %v5215_v30 = vsel %vm5194_vm3, %v10866_v39, 0.0 }
 0x28a   : > { %v11068_v11 = vpop.f32.mrf.mxu0  ;;  %7797 = vmatmul.mubr.msk.f32.gmra.mxu0 %vm793_vm11, %v5373_v37  ;;  %vm5196_vm7 = vcmp.eq.s32.totalorder %v14223_v28, %v10997_v23  ;;  %vm5239_vm8 = vcmp.eq.s32.totalorder %v8133_v46, %v10938_v24  ;;  %v5264_v33 = vadd.f32 %v5255_v20, %v5213_v57  ;;  %v5265_v37 = vadd.f32 %v5256_v58, %v5214_v54  ;;  %v4617_v20 = vld [vmem:[%s8280_s6 + $0x428] sm:$0xff]  ;;  %v14278_v54 = vld [vmem:[#allocation8_spill] sm:$0xff] }
 0x28b   : > { %14274 = vst [vmem:[#allocation48_spill] sm:$0xff] %v11068_v11  ;;  %v11085_v45 = vpop.f32.mrf.mxu1  ;;  %7777 = vmatmul.mubr.msk.f32.gmra.mxu1 %vm793_vm11, %v4616_v38  ;;  %5618 = vmatprep.mubr.f32.mxu0 %v14201_v15  ;;  %v5374_v11 = vld [vmem:[%s8280_s6 + $0x4c8] sm:$0xff]  ;;  %v5258_v14 = vsel %vm5237_vm4, %v10917_v16, 0.0  ;;  %v5259_v29 = vsel %vm5238_vm5, %v10842_v49, 0.0  ;;  %v5266_v58 = vadd.f32 %v5257_v44, %v5215_v30  ;;  %v5216_v57 = vsel %vm5195_vm6, %v10885_v2, 0.0 }
 0x28c   : > { %v11097_v60 = vpop.f32.mrf.mxu0  ;;  %4973 = vrot.lane.b32.xlu1 %v4510_v63, %s8008_s8  ;;  %5718 = vrot.lane.b32.xlu0 %v5263_v17, %s8007_s7  ;;  %vm5197_vm9 = vcmp.eq.s32.totalorder %v8133_v46, %v10953_v26  ;;  %vm5198_vm10 = vcmp.eq.s32.totalorder %v8133_v46, %v10983_v32  ;;  %v5217_v17 = vsel %vm5196_vm7, %v10825_v18, 0.0  ;;  %v5260_v44 = vsel %vm5239_vm8, %v10889_v0, 0.0 }
 0x28d   : > { %14275 = vst [vmem:[#allocation49_spill] sm:$0xff] %v11097_v60  ;;  %v11110_v38 = vpop.f32.mrf.mxu1  ;;  %4881 = vmatprep.mubr.f32.mxu1 %v14201_v15  ;;  %vm5240_vm12 = vcmp.eq.s32.totalorder %v8133_v46, %v10964_v34  ;;  %v11136_v30 = vrot.slane %v9825_v5, %v14278_v54  ;;  %v5267_v12 = vadd.f32 %v5258_v14, %v5216_v57  ;;  %v5219_v14 = vsel %vm5198_vm10, %v10885_v2, 0.0 }
 0x28e   : > { %14276 = vst [vmem:[#allocation50_spill] sm:$0xff] %v11110_v38  ;;  %v11122_v63 = vpop.f32.mrf.mxu0  ;;  %7798 = vmatmul.mubr.msk.f32.gmra.mxu0 %vm793_vm11, %v5374_v11  ;;  %v11141_v60 = vadd.f32 %v5259_v29, %v5217_v17  ;;  %vm5241_vm0 = vcmp.eq.s32.totalorder %v8133_v46, %v10968_v13  ;;  %v11147_v0 = vrot.slane %v9832_v31, %v14278_v54  ;;  %v5375_v11 = vld [vmem:[%s8280_s6 + $0x4d0] sm:$0xff]  ;;  %v5218_v29 = vsel %vm5197_vm9, %v10866_v39, 0.0 }
 0x28f   : > { %14277 = vst [vmem:[#allocation51_spill] sm:$0xff] %v11122_v63  ;;  %v11139_v63 = vpop.f32.mrf.mxu1  ;;  %7778 = vmatmul.mubr.msk.f32.gmra.mxu1 %vm793_vm11, %v4617_v20  ;;  %5624 = vmatprep.mubr.f32.mxu0 %v14201_v15  ;;  %v11164_v57 = vrot.slane %v9808_v36, %v14278_v54  ;;  %v11168_v20 = vrot.slane %v9821_v59, %v14278_v54  ;;  %v4618_v39 = vld [vmem:[%s8280_s6 + $0x430] sm:$0xff]  ;;  %v5261_v32 = vsel %vm5240_vm12, %v10917_v16, 0.0 }
 0x290   : > { %14279 = vst [vmem:[#allocation8_spill] sm:$0xff] %v11139_v63  ;;  %v11151_v24 = vpop.f32.mrf.mxu0  ;;  %5720 = vrot.lane.b32.xlu1 %v5264_v33, %s8007_s7  ;;  %5722 = vrot.lane.b32.xlu0 %v5265_v37, %s8007_s7  ;;  %v5269_v26 = vadd.f32 %v5260_v44, %v5218_v29  ;;  %vm5199_vm1 = vcmp.eq.s32.totalorder %v8133_v46, %v10997_v23  ;;  %v5262_v37 = vsel %vm5241_vm0, %v10842_v49, 0.0 }
 0x291   : > { %14280 = vst [vmem:[#allocation52_spill] sm:$0xff] %v11151_v24  ;;  %v11172_v17 = vpop.f32.mrf.mxu1  ;;  %v11183_v2 = vrot.slane %v9801_v7, %v14278_v54  ;;  %4887 = vmatprep.mubr.f32.mxu1 %v14201_v15  ;;  %vm5994_vm2 = vcmp.eq.s32.totalorder %v14222_v47, %v11136_v30  ;;  %v11196_v16 = vrot.slane %v9804_v52, %v14278_v54  ;;  %v5220_v48 = vsel %vm5199_vm1, %v10825_v18, 0.0 }
 0x292   : > { %14281 = vst [vmem:[#allocation53_spill] sm:$0xff] %v11172_v17  ;;  %v11186_v33 = vpop.f32.mrf.mxu0  ;;  %v11200_v34 = vrot.slane %v9845_v56, %v14278_v54  ;;  %7799 = vmatmul.mubr.msk.f32.gmra.mxu0 %vm793_vm11, %v5375_v11  ;;  %v11207_v13 = vrot.slane %v9797_v10, %v14278_v54  ;;  %v11211_v49 = vrot.slane %v9799_v1, %v14278_v54 }
 0x293   : > { %14282 = vst [vmem:[#allocation54_spill] sm:$0xff] %v11186_v33  ;;  %v11203_v44 = vpop.f32.mrf.mxu1  ;;  %vm5995_vm3 = vcmp.eq.s32.totalorder %v14222_v47, %v11147_v0  ;;  %v11217_v29 = vrot.slane %v9823_v8, %v14278_v54  ;;  %7779 = vmatmul.mubr.msk.f32.gmra.mxu1 %vm793_vm11, %v4618_v39  ;;  %5630 = vmatprep.mubr.f32.mxu0 %v14201_v15  ;;  %v5376_v33 = vld [vmem:[%s8280_s6 + $0x4d8] sm:$0xff]  ;;  %v6015_v23 = vsel %vm5994_vm2, %v11183_v2, 0.0 }
 0x294   : > { %14283 = vst [vmem:[#allocation55_spill] sm:$0xff] %v11203_v44  ;;  %v11221_v11 = vpop.f32.mrf.mxu0  ;;  %v5270_v24 = vadd.f32 %v5261_v32, %v5219_v14  ;;  %vm5952_vm4 = vcmp.eq.s32.totalorder %v14222_v47, %v11164_v57  ;;  %vm5953_vm5 = vcmp.eq.s32.totalorder %v14222_v47, %v11168_v20  ;;  %5724 = vrot.lane.b32.xlu1 %v5266_v58, %s8007_s7 }
 0x295   : > { %14284 = vst [vmem:[#allocation56_spill] sm:$0xff] %v11221_v11  ;;  %5726 = vrot.lane.b32.xlu0 %v5267_v12, %s8007_s7  ;;  %v11234_v39 = vpop.f32.mrf.mxu1  ;;  %v4619_v11 = vld [vmem:[%s8280_s6 + $0x438] sm:$0xff]  ;;  %v5271_v44 = vadd.f32 %v5262_v37, %v5220_v48  ;;  %v11243_v18 = vrot.slane %v9806_v19, %v14278_v54  ;;  %vm5997_vm6 = vcmp.eq.s32.totalorder %v14223_v28, %v11136_v30  ;;  %v6016_v48 = vsel %vm5995_vm3, %v11196_v16, 0.0  ;;  %v5377_v37 = vld [vmem:[%s8280_s6 + $0x4e0] sm:$0xff] }
 0x296   : > { %4893 = vmatprep.mubr.f32.mxu1 %v14201_v15  ;;  %v11248_v12 = vpop.f32.mrf.mxu0  ;;  %v11256_v58 = vrot.slane %v9792_v25, %v14278_v54  ;;  %vm5996_vm7 = vcmp.eq.s32.totalorder %v14222_v47, %v11200_v34  ;;  %vm5998_vm8 = vcmp.eq.s32.totalorder %v14223_v28, %v11147_v0  ;;  %7800 = vmatmul.mubr.msk.f32.gmra.mxu0 %vm793_vm11, %v5376_v33  ;;  %v5973_v32 = vsel %vm5952_vm4, %v11207_v13, 0.0 }
 0x297   : > { %14285 = vst [vmem:[#allocation57_spill] sm:$0xff] %v11248_v12  ;;  %v11263_v14 = vpop.f32.mrf.mxu1  ;;  %v5974_v54 = vsel %vm5953_vm5, %v11211_v49, 0.0  ;;  %vm5954_vm9 = vcmp.eq.s32.totalorder %v14222_v47, %v11217_v29  ;;  %vm5955_vm10 = vcmp.eq.s32.totalorder %v14223_v28, %v11164_v57  ;;  %7780 = vmatmul.mubr.msk.f32.gmra.mxu1 %vm793_vm11, %v4619_v11  ;;  %5636 = vmatprep.mubr.f32.mxu0 %v14201_v15  ;;  %v6018_v12 = vsel %vm5997_vm6, %v11183_v2, 0.0 }
 0x298   : > { %v11279_v33 = vpop.f32.mrf.mxu0  ;;  %vm5956_vm12 = vcmp.eq.s32.totalorder %v14223_v28, %v11168_v20  ;;  %vm5999_vm0 = vcmp.eq.s32.totalorder %v14223_v28, %v11200_v34  ;;  %vm6000_vm1 = vcmp.eq.s32.totalorder %v8133_v46, %v11136_v30  ;;  %5728 = vrot.lane.b32.xlu1 %v11141_v60, %s8007_s7  ;;  %v6024_v61 = vadd.f32 %v6015_v23, %v5973_v32 }
 0x299   : > { %14286 = vst [vmem:[#allocation58_spill] sm:$0xff] %v11279_v33  ;;  %5730 = vrot.lane.b32.xlu0 %v5269_v26, %s8007_s7  ;;  %v11295_v11 = vpop.f32.mrf.mxu1  ;;  %v4620_v33 = vld [vmem:[%s8280_s6 + $0x440] sm:$0xff]  ;;  %v6025_v17 = vadd.f32 %v6016_v48, %v5974_v54  ;;  %v6017_v51 = vsel %vm5996_vm7, %v11243_v18, 0.0  ;;  %v6019_v63 = vsel %vm5998_vm8, %v11196_v16, 0.0  ;;  %4899 = vmatprep.mubr.f32.mxu1 %v14201_v15  ;;  %v5975_v26 = vsel %vm5954_vm9, %v11256_v58, 0.0 }
 0x29a   : > { %14287 = vst [vmem:[#allocation59_spill] sm:$0xff] %v11295_v11  ;;  %v11307_v60 = vpop.f32.mrf.mxu0  ;;  %v5976_v23 = vsel %vm5955_vm10, %v11207_v13, 0.0  ;;  %vm5957_vm2 = vcmp.eq.s32.totalorder %v14223_v28, %v11217_v29  ;;  %vm5958_vm3 = vcmp.eq.s32.totalorder %v8133_v46, %v11164_v57  ;;  %7801 = vmatmul.mubr.msk.f32.gmra.mxu0 %vm793_vm11, %v5377_v37  ;;  %v5977_v54 = vsel %vm5956_vm12, %v11211_v49, 0.0  ;;  %v14291_v11 = vld [vmem:[#allocation11_spill] sm:$0xff] }
 0x29b   : > { %14288 = vst [vmem:[#allocation60_spill] sm:$0xff] %v11307_v60  ;;  %v11322_v48 = vpop.f32.mrf.mxu1  ;;  %v11324_v32 = vadd.f32 %v6018_v12, %v5976_v23  ;;  %v6020_v60 = vsel %vm5999_vm0, %v11243_v18, 0.0  ;;  %v6021_v37 = vsel %vm6000_vm1, %v11183_v2, 0.0  ;;  %7781 = vmatmul.mubr.msk.f32.gmra.mxu1 %vm793_vm11, %v4620_v33  ;;  %5642 = vmatprep.mubr.f32.mxu0 %v14201_v15  ;;  %v5378_v23 = vld [vmem:[%s8280_s6 + $0x4e8] sm:$0xff]  ;;  %v6026_v27 = vadd.f32 %v6017_v51, %v5975_v26 }
 0x29c   : > { %14289 = vst [vmem:[#allocation61_spill] sm:$0xff] %v11322_v48  ;;  %v11341_v12 = vpop.f32.mrf.mxu0  ;;  %v11344_v35 = vadd.f32 %v6019_v63, %v5977_v54  ;;  %v11348_v38 = vrot.slane %v9825_v5, %v14291_v11  ;;  %5732 = vrot.lane.b32.xlu1 %v5270_v24, %s8007_s7  ;;  %v4621_v2 = vld [vmem:[%s8280_s6 + $0x448] sm:$0xff]  ;;  %v5978_v33 = vsel %vm5957_vm2, %v11256_v58, 0.0  ;;  %v5979_v51 = vsel %vm5958_vm3, %v11207_v13, 0.0  ;;  %4905 = vmatprep.mubr.f32.mxu1 %v14201_v15  ;;  %v5379_v54 = vld [vmem:[%s8280_s6 + $0x4f0] sm:$0xff] }
 0x29d   : > { %14290 = vst [vmem:[#allocation62_spill] sm:$0xff] %v11341_v12  ;;  %5734 = vrot.lane.b32.xlu0 %v5271_v44, %s8007_s7  ;;  %v11352_v30 = vpop.f32.mrf.mxu1  ;;  %vm5959_vm4 = vcmp.eq.s32.totalorder %v8133_v46, %v11168_v20  ;;  %v11367_v5 = vrot.slane %v9832_v31, %v14291_v11  ;;  %v11372_v24 = vadd.f32 %v6020_v60, %v5978_v33 }
 0x29e   : > { %v11370_v63 = vpop.f32.mrf.mxu0  ;;  %v11374_v44 = vadd.f32 %v6021_v37, %v5979_v51  ;;  %vm6001_vm5 = vcmp.eq.s32.totalorder %v8133_v46, %v11147_v0  ;;  %v11380_v57 = vrot.slane %v9808_v36, %v14291_v11  ;;  %7802 = vmatmul.mubr.msk.f32.gmra.mxu0 %vm793_vm11, %v5378_v23  ;;  %vm6002_vm6 = vcmp.eq.s32.totalorder %v8133_v46, %v11200_v34  ;;  %v4622_v23 = vld [vmem:[%s8280_s6 + $0x450] sm:$0xff]  ;;  %v5380_v34 = vld [vmem:[%s8280_s6 + $0x4f8] sm:$0xff] }
 0x29f   : > { %14292 = vst [vmem:[#allocation11_spill] sm:$0xff] %v11370_v63  ;;  %v11383_v31 = vpop.f32.mrf.mxu1  ;;  %v11389_v13 = vrot.slane %v9801_v7, %v14291_v11  ;;  %v11393_v60 = vrot.slane %v9821_v59, %v14291_v11  ;;  %v11397_v36 = vrot.slane %v9823_v8, %v14291_v11  ;;  %7782 = vmatmul.mubr.msk.f32.gmra.mxu1 %vm793_vm11, %v4621_v2  ;;  %v5980_v7 = vsel %vm5959_vm4, %v11211_v49, 0.0 }
 0x2a0   : > { %5648 = vmatprep.mubr.f32.mxu0 %v14201_v15  ;;  %v11401_v26 = vpop.f32.mrf.mxu0  ;;  %vm6755_vm7 = vcmp.eq.s32.totalorder %v14222_v47, %v11348_v38  ;;  %v11412_v59 = vrot.slane %v9804_v52, %v14291_v11  ;;  %v11416_v8 = vrot.slane %v9845_v56, %v14291_v11  ;;  %6479 = vrot.lane.b32.xlu1 %v6024_v61, %s8008_s8  ;;  %v6022_v20 = vsel %vm6001_vm5, %v11196_v16, 0.0 }
 0x2a1   : > { %14293 = vst [vmem:[#allocation63_spill] sm:$0xff] %v11401_v26  ;;  %6481 = vrot.lane.b32.xlu0 %v6025_v17, %s8008_s8  ;;  %v11420_v37 = vpop.f32.mrf.mxu1  ;;  %vm5960_vm8 = vcmp.eq.s32.totalorder %v8133_v46, %v11217_v29  ;;  %v11431_v52 = vrot.slane %v9797_v10, %v14291_v11  ;;  %vm6756_vm9 = vcmp.eq.s32.totalorder %v14222_v47, %v11367_v5  ;;  %v6023_v61 = vsel %vm6002_vm6, %v11243_v18, 0.0  ;;  %v4623_v29 = vld [vmem:[%s8280_s6 + $0x458] sm:$0xff] }
 0x2a2   : > { %4911 = vmatprep.mubr.f32.mxu1 %v14201_v15  ;;  %v11436_v56 = vpop.f32.mrf.mxu0  ;;  %vm6713_vm10 = vcmp.eq.s32.totalorder %v14222_v47, %v11380_v57  ;;  %v11446_v10 = vrot.slane %v9799_v1, %v14291_v11  ;;  %v11450_v0 = vrot.slane %v9792_v25, %v14291_v11  ;;  %7803 = vmatmul.mubr.msk.f32.gmra.mxu0 %vm793_vm11, %v5379_v54  ;;  %v6776_v16 = vsel %vm6755_vm7, %v11389_v13, 0.0 }
 0x2a3   : > { %14294 = vst [vmem:[#allocation64_spill] sm:$0xff] %v11436_v56  ;;  %v11453_v17 = vpop.f32.mrf.mxu1  ;;  %vm6714_vm12 = vcmp.eq.s32.totalorder %v14222_v47, %v11393_v60  ;;  %vm6715_vm0 = vcmp.eq.s32.totalorder %v14222_v47, %v11397_v36  ;;  %v11465_v25 = vrot.slane %v9806_v19, %v14291_v11  ;;  %7783 = vmatmul.mubr.msk.f32.gmra.mxu1 %vm793_vm11, %v4622_v23  ;;  %v5981_v49 = vsel %vm5960_vm8, %v11256_v58, 0.0 }
 0x2a4   : > { %5654 = vmatprep.mubr.f32.mxu0 %v14201_v15  ;;  %v11469_v1 = vpop.f32.mrf.mxu0  ;;  %v6777_v18 = vsel %vm6756_vm9, %v11412_v59, 0.0  ;;  %vm6757_vm1 = vcmp.eq.s32.totalorder %v14222_v47, %v11416_v8  ;;  %vm6716_vm2 = vcmp.eq.s32.totalorder %v14223_v28, %v11380_v57  ;;  %6483 = vrot.lane.b32.xlu1 %v6026_v27, %s8008_s8  ;;  %v11490_v58 = vadd.f32 %v6022_v20, %v5980_v7  ;;  %v1881_v54 = vpop.permute.xlu1 %1880  ;;  %v5381_v47 = vld [vmem:[%s8280_s6 + $0x500] sm:$0xff] }
 0x2a5   : > { %6485 = vrot.lane.b32.xlu0 %v11324_v32, %s8008_s8  ;;  %v11487_v19 = vpop.f32.mrf.mxu1  ;;  %v6734_v11 = vsel %vm6713_vm10, %v11431_v52, 0.0  ;;  %vm6758_vm3 = vcmp.eq.s32.totalorder %v14223_v28, %v11348_v38  ;;  %vm6759_vm4 = vcmp.eq.s32.totalorder %v14223_v28, %v11367_v5  ;;  %4917 = vmatprep.mubr.f32.mxu1 %v14201_v15  ;;  %v11503_v32 = vadd.f32 %v6023_v61, %v5981_v49  ;;  %v1883_v7 = vpop.permute.xlu0 %1882 }
 0x2a6   : > { %v11501_v27 = vpop.f32.mrf.mxu0  ;;  %v11505_v2 = vadd.f32 %v6776_v16, %v6734_v11  ;;  %v6735_v33 = vsel %vm6714_vm12, %v11446_v10, 0.0  ;;  %v6736_v51 = vsel %vm6715_vm0, %v11450_v0, 0.0  ;;  %7804 = vmatmul.mubr.msk.f32.gmra.mxu0 %vm793_vm11, %v5380_v34  ;;  %v6778_v20 = vsel %vm6757_vm1, %v11465_v25, 0.0 }
 0x2a7   : > { %v11516_v23 = vadd.f32 %v6777_v18, %v6735_v33  ;;  %v6737_v61 = vsel %vm6716_vm2, %v11431_v52, 0.0  ;;  %vm6760_vm5 = vcmp.eq.s32.totalorder %v14223_v28, %v11416_v8  ;;  %v1898_v16 = vsel %vm1577_vm15, %v1881_v54, %v1883_v7  ;;  %7784 = vmatmul.mubr.msk.f32.gmra.mxu1 %vm793_vm11, %v4623_v29  ;;  %v11530_v34 = vpop.f32.mrf.mxu1  ;;  %5660 = vmatprep.mubr.f32.mxu0 %v14201_v15  ;;  %v4624_v54 = vld [vmem:[%s8280_s6 + $0x460] sm:$0xff] }
 0x2a8   : > { %v11533_v49 = vpop.f32.mrf.mxu0  ;;  %v6779_v18 = vsel %vm6758_vm3, %v11389_v13, 0.0  ;;  %vm6717_vm6 = vcmp.eq.s32.totalorder %v14223_v28, %v11393_v60  ;;  %v6780_v29 = vsel %vm6759_vm4, %v11412_v59, 0.0  ;;  %v11547_v11 = vmul.f32 %v1898_v16, %v10702_v22  ;;  %6487 = vrot.lane.b32.xlu1 %v11344_v35, %s8008_s8  ;;  %4923 = vmatprep.mubr.f32.mxu1 %v14201_v15 }
 0x2a9   : > { %14295 = vst [vmem:[#allocation65_spill] sm:$0xff] %v11533_v49  ;;  %v11550_v33 = vmul.f32 %v1898_v16, %v10893_v21  ;;  %vm6718_vm7 = vcmp.eq.s32.totalorder %v14223_v28, %v11397_v36  ;;  %vm6719_vm8 = vcmp.eq.s32.totalorder %v8133_v46, %v11380_v57  ;;  %v11560_v48 = vmul.f32 %v1898_v16, %v11052_v42  ;;  %v11571_v35 = vpop.f32.mrf.mxu1  ;;  %v1887_v26 = vpop.permute.xlu0 %1886 }
 0x2aa   : > { %v11563_v56 = vmul.f32 %v1898_v16, %v11234_v39  ;;  %v11566_v22 = vmul.f32 %v1898_v16, %v11420_v37  ;;  %6489 = vrot.lane.b32.xlu0 %v11372_v24, %s8008_s8  ;;  %v11573_v21 = vpop.f32.mrf.mxu0  ;;  %v6781_v42 = vsel %vm6760_vm5, %v11465_v25, 0.0  ;;  %v1885_v39 = vpop.permute.xlu1 %1884  ;;  %7805 = vmatmul.mubr.msk.f32.gmra.mxu0 %vm793_vm11, %v5381_v47  ;;  %v11580_v37 = vadd.f32 %v6778_v20, %v6736_v51  ;;  %v5382_v20 = vld [vmem:[%s8280_s6 + $0x508] sm:$0xff] }
 0x2ab   : > { %14296 = vst [vmem:[#allocation66_spill] sm:$0xff] %v11573_v21  ;;  %v11582_v24 = vadd.f32 %v6779_v18, %v6737_v61  ;;  %v6738_v63 = vsel %vm6717_vm6, %v11446_v10, 0.0  ;;  %vm6761_vm9 = vcmp.eq.s32.totalorder %v8133_v46, %v11348_v38  ;;  %v11591_v21 = vsel %vm1577_vm15, %v1883_v7, %v1885_v39  ;;  %7785 = vmatmul.mubr.msk.f32.gmra.mxu1 %vm793_vm11, %v4624_v54  ;;  %v11594_v49 = vpop.f32.mrf.mxu1 }
 0x2ac   : > { %5666 = vmatprep.mubr.f32.mxu0 %v14201_v15  ;;  %v11597_v51 = vpop.f32.mrf.mxu0  ;;  %v11600_v61 = vadd.f32 %v6780_v29, %v6738_v63  ;;  %v6739_v47 = vsel %vm6718_vm7, %v11450_v0, 0.0  ;;  %v11610_v7 = vsel %vm6719_vm8, %v11431_v52, 0.0  ;;  %v11614_v18 = vmul.f32 %v11591_v21, %v10729_v55  ;;  %6491 = vrot.lane.b32.xlu1 %v11374_v44, %s8008_s8  ;;  %v4625_v63 = vld [vmem:[%s8280_s6 + $0x468] sm:$0xff] }
 0x2ad   : > { %14297 = vst [vmem:[#allocation67_spill] sm:$0xff] %v11597_v51  ;;  %v11618_v54 = vmul.f32 %v11591_v21, %v10924_v41  ;;  %v11623_v28 = vadd.f32 %v6781_v42, %v6739_v47  ;;  %vm6762_vm10 = vcmp.eq.s32.totalorder %v8133_v46, %v11367_v5  ;;  %v11629_v57 = vmul.f32 %v11591_v21, %v11085_v45  ;;  %v1854_v44 = vpop.f32.mrf.mxu1 }
 0x2ae   : > { %v11633_v55 = vmul.f32 %v11591_v21, %v11263_v14  ;;  %v11637_v41 = vmul.f32 %v11591_v21, %v11453_v17  ;;  %6493 = vrot.lane.b32.xlu0 %v11490_v58, %s8008_s8  ;;  %4929 = vmatprep.mubr.f32.mxu1 %v14201_v15  ;;  %v11642_v52 = vpop.f32.mrf.mxu0  ;;  %v11648_v45 = vsel %vm6761_vm9, %v11389_v13, 0.0  ;;  %v1910_v14 = vmul.f32 %v1898_v16, %v10369_v6  ;;  %v1889_v42 = vpop.permute.xlu1 %1888 }
 0x2af   : > { %14298 = vst [vmem:[#allocation68_spill] sm:$0xff] %v11642_v52  ;;  %v1916_v29 = vmul.f32 %v1898_v16, %v10539_v4  ;;  %v1911_v17 = vmul.f32 %v11591_v21, %v10395_v50  ;;  %v1891_v58 = vpop.permute.xlu0 %1890  ;;  %7806 = vmatmul.mubr.msk.f32.gmra.mxu0 %vm793_vm11, %v5382_v20  ;;  %v11655_v39 = vmul.f32 %v1898_v16, %v1854_v44  ;;  %v11666_v4 = vpop.f32.mrf.mxu1  ;;  %v11675_v13 = vsel %vm6762_vm10, %v11412_v59, 0.0  ;;  %v14299_v44 = vld [vmem:[#allocation50_spill] sm:$0xff]  ;;  %v14300_v59 = vld [vmem:[#allocation59_spill] sm:$0xff] }
 0x2b0   : > { %v1917_v47 = vmul.f32 %v11591_v21, %v10563_v62  ;;  %v11660_v38 = vsel %vm1577_vm15, %v1887_v26, %v1889_v42  ;;  %v11663_v6 = vsel %vm1577_vm15, %v1889_v42, %v1891_v58  ;;  %7786 = vmatmul.mubr.msk.f32.gmra.mxu1 %vm793_vm11, %v4625_v63  ;;  %5672 = vmatprep.mubr.f32.mxu0 %v14201_v15  ;;  %v11669_v50 = vpop.f32.mrf.mxu0  ;;  %v5383_v63 = vld [vmem:[%s8280_s6 + $0x510] sm:$0xff]  ;;  %vm7486_vm2 = vcmask 1045509  }
 0x2b1   : > { %v1912_v62 = vmul.f32 %v11660_v38, %v10421_v53  ;;  %v1918_v26 = vmul.f32 %v11660_v38, %v10591_v40  ;;  %v1924_v16 = vmul.f32 %v11660_v38, %v10763_v3  ;;  %v1930_v20 = vmul.f32 %v11660_v38, %v10946_v43  ;;  %6495 = vrot.lane.b32.xlu1 %v11503_v32, %s8008_s8  ;;  %v14301_v40 = vld [vmem:[#allocation6_spill] sm:$0xff]  ;;  %v11698_v3 = vpop.f32.mrf.mxu1 }
 0x2b2   : > { %v1936_v5 = vmul.f32 %v11660_v38, %v14299_v44  ;;  %v1942_v42 = vmul.f32 %v11660_v38, %v14300_v59  ;;  %v1948_v53 = vmul.f32 %v11660_v38, %v11487_v19  ;;  %v1913_v58 = vmul.f32 %v11663_v6, %v14301_v40  ;;  %7240 = vrot.lane.b32.xlu0 %v11505_v2, %s8008_s8  ;;  %v11700_v43 = vpop.f32.mrf.mxu0  ;;  %v1893_v40 = vpop.permute.xlu1 %1892 }
 0x2b3   : > { %14302 = vst [vmem:[#allocation50_spill] sm:$0xff] %v11700_v43  ;;  %vm6720_vm12 = vcmp.eq.s32.totalorder %v8133_v46, %v11393_v60  ;;  %vm6763_vm0 = vcmp.eq.s32.totalorder %v8133_v46, %v11416_v8  ;;  %v1958_v32 = vadd.f32 %v1912_v62, %v1910_v14  ;;  %v1974_v44 = vadd.f32 %v1918_v26, %v1916_v29  ;;  %v1895_v52 = vpop.permute.xlu0 %1894  ;;  %v14303_v43 = vld [vmem:[#allocation26_spill] sm:$0xff]  ;;  %v14304_v62 = vld [vmem:[#allocation33_spill] sm:$0xff] }
 0x2b4   : > { %v1990_v19 = vadd.f32 %v1924_v16, %v11547_v11  ;;  %v2006_v59 = vadd.f32 %v1930_v20, %v11550_v33  ;;  %4935 = vmatprep.mubr.f32.mxu1 %v14201_v15  ;;  %vm6721_vm1 = vcmp.eq.s32.totalorder %v8133_v46, %v11397_v36  ;;  %v2022_v2 = vadd.f32 %v1936_v5, %v11560_v48  ;;  %v4626_v11 = vld [vmem:[%s8280_s6 + $0x470] sm:$0xff]  ;;  %v11718_v33 = vpop.f32.mrf.mxu1  ;;  %v11720_v29 = vpop.f32.mrf.mxu0  ;;  %v14305_v16 = vld [vmem:[#allocation42_spill] sm:$0xff]  ;;  %v14329_v8 = vld [vmem:[#allocation37_spill] sm:$0xff] }
 0x2b5   : > { %v2038_v51 = vadd.f32 %v1942_v42, %v11563_v56  ;;  %v2054_v12 = vadd.f32 %v1948_v53, %v11566_v22  ;;  %v1919_v14 = vmul.f32 %v11663_v6, %v14303_v43  ;;  %7807 = vmatmul.mubr.msk.f32.gmra.mxu0 %vm793_vm11, %v5383_v63  ;;  %v1925_v26 = vmul.f32 %v11663_v6, %v14304_v62  ;;  %v14306_v20 = vld [vmem:[#allocation8_spill] sm:$0xff]  ;;  %v14307_v22 = vld [vmem:[#allocation61_spill] sm:$0xff] }
 0x2b6   : > { %v1931_v48 = vmul.f32 %v11663_v6, %v14305_v16  ;;  %v1937_v56 = vmul.f32 %v11663_v6, %v14306_v20  ;;  %v1943_v5 = vmul.f32 %v11663_v6, %v14307_v22  ;;  %7242 = vrot.lane.b32.xlu1 %v11516_v23, %s8008_s8  ;;  %v1949_v63 = vmul.f32 %v11663_v6, %v11530_v34  ;;  %v11743_v62 = vpop.f32.mrf.mxu1  ;;  %v11745_v16 = vpop.f32.mrf.mxu0 }
 0x2b7   : > { %v11734_v42 = vadd.f32 %v1913_v58, %v1911_v17  ;;  %v11736_v53 = vadd.f32 %v1919_v14, %v1917_v47  ;;  %v11739_v43 = vsel %vm1577_vm15, %v1893_v40, %v1895_v52  ;;  %7244 = vrot.lane.b32.xlu0 %v11580_v37, %s8008_s8  ;;  %14308 = vst [vmem:[#allocation59_spill] sm:$0xff] %v11745_v16  ;;  %v1897_v47 = vpop.permute.xlu1 %1896  ;;  %v11759_v37 = vpop.permute.xlu0 %2655  ;;  %v14310_v40 = vld [vmem:[#allocation28_spill] sm:$0xff]  ;;  %v6742_v60 = vsel %vm6721_vm1, %v11450_v0, 0.0 }
 0x2b8   : > { %v11748_v20 = vadd.f32 %v1925_v26, %v11614_v18  ;;  %v11751_v23 = vadd.f32 %v1931_v48, %v11618_v54  ;;  %v11754_v34 = vadd.f32 %v1937_v56, %v11629_v57  ;;  %v11757_v17 = vadd.f32 %v1943_v5, %v11633_v55  ;;  %7787 = vmatmul.mubr.msk.f32.gmra.mxu1 %vm793_vm11, %v4626_v11  ;;  %v14309_v18 = vld [vmem:[#allocation5_spill] sm:$0xff]  ;;  %v14311_v14 = vld [vmem:[#allocation12_spill] sm:$0xff]  ;;  %v11772_v26 = vpop.f32.mrf.mxu1  ;;  %v11774_v48 = vpop.f32.mrf.mxu0 }
 0x2b9   : > { %v11763_v58 = vadd.f32 %v1949_v63, %v11637_v41  ;;  %v1914_v54 = vmul.f32 %v11739_v43, %v14309_v18  ;;  %v1920_v57 = vmul.f32 %v11739_v43, %v14310_v40  ;;  %v1926_v55 = vmul.f32 %v11739_v43, %v14311_v14  ;;  %5678 = vmatprep.mubr.f32.mxu0 %v14201_v15  ;;  %v14313_v56 = vld [vmem:[#allocation44_spill] sm:$0xff]  ;;  %v14314_v41 = vld [vmem:[#allocation53_spill] sm:$0xff] }
 0x2ba   : > { %14312 = vst [vmem:[#allocation6_spill] sm:$0xff] %v11774_v48  ;;  %v1932_v11 = vmul.f32 %v11739_v43, %v14313_v56  ;;  %v1938_v22 = vmul.f32 %v11739_v43, %v14314_v41  ;;  %v1944_v5 = vmul.f32 %v11739_v43, %v11352_v30  ;;  %v1950_v63 = vmul.f32 %v11739_v43, %v11571_v35  ;;  %v5384_v18 = vld [vmem:[%s8280_s6 + $0x518] sm:$0xff]  ;;  %v11800_v30 = vpop.f32.mrf.mxu1  ;;  %v11802_v35 = vpop.f32.mrf.mxu0 }
 0x2bb   : > { %7246 = vrot.lane.b32.xlu1 %v11582_v24, %s8008_s8  ;;  %v4627_v40 = vld [vmem:[%s8280_s6 + $0x478] sm:$0xff]  ;;  %v11788_v14 = vadd.f32 %v1958_v32, %v1914_v54  ;;  %v11790_v48 = vadd.f32 %v1974_v44, %v1920_v57  ;;  %v11792_v16 = vadd.f32 %v1990_v19, %v1926_v55  ;;  %v11796_v56 = vmul.f32 %v11591_v21, %v11666_v4  ;;  %v11813_v21 = vpop.permute.xlu1 %2657  ;;  %v11815_v4 = vpop.permute.xlu0 %2659  ;;  %v14324_v55 = vld [vmem:[#allocation30_spill] sm:$0xff] }
 0x2bc   : > { %7248 = vrot.lane.b32.xlu0 %v11600_v61, %s8008_s8  ;;  %14316 = vst [vmem:[#allocation33_spill] sm:$0xff] %v11800_v30  ;;  %v11804_v24 = vadd.f32 %v2006_v59, %v1932_v11  ;;  %v11806_v41 = vadd.f32 %v2022_v2, %v1938_v22  ;;  %v11808_v32 = vadd.f32 %v2038_v51, %v1944_v5  ;;  %v14321_v61 = vld [vmem:[#allocation29_spill] sm:$0xff]  ;;  %v14322_v59 = vrot.slane %v10808_v9, 2  ;;  %v11828_v51 = vpop.f32.mrf.mxu1  ;;  %v11830_v57 = vpop.f32.mrf.mxu0  ;;  %v14325_v22 = vld [vmem:[#allocation34_spill] sm:$0xff] }
 0x2bd   : > { %14315 = vst [vmem:[#allocation26_spill] sm:$0xff] %v11792_v16  ;;  %v11810_v44 = vadd.f32 %v2054_v12, %v1950_v63  ;;  %4941 = vmatprep.mubr.f32.mxu1 %v14201_v15  ;;  %v1177_v19 = vrot.slane %v14321_v61, 1  ;;  %v11822_v2 = vsel %vm1577_vm15, %v1895_v52, %v1897_v47  ;;  %7808 = vmatmul.mubr.msk.f32.gmra.mxu0 %vm793_vm11, %v5384_v18  ;;  %14323 = vst [vmem:[#allocation28_spill] sm:$0xff] %v11828_v51  ;;  %v6126_v52 = vld [vmem:[%s8280_s6 + $0x540] sm:$0xff]  ;;  %v14326_v47 = vld [vmem:[#allocation9_spill] sm:$0xff]  ;;  %vm7488_vm3 = vcmask 1046534  }
 0x2be   : > { %14317 = vst [vmem:[#allocation42_spill] sm:$0xff] %v11804_v24  ;;  %14318 = vst [vmem:[#allocation8_spill] sm:$0xff] %v11806_v41  ;;  %v1248_v54 = vadd.f32 %v14322_v59, %v10808_v9  ;;  %7788 = vmatmul.mubr.msk.f32.gmra.mxu1 %vm793_vm11, %v4627_v40  ;;  %v6791_v12 = vadd.f32 %v11648_v45, %v11610_v7  ;;  %v1241_v11 = vrot.slane %v14324_v55, 1  ;;  %v1185_v5 = vrot.slane %v14325_v22, 1  ;;  %v5385_v9 = vld [vmem:[%s8280_s6 + $0x520] sm:$0xff]  ;;  %v14327_v18 = vld [vmem:[#allocation20_spill] sm:$0xff]  ;;  %v11859_v59 = vpop.f32.mrf.mxu0 }
 0x2bf   : > { %14319 = vst [vmem:[#allocation61_spill] sm:$0xff] %v11808_v32  ;;  %14320 = vst [vmem:[#allocation5_spill] sm:$0xff] %v11810_v44  ;;  %7250 = vrot.lane.b32.xlu1 %v11623_v28, %s8008_s8  ;;  %5684 = vmatprep.mubr.f32.mxu0 %v14201_v15  ;;  %v6741_v7 = vsel %vm6720_vm12, %v11446_v10, 0.0  ;;  %v6784_v45 = vsel %vm6763_vm0, %v11465_v25, 0.0  ;;  %v1915_v63 = vmul.f32 %v11822_v2, %v14326_v47  ;;  %v11857_v10 = vpop.f32.mrf.mxu1  ;;  %v14330_v47 = vld [vmem:[#allocation46_spill] sm:$0xff]  ;;  %v11870_v46 = vpop.permute.xlu1 %2661  ;;  %vm7490_vm4 = vcmask 1047559  }
 0x2c0   : > { %v1921_v28 = vmul.f32 %v11822_v2, %v14327_v18  ;;  %7252 = vrot.lane.b32.xlu0 %v6791_v12, %s8008_s8  ;;  %v6792_v40 = vadd.f32 %v11675_v13, %v6741_v7  ;;  %14328 = vst [vmem:[#allocation12_spill] sm:$0xff] %v11857_v10  ;;  %v1927_v25 = vmul.f32 %v11822_v2, %v14329_v8  ;;  %v14331_v18 = vld [vmem:[#allocation55_spill] sm:$0xff]  ;;  %v11872_v36 = vpop.permute.xlu0 %2663  ;;  %v1249_v0 = vrot.slane %v1248_v54, 1 }
 0x2c1   : > { %v1933_v51 = vmul.f32 %v11822_v2, %v14330_v47  ;;  %v1939_v12 = vmul.f32 %v11822_v2, %v14331_v18  ;;  %v1945_v13 = vmul.f32 %v11822_v2, %v11383_v31  ;;  %6325 = vmatprep.mubr.f32.mxu1 %v14201_v15  ;;  %v1951_v7 = vmul.f32 %v11822_v2, %v11594_v49  ;;  %v11881_v47 = vpop.f32.mrf.mxu1  ;;  %v11883_v18 = vpop.f32.mrf.mxu0 }
 0x2c2   : > { %v11877_v8 = vadd.f32 %v11734_v42, %v1915_v63  ;;  %7809 = vmatmul.mubr.msk.f32.gmra.mxu0 %vm793_vm11, %v5385_v9  ;;  %7813 = vmatmul.mubr.msk.f32.vlgmr.msra.gmra.mxu1 %vm793_vm11, %v6126_v52  ;;  %v6793_v31 = vadd.f32 %v6784_v45, %v6742_v60  ;;  %14332 = vst [vmem:[#allocation44_spill] sm:$0xff] %v11881_v47  ;;  %v5386_v9 = vld [vmem:[%s8280_s6 + $0x528] sm:$0xff]  ;;  %v1960_v45 = vrot.slane %v11788_v14, 4 }
 0x2c3   : > { %v11886_v10 = vadd.f32 %v11736_v53, %v1921_v28  ;;  %v11889_v30 = vadd.f32 %v11748_v20, %v1927_v25  ;;  %v11892_v49 = vadd.f32 %v11751_v23, %v1933_v51  ;;  %v11895_v42 = vadd.f32 %v11754_v34, %v1939_v12  ;;  %7254 = vrot.lane.b32.xlu1 %v6792_v40, %s8008_s8  ;;  %v6127_v52 = vld [vmem:[%s8280_s6 + $0x548] sm:$0xff]  ;;  %v11911_v23 = vpop.f32.mrf.mxu1  ;;  %v11913_v34 = vpop.f32.mrf.mxu0  ;;  %v14338_v51 = vld [vmem:[#allocation10_spill] sm:$0xff] }
 0x2c4   : > { %v11902_v63 = vadd.f32 %v11757_v17, %v1945_v13  ;;  %v11905_v53 = vadd.f32 %v11763_v58, %v1951_v7  ;;  %v1954_v20 = vmul.f32 %v11660_v38, %v11698_v3  ;;  %7256 = vrot.lane.b32.xlu0 %v6793_v31, %s8008_s8  ;;  %5690 = vmatprep.mubr.f32.mxu0 %v14201_v15  ;;  %v14339_v28 = vrot.slane %v14338_v51, 1  ;;  %v11930_v3 = vpop.permute.xlu1 %2665  ;;  %v11932_v60 = vpop.permute.xlu0 %2667  ;;  %v5387_v13 = vld [vmem:[%s8280_s6 + $0x530] sm:$0xff]  ;;  %v14345_v31 = vld [vmem:[#allocation7_spill] sm:$0xff] }
 0x2c5   : > { %14333 = vst [vmem:[#allocation53_spill] sm:$0xff] %v11892_v49  ;;  %14334 = vst [vmem:[#allocation29_spill] sm:$0xff] %v11895_v42  ;;  %v11921_v17 = vadd.f32 %v1177_v19, %v14321_v61  ;;  %v11924_v58 = vadd.f32 %v1241_v11, %v14324_v55  ;;  %v11927_v38 = vadd.f32 %v1185_v5, %v14325_v22  ;;  %6331 = vmatprep.mubr.f32.mxu1 %v14201_v15  ;;  %v11941_v55 = vpop.f32.mrf.mxu1  ;;  %v11943_v11 = vpop.f32.mrf.mxu0  ;;  %v14351_v61 = vld [vmem:[#allocation32_spill] sm:$0xff]  ;;  %v14363_v49 = vld [vmem:[#allocation62_spill] sm:$0xff] }
 0x2c6   : > { %14335 = vst [vmem:[#allocation30_spill] sm:$0xff] %v11902_v63  ;;  %14336 = vst [vmem:[#allocation34_spill] sm:$0xff] %v11905_v53  ;;  %v11918_v40 = vadd.f32 %v14339_v28, %v14338_v51  ;;  %v11934_v25 = vadd.f32 %v1249_v0, %v1248_v54  ;;  %v2070_v19 = vadd.f32 %v1954_v20, %v11655_v39  ;;  %7810 = vmatmul.mubr.msk.f32.gmra.mxu0 %vm793_vm11, %v5386_v9  ;;  %v6128_v9 = vld [vmem:[%s8280_s6 + $0x550] sm:$0xff]  ;;  %v14349_v28 = vld [vmem:[#allocation58_spill] sm:$0xff] }
 0x2c7   : > { %14337 = vst [vmem:[#allocation9_spill] sm:$0xff] %v11911_v23  ;;  %14341 = vst [vmem:[#allocation37_spill] sm:$0xff] %v11921_v17  ;;  %7814 = vmatmul.mubr.msk.f32.gmra.mxu1 %vm793_vm11, %v6127_v52  ;;  %v1955_v54 = vmul.f32 %v11663_v6, %v11718_v33  ;;  %v11951_v5 = vsel %vm1577_vm15, %v11759_v37, %v11813_v21  ;;  %v11956_v39 = vsel %vm1577_vm15, %v11813_v21, %v11815_v4  ;;  %v14346_v33 = vld [vmem:[#allocation31_spill] sm:$0xff]  ;;  %v11970_v52 = vpop.f32.mrf.mxu1  ;;  %v11972_v21 = vpop.f32.mrf.mxu0  ;;  %v14347_v20 = vld [vmem:[#allocation40_spill] sm:$0xff] }
 0x2c8   : > { %14340 = vst [vmem:[#allocation20_spill] sm:$0xff] %v11918_v40  ;;  %14342 = vst [vmem:[#allocation46_spill] sm:$0xff] %v11927_v38  ;;  %5696 = vmatprep.mubr.f32.mxu0 %v14201_v15  ;;  %v11961_v0 = vadd.f32 %v1960_v45, %v11788_v14  ;;  %v2685_v6 = vmul.f32 %v11951_v5, %v14345_v31  ;;  %v2691_v37 = vmul.f32 %v11951_v5, %v14346_v33  ;;  %v14348_v45 = vld [vmem:[#allocation49_spill] sm:$0xff]  ;;  %v11981_v33 = vpop.permute.xlu1 %2669  ;;  %v11983_v7 = vpop.permute.xlu0 %2671  ;;  %v14356_v17 = vld [vmem:[#allocation50_spill] sm:$0xff] }
 0x2c9   : > { %14343 = vst [vmem:[#allocation55_spill] sm:$0xff] %v11941_v55  ;;  %6337 = vmatprep.mubr.f32.mxu1 %v14201_v15  ;;  %v2078_v4 = vadd.f32 %v1955_v54, %v11796_v56  ;;  %v2697_v14 = vmul.f32 %v11951_v5, %v14347_v20  ;;  %v2703_v51 = vmul.f32 %v11951_v5, %v14348_v45  ;;  %v14350_v54 = vld [vmem:[#allocation25_spill] sm:$0xff]  ;;  %v12000_v12 = vpop.f32.mrf.mxu0  ;;  %v14360_v63 = vld [vmem:[#allocation35_spill] sm:$0xff] }
 0x2ca   : > { %14344 = vst [vmem:[#allocation10_spill] sm:$0xff] %v11961_v0  ;;  %v2709_v31 = vmul.f32 %v11951_v5, %v14349_v28  ;;  %v2715_v22 = vmul.f32 %v11951_v5, %v11469_v1  ;;  %v2721_v56 = vmul.f32 %v11951_v5, %v11669_v50  ;;  %v11991_v20 = vmul.f32 %v11956_v39, %v14350_v54  ;;  %v11998_v28 = vpop.f32.mrf.mxu1  ;;  %v14353_v40 = vld [vmem:[#allocation41_spill] sm:$0xff]  ;;  %v14354_v50 = vld [vmem:[#allocation51_spill] sm:$0xff]  ;;  %v14355_v54 = vld [vmem:[#allocation60_spill] sm:$0xff] }
 0x2cb   : > { %v11995_v45 = vmul.f32 %v11956_v39, %v14351_v61  ;;  %7811 = vmatmul.mubr.msk.f32.gmra.mxu0 %vm793_vm11, %v5387_v13  ;;  %14352 = vst [vmem:[#allocation7_spill] sm:$0xff] %v12000_v12  ;;  %v12004_v1 = vmul.f32 %v11956_v39, %v14353_v40  ;;  %v12008_v41 = vmul.f32 %v11956_v39, %v14354_v50  ;;  %v5388_v13 = vld [vmem:[%s8280_s6 + $0x538] sm:$0xff]  ;;  %v12037_v24 = vpop.f32.mrf.mxu0 }
 0x2cc   : > { %v12012_v38 = vmul.f32 %v11956_v39, %v14355_v54  ;;  %v12016_v61 = vmul.f32 %v11956_v39, %v11501_v27  ;;  %7815 = vmatmul.mubr.msk.f32.gmra.mxu1 %vm793_vm11, %v6128_v9  ;;  %v12022_v53 = vmul.f32 %v11956_v39, %v14356_v17  ;;  %v1956_v40 = vmul.f32 %v11739_v43, %v11743_v62  ;;  %v6129_v27 = vld [vmem:[%s8280_s6 + $0x558] sm:$0xff]  ;;  %v12035_v9 = vpop.f32.mrf.mxu1  ;;  %v14359_v17 = vld [vmem:[#allocation19_spill] sm:$0xff]  ;;  %v12048_v12 = vpop.permute.xlu1 %3434 }
 0x2cd   : > { %v1957_v50 = vmul.f32 %v11822_v2, %v11772_v26  ;;  %v12031_v54 = vsel %vm1577_vm15, %v11870_v46, %v11872_v36  ;;  %5702 = vmatprep.mubr.f32.mxu0 %v14201_v15  ;;  %14357 = vst [vmem:[#allocation31_spill] sm:$0xff] %v12035_v9  ;;  %14358 = vst [vmem:[#allocation40_spill] sm:$0xff] %v12037_v24  ;;  %v14361_v62 = vld [vmem:[#allocation43_spill] sm:$0xff]  ;;  %v14362_v2 = vld [vmem:[#allocation52_spill] sm:$0xff]  ;;  %6343 = vmatprep.mubr.f32.mxu1 %v14201_v15  ;;  %v12050_v42 = vpop.permute.xlu0 %3436 }
 0x2ce   : > { %v2687_v16 = vmul.f32 %v12031_v54, %v14359_v17  ;;  %v2693_v43 = vmul.f32 %v12031_v54, %v14360_v63  ;;  %v2699_v26 = vmul.f32 %v12031_v54, %v14361_v62  ;;  %v2705_v46 = vmul.f32 %v12031_v54, %v14362_v2  ;;  %v14364_v23 = vld [vmem:[#allocation65_spill] sm:$0xff]  ;;  %v12057_v62 = vpop.f32.mrf.mxu1 }
 0x2cf   : > { %v2071_v24 = vadd.f32 %v2070_v19, %v1956_v40  ;;  %v2079_v55 = vadd.f32 %v2078_v4, %v1957_v50  ;;  %v2711_v17 = vmul.f32 %v12031_v54, %v14363_v49  ;;  %v2717_v63 = vmul.f32 %v12031_v54, %v14364_v23  ;;  %7812 = vmatmul.mubr.msk.f32.gmra.mxu0 %vm793_vm11, %v5388_v13  ;;  %v6887_v49 = vld [vmem:[%s8280_s6 + $0x600] sm:$0xff]  ;;  %v12069_v4 = vpop.f32.mrf.mxu0  ;;  %v14412_v44 = vld [vmem:[#allocation9_spill] sm:$0xff] }
 0x2d0   : > { %14365 = vst [vmem:[#allocation49_spill] sm:$0xff] %v12057_v62  ;;  %v2723_v2 = vmul.f32 %v12031_v54, %v11720_v29  ;;  %v12061_v47 = vadd.f32 %v2687_v16, %v2685_v6  ;;  %v12063_v9 = vadd.f32 %v2693_v43, %v2691_v37  ;;  %v12065_v19 = vadd.f32 %v2699_v26, %v2697_v14  ;;  %v6130_v29 = vld [vmem:[%s8280_s6 + $0x560] sm:$0xff]  ;;  %v12078_v16 = vpop.f32.mrf.mxu1 }
 0x2d1   : > { %7816 = vmatmul.mubr.msk.f32.gmra.mxu1 %vm793_vm11, %v6129_v27  ;;  %14366 = vst [vmem:[#allocation58_spill] sm:$0xff] %v12069_v4  ;;  %v2072_v23 = vrot.slane %v2071_v24, 4  ;;  %v2080_v40 = vrot.slane %v2079_v55, 4  ;;  %v12071_v50 = vadd.f32 %v2705_v46, %v2703_v51  ;;  %v12073_v13 = vadd.f32 %v2711_v17, %v2709_v31  ;;  %7086 = vmatprep.mubr.f32.mxu0 %v14201_v15  ;;  %v14368_v43 = vld [vmem:[#allocation18_spill] sm:$0xff]  ;;  %v14369_v46 = vld [vmem:[#allocation36_spill] sm:$0xff] }
 0x2d2   : > { %6349 = vmatprep.mubr.f32.mxu1 %v14201_v15  ;;  %14367 = vst [vmem:[#allocation25_spill] sm:$0xff] %v12078_v16  ;;  %v12080_v6 = vadd.f32 %v2717_v63, %v2715_v22  ;;  %v12082_v37 = vadd.f32 %v2723_v2, %v2721_v56  ;;  %v2727_v14 = vmul.f32 %v11951_v5, %v11830_v57  ;;  %v12096_v56 = vpop.f32.mrf.mxu0  ;;  %v12098_v57 = vpop.f32.mrf.mxu1  ;;  %v14372_v5 = vld [vmem:[#allocation45_spill] sm:$0xff]  ;;  %v14375_v63 = vld [vmem:[#allocation66_spill] sm:$0xff] }
 0x2d3   : > { %v12089_v51 = vsel %vm1577_vm15, %v11872_v36, %v11930_v3  ;;  %v2073_v31 = vadd.f32 %v2072_v23, %v2071_v24  ;;  %v2081_v27 = vadd.f32 %v2080_v40, %v2079_v55  ;;  %7837 = vmatmul.mubr.msk.f32.vlgmr.msra.gmra.mxu0 %vm793_vm11, %v6887_v49  ;;  %14370 = vst [vmem:[#allocation32_spill] sm:$0xff] %v12096_v56  ;;  %14371 = vst [vmem:[#allocation41_spill] sm:$0xff] %v12098_v57  ;;  %v14373_v36 = vld [vmem:[#allocation54_spill] sm:$0xff]  ;;  %v14374_v3 = vld [vmem:[#allocation11_spill] sm:$0xff]  ;;  %v12108_v23 = vpop.permute.xlu1 %3438  ;;  %v12110_v49 = vpop.permute.xlu0 %3440 }
 0x2d4   : > { %v2688_v26 = vmul.f32 %v12089_v51, %v14368_v43  ;;  %v2694_v22 = vmul.f32 %v12089_v51, %v14369_v46  ;;  %v2700_v17 = vmul.f32 %v12089_v51, %v14372_v5  ;;  %v2706_v24 = vmul.f32 %v12089_v51, %v14373_v36  ;;  %v6888_v40 = vld [vmem:[%s8280_s6 + $0x608] sm:$0xff]  ;;  %7092 = vmatprep.mubr.f32.mxu0 %v14201_v15  ;;  %v12124_v4 = vpop.f32.mrf.mxu1 }
 0x2d5   : > { %v2712_v55 = vmul.f32 %v12089_v51, %v14374_v3  ;;  %v2718_v2 = vmul.f32 %v12089_v51, %v14375_v63  ;;  %7817 = vmatmul.mubr.msk.f32.gmra.mxu1 %vm793_vm11, %v6130_v29  ;;  %v2074_v43 = vrot.slane %v2073_v31, 2  ;;  %v2082_v46 = vrot.slane %v2081_v27, 2  ;;  %v14376_v56 = vld [vmem:[#allocation59_spill] sm:$0xff]  ;;  %v12122_v63 = vpop.f32.mrf.mxu0 }
 0x2d6   : > { %v2724_v5 = vmul.f32 %v12089_v51, %v14376_v56  ;;  %v12117_v36 = vadd.f32 %v2688_v26, %v11991_v20  ;;  %6355 = vmatprep.mubr.f32.mxu1 %v14201_v15  ;;  %v6131_v3 = vld [vmem:[%s8280_s6 + $0x568] sm:$0xff]  ;;  %14377 = vst [vmem:[#allocation51_spill] sm:$0xff] %v12122_v63  ;;  %v12127_v29 = vadd.f32 %v2694_v22, %v11995_v45 }
 0x2d7   : > { %v12130_v57 = vadd.f32 %v2700_v17, %v12004_v1  ;;  %v12133_v56 = vadd.f32 %v2706_v24, %v12008_v41  ;;  %v12136_v20 = vadd.f32 %v2712_v55, %v12012_v38  ;;  %v2075_v26 = vadd.f32 %v2074_v43, %v2073_v31  ;;  %7838 = vmatmul.mubr.msk.f32.gmra.mxu0 %vm793_vm11, %v6888_v40  ;;  %v12145_v45 = vpop.f32.mrf.mxu0  ;;  %v12147_v1 = vpop.f32.mrf.mxu1  ;;  %v6889_v31 = vld [vmem:[%s8280_s6 + $0x610] sm:$0xff]  ;;  %v14380_v17 = vld [vmem:[#allocation38_spill] sm:$0xff]  ;;  %v14383_v24 = vld [vmem:[#allocation47_spill] sm:$0xff] }
 0x2d8   : > { %v2083_v16 = vadd.f32 %v2082_v46, %v2081_v27  ;;  %v12139_v62 = vadd.f32 %v2718_v2, %v12016_v61  ;;  %v12142_v63 = vadd.f32 %v2724_v5, %v12022_v53  ;;  %14378 = vst [vmem:[#allocation60_spill] sm:$0xff] %v12145_v45  ;;  %v12151_v41 = vmul.f32 %v11956_v39, %v11859_v59  ;;  %v14379_v59 = vld [vmem:[#allocation21_spill] sm:$0xff]  ;;  %v14384_v2 = vld [vmem:[#allocation56_spill] sm:$0xff]  ;;  %v14385_v43 = vld [vmem:[#allocation63_spill] sm:$0xff]  ;;  %v12186_v5 = vpop.permute.xlu1 %3442 }
 0x2d9   : > { %v2729_v38 = vmul.f32 %v12031_v54, %v11883_v18  ;;  %v12158_v61 = vsel %vm1577_vm15, %v11932_v60, %v11981_v33  ;;  %v12163_v53 = vsel %vm1577_vm15, %v11981_v33, %v11983_v7  ;;  %7818 = vmatmul.mubr.msk.f32.gmra.mxu1 %vm793_vm11, %v6131_v3  ;;  %v2076_v27 = vrot.slane %v2075_v26, 1  ;;  %7098 = vmatprep.mubr.f32.mxu0 %v14201_v15  ;;  %v6132_v60 = vld [vmem:[%s8280_s6 + $0x570] sm:$0xff]  ;;  %v12174_v54 = vpop.f32.mrf.mxu0  ;;  %v12176_v7 = vpop.f32.mrf.mxu1  ;;  %v14386_v45 = vld [vmem:[#allocation67_spill] sm:$0xff] }
 0x2da   : > { %v2084_v22 = vrot.slane %v2083_v16, 1  ;;  %v2689_v39 = vmul.f32 %v12158_v61, %v14379_v59  ;;  %v2695_v18 = vmul.f32 %v12158_v61, %v14380_v17  ;;  %6361 = vmatprep.mubr.f32.mxu1 %v14201_v15  ;;  %14381 = vst [vmem:[#allocation50_spill] sm:$0xff] %v12174_v54  ;;  %14382 = vst [vmem:[#allocation19_spill] sm:$0xff] %v12176_v7  ;;  %v12188_v3 = vpop.permute.xlu0 %3444  ;;  %vm7480_vm15 = vcmask 1042434  }
 0x2db   : > { %v12178_v33 = vadd.f32 %v2729_v38, %v2727_v14  ;;  %v2701_v55 = vmul.f32 %v12158_v61, %v14383_v24  ;;  %v2707_v40 = vmul.f32 %v12158_v61, %v14384_v2  ;;  %v2713_v46 = vmul.f32 %v12158_v61, %v14385_v43  ;;  %v14387_v38 = vld [vmem:[#allocation6_spill] sm:$0xff]  ;;  %7839 = vmatmul.mubr.msk.f32.gmra.mxu0 %vm793_vm11, %v6889_v31  ;;  %v12195_v2 = vpop.f32.mrf.mxu0  ;;  %v12197_v54 = vpop.f32.mrf.mxu1 }
 0x2dc   : > { %v2077_v59 = vadd.f32 %v2076_v27, %v2075_v26  ;;  %v2085_v17 = vadd.f32 %v2084_v22, %v2083_v16  ;;  %v2719_v14 = vmul.f32 %v12158_v61, %v14386_v45  ;;  %v2725_v24 = vmul.f32 %v12158_v61, %v14387_v38  ;;  %v6890_v45 = vld [vmem:[%s8280_s6 + $0x618] sm:$0xff]  ;;  %7104 = vmatprep.mubr.f32.mxu0 %v14201_v15 }
 0x2dd   : > { %v12200_v43 = vadd.f32 %v12061_v47, %v2689_v39  ;;  %v12203_v7 = vadd.f32 %v12063_v9, %v2695_v18  ;;  %v12206_v16 = vadd.f32 %v12065_v19, %v2701_v55  ;;  %v12209_v26 = vadd.f32 %v12071_v50, %v2707_v40  ;;  %7819 = vmatmul.mubr.msk.f32.gmra.mxu1 %vm793_vm11, %v6132_v60  ;;  %v6133_v19 = vld [vmem:[%s8280_s6 + $0x578] sm:$0xff]  ;;  %v12227_v50 = vpop.f32.mrf.mxu0  ;;  %v12229_v22 = vpop.f32.mrf.mxu1  ;;  %v14395_v18 = vld [vmem:[#allocation4_spill] sm:$0xff]  ;;  %v14396_v60 = vld [vmem:[#allocation39_spill] sm:$0xff] }
 0x2de   : > { %v12214_v31 = vadd.f32 %v2077_v59, %v11924_v58  ;;  %v12217_v27 = vadd.f32 %v2085_v17, %v11934_v25  ;;  %v12220_v47 = vadd.f32 %v12073_v13, %v2713_v46  ;;  %v12223_v9 = vadd.f32 %v12080_v6, %v2719_v14  ;;  %6367 = vmatprep.mubr.f32.mxu1 %v14201_v15  ;;  %v14397_v40 = vld [vmem:[#allocation48_spill] sm:$0xff]  ;;  %v14398_v59 = vld [vmem:[#allocation57_spill] sm:$0xff]  ;;  %v12262_v25 = vpop.permute.xlu0 %3448 }
 0x2df   : > { %14388 = vst [vmem:[#allocation35_spill] sm:$0xff] %v12200_v43  ;;  %14389 = vst [vmem:[#allocation43_spill] sm:$0xff] %v12203_v7  ;;  %v14392_v58 = vrot.slane %v11790_v48, 4  ;;  %v12238_v13 = vadd.f32 %v12082_v37, %v2725_v24  ;;  %v2690_v6 = vmul.f32 %v12163_v53, %v14395_v18  ;;  %v2696_v55 = vmul.f32 %v12163_v53, %v14396_v60  ;;  %v14399_v17 = vld [vmem:[#allocation64_spill] sm:$0xff]  ;;  %v12252_v37 = vpop.f32.mrf.mxu0  ;;  %v12254_v38 = vpop.f32.mrf.mxu1 }
 0x2e0   : > { %14390 = vst [vmem:[#allocation52_spill] sm:$0xff] %v12220_v47  ;;  %14391 = vst [vmem:[#allocation62_spill] sm:$0xff] %v12223_v9  ;;  %v2702_v46 = vmul.f32 %v12163_v53, %v14397_v40  ;;  %v2714_v14 = vmul.f32 %v12163_v53, %v14399_v17  ;;  %7840 = vmatmul.mubr.msk.f32.gmra.mxu0 %vm793_vm11, %v6890_v45  ;;  %v14400_v18 = vld [vmem:[#allocation68_spill] sm:$0xff]  ;;  %v2726_v40 = vmul.f32 %v12163_v53, %v11802_v35  ;;  %v6891_v45 = vld [vmem:[%s8280_s6 + $0x620] sm:$0xff] }
 0x2e1   : > { %v12234_v39 = vadd.f32 %v14392_v58, %v11790_v48  ;;  %14394 = vst [vmem:[#allocation18_spill] sm:$0xff] %v12238_v13  ;;  %v2708_v48 = vmul.f32 %v12163_v53, %v14398_v59  ;;  %v2720_v60 = vmul.f32 %v12163_v53, %v14400_v18  ;;  %v3447_v59 = vpop.permute.xlu1 %3446  ;;  %7820 = vmatmul.mubr.msk.f32.gmra.mxu1 %vm793_vm11, %v6133_v19  ;;  %v6134_v35 = vld [vmem:[%s8280_s6 + $0x580] sm:$0xff]  ;;  %v12280_v58 = vpop.f32.mrf.mxu0 }
 0x2e2   : > { %v12267_v17 = vadd.f32 %v12117_v36, %v2690_v6  ;;  %v12270_v13 = vadd.f32 %v12127_v29, %v2696_v55  ;;  %v12273_v24 = vadd.f32 %v12130_v57, %v2702_v46  ;;  %7110 = vmatprep.mubr.f32.mxu0 %v14201_v15  ;;  %v12282_v0 = vpop.f32.mrf.mxu1  ;;  %v12285_v19 = vadd.f32 %v12136_v20, %v2714_v14  ;;  %v14406_v55 = vld [vmem:[#allocation33_spill] sm:$0xff]  ;;  %v14410_v14 = vld [vmem:[#allocation44_spill] sm:$0xff] }
 0x2e3   : > { %14393 = vst [vmem:[#allocation65_spill] sm:$0xff] %v12234_v39  ;;  %v12276_v18 = vadd.f32 %v12133_v56, %v2708_v48  ;;  %v12288_v36 = vadd.f32 %v12139_v62, %v2720_v60  ;;  %v12291_v57 = vadd.f32 %v12142_v63, %v2726_v40  ;;  %v2730_v29 = vmul.f32 %v12089_v51, %v11913_v34  ;;  %v12306_v63 = vpop.f32.mrf.mxu0 }
 0x2e4   : > { %14401 = vst [vmem:[#allocation36_spill] sm:$0xff] %v12267_v17  ;;  %14402 = vst [vmem:[#allocation45_spill] sm:$0xff] %v12270_v13  ;;  %6373 = vmatprep.mubr.f32.mxu1 %v14201_v15  ;;  %v2731_v20 = vmul.f32 %v12158_v61, %v11943_v11  ;;  %v12303_v62 = vsel %vm3131_vm13, %v12048_v12, %v12050_v42  ;;  %7841 = vmatmul.mubr.msk.f32.gmra.mxu0 %vm793_vm11, %v6891_v45  ;;  %v12308_v34 = vpop.f32.mrf.mxu1  ;;  %v6892_v12 = vld [vmem:[%s8280_s6 + $0x628] sm:$0xff]  ;;  %v14407_v45 = vld [vmem:[#allocation28_spill] sm:$0xff] }
 0x2e5   : > { %14403 = vst [vmem:[#allocation54_spill] sm:$0xff] %v12285_v19  ;;  %14404 = vst [vmem:[#allocation11_spill] sm:$0xff] %v12288_v36  ;;  %v2853_v51 = vadd.f32 %v2730_v29, %v12151_v41  ;;  %v3464_v46 = vmul.f32 %v12303_v62, %v14406_v55  ;;  %v3470_v11 = vmul.f32 %v12303_v62, %v11970_v52  ;;  %7821 = vmatmul.mubr.msk.f32.gmra.mxu1 %vm793_vm11, %v6134_v35  ;;  %v6135_v52 = vld [vmem:[%s8280_s6 + $0x588] sm:$0xff]  ;;  %v12329_v40 = vpop.f32.mrf.mxu0  ;;  %v14408_v55 = vld [vmem:[#allocation12_spill] sm:$0xff] }
 0x2e6   : > { %14405 = vst [vmem:[#allocation66_spill] sm:$0xff] %v12291_v57  ;;  %v2732_v61 = vmul.f32 %v12163_v53, %v11972_v21  ;;  %v2846_v60 = vadd.f32 %v12178_v33, %v2731_v20  ;;  %v12325_v41 = vsel %vm3131_vm13, %v12050_v42, %v12108_v23  ;;  %7116 = vmatprep.mubr.f32.mxu0 %v14201_v15  ;;  %v12331_v21 = vpop.f32.mrf.mxu1  ;;  %v3451_v42 = vpop.permute.xlu1 %3450 }
 0x2e7   : > { %v3465_v35 = vmul.f32 %v12325_v41, %v14407_v45  ;;  %v3471_v29 = vmul.f32 %v12325_v41, %v11998_v28  ;;  %v12340_v33 = vsel %vm3131_vm13, %v12110_v49, %v12186_v5  ;;  %v4197_v23 = vpop.permute.xlu0 %4196  ;;  %6379 = vmatprep.mubr.f32.mxu1 %v14201_v15  ;;  %v12350_v28 = vsel %vm3131_vm13, %v12186_v5, %v12188_v3  ;;  %v12353_v49 = vpop.f32.mrf.mxu0  ;;  %v6893_v5 = vld [vmem:[%s8280_s6 + $0x630] sm:$0xff] }
 0x2e8   : > { %v2854_v53 = vadd.f32 %v2853_v51, %v2732_v61  ;;  %v2847_v20 = vrot.slane %v2846_v60, 4  ;;  %v3466_v51 = vmul.f32 %v12340_v33, %v14408_v55  ;;  %v14409_v61 = vld [vmem:[#allocation31_spill] sm:$0xff]  ;;  %7842 = vmatmul.mubr.msk.f32.gmra.mxu0 %vm793_vm11, %v6892_v12  ;;  %v12355_v56 = vpop.f32.mrf.mxu1  ;;  %v3467_v6 = vmul.f32 %v12350_v28, %v14410_v14  ;;  %v14411_v55 = vld [vmem:[#allocation49_spill] sm:$0xff]  ;;  %v6136_v14 = vld [vmem:[%s8280_s6 + $0x590] sm:$0xff] }
 0x2e9   : > { %v3472_v45 = vmul.f32 %v12340_v33, %v14409_v61  ;;  %v3473_v39 = vmul.f32 %v12350_v28, %v14411_v55  ;;  %v12363_v61 = vsel %vm3131_vm13, %v3447_v59, %v12262_v25  ;;  %7822 = vmatmul.mubr.msk.f32.gmra.mxu1 %vm793_vm11, %v6135_v52  ;;  %7122 = vmatprep.mubr.f32.mxu0 %v14201_v15  ;;  %v12372_v17 = vpop.f32.mrf.mxu0  ;;  %v14413_v52 = vld [vmem:[#allocation25_spill] sm:$0xff] }
 0x2ea   : > { %v2855_v48 = vrot.slane %v2854_v53, 4  ;;  %v2848_v3 = vadd.f32 %v2847_v20, %v2846_v60  ;;  %v3512_v12 = vadd.f32 %v3466_v51, %v3464_v46  ;;  %v3468_v13 = vmul.f32 %v12363_v61, %v14412_v44  ;;  %6385 = vmatprep.mubr.f32.mxu1 %v14201_v15  ;;  %v12374_v55 = vpop.f32.mrf.mxu1  ;;  %v14417_v51 = vld [vmem:[#allocation53_spill] sm:$0xff] }
 0x2eb   : > { %v3528_v57 = vadd.f32 %v3472_v45, %v3470_v11  ;;  %v3520_v36 = vadd.f32 %v3467_v6, %v3465_v35  ;;  %v3536_v9 = vadd.f32 %v3473_v39, %v3471_v29  ;;  %v3474_v32 = vmul.f32 %v12363_v61, %v14413_v52  ;;  %v12385_v20 = vpop.f32.mrf.mxu0  ;;  %v4199_v35 = vpop.permute.xlu1 %4198 }
 0x2ec   : > { %v2856_v59 = vadd.f32 %v2855_v48, %v2854_v53  ;;  %v2849_v60 = vrot.slane %v2848_v3, 2  ;;  %v12378_v46 = vadd.f32 %v3512_v12, %v3468_v13  ;;  %v3476_v44 = vmul.f32 %v12303_v62, %v12124_v4  ;;  %7843 = vmatmul.mubr.msk.f32.gmra.mxu0 %vm793_vm11, %v6893_v5  ;;  %v12387_v6 = vpop.f32.mrf.mxu1  ;;  %v14416_v53 = vld [vmem:[#allocation19_spill] sm:$0xff]  ;;  %v4201_v29 = vpop.permute.xlu0 %4200 }
 0x2ed   : > { %v3477_v11 = vmul.f32 %v12325_v41, %v12147_v1  ;;  %v12389_v48 = vadd.f32 %v3528_v57, %v3474_v32  ;;  %v12393_v13 = vsel %vm3131_vm13, %v12262_v25, %v3451_v42  ;;  %v3478_v4 = vmul.f32 %v12340_v33, %v14416_v53  ;;  %7823 = vmatmul.mubr.msk.f32.gmra.mxu1 %vm793_vm11, %v6136_v14  ;;  %v6894_v1 = vld [vmem:[%s8280_s6 + $0x638] sm:$0xff]  ;;  %v14418_v12 = vld [vmem:[#allocation55_spill] sm:$0xff]  ;;  %v12407_v52 = vpop.f32.mrf.mxu0 }
 0x2ee   : > { %14414 = vst [vmem:[#allocation59_spill] sm:$0xff] %v12378_v46  ;;  %v2857_v39 = vrot.slane %v2856_v59, 2  ;;  %7128 = vmatprep.mubr.f32.mxu0 %v14201_v15  ;;  %v2850_v5 = vadd.f32 %v2849_v60, %v2848_v3  ;;  %v3469_v32 = vmul.f32 %v12393_v13, %v14418_v12  ;;  %v14419_v57 = vld [vmem:[#allocation41_spill] sm:$0xff]  ;;  %6391 = vmatprep.mubr.f32.mxu1 %v14201_v15  ;;  %v12409_v53 = vpop.f32.mrf.mxu1 }
 0x2ef   : > { %14415 = vst [vmem:[#allocation21_spill] sm:$0xff] %v12389_v48  ;;  %v3475_v25 = vmul.f32 %v12393_v13, %v14419_v57  ;;  %v6137_v42 = vld [vmem:[%s8280_s6 + $0x598] sm:$0xff]  ;;  %v3544_v7 = vadd.f32 %v3478_v4, %v3476_v44  ;;  %v3479_v3 = vmul.f32 %v12350_v28, %v12197_v54  ;;  %v12419_v57 = vsel %vm3893_vm14, %v4197_v23, %v4199_v35  ;;  %v12422_v43 = vpop.f32.mrf.mxu0  ;;  %v14424_v4 = vld [vmem:[#allocation50_spill] sm:$0xff] }
 0x2f0   : > { %v2858_v46 = vadd.f32 %v2857_v39, %v2856_v59  ;;  %v2851_v60 = vrot.slane %v2850_v5, 1  ;;  %v12414_v12 = vadd.f32 %v3520_v36, %v3469_v32  ;;  %7844 = vmatmul.mubr.msk.f32.gmra.mxu0 %vm793_vm11, %v6894_v1  ;;  %v12424_v48 = vpop.f32.mrf.mxu1  ;;  %v14423_v39 = vld [vmem:[#allocation7_spill] sm:$0xff]  ;;  %v12430_v36 = vmul.f32 %v12419_v57, %v14424_v4 }
 0x2f1   : > { %v12416_v45 = vadd.f32 %v3536_v9, %v3475_v25  ;;  %v3552_v44 = vadd.f32 %v3479_v3, %v3477_v11  ;;  %v4226_v54 = vmul.f32 %v12419_v57, %v14423_v39  ;;  %7824 = vmatmul.mubr.msk.f32.gmra.mxu1 %vm793_vm11, %v6137_v42  ;;  %7134 = vmatprep.mubr.f32.mxu0 %v14201_v15  ;;  %v6895_v9 = vld [vmem:[%s8280_s6 + $0x640] sm:$0xff]  ;;  %v14425_v23 = vrot.slane %v11877_v8, 4  ;;  %v12446_v4 = vpop.f32.mrf.mxu0 }
 0x2f2   : > { %14421 = vst [vmem:[#allocation38_spill] sm:$0xff] %v12414_v12  ;;  %v2859_v59 = vrot.slane %v2858_v46, 1  ;;  %v2852_v11 = vadd.f32 %v2851_v60, %v2850_v5  ;;  %v12442_v3 = vsel %vm3893_vm14, %v4199_v35, %v4201_v29  ;;  %6397 = vmatprep.mubr.f32.mxu1 %v14201_v15  ;;  %v6138_v39 = vld [vmem:[%s8280_s6 + $0x5a0] sm:$0xff]  ;;  %v12448_v42 = vpop.f32.mrf.mxu1  ;;  %v14428_v12 = vld [vmem:[#allocation40_spill] sm:$0xff]  ;;  %v4203_v60 = vpop.permute.xlu1 %4202 }
 0x2f3   : > { %14422 = vst [vmem:[#allocation47_spill] sm:$0xff] %v12416_v45  ;;  %v12438_v1 = vadd.f32 %v14425_v23, %v11877_v8  ;;  %v12452_v19 = vmul.f32 %v12442_v3, %v14428_v12  ;;  %v12456_v8 = vmul.f32 %v12442_v3, %v12195_v2  ;;  %v14429_v5 = vld [vmem:[#allocation26_spill] sm:$0xff]  ;;  %v12461_v23 = vpop.permute.xlu0 %4204  ;;  %v3480_v12 = vmul.f32 %v12363_v61, %v12229_v22 }
 0x2f4   : > { %v2860_v45 = vadd.f32 %v2859_v59, %v2858_v46  ;;  %v14430_v35 = vrot.slane %v14429_v5, 4  ;;  %v12464_v25 = vadd.f32 %v2852_v11, %v12214_v31  ;;  %v2767_v46 = vrot.slane %v12206_v16, 4  ;;  %7845 = vmatmul.mubr.msk.f32.gmra.mxu0 %vm793_vm11, %v6895_v9 }
 0x2f5   : > { %14426 = vst [vmem:[#allocation56_spill] sm:$0xff] %v12438_v1  ;;  %v14432_v2 = vrot.slane %v11889_v30, 4  ;;  %v2775_v11 = vrot.slane %v12273_v24, 4  ;;  %v3481_v22 = vmul.f32 %v12393_v13, %v12254_v38  ;;  %7825 = vmatmul.mubr.msk.f32.gmra.mxu1 %vm793_vm11, %v6138_v39  ;;  %7140 = vmatprep.mubr.f32.mxu0 %v14201_v15  ;;  %v12489_v14 = vsel %vm3893_vm14, %v4203_v60, %v12461_v23  ;;  %v14438_v1 = vld [vmem:[#allocation58_spill] sm:$0xff] }
 0x2f6   : > { %v1993_v29 = vadd.f32 %v14430_v35, %v14429_v5  ;;  %14431 = vst [vmem:[#allocation63_spill] sm:$0xff] %v12464_v25  ;;  %v12473_v5 = vpop.f32.mrf.mxu0  ;;  %v12475_v35 = vpop.f32.mrf.mxu1  ;;  %v12478_v32 = vadd.f32 %v2860_v45, %v12217_v27  ;;  %v2768_v9 = vadd.f32 %v2767_v46, %v12206_v16  ;;  %6403 = vmatprep.mubr.f32.mxu1 %v14201_v15  ;;  %v6139_v27 = vld [vmem:[%s8280_s6 + $0x5a8] sm:$0xff] }
 0x2f7   : > { %v2001_v59 = vadd.f32 %v14432_v2, %v11889_v30  ;;  %14433 = vst [vmem:[#allocation67_spill] sm:$0xff] %v12473_v5  ;;  %14434 = vst [vmem:[#allocation6_spill] sm:$0xff] %v12475_v35  ;;  %v6896_v30 = vld [vmem:[%s8280_s6 + $0x648] sm:$0xff]  ;;  %v3545_v2 = vadd.f32 %v3544_v7, %v3480_v12  ;;  %v2776_v39 = vadd.f32 %v2775_v11, %v12273_v24  ;;  %v12509_v11 = vpop.permute.xlu0 %4208 }
 0x2f8   : > { %14435 = vst [vmem:[#allocation4_spill] sm:$0xff] %v12478_v32  ;;  %v1994_v31 = vrot.slane %v1993_v29, 2  ;;  %v12493_v45 = vpop.f32.mrf.mxu0  ;;  %v12495_v32 = vpop.f32.mrf.mxu1  ;;  %v3553_v47 = vadd.f32 %v3552_v44, %v3481_v22  ;;  %v4228_v16 = vmul.f32 %v12489_v14, %v14438_v1  ;;  %v2769_v7 = vrot.slane %v2768_v9, 2  ;;  %7846 = vmatmul.mubr.msk.f32.gmra.mxu0 %vm793_vm11, %v6896_v30 }
 0x2f9   : > { %v2002_v25 = vrot.slane %v2001_v59, 2  ;;  %14436 = vst [vmem:[#allocation39_spill] sm:$0xff] %v12493_v45  ;;  %14437 = vst [vmem:[#allocation48_spill] sm:$0xff] %v12495_v32  ;;  %v3546_v46 = vrot.slane %v3545_v2, 4  ;;  %v4234_v60 = vmul.f32 %v12489_v14, %v12227_v50  ;;  %v2777_v24 = vrot.slane %v2776_v39, 2  ;;  %v4207_v1 = vpop.permute.xlu1 %4206  ;;  %7826 = vmatmul.mubr.msk.f32.gmra.mxu1 %vm793_vm11, %v6139_v27  ;;  %7146 = vmatprep.mubr.f32.mxu0 %v14201_v15  ;;  %v6897_v50 = vld [vmem:[%s8280_s6 + $0x650] sm:$0xff] }
 0x2fa   : > { %v1995_v38 = vadd.f32 %v1994_v31, %v1993_v29  ;;  %v12503_v35 = vpop.f32.mrf.mxu0  ;;  %v12505_v32 = vpop.f32.mrf.mxu1  ;;  %v3554_v44 = vrot.slane %v3553_v47, 4  ;;  %v12507_v31 = vadd.f32 %v4228_v16, %v4226_v54  ;;  %6409 = vmatprep.mubr.f32.mxu1 %v14201_v15  ;;  %v3482_v5 = vmul.f32 %v12303_v62, %v12282_v0 }
 0x2fb   : > { %v2003_v12 = vadd.f32 %v2002_v25, %v2001_v59  ;;  %14439 = vst [vmem:[#allocation57_spill] sm:$0xff] %v12503_v35  ;;  %14440 = vst [vmem:[#allocation64_spill] sm:$0xff] %v12505_v32  ;;  %v2770_v25 = vadd.f32 %v2769_v7, %v2768_v9  ;;  %v3547_v59 = vadd.f32 %v3546_v46, %v3545_v2  ;;  %v6140_v32 = vld [vmem:[%s8280_s6 + $0x5b0] sm:$0xff] }
 0x2fc   : > { %v1996_v29 = vrot.slane %v1995_v38, 1  ;;  %v12515_v30 = vadd.f32 %v4234_v60, %v12430_v36  ;;  %v12519_v35 = vpop.f32.mrf.mxu0  ;;  %v12521_v54 = vpop.f32.mrf.mxu1  ;;  %v2778_v45 = vadd.f32 %v2777_v24, %v2776_v39  ;;  %v3555_v27 = vadd.f32 %v3554_v44, %v3553_v47  ;;  %7847 = vmatmul.mubr.msk.f32.gmra.mxu0 %vm793_vm11, %v6897_v50  ;;  %v14445_v44 = vld [vmem:[#allocation27_spill] sm:$0xff] }
 0x2fd   : > { %v2004_v22 = vrot.slane %v2003_v12, 1  ;;  %14441 = vst [vmem:[#allocation68_spill] sm:$0xff] %v12521_v54  ;;  %v2771_v9 = vrot.slane %v2770_v25, 1  ;;  %v3548_v2 = vrot.slane %v3547_v59, 2  ;;  %v3483_v36 = vmul.f32 %v12325_v41, %v12308_v34  ;;  %7827 = vmatmul.mubr.msk.f32.gmra.mxu1 %vm793_vm11, %v6140_v32  ;;  %7152 = vmatprep.mubr.f32.mxu0 %v14201_v15 }
 0x2fe   : > { %v1997_v16 = vadd.f32 %v1996_v29, %v1995_v38  ;;  %v12528_v46 = vpop.f32.mrf.mxu0  ;;  %v12530_v60 = vpop.f32.mrf.mxu1  ;;  %v14444_v38 = vld [vmem:[#allocation3_spill] sm:$0xff]  ;;  %v2779_v29 = vrot.slane %v2778_v45, 1  ;;  %v3556_v47 = vrot.slane %v3555_v27, 2  ;;  %v4238_v0 = vmul.f32 %v12419_v57, %v12329_v40  ;;  %6415 = vmatprep.mubr.f32.mxu1 %v14201_v15 }
 0x2ff   : > { %v2005_v7 = vadd.f32 %v2004_v22, %v2003_v12  ;;  %14442 = vst [vmem:[#allocation33_spill] sm:$0xff] %v12528_v46  ;;  %14443 = vst [vmem:[#allocation28_spill] sm:$0xff] %v12530_v60  ;;  %v6898_v12 = vld [vmem:[%s8280_s6 + $0x658] sm:$0xff]  ;;  %v2772_v34 = vadd.f32 %v2771_v9, %v2770_v25  ;;  %v3549_v24 = vadd.f32 %v3548_v2, %v3547_v59  ;;  %v14446_v46 = vld [vmem:[#allocation32_spill] sm:$0xff]  ;;  %v4211_v59 = vpop.permute.xlu1 %4210  ;;  %v4213_v9 = vpop.permute.xlu0 %4212 }
 0x300   : > { %v2090_v39 = vadd.f32 %v1997_v16, %v14444_v38  ;;  %v12541_v22 = vsel %vm3893_vm14, %v12461_v23, %v4207_v1  ;;  %v6141_v16 = vld [vmem:[%s8280_s6 + $0x5b8] sm:$0xff]  ;;  %v12545_v38 = vpop.f32.mrf.mxu0  ;;  %v12547_v60 = vpop.f32.mrf.mxu1  ;;  %v2780_v40 = vadd.f32 %v2779_v29, %v2778_v45  ;;  %v3557_v32 = vadd.f32 %v3556_v47, %v3555_v27  ;;  %7848 = vmatmul.mubr.msk.f32.gmra.mxu0 %vm793_vm11, %v6898_v12 }
 0x301   : > { %v2091_v50 = vadd.f32 %v2005_v7, %v14445_v44  ;;  %v4229_v54 = vmul.f32 %v12541_v22, %v14446_v46  ;;  %v4235_v25 = vmul.f32 %v12541_v22, %v12252_v37  ;;  %v3550_v1 = vrot.slane %v3549_v24, 1  ;;  %7828 = vmatmul.mubr.msk.f32.gmra.mxu1 %vm793_vm11, %v6141_v16  ;;  %7158 = vmatprep.mubr.f32.mxu0 %v14201_v15  ;;  %v6142_v44 = vld [vmem:[%s8280_s6 + $0x5c0] sm:$0xff] }
 0x302   : > { %v2865_v23 = vadd.f32 %v2772_v34, %v2090_v39  ;;  %v3484_v2 = vmul.f32 %v12340_v33, %v12331_v21  ;;  %v4239_v7 = vmul.f32 %v12442_v3, %v12353_v49  ;;  %v12558_v45 = vpop.f32.mrf.mxu0  ;;  %v12560_v27 = vpop.f32.mrf.mxu1  ;;  %v3558_v37 = vrot.slane %v3557_v32, 1  ;;  %v6899_v21 = vld [vmem:[%s8280_s6 + $0x660] sm:$0xff]  ;;  %6421 = vmatprep.mubr.f32.mxu1 %v14201_v15 }
 0x303   : > { %v2866_v46 = vadd.f32 %v2780_v40, %v2091_v50  ;;  %v4282_v29 = vadd.f32 %v4229_v54, %v12452_v19  ;;  %v4298_v39 = vadd.f32 %v4235_v25, %v12456_v8  ;;  %v3551_v47 = vadd.f32 %v3550_v1, %v3549_v24  ;;  %v14449_v1 = vld [vmem:[#allocation51_spill] sm:$0xff] }
 0x304   : > { %v3560_v49 = vadd.f32 %v3484_v2, %v3482_v5  ;;  %v3485_v12 = vmul.f32 %v12350_v28, %v12355_v56  ;;  %v4240_v34 = vmul.f32 %v12489_v14, %v12372_v17  ;;  %v12573_v50 = vpop.f32.mrf.mxu0  ;;  %v12575_v19 = vpop.f32.mrf.mxu1  ;;  %v3559_v8 = vadd.f32 %v3558_v37, %v3557_v32  ;;  %v14447_v56 = vld [vmem:[#allocation42_spill] sm:$0xff]  ;;  %7849 = vmatmul.mubr.msk.f32.gmra.mxu0 %vm793_vm11, %v6899_v21  ;;  %v14450_v37 = vld [vmem:[#allocation60_spill] sm:$0xff] }
 0x305   : > { %v12579_v54 = vsel %vm3893_vm14, %v12509_v11, %v4211_v59  ;;  %v12582_v5 = vsel %vm3893_vm14, %v4211_v59, %v4213_v9  ;;  %v14448_v24 = vrot.slane %v14447_v56, 4  ;;  %v12587_v16 = vadd.f32 %v3551_v47, %v2865_v23  ;;  %7829 = vmatmul.mubr.msk.f32.gmra.mxu1 %vm793_vm11, %v6142_v44  ;;  %7164 = vmatprep.mubr.f32.mxu0 %v14201_v15 }
 0x306   : > { %v3568_v40 = vadd.f32 %v3485_v12, %v3483_v36  ;;  %v4306_v25 = vadd.f32 %v4240_v34, %v4238_v0  ;;  %v4230_v2 = vmul.f32 %v12579_v54, %v14449_v1  ;;  %v12592_v32 = vpop.f32.mrf.mxu0  ;;  %v12594_v11 = vpop.f32.mrf.mxu1  ;;  %v12596_v59 = vadd.f32 %v3559_v8, %v2866_v46  ;;  %v6900_v0 = vld [vmem:[%s8280_s6 + $0x668] sm:$0xff]  ;;  %6427 = vmatprep.mubr.f32.mxu1 %v14201_v15 }
 0x307   : > { %v2009_v17 = vadd.f32 %v14448_v24, %v14447_v56  ;;  %v4236_v9 = vmul.f32 %v12579_v54, %v12280_v58  ;;  %v4231_v23 = vmul.f32 %v12582_v5, %v14450_v37  ;;  %v4237_v36 = vmul.f32 %v12582_v5, %v12306_v63  ;;  %v6143_v58 = vld [vmem:[%s8280_s6 + $0x5c8] sm:$0xff] }
 0x308   : > { %v12607_v21 = vadd.f32 %v12507_v31, %v4230_v2  ;;  %v2783_v12 = vrot.slane %v12209_v26, 4  ;;  %v3486_v46 = vmul.f32 %v12363_v61, %v12374_v55  ;;  %v12615_v34 = vpop.f32.mrf.mxu0  ;;  %v12617_v63 = vpop.f32.mrf.mxu1  ;;  %v4241_v55 = vmul.f32 %v12541_v22, %v12385_v20  ;;  %7850 = vmatmul.mubr.msk.f32.gmra.mxu0 %vm793_vm11, %v6900_v0 }
 0x309   : > { %v2010_v47 = vrot.slane %v2009_v17, 2  ;;  %v12620_v44 = vadd.f32 %v12515_v30, %v4236_v9  ;;  %v12622_v31 = vadd.f32 %v4282_v29, %v4231_v23  ;;  %v12624_v8 = vadd.f32 %v4298_v39, %v4237_v36  ;;  %7830 = vmatmul.mubr.msk.f32.gmra.mxu1 %vm793_vm11, %v6143_v58  ;;  %7170 = vmatprep.mubr.f32.mxu0 %v14201_v15 }
 0x30a   : > { %14451 = vst [vmem:[#allocation12_spill] sm:$0xff] %v12607_v21  ;;  %v2784_v24 = vadd.f32 %v2783_v12, %v12209_v26  ;;  %v3561_v1 = vadd.f32 %v3560_v49, %v3486_v46  ;;  %v14455_v2 = vrot.slane %v14417_v51, 4  ;;  %v12633_v30 = vpop.f32.mrf.mxu0  ;;  %v12635_v29 = vpop.f32.mrf.mxu1  ;;  %v4314_v39 = vadd.f32 %v4241_v55, %v4239_v7  ;;  %6433 = vmatprep.mubr.f32.mxu1 %v14201_v15  ;;  %v6144_v7 = vld [vmem:[%s8280_s6 + $0x5d0] sm:$0xff] }
 0x30b   : > { %14452 = vst [vmem:[#allocation31_spill] sm:$0xff] %v12620_v44  ;;  %14453 = vst [vmem:[#allocation44_spill] sm:$0xff] %v12622_v31  ;;  %v2011_v56 = vadd.f32 %v2010_v47, %v2009_v17  ;;  %v2791_v9 = vrot.slane %v12276_v18, 4  ;;  %v3487_v20 = vmul.f32 %v12393_v13, %v12387_v6  ;;  %v4242_v26 = vmul.f32 %v12579_v54, %v12407_v52  ;;  %v14459_v6 = vld [vmem:[#allocation34_spill] sm:$0xff] }
 0x30c   : > { %14454 = vst [vmem:[#allocation49_spill] sm:$0xff] %v12624_v8  ;;  %v2017_v37 = vadd.f32 %v14455_v2, %v14417_v51  ;;  %14456 = vst [vmem:[#allocation9_spill] sm:$0xff] %v12635_v29  ;;  %v6901_v51 = vld [vmem:[%s8280_s6 + $0x670] sm:$0xff]  ;;  %v2785_v17 = vrot.slane %v2784_v24, 2  ;;  %v3562_v23 = vrot.slane %v3561_v1, 4  ;;  %v12647_v0 = vpop.f32.mrf.mxu0  ;;  %v12649_v47 = vpop.f32.mrf.mxu1 }
 0x30d   : > { %v2012_v49 = vrot.slane %v2011_v56, 1  ;;  %14457 = vst [vmem:[#allocation25_spill] sm:$0xff] %v12647_v0  ;;  %14458 = vst [vmem:[#allocation19_spill] sm:$0xff] %v12649_v47  ;;  %v2792_v52 = vadd.f32 %v2791_v9, %v12276_v18  ;;  %v3569_v46 = vadd.f32 %v3568_v40, %v3487_v20  ;;  %v4307_v58 = vadd.f32 %v4306_v25, %v4242_v26  ;;  %v6902_v40 = vld [vmem:[%s8280_s6 + $0x678] sm:$0xff] }
 0x30e   : > { %v2018_v36 = vrot.slane %v2017_v37, 2  ;;  %v2786_v2 = vadd.f32 %v2785_v17, %v2784_v24  ;;  %v3563_v8 = vadd.f32 %v3562_v23, %v3561_v1  ;;  %7851 = vmatmul.mubr.msk.f32.gmra.mxu0 %vm793_vm11, %v6901_v51  ;;  %v12654_v31 = vpop.f32.mrf.mxu0  ;;  %v12656_v21 = vpop.f32.mrf.mxu1  ;;  %v3488_v18 = vmul.f32 %v12303_v62, %v12409_v53  ;;  %7831 = vmatmul.mubr.msk.f32.gmra.mxu1 %vm793_vm11, %v6144_v7  ;;  %v14460_v25 = vld [vmem:[#allocation37_spill] sm:$0xff] }
 0x30f   : > { %v2013_v55 = vadd.f32 %v2012_v49, %v2011_v56  ;;  %v2793_v0 = vrot.slane %v2792_v52, 2  ;;  %v3570_v47 = vrot.slane %v3569_v46, 4  ;;  %v4308_v29 = vrot.slane %v4307_v58, 4  ;;  %7176 = vmatprep.mubr.f32.mxu0 %v14201_v15  ;;  %6439 = vmatprep.mubr.f32.mxu1 %v14201_v15  ;;  %v6145_v9 = vld [vmem:[%s8280_s6 + $0x5d8] sm:$0xff] }
 0x310   : > { %v2019_v44 = vadd.f32 %v2018_v36, %v2017_v37  ;;  %v2787_v24 = vrot.slane %v2786_v2, 1  ;;  %v3564_v1 = vrot.slane %v3563_v8, 2  ;;  %v12666_v20 = vpop.f32.mrf.mxu0  ;;  %v12668_v26 = vpop.f32.mrf.mxu1  ;;  %v4243_v17 = vmul.f32 %v12582_v5, %v12422_v43  ;;  %v6903_v43 = vld [vmem:[%s8280_s6 + $0x680] sm:$0xff] }
 0x311   : > { %v2092_v56 = vadd.f32 %v2013_v55, %v14460_v25  ;;  %v2794_v51 = vadd.f32 %v2793_v0, %v2792_v52  ;;  %v3571_v49 = vadd.f32 %v3570_v47, %v3569_v46  ;;  %v4309_v53 = vadd.f32 %v4308_v29, %v4307_v58  ;;  %v14461_v46 = vld [vmem:[#allocation46_spill] sm:$0xff] }
 0x312   : > { %v2020_v37 = vrot.slane %v2019_v44, 1  ;;  %v2788_v23 = vadd.f32 %v2787_v24, %v2786_v2  ;;  %v3565_v36 = vadd.f32 %v3564_v1, %v3563_v8  ;;  %v3489_v55 = vmul.f32 %v12325_v41, %v12424_v48  ;;  %7852 = vmatmul.mubr.msk.f32.gmra.mxu0 %vm793_vm11, %v6902_v40  ;;  %v12675_v25 = vpop.f32.mrf.mxu0  ;;  %v12677_v12 = vpop.f32.mrf.mxu1  ;;  %7832 = vmatmul.mubr.msk.f32.gmra.mxu1 %vm793_vm11, %v6145_v9  ;;  %v6146_v2 = vld [vmem:[%s8280_s6 + $0x5e0] sm:$0xff] }
 0x313   : > { %v2795_v0 = vrot.slane %v2794_v51, 1  ;;  %v3572_v47 = vrot.slane %v3571_v49, 2  ;;  %v4310_v52 = vrot.slane %v4309_v53, 2  ;;  %v4315_v29 = vadd.f32 %v4314_v39, %v4243_v17  ;;  %7182 = vmatprep.mubr.f32.mxu0 %v14201_v15  ;;  %6445 = vmatprep.mubr.f32.mxu1 %v14201_v15 }
 0x314   : > { %v2021_v7 = vadd.f32 %v2020_v37, %v2019_v44  ;;  %v2867_v44 = vadd.f32 %v2788_v23, %v2092_v56  ;;  %v3566_v8 = vrot.slane %v3565_v36, 1  ;;  %v4244_v58 = vmul.f32 %v12419_v57, %v12446_v4  ;;  %v12687_v40 = vpop.f32.mrf.mxu0  ;;  %v12689_v24 = vpop.f32.mrf.mxu1 }
 0x315   : > { %14462 = vst [vmem:[#allocation53_spill] sm:$0xff] %v12689_v24  ;;  %v2796_v39 = vadd.f32 %v2795_v0, %v2794_v51  ;;  %v3573_v1 = vadd.f32 %v3572_v47, %v3571_v49  ;;  %v4311_v37 = vadd.f32 %v4310_v52, %v4309_v53  ;;  %v4316_v9 = vrot.slane %v4315_v29, 4 }
 0x316   : > { %v2093_v48 = vadd.f32 %v2021_v7, %v14461_v46  ;;  %v14463_v56 = vrot.slane %v11886_v10, 4  ;;  %v3567_v23 = vadd.f32 %v3566_v8, %v3565_v36  ;;  %v3490_v4 = vmul.f32 %v12340_v33, %v12448_v42  ;;  %v14465_v7 = vld [vmem:[#allocation67_spill] sm:$0xff]  ;;  %7853 = vmatmul.mubr.msk.f32.gmra.mxu0 %vm793_vm11, %v6903_v43  ;;  %v12701_v51 = vpop.f32.mrf.mxu0  ;;  %v12703_v49 = vpop.f32.mrf.mxu1  ;;  %7833 = vmatmul.mubr.msk.f32.gmra.mxu1 %vm793_vm11, %v6146_v2  ;;  %v14468_v8 = vld [vmem:[#allocation6_spill] sm:$0xff] }
 0x317   : > { %v4245_v46 = vmul.f32 %v12442_v3, %v14465_v7  ;;  %14466 = vst [vmem:[#allocation41_spill] sm:$0xff] %v12701_v51  ;;  %14467 = vst [vmem:[#allocation7_spill] sm:$0xff] %v12703_v49  ;;  %v3574_v0 = vrot.slane %v3573_v1, 1  ;;  %v4312_v47 = vrot.slane %v4311_v37, 1  ;;  %v4317_v52 = vadd.f32 %v4316_v9, %v4315_v29  ;;  %7188 = vmatprep.mubr.f32.mxu0 %v14201_v15  ;;  %v14469_v43 = vld [vmem:[#allocation39_spill] sm:$0xff]  ;;  %v14473_v51 = vld [vmem:[#allocation8_spill] sm:$0xff] }
 0x318   : > { %v12694_v17 = vadd.f32 %v14463_v56, %v11886_v10  ;;  %v2868_v53 = vadd.f32 %v2796_v39, %v2093_v48  ;;  %v6904_v10 = vld [vmem:[%s8280_s6 + $0x688] sm:$0xff]  ;;  %v12708_v42 = vadd.f32 %v3567_v23, %v2867_v44  ;;  %v3576_v36 = vadd.f32 %v3490_v4, %v3488_v18  ;;  %6451 = vmatprep.mubr.f32.mxu1 %v14201_v15  ;;  %v12716_v39 = vpop.f32.mrf.mxu0  ;;  %v12718_v29 = vpop.f32.mrf.mxu1  ;;  %v14485_v18 = vld [vmem:[#allocation54_spill] sm:$0xff] }
 0x319   : > { %v3491_v56 = vmul.f32 %v12350_v28, %v14468_v8  ;;  %v4246_v7 = vmul.f32 %v12489_v14, %v14469_v43  ;;  %v6147_v48 = vld [vmem:[%s8280_s6 + $0x5e8] sm:$0xff]  ;;  %14470 = vst [vmem:[#allocation50_spill] sm:$0xff] %v12716_v39  ;;  %14471 = vst [vmem:[#allocation40_spill] sm:$0xff] %v12718_v29  ;;  %v3575_v49 = vadd.f32 %v3574_v0, %v3573_v1  ;;  %v4318_v23 = vrot.slane %v4317_v52, 2  ;;  %v14478_v0 = vld [vmem:[#allocation52_spill] sm:$0xff] }
 0x31a   : > { %14464 = vst [vmem:[#allocation55_spill] sm:$0xff] %v12694_v17  ;;  %v4313_v44 = vadd.f32 %v4312_v47, %v4311_v37  ;;  %v14474_v43 = vrot.slane %v14473_v51, 4  ;;  %7854 = vmatmul.mubr.msk.f32.gmra.mxu0 %vm793_vm11, %v6904_v10  ;;  %v12726_v39 = vpop.f32.mrf.mxu0  ;;  %v12728_v29 = vpop.f32.mrf.mxu1  ;;  %7834 = vmatmul.mubr.msk.f32.gmra.mxu1 %vm793_vm11, %v6147_v48  ;;  %v14479_v47 = vld [vmem:[#allocation48_spill] sm:$0xff] }
 0x31b   : > { %v3584_v4 = vadd.f32 %v3491_v56, %v3489_v55  ;;  %v4322_v8 = vadd.f32 %v4246_v7, %v4244_v58  ;;  %14475 = vst [vmem:[#allocation26_spill] sm:$0xff] %v12726_v39  ;;  %14476 = vst [vmem:[#allocation58_spill] sm:$0xff] %v12728_v29  ;;  %v12730_v9 = vadd.f32 %v3575_v49, %v2868_v53  ;;  %v2799_v55 = vrot.slane %v14478_v0, 4  ;;  %v6905_v58 = vld [vmem:[%s8280_s6 + $0x690] sm:$0xff]  ;;  %v14480_v56 = vld [vmem:[#allocation57_spill] sm:$0xff] }
 0x31c   : > { %v2025_v24 = vadd.f32 %v14474_v43, %v14473_v51  ;;  %v12733_v1 = vadd.f32 %v4313_v44, %v12587_v16  ;;  %v4319_v37 = vadd.f32 %v4318_v23, %v4317_v52  ;;  %7194 = vmatprep.mubr.f32.mxu0 %v14201_v15  ;;  %v3492_v10 = vmul.f32 %v12363_v61, %v14479_v47  ;;  %v14481_v49 = vld [vmem:[#allocation29_spill] sm:$0xff]  ;;  %v6148_v52 = vld [vmem:[%s8280_s6 + $0x5f0] sm:$0xff]  ;;  %v12748_v44 = vpop.f32.mrf.mxu0  ;;  %v12750_v48 = vpop.f32.mrf.mxu1 }
 0x31d   : > { %v4247_v7 = vmul.f32 %v12541_v22, %v14480_v56  ;;  %v14482_v53 = vrot.slane %v14481_v49, 4  ;;  %6457 = vmatprep.mubr.f32.mxu1 %v14201_v15  ;;  %14483 = vst [vmem:[#allocation27_spill] sm:$0xff] %v12748_v44  ;;  %14484 = vst [vmem:[#allocation32_spill] sm:$0xff] %v12750_v48  ;;  %v2800_v43 = vadd.f32 %v2799_v55, %v14478_v0  ;;  %v2807_v47 = vrot.slane %v14485_v18, 4 }
 0x31e   : > { %14477 = vst [vmem:[#allocation3_spill] sm:$0xff] %v12733_v1  ;;  %v2026_v51 = vrot.slane %v2025_v24, 2  ;;  %v4320_v23 = vrot.slane %v4319_v37, 1  ;;  %v14486_v1 = vld [vmem:[#allocation64_spill] sm:$0xff]  ;;  %v3577_v2 = vadd.f32 %v3576_v36, %v3492_v10  ;;  %7855 = vmatmul.mubr.msk.f32.gmra.mxu0 %vm793_vm11, %v6905_v58  ;;  %v12761_v48 = vpop.f32.mrf.mxu1  ;;  %7835 = vmatmul.mubr.msk.f32.gmra.mxu1 %vm793_vm11, %v6148_v52  ;;  %v4248_v58 = vmul.f32 %v12579_v54, %v12519_v35 }
 0x31f   : > { %v2033_v16 = vadd.f32 %v14482_v53, %v14481_v49  ;;  %v3493_v56 = vmul.f32 %v12393_v13, %v14486_v1  ;;  %v12756_v29 = vadd.f32 %v4247_v7, %v4245_v46  ;;  %v12759_v53 = vpop.f32.mrf.mxu0  ;;  %14488 = vst [vmem:[#allocation51_spill] sm:$0xff] %v12761_v48  ;;  %v2801_v0 = vrot.slane %v2800_v43, 2  ;;  %7200 = vmatprep.mubr.f32.mxu0 %v14201_v15 }
 0x320   : > { %v2027_v17 = vadd.f32 %v2026_v51, %v2025_v24  ;;  %14487 = vst [vmem:[#allocation42_spill] sm:$0xff] %v12759_v53  ;;  %v4321_v44 = vadd.f32 %v4320_v23, %v4319_v37  ;;  %v2808_v55 = vadd.f32 %v2807_v47, %v14485_v18  ;;  %v6906_v24 = vld [vmem:[%s8280_s6 + $0x698] sm:$0xff]  ;;  %v3578_v36 = vrot.slane %v3577_v2, 4  ;;  %6463 = vmatprep.mubr.f32.mxu1 %v14201_v15  ;;  %v12773_v37 = vpop.f32.mrf.mxu1 }
 0x321   : > { %v2034_v49 = vrot.slane %v2033_v16, 2  ;;  %v3585_v39 = vadd.f32 %v3584_v4, %v3493_v56  ;;  %v6149_v51 = vld [vmem:[%s8280_s6 + $0x5f8] sm:$0xff]  ;;  %v12771_v10 = vpop.f32.mrf.mxu0  ;;  %14490 = vst [vmem:[#allocation34_spill] sm:$0xff] %v12773_v37  ;;  %v2802_v4 = vadd.f32 %v2801_v0, %v2800_v43  ;;  %v4323_v56 = vadd.f32 %v4322_v8, %v4248_v58 }
 0x322   : > { %v2028_v46 = vrot.slane %v2027_v17, 1  ;;  %14489 = vst [vmem:[#allocation60_spill] sm:$0xff] %v12771_v10  ;;  %v12776_v18 = vadd.f32 %v4321_v44, %v12596_v59  ;;  %v2809_v7 = vrot.slane %v2808_v55, 2  ;;  %v3579_v47 = vadd.f32 %v3578_v36, %v3577_v2  ;;  %7856 = vmatmul.mubr.msk.f32.gmra.mxu0 %vm793_vm11, %v6906_v24  ;;  %7836 = vmatmul.mubr.msk.f32.gmra.mxu1 %vm793_vm11, %v6149_v51  ;;  %v6907_v59 = vld [vmem:[%s8280_s6 + $0x6a0] sm:$0xff]  ;;  %v12785_v44 = vpop.f32.mrf.mxu1 }
 0x323   : > { %v2035_v1 = vadd.f32 %v2034_v49, %v2033_v16  ;;  %v3586_v52 = vrot.slane %v3585_v39, 4  ;;  %v12779_v35 = vpop.f32.mrf.mxu0  ;;  %v14493_v49 = vld [vmem:[#allocation35_spill] sm:$0xff]  ;;  %v2803_v10 = vrot.slane %v2802_v4, 1  ;;  %7206 = vmatprep.mubr.f32.mxu0 %v14201_v15  ;;  %14494 = vst [vmem:[#allocation67_spill] sm:$0xff] %v12785_v44  ;;  %v4324_v0 = vrot.slane %v4323_v56, 4 }
 0x324   : > { %14491 = vst [vmem:[#allocation37_spill] sm:$0xff] %v12776_v18  ;;  %v2029_v23 = vadd.f32 %v2028_v46, %v2027_v17  ;;  %14492 = vst [vmem:[#allocation46_spill] sm:$0xff] %v12779_v35  ;;  %v2735_v48 = vrot.slane %v14493_v49, 4  ;;  %v2810_v53 = vadd.f32 %v2809_v7, %v2808_v55  ;;  %v14495_v17 = vld [vmem:[#allocation23_spill] sm:$0xff]  ;;  %v3580_v43 = vrot.slane %v3579_v47, 2  ;;  %v14497_v55 = vld [vmem:[#allocation68_spill] sm:$0xff]  ;;  %v12792_v51 = vpop.f32.mrf.mxu1 }
 0x325   : > { %v2036_v16 = vrot.slane %v2035_v1, 1  ;;  %v3587_v37 = vadd.f32 %v3586_v52, %v3585_v39  ;;  %v12788_v24 = vpop.f32.mrf.mxu0  ;;  %v2804_v46 = vadd.f32 %v2803_v10, %v2802_v4  ;;  %v3494_v39 = vmul.f32 %v12303_v62, %v14497_v55  ;;  %v14498_v52 = vld [vmem:[#allocation16_spill] sm:$0xff]  ;;  %v14499_v35 = vld [vmem:[#allocation33_spill] sm:$0xff]  ;;  %v6908_v55 = vld [vmem:[%s8280_s6 + $0x6a8] sm:$0xff] }
 0x326   : > { %v2094_v2 = vadd.f32 %v2029_v23, %v14495_v17  ;;  %14496 = vst [vmem:[#allocation6_spill] sm:$0xff] %v12788_v24  ;;  %v2811_v36 = vrot.slane %v2810_v53, 1  ;;  %v3581_v7 = vadd.f32 %v3580_v43, %v3579_v47  ;;  %v4325_v44 = vadd.f32 %v4324_v0, %v4323_v56  ;;  %7857 = vmatmul.mubr.msk.f32.gmra.mxu0 %vm793_vm11, %v6907_v59  ;;  %v14500_v17 = vld [vmem:[#allocation28_spill] sm:$0xff]  ;;  %v12804_v47 = vpop.f32.mrf.mxu1 }
 0x327   : > { %v2037_v8 = vadd.f32 %v2036_v16, %v2035_v1  ;;  %v3588_v58 = vrot.slane %v3587_v37, 2  ;;  %v4249_v23 = vmul.f32 %v12582_v5, %v14499_v35  ;;  %v12798_v1 = vpop.f32.mrf.mxu0  ;;  %v3495_v24 = vmul.f32 %v12325_v41, %v14500_v17  ;;  %7212 = vmatprep.mubr.f32.mxu0 %v14201_v15 }
 0x328   : > { %v2869_v10 = vadd.f32 %v2804_v46, %v2094_v2  ;;  %v2812_v4 = vadd.f32 %v2811_v36, %v2810_v53  ;;  %v3582_v43 = vrot.slane %v3581_v7, 1  ;;  %v4326_v56 = vrot.slane %v4325_v44, 2  ;;  %v14502_v2 = vld [vmem:[#allocation43_spill] sm:$0xff]  ;;  %v12814_v36 = vpop.f32.mrf.mxu1 }
 0x329   : > { %v2095_v18 = vadd.f32 %v2037_v8, %v14498_v52  ;;  %v3589_v16 = vadd.f32 %v3588_v58, %v3587_v37  ;;  %v4331_v8 = vadd.f32 %v12756_v29, %v4249_v23  ;;  %v4250_v35 = vmul.f32 %v12419_v57, %v12545_v38  ;;  %v12809_v59 = vpop.f32.mrf.mxu0 }
 0x32a   : > { %14501 = vst [vmem:[#allocation39_spill] sm:$0xff] %v12809_v59  ;;  %v2751_v53 = vrot.slane %v14502_v2, 4  ;;  %v3496_v46 = vmul.f32 %v12340_v33, %v12547_v60  ;;  %v3583_v58 = vadd.f32 %v3582_v43, %v3581_v7  ;;  %v4327_v52 = vadd.f32 %v4326_v56, %v4325_v44  ;;  %7858 = vmatmul.mubr.msk.f32.gmra.mxu0 %vm793_vm11, %v6908_v55  ;;  %v6909_v7 = vld [vmem:[%s8280_s6 + $0x6b0] sm:$0xff]  ;;  %v12827_v44 = vpop.f32.mrf.mxu1 }
 0x32b   : > { %v2870_v37 = vadd.f32 %v2812_v4, %v2095_v18  ;;  %v3590_v0 = vrot.slane %v3589_v16, 1  ;;  %v4332_v17 = vrot.slane %v4331_v8, 4  ;;  %v4251_v29 = vmul.f32 %v12442_v3, %v12558_v45  ;;  %v12819_v38 = vpop.f32.mrf.mxu0  ;;  %7218 = vmatprep.mubr.f32.mxu0 %v14201_v15  ;;  %14503 = vst [vmem:[#allocation8_spill] sm:$0xff] %v12827_v44 }
 0x32c   : > { %v3592_v59 = vadd.f32 %v3496_v46, %v3494_v39  ;;  %v3497_v18 = vmul.f32 %v12350_v28, %v12560_v27  ;;  %v4252_v60 = vmul.f32 %v12489_v14, %v12573_v50  ;;  %v12830_v4 = vadd.f32 %v2735_v48, %v14493_v49  ;;  %v14507_v48 = vld [vmem:[#allocation61_spill] sm:$0xff] }
 0x32d   : > { %v3591_v23 = vadd.f32 %v3590_v0, %v3589_v16  ;;  %v12832_v45 = vadd.f32 %v3583_v58, %v2869_v10  ;;  %v4328_v55 = vrot.slane %v4327_v52, 1  ;;  %v4333_v43 = vadd.f32 %v4332_v17, %v4331_v8  ;;  %v12834_v16 = vpop.f32.mrf.mxu0  ;;  %v12841_v0 = vpop.f32.mrf.mxu1  ;;  %v14509_v58 = vld [vmem:[#allocation62_spill] sm:$0xff] }
 0x32e   : > { %14504 = vst [vmem:[#allocation52_spill] sm:$0xff] %v12834_v16  ;;  %v12837_v39 = vadd.f32 %v2751_v53, %v14502_v2  ;;  %v3600_v50 = vadd.f32 %v3497_v18, %v3495_v24  ;;  %v4338_v56 = vadd.f32 %v4252_v60, %v4250_v35  ;;  %14506 = vst [vmem:[#allocation57_spill] sm:$0xff] %v12841_v0  ;;  %v14508_v49 = vrot.slane %v14507_v48, 4  ;;  %v14511_v35 = vld [vmem:[#allocation30_spill] sm:$0xff]  ;;  %v6910_v18 = vld [vmem:[%s8280_s6 + $0x6b8] sm:$0xff] }
 0x32f   : > { %v12839_v27 = vadd.f32 %v3591_v23, %v2870_v37  ;;  %v4329_v46 = vadd.f32 %v4328_v55, %v4327_v52  ;;  %v4334_v44 = vrot.slane %v4333_v43, 2  ;;  %v2815_v8 = vrot.slane %v14509_v58, 4  ;;  %7859 = vmatmul.mubr.msk.f32.gmra.mxu0 %vm793_vm11, %v6909_v7  ;;  %v12848_v17 = vpop.f32.mrf.mxu0  ;;  %v14513_v52 = vld [vmem:[#allocation11_spill] sm:$0xff]  ;;  %v12860_v60 = vpop.f32.mrf.mxu1 }
 0x330   : > { %14505 = vst [vmem:[#allocation48_spill] sm:$0xff] %v12837_v39  ;;  %v2041_v10 = vadd.f32 %v14508_v49, %v14507_v48  ;;  %14510 = vst [vmem:[#allocation29_spill] sm:$0xff] %v12848_v17  ;;  %v3498_v2 = vmul.f32 %v12363_v61, %v12575_v19  ;;  %v4253_v24 = vmul.f32 %v12541_v22, %v12592_v32  ;;  %v14512_v53 = vrot.slane %v14511_v35, 4 }
 0x331   : > { %v2823_v23 = vrot.slane %v14513_v52, 4  ;;  %7224 = vmatprep.mubr.f32.mxu0 %v14201_v15  ;;  %v12863_v7 = vadd.f32 %v4329_v46, %v12708_v42  ;;  %v4335_v55 = vadd.f32 %v4334_v44, %v4333_v43  ;;  %v2816_v19 = vadd.f32 %v2815_v8, %v14509_v58  ;;  %v12866_v49 = vpop.f32.mrf.mxu0 }
 0x332   : > { %v2049_v37 = vadd.f32 %v14512_v53, %v14511_v35  ;;  %v2042_v48 = vrot.slane %v2041_v10, 2  ;;  %14515 = vst [vmem:[#allocation64_spill] sm:$0xff] %v12866_v49  ;;  %v3593_v32 = vadd.f32 %v3592_v59, %v3498_v2  ;;  %v4346_v39 = vadd.f32 %v4253_v24, %v4251_v29  ;;  %v12869_v53 = vpop.f32.mrf.mxu1 }
 0x333   : > { %14514 = vst [vmem:[#allocation54_spill] sm:$0xff] %v12863_v7  ;;  %v2824_v35 = vadd.f32 %v2823_v23, %v14513_v52  ;;  %v4336_v15 = vrot.slane %v4335_v55, 1  ;;  %v2817_v16 = vrot.slane %v2816_v19, 2  ;;  %v3499_v42 = vmul.f32 %v12393_v13, %v12594_v11  ;;  %7860 = vmatmul.mubr.msk.f32.gmra.mxu0 %vm793_vm11, %v6910_v18  ;;  %v12874_v44 = vpop.f32.mrf.mxu0  ;;  %v12882_v18 = vpop.permute.xlu1 %4957 }
 0x334   : > { %v2050_v0 = vrot.slane %v2049_v37, 2  ;;  %v2043_v17 = vadd.f32 %v2042_v48, %v2041_v10  ;;  %14516 = vst [vmem:[#allocation35_spill] sm:$0xff] %v12874_v44  ;;  %v3594_v43 = vrot.slane %v3593_v32, 4  ;;  %v4254_v59 = vmul.f32 %v12579_v54, %v12615_v34  ;;  %v12878_v29 = vpop.f32.mrf.mxu1 }
 0x335   : > { %v2825_v58 = vrot.slane %v2824_v35, 2  ;;  %14517 = vst [vmem:[#allocation23_spill] sm:$0xff] %v12878_v29  ;;  %v4337_v8 = vadd.f32 %v4336_v15, %v4335_v55  ;;  %v2818_v24 = vadd.f32 %v2817_v16, %v2816_v19  ;;  %v3601_v10 = vadd.f32 %v3600_v50, %v3499_v42  ;;  %v12880_v7 = vpop.f32.mrf.mxu0  ;;  %v12889_v55 = vpop.permute.xlu0 %4959  ;;  %v14523_v42 = vld [vmem:[#allocation15_spill] sm:$0xff] }
 0x336   : > { %v2051_v46 = vadd.f32 %v2050_v0, %v2049_v37  ;;  %v2044_v2 = vrot.slane %v2043_v17, 1  ;;  %v3595_v52 = vadd.f32 %v3594_v43, %v3593_v32  ;;  %v4339_v11 = vadd.f32 %v4338_v56, %v4254_v59  ;;  %14518 = vst [vmem:[#allocation68_spill] sm:$0xff] %v12880_v7  ;;  %v12887_v49 = vpop.f32.mrf.mxu1  ;;  %v14522_v56 = vld [vmem:[#allocation36_spill] sm:$0xff] }
 0x337   : > { %v2826_v48 = vadd.f32 %v2825_v58, %v2824_v35  ;;  %v12885_v0 = vadd.f32 %v4337_v8, %v12730_v9  ;;  %v2819_v44 = vrot.slane %v2818_v24, 1  ;;  %v3602_v34 = vrot.slane %v3601_v10, 4  ;;  %14520 = vst [vmem:[#allocation33_spill] sm:$0xff] %v12887_v49  ;;  %v12891_v35 = vpop.f32.mrf.mxu0  ;;  %v14525_v8 = vld [vmem:[#allocation24_spill] sm:$0xff] }
 0x338   : > { %v2052_v23 = vrot.slane %v2051_v46, 1  ;;  %v2045_v37 = vadd.f32 %v2044_v2, %v2043_v17  ;;  %v3596_v16 = vrot.slane %v3595_v52, 2  ;;  %v4340_v32 = vrot.slane %v4339_v11, 4  ;;  %14521 = vst [vmem:[#allocation28_spill] sm:$0xff] %v12891_v35  ;;  %v12895_v59 = vpop.f32.mrf.mxu1 }
 0x339   : > { %14519 = vst [vmem:[#allocation16_spill] sm:$0xff] %v12885_v0  ;;  %v2827_v19 = vrot.slane %v2826_v48, 1  ;;  %v2743_v15 = vrot.slane %v14522_v56, 4  ;;  %v2820_v58 = vadd.f32 %v2819_v44, %v2818_v24  ;;  %v3603_v9 = vadd.f32 %v3602_v34, %v3601_v10  ;;  %14524 = vst [vmem:[#allocation43_spill] sm:$0xff] %v12895_v59  ;;  %v12898_v49 = vpop.f32.mrf.mxu0 }
 0x33a   : > { %v2053_v50 = vadd.f32 %v2052_v23, %v2051_v46  ;;  %v2096_v43 = vadd.f32 %v2045_v37, %v14523_v42  ;;  %v3597_v17 = vadd.f32 %v3596_v16, %v3595_v52  ;;  %v4341_v7 = vadd.f32 %v4340_v32, %v4339_v11  ;;  %14526 = vst [vmem:[#allocation61_spill] sm:$0xff] %v12898_v49  ;;  %v12904_v37 = vpop.f32.mrf.mxu1  ;;  %v14528_v52 = vld [vmem:[#allocation9_spill] sm:$0xff] }
 0x33b   : > { %v2828_v0 = vadd.f32 %v2827_v19, %v2826_v48  ;;  %v3604_v23 = vrot.slane %v3603_v9, 2  ;;  %v3500_v35 = vmul.f32 %v12303_v62, %v12617_v63  ;;  %v4255_v29 = vmul.f32 %v12582_v5, %v12633_v30  ;;  %14527 = vst [vmem:[#allocation62_spill] sm:$0xff] %v12904_v37  ;;  %v12908_v48 = vpop.f32.mrf.mxu0  ;;  %v14530_v11 = vld [vmem:[#allocation45_spill] sm:$0xff] }
 0x33c   : > { %v2097_v2 = vadd.f32 %v2053_v50, %v14525_v8  ;;  %v2871_v46 = vadd.f32 %v2820_v58, %v2096_v43  ;;  %v3598_v44 = vrot.slane %v3597_v17, 1  ;;  %v4342_v10 = vrot.slane %v4341_v7, 2  ;;  %14529 = vst [vmem:[#allocation30_spill] sm:$0xff] %v12908_v48  ;;  %v12911_v50 = vpop.permute.xlu1 %4961  ;;  %v14531_v63 = vld [vmem:[#allocation25_spill] sm:$0xff]  ;;  %v12915_v30 = vpop.f32.mrf.mxu1  ;;  %v14533_v8 = vld [vmem:[#allocation19_spill] sm:$0xff] }
 0x33d   : > { %v3501_v34 = vmul.f32 %v12325_v41, %v14528_v52  ;;  %v2759_v16 = vrot.slane %v14530_v11, 4  ;;  %v3605_v19 = vadd.f32 %v3604_v23, %v3603_v9  ;;  %v4347_v32 = vadd.f32 %v4346_v39, %v4255_v29  ;;  %14532 = vst [vmem:[#allocation11_spill] sm:$0xff] %v12915_v30  ;;  %v12917_v43 = vpop.permute.xlu0 %4963  ;;  %v12923_v37 = vpop.f32.mrf.mxu0 }
 0x33e   : > { %v2872_v24 = vadd.f32 %v2828_v0, %v2097_v2  ;;  %v4256_v42 = vmul.f32 %v12419_v57, %v14531_v63  ;;  %v3599_v0 = vadd.f32 %v3598_v44, %v3597_v17  ;;  %v4343_v58 = vadd.f32 %v4342_v10, %v4341_v7  ;;  %14534 = vst [vmem:[#allocation36_spill] sm:$0xff] %v12923_v37  ;;  %v12929_v23 = vpop.f32.mrf.mxu1 }
 0x33f   : > { %v3502_v2 = vmul.f32 %v12340_v33, %v14533_v8  ;;  %v4257_v52 = vmul.f32 %v12442_v3, %v12654_v31  ;;  %v3606_v48 = vrot.slane %v3605_v19, 1  ;;  %v4348_v9 = vrot.slane %v4347_v32, 4  ;;  %14535 = vst [vmem:[#allocation15_spill] sm:$0xff] %v12929_v23  ;;  %v12936_v31 = vpop.f32.mrf.mxu0  ;;  %v14537_v23 = vld [vmem:[#allocation5_spill] sm:$0xff] }
 0x340   : > { %v3503_v39 = vmul.f32 %v12350_v28, %v12656_v21  ;;  %v4258_v29 = vmul.f32 %v12489_v14, %v12666_v20  ;;  %v12932_v7 = vadd.f32 %v2743_v15, %v14522_v56  ;;  %v12934_v17 = vadd.f32 %v3599_v0, %v2871_v46  ;;  %14536 = vst [vmem:[#allocation24_spill] sm:$0xff] %v12936_v31  ;;  %v12938_v49 = vpop.f32.mrf.mxu1  ;;  %v14539_v46 = vld [vmem:[#allocation18_spill] sm:$0xff] }
 0x341   : > { %v4344_v44 = vrot.slane %v4343_v58, 1  ;;  %v3608_v10 = vadd.f32 %v3502_v2, %v3500_v35  ;;  %v3607_v63 = vadd.f32 %v3606_v48, %v3605_v19  ;;  %v4349_v8 = vadd.f32 %v4348_v9, %v4347_v32  ;;  %v12947_v59 = vpop.f32.mrf.mxu0  ;;  %v12949_v35 = vpop.permute.xlu1 %4965 }
 0x342   : > { %v3616_v37 = vadd.f32 %v3503_v39, %v3501_v34  ;;  %v4354_v30 = vadd.f32 %v4258_v29, %v4256_v42  ;;  %v12941_v21 = vadd.f32 %v2759_v16, %v14530_v11  ;;  %v14538_v56 = vrot.slane %v14537_v23, 4  ;;  %14540 = vst [vmem:[#allocation9_spill] sm:$0xff] %v12947_v59  ;;  %v12957_v16 = vpop.f32.mrf.mxu1  ;;  %v12959_v32 = vpop.permute.xlu0 %4967 }
 0x343   : > { %v4345_v20 = vadd.f32 %v4344_v44, %v4343_v58  ;;  %v2831_v0 = vrot.slane %v14539_v46, 4  ;;  %v12951_v48 = vadd.f32 %v3607_v63, %v2872_v24  ;;  %v4350_v34 = vrot.slane %v4349_v8, 2  ;;  %14541 = vst [vmem:[#allocation45_spill] sm:$0xff] %v12957_v16  ;;  %v12968_v39 = vpop.f32.mrf.mxu0 }
 0x344   : > { %v2057_v15 = vadd.f32 %v14538_v56, %v14537_v23  ;;  %v3504_v19 = vmul.f32 %v12363_v61, %v12668_v26  ;;  %v4259_v11 = vmul.f32 %v12541_v22, %v12675_v25  ;;  %v14543_v24 = vrot.slane %v14459_v6, 4  ;;  %14544 = vst [vmem:[#allocation19_spill] sm:$0xff] %v12968_v39  ;;  %v14545_v25 = vld [vmem:[#allocation66_spill] sm:$0xff]  ;;  %v12973_v63 = vpop.f32.mrf.mxu1 }
 0x345   : > { %v12962_v42 = vadd.f32 %v4345_v20, %v12832_v45  ;;  %v2832_v2 = vadd.f32 %v2831_v0, %v14539_v46  ;;  %v4351_v26 = vadd.f32 %v4350_v34, %v4349_v8  ;;  %v2839_v44 = vrot.slane %v14545_v25, 4  ;;  %14546 = vst [vmem:[#allocation5_spill] sm:$0xff] %v12973_v63  ;;  %v12977_v0 = vpop.f32.mrf.mxu0 }
 0x346   : > { %v2058_v58 = vrot.slane %v2057_v15, 2  ;;  %v2065_v9 = vadd.f32 %v14543_v24, %v14459_v6  ;;  %v3609_v29 = vadd.f32 %v3608_v10, %v3504_v19  ;;  %v12970_v23 = vadd.f32 %v4259_v11, %v4257_v52  ;;  %14547 = vst [vmem:[#allocation18_spill] sm:$0xff] %v12977_v0  ;;  %v12982_v10 = vpop.f32.mrf.mxu1 }
 0x347   : > { %14542 = vst [vmem:[#allocation25_spill] sm:$0xff] %v12962_v42  ;;  %v2833_v45 = vrot.slane %v2832_v2, 2  ;;  %v3505_v46 = vmul.f32 %v12393_v13, %v12677_v12  ;;  %v4352_v42 = vrot.slane %v4351_v26, 1  ;;  %v2840_v24 = vadd.f32 %v2839_v44, %v14545_v25  ;;  %14548 = vst [vmem:[#allocation66_spill] sm:$0xff] %v12982_v10  ;;  %v12984_v11 = vpop.f32.mrf.mxu0  ;;  %v12990_v25 = vpop.permute.xlu0 %4971 }
 0x348   : > { %v2059_v56 = vadd.f32 %v2058_v58, %v2057_v15  ;;  %v2066_v20 = vrot.slane %v2065_v9, 2  ;;  %v3610_v6 = vrot.slane %v3609_v29, 4  ;;  %v4260_v52 = vmul.f32 %v12579_v54, %v12687_v40  ;;  %14549 = vst [vmem:[#allocation69_spill] sm:$0xff] %v12984_v11  ;;  %v12986_v58 = vpop.permute.xlu1 %4969  ;;  %v12988_v39 = vpop.f32.mrf.mxu1 }
 0x349   : > { %v2834_v34 = vadd.f32 %v2833_v45, %v2832_v2  ;;  %v3617_v15 = vadd.f32 %v3616_v37, %v3505_v46  ;;  %v4353_v12 = vadd.f32 %v4352_v42, %v4351_v26  ;;  %v2841_v0 = vrot.slane %v2840_v24, 2  ;;  %14550 = vst [vmem:[#allocation70_spill] sm:$0xff] %v12988_v39  ;;  %v12992_v59 = vpop.f32.mrf.mxu0  ;;  %v14554_v26 = vld [vmem:[#allocation13_spill] sm:$0xff] }
 0x34a   : > { %v2060_v8 = vrot.slane %v2059_v56, 1  ;;  %v2067_v19 = vadd.f32 %v2066_v20, %v2065_v9  ;;  %v3611_v31 = vadd.f32 %v3610_v6, %v3609_v29  ;;  %v4355_v63 = vadd.f32 %v4354_v30, %v4260_v52  ;;  %14551 = vst [vmem:[#allocation71_spill] sm:$0xff] %v12992_v59  ;;  %v12997_v42 = vpop.f32.mrf.mxu1 }
 0x34b   : > { %v2835_v40 = vrot.slane %v2834_v34, 1  ;;  %v3618_v10 = vrot.slane %v3617_v15, 4  ;;  %v12995_v37 = vadd.f32 %v4353_v12, %v12839_v27  ;;  %v2842_v9 = vadd.f32 %v2841_v0, %v2840_v24  ;;  %14553 = vst [vmem:[#allocation73_spill] sm:$0xff] %v12997_v42  ;;  %v13000_v6 = vpop.f32.mrf.mxu0  ;;  %v14557_v12 = vld [vmem:[#allocation20_spill] sm:$0xff] }
 0x34c   : > { %v2061_v44 = vadd.f32 %v2060_v8, %v2059_v56  ;;  %v2068_v16 = vrot.slane %v2067_v19, 1  ;;  %v3612_v2 = vrot.slane %v3611_v31, 2  ;;  %v4356_v45 = vrot.slane %v4355_v63, 4  ;;  %14555 = vst [vmem:[#allocation13_spill] sm:$0xff] %v13000_v6  ;;  %v14556_v56 = vld [vmem:[#allocation59_spill] sm:$0xff]  ;;  %v13003_v11 = vpop.f32.mrf.mxu1 }
 0x34d   : > { %14552 = vst [vmem:[#allocation72_spill] sm:$0xff] %v12995_v37  ;;  %v2836_v29 = vadd.f32 %v2835_v40, %v2834_v34  ;;  %v3619_v46 = vadd.f32 %v3618_v10, %v3617_v15  ;;  %v2843_v39 = vrot.slane %v2842_v9, 1  ;;  %v14558_v37 = vld [vmem:[#allocation53_spill] sm:$0xff]  ;;  %v14561_v40 = vld [vmem:[#allocation38_spill] sm:$0xff]  ;;  %vm7478_vm11 = vcmask 1041409  }
 0x34e   : > { %v2098_v30 = vadd.f32 %v2061_v44, %v14554_v26  ;;  %v2069_v20 = vadd.f32 %v2068_v16, %v2067_v19  ;;  %v3613_v8 = vadd.f32 %v3612_v2, %v3611_v31  ;;  %v4357_v59 = vadd.f32 %v4356_v45, %v4355_v63  ;;  %v13008_v44 = vpop.f32.mrf.mxu0  ;;  %v13010_v16 = vpop.permute.xlu1 %4973  ;;  %v14559_v15 = vld [vmem:[#allocation41_spill] sm:$0xff]  ;;  %v14565_v2 = vld [vmem:[#allocation40_spill] sm:$0xff] }
 0x34f   : > { %v3620_v24 = vrot.slane %v3619_v46, 2  ;;  %v3506_v42 = vmul.f32 %v12303_v62, %v14558_v37  ;;  %v2844_v34 = vadd.f32 %v2843_v39, %v2842_v9  ;;  %v4261_v31 = vmul.f32 %v12582_v5, %v14559_v15  ;;  %v13014_v63 = vpop.f32.mrf.mxu1  ;;  %v13017_v45 = vpop.permute.xlu0 %5718  ;;  %v14563_v37 = vld [vmem:[#allocation50_spill] sm:$0xff] }
 0x350   : > { %v2873_v27 = vadd.f32 %v2836_v29, %v2098_v30  ;;  %v2099_v0 = vadd.f32 %v2069_v20, %v14557_v12  ;;  %v3614_v10 = vrot.slane %v3613_v8, 1  ;;  %v4358_v19 = vrot.slane %v4357_v59, 2  ;;  %14560 = vst [vmem:[#allocation59_spill] sm:$0xff] %v13014_v63  ;;  %v14562_v30 = vld [vmem:[#allocation7_spill] sm:$0xff]  ;;  %v13023_v20 = vpop.f32.mrf.mxu0 }
 0x351   : > { %v3621_v26 = vadd.f32 %v3620_v24, %v3619_v46  ;;  %v3507_v62 = vmul.f32 %v12325_v41, %v14562_v30  ;;  %v4262_v29 = vmul.f32 %v12419_v57, %v14563_v37  ;;  %14564 = vst [vmem:[#allocation20_spill] sm:$0xff] %v13023_v20  ;;  %v4363_v15 = vadd.f32 %v12970_v23, %v4261_v31  ;;  %v13026_v52 = vpop.f32.mrf.mxu1  ;;  %v14566_v46 = vld [vmem:[#allocation26_spill] sm:$0xff] }
 0x352   : > { %v3615_v39 = vadd.f32 %v3614_v10, %v3613_v8  ;;  %v2874_v9 = vadd.f32 %v2844_v34, %v2099_v0  ;;  %v4359_v12 = vadd.f32 %v4358_v19, %v4357_v59  ;;  %v3508_v63 = vmul.f32 %v12340_v33, %v14565_v2  ;;  %v14567_v41 = vld [vmem:[#allocation58_spill] sm:$0xff]  ;;  %v13034_v37 = vpop.f32.mrf.mxu0  ;;  %v14568_v0 = vld [vmem:[#allocation27_spill] sm:$0xff]  ;;  %v13054_v2 = vpop.permute.xlu1 %5720 }
 0x353   : > { %v3622_v6 = vrot.slane %v3621_v26, 1  ;;  %v4263_v24 = vmul.f32 %v12442_v3, %v14566_v46  ;;  %v3509_v30 = vmul.f32 %v12350_v28, %v14567_v41  ;;  %v4364_v59 = vrot.slane %v4363_v15, 4  ;;  %v13040_v10 = vpop.f32.mrf.mxu1 }
 0x354   : > { %v13036_v20 = vadd.f32 %v3615_v39, %v2873_v27  ;;  %v4360_v8 = vrot.slane %v4359_v12, 1  ;;  %v4264_v23 = vmul.f32 %v12489_v14, %v14568_v0  ;;  %14569 = vst [vmem:[#allocation53_spill] sm:$0xff] %v13040_v10  ;;  %v13045_v33 = vsel %vm3893_vm14, %v12882_v18, %v12889_v55  ;;  %v13047_v28 = vpop.f32.mrf.mxu0  ;;  %v13058_v10 = vpop.permute.xlu0 %5722 }
 0x355   : > { %v3623_v34 = vadd.f32 %v3622_v6, %v3621_v26  ;;  %v3624_v19 = vadd.f32 %v3508_v63, %v3506_v42  ;;  %v3632_v31 = vadd.f32 %v3509_v30, %v3507_v62  ;;  %v13052_v27 = vsel %vm3893_vm14, %v12889_v55, %v12911_v50  ;;  %v13056_v0 = vpop.f32.mrf.mxu1  ;;  %v14571_v42 = vld [vmem:[#allocation32_spill] sm:$0xff]  ;;  %v14572_v63 = vld [vmem:[#allocation42_spill] sm:$0xff]  ;;  %v14573_v62 = vld [vmem:[#allocation51_spill] sm:$0xff] }
 0x356   : > { %v4361_v39 = vadd.f32 %v4360_v8, %v4359_v12  ;;  %v4365_v46 = vadd.f32 %v4364_v59, %v4363_v15  ;;  %v4370_v41 = vadd.f32 %v4264_v23, %v4262_v29  ;;  %14570 = vst [vmem:[#allocation41_spill] sm:$0xff] %v13056_v0  ;;  %v3510_v6 = vmul.f32 %v12363_v61, %v14571_v42  ;;  %v13068_v50 = vpop.f32.mrf.mxu0  ;;  %v14576_v15 = vld [vmem:[#allocation60_spill] sm:$0xff]  ;;  %v14582_v0 = vld [vmem:[#allocation67_spill] sm:$0xff] }
 0x357   : > { %v13060_v18 = vadd.f32 %v3623_v34, %v2874_v9  ;;  %v4265_v26 = vmul.f32 %v12541_v22, %v14572_v63  ;;  %v3511_v55 = vmul.f32 %v12393_v13, %v14573_v62  ;;  %14574 = vst [vmem:[#allocation38_spill] sm:$0xff] %v13068_v50  ;;  %v13073_v29 = vsel %vm3893_vm14, %v12917_v43, %v12949_v35  ;;  %v13080_v30 = vpop.f32.mrf.mxu1  ;;  %v14580_v63 = vld [vmem:[#allocation46_spill] sm:$0xff] }
 0x358   : > { %v13076_v12 = vadd.f32 %v4361_v39, %v12934_v17  ;;  %v4366_v9 = vrot.slane %v4365_v46, 2  ;;  %v4266_v61 = vmul.f32 %v12579_v54, %v14576_v15  ;;  %14577 = vst [vmem:[#allocation50_spill] sm:$0xff] %v13080_v30  ;;  %v13085_v13 = vsel %vm3893_vm14, %v12949_v35, %v12959_v32  ;;  %v13087_v34 = vpop.f32.mrf.mxu0  ;;  %v14579_v17 = vld [vmem:[#allocation34_spill] sm:$0xff] }
 0x359   : > { %v3625_v8 = vadd.f32 %v3624_v19, %v3510_v6  ;;  %v4378_v59 = vadd.f32 %v4265_v26, %v4263_v24  ;;  %v3633_v23 = vadd.f32 %v3632_v31, %v3511_v55  ;;  %14578 = vst [vmem:[#allocation40_spill] sm:$0xff] %v13087_v34  ;;  %v4987_v39 = vmul.f32 %v13045_v33, %v14579_v17  ;;  %v13093_v15 = vpop.f32.mrf.mxu1  ;;  %v14583_v32 = vld [vmem:[#allocation6_spill] sm:$0xff]  ;;  %v13101_v31 = vpop.permute.xlu1 %5724 }
 0x35a   : > { %14575 = vst [vmem:[#allocation7_spill] sm:$0xff] %v13076_v12  ;;  %v4367_v43 = vadd.f32 %v4366_v9, %v4365_v46  ;;  %v4371_v42 = vadd.f32 %v4370_v41, %v4266_v61  ;;  %v4267_v62 = vmul.f32 %v12582_v5, %v14580_v63  ;;  %14581 = vst [vmem:[#allocation26_spill] sm:$0xff] %v13093_v15  ;;  %v13099_v19 = vpop.f32.mrf.mxu0  ;;  %v13107_v9 = vpop.permute.xlu0 %5726 }
 0x35b   : > { %v3626_v12 = vrot.slane %v3625_v8, 4  ;;  %v3634_v50 = vrot.slane %v3633_v23, 4  ;;  %v4988_v35 = vmul.f32 %v13052_v27, %v14582_v0  ;;  %v4268_v24 = vmul.f32 %v12419_v57, %v14583_v32  ;;  %14584 = vst [vmem:[#allocation58_spill] sm:$0xff] %v13099_v19  ;;  %v13105_v55 = vpop.f32.mrf.mxu1 }
 0x35c   : > { %v4368_v46 = vrot.slane %v4367_v43, 1  ;;  %v4372_v41 = vrot.slane %v4371_v42, 4  ;;  %v4379_v6 = vadd.f32 %v4378_v59, %v4267_v62  ;;  %v4989_v26 = vmul.f32 %v13073_v29, %v12792_v51  ;;  %14585 = vst [vmem:[#allocation27_spill] sm:$0xff] %v13105_v55  ;;  %v13115_v63 = vpop.f32.mrf.mxu0 }
 0x35d   : > { %v3627_v61 = vadd.f32 %v3626_v12, %v3625_v8  ;;  %v3635_v17 = vadd.f32 %v3634_v50, %v3633_v23  ;;  %v13111_v0 = vmul.f32 %v12442_v3, %v12798_v1  ;;  %v4990_v57 = vmul.f32 %v13085_v13, %v12804_v47  ;;  %14586 = vst [vmem:[#allocation32_spill] sm:$0xff] %v13115_v63  ;;  %v13119_v51 = vpop.f32.mrf.mxu1  ;;  %v14588_v50 = vld [vmem:[#allocation39_spill] sm:$0xff] }
 0x35e   : > { %v4369_v32 = vadd.f32 %v4368_v46, %v4367_v43  ;;  %v4373_v59 = vadd.f32 %v4372_v41, %v4371_v42  ;;  %v4380_v62 = vrot.slane %v4379_v6, 4  ;;  %v13117_v34 = vadd.f32 %v4989_v26, %v4987_v39  ;;  %14587 = vst [vmem:[#allocation42_spill] sm:$0xff] %v13119_v51  ;;  %v13125_v1 = vpop.f32.mrf.mxu0 }
 0x35f   : > { %v3628_v55 = vrot.slane %v3627_v61, 2  ;;  %v3636_v19 = vrot.slane %v3635_v17, 2  ;;  %v13121_v12 = vadd.f32 %v4990_v57, %v4988_v35  ;;  %v4270_v3 = vmul.f32 %v12489_v14, %v14588_v50  ;;  %14589 = vst [vmem:[#allocation51_spill] sm:$0xff] %v13125_v1  ;;  %v13135_v42 = vpop.f32.mrf.mxu1  ;;  %v14593_v57 = vld [vmem:[#allocation10_spill] sm:$0xff] }
 0x360   : > { %v13130_v47 = vsel %vm3893_vm14, %v12986_v58, %v12990_v25  ;;  %v13133_v8 = vadd.f32 %v4369_v32, %v12951_v48  ;;  %v4374_v23 = vrot.slane %v4373_v59, 2  ;;  %v4381_v43 = vadd.f32 %v4380_v62, %v4379_v6  ;;  %14591 = vst [vmem:[#allocation34_spill] sm:$0xff] %v13135_v42  ;;  %v13144_v41 = vpop.f32.mrf.mxu0  ;;  %v13146_v58 = vpop.permute.xlu1 %5728 }
 0x361   : > { %v13140_v39 = vsel %vm3893_vm14, %v12990_v25, %v13010_v16  ;;  %v3629_v14 = vadd.f32 %v3628_v55, %v3627_v61  ;;  %v3637_v35 = vadd.f32 %v3636_v19, %v3635_v17  ;;  %v13142_v46 = vadd.f32 %v4270_v3, %v4268_v24  ;;  %14592 = vst [vmem:[#allocation46_spill] sm:$0xff] %v13144_v41  ;;  %v13152_v50 = vpop.f32.mrf.mxu1  ;;  %v13154_v25 = vpop.permute.xlu0 %5730  ;;  %v14597_v61 = vld [vmem:[#allocation12_spill] sm:$0xff] }
 0x362   : > { %14590 = vst [vmem:[#allocation60_spill] sm:$0xff] %v13133_v8  ;;  %v4375_v26 = vadd.f32 %v4374_v23, %v4373_v59  ;;  %v4382_v48 = vrot.slane %v4381_v43, 2  ;;  %v14594_v6 = vrot.slane %v14593_v57, 2  ;;  %v2737_v62 = vrot.slane %v12830_v4, 2  ;;  %14595 = vst [vmem:[#allocation67_spill] sm:$0xff] %v13152_v50  ;;  %v13160_v59 = vpop.f32.mrf.mxu0 }
 0x363   : > { %v3630_v16 = vrot.slane %v3629_v14, 1  ;;  %v3638_v19 = vrot.slane %v3637_v35, 1  ;;  %v14596_v24 = vrot.slane %v14556_v56, 4  ;;  %v4276_v17 = vrot.slane %v14597_v61, 4  ;;  %14598 = vst [vmem:[#allocation6_spill] sm:$0xff] %v13160_v59  ;;  %v14600_v59 = vld [vmem:[#allocation63_spill] sm:$0xff] }
 0x364   : > { %v1963_v32 = vadd.f32 %v14594_v6, %v14593_v57  ;;  %v4376_v3 = vrot.slane %v4375_v26, 1  ;;  %v4383_v23 = vadd.f32 %v4382_v48, %v4381_v43  ;;  %v2738_v57 = vadd.f32 %v2737_v62, %v12830_v4  ;;  %v13163_v6 = vpop.f32.mrf.mxu1  ;;  %v13166_v51 = vpop.f32.mrf.mxu0  ;;  %v14601_v48 = vld [vmem:[#allocation4_spill] sm:$0xff] }
 0x365   : > { %v3515_v55 = vadd.f32 %v14596_v24, %v14556_v56  ;;  %v3631_v50 = vadd.f32 %v3630_v16, %v3629_v14  ;;  %v3639_v42 = vadd.f32 %v3638_v19, %v3637_v35  ;;  %v4277_v1 = vadd.f32 %v4276_v17, %v14597_v61  ;;  %14599 = vst [vmem:[#allocation39_spill] sm:$0xff] %v13166_v51  ;;  %v13178_v16 = vpop.permute.xlu1 %5732 }
 0x366   : > { %v1964_v8 = vrot.slane %v1963_v32, 1  ;;  %v4377_v63 = vadd.f32 %v4376_v3, %v4375_v26  ;;  %v4384_v56 = vrot.slane %v4383_v23, 1  ;;  %v2739_v15 = vrot.slane %v2738_v57, 1  ;;  %v13168_v30 = vpop.f32.mrf.mxu1  ;;  %v13176_v35 = vpop.f32.mrf.mxu0 }
 0x367   : > { %v3516_v41 = vrot.slane %v3515_v55, 2  ;;  %v13171_v43 = vadd.f32 %v3631_v50, %v14600_v59  ;;  %v13174_v4 = vadd.f32 %v3639_v42, %v14601_v48  ;;  %v4278_v14 = vrot.slane %v4277_v1, 2  ;;  %v13186_v50 = vpop.permute.xlu0 %5734 }
 0x368   : > { %v1965_v24 = vadd.f32 %v1964_v8, %v1963_v32  ;;  %v13181_v19 = vadd.f32 %v4377_v63, %v13036_v20  ;;  %v4385_v26 = vadd.f32 %v4384_v56, %v4383_v23  ;;  %v14603_v8 = vld [vmem:[#allocation22_spill] sm:$0xff]  ;;  %v2740_v61 = vadd.f32 %v2739_v15, %v2738_v57  ;;  %v13184_v17 = vpop.f32.mrf.mxu1  ;;  %v13192_v3 = vpop.f32.mrf.mxu0  ;;  %v14607_v23 = vld [vmem:[#allocation56_spill] sm:$0xff] }
 0x369   : > { %v3517_v62 = vadd.f32 %v3516_v41, %v3515_v55  ;;  %14604 = vst [vmem:[#allocation12_spill] sm:$0xff] %v13184_v17  ;;  %v4279_v42 = vadd.f32 %v4278_v14, %v4277_v1  ;;  %v4991_v41 = vmul.f32 %v13130_v47, %v12814_v36  ;;  %v4271_v55 = vmul.f32 %v12541_v22, %v12819_v38 }
 0x36a   : > { %14602 = vst [vmem:[#allocation10_spill] sm:$0xff] %v13181_v19  ;;  %v2086_v32 = vadd.f32 %v1965_v24, %v14603_v8  ;;  %14605 = vst [vmem:[#allocation63_spill] sm:$0xff] %v13192_v3  ;;  %v13195_v20 = vadd.f32 %v4385_v26, %v13060_v18  ;;  %v14608_v15 = vrot.slane %v14607_v23, 2  ;;  %v2745_v56 = vrot.slane %v12932_v7, 2  ;;  %v13201_v24 = vpop.f32.mrf.mxu1  ;;  %v13205_v38 = vpop.f32.mrf.mxu0 }
 0x36b   : > { %v3518_v59 = vrot.slane %v3517_v62, 1  ;;  %14609 = vst [vmem:[#allocation22_spill] sm:$0xff] %v13201_v24  ;;  %v4280_v48 = vrot.slane %v4279_v42, 1  ;;  %v5036_v36 = vadd.f32 %v13117_v34, %v4991_v41  ;;  %v4394_v22 = vadd.f32 %v4271_v55, %v13111_v0  ;;  %14610 = vst [vmem:[#allocation56_spill] sm:$0xff] %v13205_v38  ;;  %v13218_v41 = vpop.permute.xlu1 %6479 }
 0x36c   : > { %14606 = vst [vmem:[#allocation4_spill] sm:$0xff] %v13195_v20  ;;  %v2861_v63 = vadd.f32 %v2740_v61, %v2086_v32  ;;  %v1971_v57 = vadd.f32 %v14608_v15, %v14607_v23  ;;  %v2746_v18 = vadd.f32 %v2745_v56, %v12932_v7  ;;  %v14611_v26 = vrot.slane %v14561_v40, 4  ;;  %v14612_v32 = vld [vmem:[#allocation44_spill] sm:$0xff]  ;;  %v13212_v23 = vpop.f32.mrf.mxu1  ;;  %v13216_v0 = vpop.f32.mrf.mxu0 }
 0x36d   : > { %v3519_v1 = vadd.f32 %v3518_v59, %v3517_v62  ;;  %v4284_v61 = vrot.slane %v14612_v32, 4  ;;  %14613 = vst [vmem:[#allocation44_spill] sm:$0xff] %v13212_v23  ;;  %v4281_v62 = vadd.f32 %v4280_v48, %v4279_v42  ;;  %v5037_v59 = vrot.slane %v5036_v36, 4  ;;  %v14614_v20 = vld [vmem:[#allocation8_spill] sm:$0xff] }
 0x36e   : > { %v1972_v14 = vrot.slane %v1971_v57, 1  ;;  %v3523_v8 = vadd.f32 %v14611_v26, %v14561_v40  ;;  %v4992_v34 = vmul.f32 %v13140_v39, %v14614_v20  ;;  %14615 = vst [vmem:[#allocation8_spill] sm:$0xff] %v13216_v0  ;;  %v2747_v7 = vrot.slane %v2746_v18, 1  ;;  %v13221_v40 = vpop.f32.mrf.mxu1  ;;  %v13223_v26 = vpop.permute.xlu0 %6481  ;;  %v14619_v0 = vld [vmem:[#allocation2_spill] sm:$0xff] }
 0x36f   : > { %v3640_v15 = vadd.f32 %v3519_v1, %v2861_v63  ;;  %v4285_v19 = vadd.f32 %v4284_v61, %v14612_v32  ;;  %14616 = vst [vmem:[#allocation74_spill] sm:$0xff] %v13221_v40  ;;  %v5038_v63 = vadd.f32 %v5037_v59, %v5036_v36  ;;  %v14617_v1 = vld [vmem:[#allocation52_spill] sm:$0xff]  ;;  %v13228_v48 = vpop.f32.mrf.mxu0  ;;  %v14621_v32 = vld [vmem:[#allocation21_spill] sm:$0xff] }
 0x370   : > { %v1973_v55 = vadd.f32 %v1972_v14, %v1971_v57  ;;  %v3524_v56 = vrot.slane %v3523_v8, 2  ;;  %v5044_v42 = vadd.f32 %v13121_v12, %v4992_v34  ;;  %v4272_v20 = vmul.f32 %v12579_v54, %v14617_v1  ;;  %14618 = vst [vmem:[#allocation52_spill] sm:$0xff] %v13228_v48  ;;  %v13231_v3 = vpop.f32.mrf.mxu1  ;;  %v14623_v12 = vld [vmem:[#allocation47_spill] sm:$0xff] }
 0x371   : > { %v4402_v23 = vadd.f32 %v4281_v62, %v3640_v15  ;;  %v2748_v57 = vadd.f32 %v2747_v7, %v2746_v18  ;;  %v4286_v38 = vrot.slane %v4285_v19, 2  ;;  %14620 = vst [vmem:[#allocation2_spill] sm:$0xff] %v13231_v3  ;;  %v3530_v61 = vrot.slane %v14621_v32, 4  ;;  %v13235_v15 = vpop.f32.mrf.mxu0 }
 0x372   : > { %v2087_v51 = vadd.f32 %v1973_v55, %v14619_v0  ;;  %v3525_v14 = vadd.f32 %v3524_v56, %v3523_v8  ;;  %v5039_v40 = vrot.slane %v5038_v63, 2  ;;  %v5045_v24 = vrot.slane %v5044_v42, 4  ;;  %14622 = vst [vmem:[#allocation21_spill] sm:$0xff] %v13235_v15  ;;  %v13238_v1 = vpop.f32.mrf.mxu1  ;;  %v14625_v55 = vld [vmem:[#allocation29_spill] sm:$0xff] }
 0x373   : > { %v4387_v36 = vadd.f32 %v13142_v46, %v4272_v20  ;;  %v4287_v34 = vadd.f32 %v4286_v38, %v4285_v19  ;;  %14624 = vst [vmem:[#allocation47_spill] sm:$0xff] %v13238_v1  ;;  %v4273_v7 = vmul.f32 %v12582_v5, %v14625_v55  ;;  %v13242_v56 = vpop.f32.mrf.mxu0  ;;  %v13247_v46 = vsel %vm3131_vm13, %v13017_v45, %v13054_v2  ;;  %v13254_v19 = vpop.permute.xlu1 %6483 }
 0x374   : > { %v2862_v54 = vadd.f32 %v2748_v57, %v2087_v51  ;;  %v3526_v59 = vrot.slane %v3525_v14, 1  ;;  %v5040_v18 = vadd.f32 %v5039_v40, %v5038_v63  ;;  %v5046_v8 = vadd.f32 %v5045_v24, %v5044_v42  ;;  %14626 = vst [vmem:[#allocation29_spill] sm:$0xff] %v13242_v56  ;;  %v13256_v40 = vpop.f32.mrf.mxu1  ;;  %v13258_v63 = vpop.permute.xlu0 %6485 }
 0x375   : > { %v4388_v0 = vrot.slane %v4387_v36, 4  ;;  %v13252_v51 = vsel %vm3131_vm13, %v13054_v2, %v13058_v10  ;;  %v4288_v24 = vrot.slane %v4287_v34, 1  ;;  %14627 = vst [vmem:[#allocation75_spill] sm:$0xff] %v13256_v40  ;;  %v4395_v57 = vadd.f32 %v4394_v22, %v4273_v7  ;;  %v13260_v55 = vpop.f32.mrf.mxu0 }
 0x376   : > { %v3527_v38 = vadd.f32 %v3526_v59, %v3525_v14  ;;  %v5041_v5 = vrot.slane %v5040_v18, 1  ;;  %v5047_v42 = vrot.slane %v5046_v8, 2  ;;  %14628 = vst [vmem:[#allocation76_spill] sm:$0xff] %v13260_v55  ;;  %v13265_v45 = vsel %vm3131_vm13, %v13101_v31, %v13107_v9  ;;  %v13269_v59 = vpop.f32.mrf.mxu1  ;;  %v14642_v55 = vld [vmem:[#allocation33_spill] sm:$0xff] }
 0x377   : > { %v4389_v20 = vadd.f32 %v4388_v0, %v4387_v36  ;;  %v4289_v2 = vadd.f32 %v4288_v24, %v4287_v34  ;;  %v4995_v14 = vmul.f32 %v13073_v29, %v12869_v53  ;;  %14629 = vst [vmem:[#allocation77_spill] sm:$0xff] %v13269_v59  ;;  %v4396_v40 = vrot.slane %v4395_v57, 4  ;;  %v13271_v36 = vpop.f32.mrf.mxu0  ;;  %v14631_v53 = vld [vmem:[#allocation57_spill] sm:$0xff] }
 0x378   : > { %v3641_v10 = vadd.f32 %v3527_v38, %v2862_v54  ;;  %v5042_v62 = vadd.f32 %v5041_v5, %v5040_v18  ;;  %v5048_v15 = vadd.f32 %v5047_v42, %v5046_v8  ;;  %14630 = vst [vmem:[#allocation78_spill] sm:$0xff] %v13271_v36  ;;  %v13276_v22 = vsel %vm3131_vm13, %v13107_v9, %v13146_v58  ;;  %v13285_v18 = vpop.f32.mrf.mxu1  ;;  %v13296_v58 = vpop.permute.xlu1 %6487  ;;  %v14634_v5 = vld [vmem:[#allocation64_spill] sm:$0xff] }
 0x379   : > { %v4390_v48 = vrot.slane %v4389_v20, 2  ;;  %v13281_v31 = vsel %vm3131_vm13, %v13154_v25, %v13178_v16  ;;  %v4993_v34 = vmul.f32 %v13045_v33, %v14631_v53  ;;  %14632 = vst [vmem:[#allocation57_spill] sm:$0xff] %v13285_v18  ;;  %v4397_v38 = vadd.f32 %v4396_v40, %v4395_v57  ;;  %v13289_v24 = vpop.f32.mrf.mxu0  ;;  %v14635_v57 = vld [vmem:[#allocation65_spill] sm:$0xff] }
 0x37a   : > { %v4403_v54 = vadd.f32 %v4289_v2, %v3641_v10  ;;  %v13287_v8 = vadd.f32 %v5042_v62, %v4402_v23  ;;  %v5049_v0 = vrot.slane %v5048_v15, 1  ;;  %14633 = vst [vmem:[#allocation79_spill] sm:$0xff] %v13289_v24  ;;  %v13294_v9 = vsel %vm3131_vm13, %v13178_v16, %v13186_v50  ;;  %v13304_v62 = vpop.permute.xlu0 %6489  ;;  %v13309_v50 = vpop.f32.mrf.mxu1  ;;  %v14638_v2 = vld [vmem:[#allocation23_spill] sm:$0xff] }
 0x37b   : > { %v4391_v7 = vadd.f32 %v4390_v48, %v4389_v20  ;;  %v4994_v25 = vmul.f32 %v13052_v27, %v12860_v60  ;;  %v13302_v42 = vmul.f32 %v13247_v46, %v14634_v5  ;;  %v5051_v23 = vadd.f32 %v4995_v14, %v4993_v34  ;;  %14637 = vst [vmem:[#allocation64_spill] sm:$0xff] %v13309_v50  ;;  %v14639_v60 = vld [vmem:[#allocation48_spill] sm:$0xff]  ;;  %v14640_v24 = vld [vmem:[#allocation31_spill] sm:$0xff]  ;;  %v13316_v34 = vpop.f32.mrf.mxu0 }
 0x37c   : > { %v5050_v48 = vadd.f32 %v5049_v0, %v5048_v15  ;;  %v4398_v20 = vrot.slane %v4397_v38, 2  ;;  %v14636_v10 = vrot.slane %v14635_v57, 2  ;;  %v4996_v53 = vmul.f32 %v13085_v13, %v14638_v2  ;;  %14641 = vst [vmem:[#allocation65_spill] sm:$0xff] %v13316_v34 }
 0x37d   : > { %v4392_v40 = vrot.slane %v4391_v7, 1  ;;  %v2753_v18 = vrot.slane %v14639_v60, 2  ;;  %v3531_v5 = vadd.f32 %v3530_v61, %v14621_v32  ;;  %v4292_v14 = vrot.slane %v14640_v24, 4  ;;  %v14644_v61 = vld [vmem:[#allocation35_spill] sm:$0xff] }
 0x37e   : > { %v1979_v16 = vadd.f32 %v14636_v10, %v14635_v57  ;;  %v13318_v15 = vadd.f32 %v5050_v48, %v4403_v54  ;;  %v4399_v36 = vadd.f32 %v4398_v20, %v4397_v38  ;;  %v4997_v2 = vmul.f32 %v13130_v47, %v14642_v55  ;;  %v13329_v48 = vpop.f32.mrf.mxu1 }
 0x37f   : > { %v4393_v0 = vadd.f32 %v4392_v40, %v4391_v7  ;;  %v2754_v57 = vadd.f32 %v2753_v18, %v14639_v60  ;;  %v3532_v10 = vrot.slane %v3531_v5, 2  ;;  %v4293_v50 = vadd.f32 %v4292_v14, %v14640_v24  ;;  %14645 = vst [vmem:[#allocation48_spill] sm:$0xff] %v13329_v48  ;;  %v13331_v7 = vpop.permute.xlu1 %6491  ;;  %v13333_v24 = vpop.f32.mrf.mxu0 }
 0x380   : > { %v1980_v59 = vrot.slane %v1979_v16, 1  ;;  %v4400_v32 = vrot.slane %v4399_v36, 1  ;;  %v5749_v34 = vmul.f32 %v13252_v51, %v14644_v61  ;;  %v5059_v38 = vadd.f32 %v4996_v53, %v4994_v25  ;;  %14646 = vst [vmem:[#allocation31_spill] sm:$0xff] %v13333_v24  ;;  %v13335_v60 = vpop.permute.xlu0 %6493  ;;  %v14649_v61 = vld [vmem:[#allocation55_spill] sm:$0xff]  ;;  %v13343_v48 = vpop.f32.mrf.mxu1 }
 0x381   : > { %v13325_v56 = vadd.f32 %v4393_v0, %v13171_v43  ;;  %v2755_v18 = vrot.slane %v2754_v57, 1  ;;  %v3533_v40 = vadd.f32 %v3532_v10, %v3531_v5  ;;  %v4294_v20 = vrot.slane %v4293_v50, 2  ;;  %v14647_v43 = vld [vmem:[#allocation68_spill] sm:$0xff]  ;;  %v14648_v0 = vld [vmem:[#allocation14_spill] sm:$0xff]  ;;  %14651 = vst [vmem:[#allocation33_spill] sm:$0xff] %v13343_v48 }
 0x382   : > { %v1981_v54 = vadd.f32 %v1980_v59, %v1979_v16  ;;  %v4401_v55 = vadd.f32 %v4400_v32, %v4399_v36  ;;  %v5750_v14 = vmul.f32 %v13265_v45, %v14647_v43  ;;  %v14650_v59 = vrot.slane %v14649_v61, 2 }
 0x383   : > { %14643 = vst [vmem:[#allocation23_spill] sm:$0xff] %v13325_v56  ;;  %v2756_v25 = vadd.f32 %v2755_v18, %v2754_v57  ;;  %v3534_v53 = vrot.slane %v3533_v40, 1  ;;  %v4295_v5 = vadd.f32 %v4294_v20, %v4293_v50  ;;  %v5052_v10 = vadd.f32 %v5051_v23, %v4997_v2  ;;  %v13354_v57 = vpop.f32.mrf.mxu0  ;;  %v13356_v50 = vpop.f32.mrf.mxu1  ;;  %v14657_v18 = vld [vmem:[#allocation49_spill] sm:$0xff] }
 0x384   : > { %v2088_v56 = vadd.f32 %v1981_v54, %v14648_v0  ;;  %v1987_v16 = vadd.f32 %v14650_v59, %v14649_v61  ;;  %v13346_v24 = vadd.f32 %v4401_v55, %v13174_v4  ;;  %v2761_v36 = vrot.slane %v12941_v21, 2  ;;  %v14654_v61 = vld [vmem:[#allocation28_spill] sm:$0xff]  ;;  %14655 = vst [vmem:[#allocation68_spill] sm:$0xff] %v13354_v57  ;;  %14656 = vst [vmem:[#allocation14_spill] sm:$0xff] %v13356_v50 }
 0x385   : > { %v14653_v32 = vrot.slane %v14623_v12, 4  ;;  %v3535_v0 = vadd.f32 %v3534_v53, %v3533_v40  ;;  %v4296_v3 = vrot.slane %v4295_v5, 1  ;;  %v5751_v59 = vmul.f32 %v13276_v22, %v14654_v61  ;;  %v13362_v40 = vpop.f32.mrf.mxu0  ;;  %v13366_v53 = vpop.permute.xlu1 %6495 }
 0x386   : > { %14652 = vst [vmem:[#allocation35_spill] sm:$0xff] %v13346_v24  ;;  %v1988_v1 = vrot.slane %v1987_v16, 1  ;;  %v2863_v43 = vadd.f32 %v2756_v25, %v2088_v56  ;;  %v2762_v4 = vadd.f32 %v2761_v36, %v12941_v21  ;;  %v4300_v20 = vrot.slane %v14657_v18, 4  ;;  %14659 = vst [vmem:[#allocation55_spill] sm:$0xff] %v13362_v40  ;;  %v13364_v25 = vpop.f32.mrf.mxu1 }
 0x387   : > { %v3539_v54 = vadd.f32 %v14653_v32, %v14623_v12  ;;  %v4297_v24 = vadd.f32 %v4296_v3, %v4295_v5  ;;  %v5053_v48 = vrot.slane %v5052_v10, 4  ;;  %v14658_v12 = vld [vmem:[#allocation43_spill] sm:$0xff]  ;;  %14660 = vst [vmem:[#allocation28_spill] sm:$0xff] %v13364_v25  ;;  %v13368_v32 = vpop.permute.xlu0 %7240  ;;  %v5796_v3 = vadd.f32 %v5750_v14, %v13302_v42  ;;  %v13377_v40 = vpop.f32.mrf.mxu0 }
 0x388   : > { %v1989_v23 = vadd.f32 %v1988_v1, %v1987_v16  ;;  %v3642_v55 = vadd.f32 %v3535_v0, %v2863_v43  ;;  %v4998_v56 = vmul.f32 %v13140_v39, %v14658_v12  ;;  %v14661_v1 = vld [vmem:[#allocation17_spill] sm:$0xff]  ;;  %v2763_v21 = vrot.slane %v2762_v4, 1  ;;  %14663 = vst [vmem:[#allocation49_spill] sm:$0xff] %v13377_v40  ;;  %v13379_v25 = vpop.f32.mrf.mxu1 }
 0x389   : > { %v3540_v2 = vrot.slane %v3539_v54, 2  ;;  %v4301_v61 = vadd.f32 %v4300_v20, %v14657_v18  ;;  %v14662_v0 = vld [vmem:[#allocation61_spill] sm:$0xff]  ;;  %14664 = vst [vmem:[#allocation43_spill] sm:$0xff] %v13379_v25  ;;  %v5804_v50 = vadd.f32 %v5751_v59, %v5749_v34  ;;  %v14665_v18 = vld [vmem:[#allocation30_spill] sm:$0xff]  ;;  %vm7482_vm13 = vcmask 1043459  }
 0x38a   : > { %v2089_v16 = vadd.f32 %v1989_v23, %v14661_v1  ;;  %v13373_v5 = vadd.f32 %v4297_v24, %v3642_v55  ;;  %v5060_v43 = vadd.f32 %v5059_v38, %v4998_v56  ;;  %v5752_v12 = vmul.f32 %v13281_v31, %v14662_v0  ;;  %v13385_v24 = vpop.f32.mrf.mxu0  ;;  %v13387_v38 = vpop.f32.mrf.mxu1  ;;  %v14675_v25 = vld [vmem:[#allocation9_spill] sm:$0xff] }
 0x38b   : > { %v3541_v36 = vadd.f32 %v3540_v2, %v3539_v54  ;;  %v2764_v57 = vadd.f32 %v2763_v21, %v2762_v4  ;;  %v4302_v23 = vrot.slane %v4301_v61, 2  ;;  %v13381_v1 = vadd.f32 %v5053_v48, %v5052_v10  ;;  %14666 = vst [vmem:[#allocation17_spill] sm:$0xff] %v13385_v24  ;;  %14667 = vst [vmem:[#allocation61_spill] sm:$0xff] %v13387_v38  ;;  %v13393_v48 = vpop.permute.xlu1 %7242  ;;  %v13395_v10 = vpop.permute.xlu0 %7244 }
 0x38c   : > { %v5061_v54 = vrot.slane %v5060_v43, 4  ;;  %v5797_v2 = vadd.f32 %v5796_v3, %v5752_v12  ;;  %v5753_v42 = vmul.f32 %v13294_v9, %v14665_v18  ;;  %v13389_v59 = vpop.f32.mrf.mxu0  ;;  %v13391_v4 = vpop.f32.mrf.mxu1  ;;  %v14670_v12 = vld [vmem:[#allocation15_spill] sm:$0xff] }
 0x38d   : > { %v3542_v17 = vrot.slane %v3541_v36, 1  ;;  %v2864_v14 = vadd.f32 %v2764_v57, %v2089_v16  ;;  %v4303_v55 = vadd.f32 %v4302_v23, %v4301_v61  ;;  %14668 = vst [vmem:[#allocation30_spill] sm:$0xff] %v13389_v59  ;;  %14669 = vst [vmem:[#allocation80_spill] sm:$0xff] %v13391_v4  ;;  %v5001_v18 = vmul.f32 %v13073_v29, %v14670_v12  ;;  %v14673_v23 = vld [vmem:[#allocation62_spill] sm:$0xff] }
 0x38e   : > { %v5062_v56 = vadd.f32 %v5061_v54, %v5060_v43  ;;  %v5798_v0 = vrot.slane %v5797_v2, 4  ;;  %v5805_v34 = vadd.f32 %v5804_v50, %v5753_v42  ;;  %v5055_v57 = vrot.slane %v13381_v1, 2  ;;  %v13400_v61 = vpop.f32.mrf.mxu0  ;;  %v13402_v50 = vpop.f32.mrf.mxu1  ;;  %v14674_v42 = vld [vmem:[#allocation11_spill] sm:$0xff] }
 0x38f   : > { %v3543_v20 = vadd.f32 %v3542_v17, %v3541_v36  ;;  %v4304_v3 = vrot.slane %v4303_v55, 1  ;;  %14671 = vst [vmem:[#allocation15_spill] sm:$0xff] %v13400_v61  ;;  %14672 = vst [vmem:[#allocation81_spill] sm:$0xff] %v13402_v50  ;;  %v4999_v54 = vmul.f32 %v13045_v33, %v14673_v23  ;;  %v14677_v50 = vld [vmem:[#allocation36_spill] sm:$0xff]  ;;  %v14678_v23 = vld [vmem:[#allocation45_spill] sm:$0xff] }
 0x390   : > { %v5063_v17 = vrot.slane %v5062_v56, 2  ;;  %v5799_v16 = vadd.f32 %v5798_v0, %v5797_v2  ;;  %v5806_v36 = vrot.slane %v5805_v34, 4  ;;  %v5756_v2 = vmul.f32 %v13265_v45, %v14675_v25  ;;  %v13412_v0 = vpop.f32.mrf.mxu0  ;;  %v7247_v25 = vpop.permute.xlu1 %7246 }
 0x391   : > { %v3643_v21 = vadd.f32 %v3543_v20, %v2864_v14  ;;  %v4305_v43 = vadd.f32 %v4304_v3, %v4303_v55  ;;  %v5000_v14 = vmul.f32 %v13052_v27, %v14674_v42  ;;  %v5002_v20 = vmul.f32 %v13085_v13, %v12938_v49  ;;  %14676 = vst [vmem:[#allocation62_spill] sm:$0xff] %v13412_v0  ;;  %v13418_v42 = vpop.f32.mrf.mxu1 }
 0x392   : > { %v5064_v12 = vadd.f32 %v5063_v17, %v5062_v56  ;;  %v5800_v59 = vrot.slane %v5799_v16, 2  ;;  %v5807_v38 = vadd.f32 %v5806_v36, %v5805_v34  ;;  %v5754_v55 = vmul.f32 %v13247_v46, %v14677_v50  ;;  %14679 = vst [vmem:[#allocation11_spill] sm:$0xff] %v13418_v42  ;;  %v14680_v17 = vld [vmem:[#allocation19_spill] sm:$0xff]  ;;  %v13422_v36 = vpop.f32.mrf.mxu0  ;;  %v13430_v42 = vpop.permute.xlu0 %7248 }
 0x393   : > { %v4405_v61 = vadd.f32 %v4305_v43, %v3643_v21  ;;  %v5067_v3 = vadd.f32 %v5001_v18, %v4999_v54  ;;  %v5003_v4 = vmul.f32 %v13130_v47, %v14678_v23  ;;  %v5075_v56 = vadd.f32 %v5002_v20, %v5000_v14  ;;  %14681 = vst [vmem:[#allocation9_spill] sm:$0xff] %v13422_v36  ;;  %v14682_v43 = vld [vmem:[#allocation5_spill] sm:$0xff]  ;;  %v14683_v18 = vld [vmem:[#allocation18_spill] sm:$0xff]  ;;  %v13428_v23 = vpop.f32.mrf.mxu1  ;;  %v14684_v20 = vld [vmem:[#allocation24_spill] sm:$0xff] }
 0x394   : > { %v5065_v24 = vrot.slane %v5064_v12, 1  ;;  %v5801_v49 = vadd.f32 %v5800_v59, %v5799_v16  ;;  %v5757_v34 = vmul.f32 %v13276_v22, %v14680_v17  ;;  %v5812_v0 = vadd.f32 %v5756_v2, %v5754_v55  ;;  %v13434_v36 = vpop.f32.mrf.mxu0 }
 0x395   : > { %v5068_v21 = vadd.f32 %v5067_v3, %v5003_v4  ;;  %v5004_v50 = vmul.f32 %v13140_v39, %v14682_v43  ;;  %v5758_v54 = vmul.f32 %v13281_v31, %v14683_v18  ;;  %v5808_v14 = vrot.slane %v5807_v38, 2  ;;  %v14685_v3 = vld [vmem:[#allocation69_spill] sm:$0xff]  ;;  %v13438_v40 = vpop.f32.mrf.mxu1 }
 0x396   : > { %v5066_v59 = vadd.f32 %v5065_v24, %v5064_v12  ;;  %v5802_v16 = vrot.slane %v5801_v49, 1  ;;  %v5755_v17 = vmul.f32 %v13252_v51, %v14684_v20  ;;  %v5759_v43 = vmul.f32 %v13294_v9, %v14685_v3  ;;  %14686 = vst [vmem:[#allocation36_spill] sm:$0xff] %v13438_v40 }
 0x397   : > { %v5069_v2 = vrot.slane %v5068_v21, 4  ;;  %v5076_v4 = vadd.f32 %v5075_v56, %v5004_v50  ;;  %v5813_v55 = vadd.f32 %v5812_v0, %v5758_v54  ;;  %v13443_v18 = vsel %vm3893_vm14, %v13218_v41, %v13223_v26  ;;  %v13452_v56 = vpop.f32.mrf.mxu0  ;;  %v13455_v40 = vpop.f32.mrf.mxu1 }
 0x398   : > { %v13448_v24 = vsel %vm3893_vm14, %v13223_v26, %v13254_v19  ;;  %v13450_v12 = vadd.f32 %v5066_v59, %v4405_v61  ;;  %v5803_v20 = vadd.f32 %v5802_v16, %v5801_v49  ;;  %v5056_v0 = vadd.f32 %v5055_v57, %v13381_v1  ;;  %14687 = vst [vmem:[#allocation45_spill] sm:$0xff] %v13455_v40  ;;  %v14689_v61 = vld [vmem:[#allocation73_spill] sm:$0xff] }
 0x399   : > { %v5070_v50 = vadd.f32 %v5069_v2, %v5068_v21  ;;  %v5820_v54 = vadd.f32 %v5757_v34, %v5755_v17  ;;  %v5077_v3 = vrot.slane %v5076_v4, 4  ;;  %v13460_v41 = vsel %vm3893_vm14, %v13258_v63, %v13296_v58  ;;  %v13472_v57 = vpop.f32.mrf.mxu0  ;;  %v7251_v63 = vpop.permute.xlu1 %7250  ;;  %v14693_v17 = vld [vmem:[#allocation66_spill] sm:$0xff] }
 0x39a   : > { %v13465_v26 = vsel %vm3893_vm14, %v13296_v58, %v13304_v62  ;;  %v13468_v19 = vadd.f32 %v5803_v20, %v13287_v8  ;;  %v5007_v1 = vmul.f32 %v13073_v29, %v14689_v61  ;;  %14690 = vst [vmem:[#allocation5_spill] sm:$0xff] %v13472_v57  ;;  %v13477_v49 = vsel %vm3893_vm14, %v13331_v7, %v13335_v60  ;;  %v13479_v16 = vpop.f32.mrf.mxu1  ;;  %v7253_v62 = vpop.permute.xlu0 %7252 }
 0x39b   : > { %v5809_v34 = vadd.f32 %v5808_v14, %v5807_v38  ;;  %v5814_v21 = vrot.slane %v5813_v55, 4  ;;  %v5821_v59 = vadd.f32 %v5820_v54, %v5759_v43  ;;  %14691 = vst [vmem:[#allocation18_spill] sm:$0xff] %v13479_v16  ;;  %v13484_v8 = vsel %vm3893_vm14, %v13335_v60, %v13366_v53  ;;  %v13495_v14 = vpop.f32.mrf.mxu0 }
 0x39c   : > { %14688 = vst [vmem:[#allocation19_spill] sm:$0xff] %v13468_v19  ;;  %v13489_v58 = vsel %vm3893_vm14, %v13368_v32, %v13393_v48  ;;  %v5005_v7 = vmul.f32 %v13045_v33, %v14693_v17  ;;  %v5008_v38 = vmul.f32 %v13085_v13, %v13003_v11  ;;  %14694 = vst [vmem:[#allocation69_spill] sm:$0xff] %v13495_v14  ;;  %v5057_v60 = vrot.slane %v5056_v0, 1  ;;  %v13502_v20 = vpop.f32.mrf.mxu1  ;;  %v14697_v32 = vld [vmem:[#allocation70_spill] sm:$0xff]  ;;  %v14698_v11 = vld [vmem:[#allocation59_spill] sm:$0xff] }
 0x39d   : > { %14692 = vst [vmem:[#allocation24_spill] sm:$0xff] %v13489_v58  ;;  %v13500_v2 = vsel %vm3893_vm14, %v13393_v48, %v13395_v10  ;;  %v5071_v53 = vrot.slane %v5070_v50, 2  ;;  %v5078_v43 = vadd.f32 %v5077_v3, %v5076_v4  ;;  %14696 = vst [vmem:[#allocation66_spill] sm:$0xff] %v13502_v20  ;;  %v5006_v54 = vmul.f32 %v13052_v27, %v14697_v32  ;;  %v13510_v14 = vpop.f32.mrf.mxu0  ;;  %v14702_v58 = vld [vmem:[#allocation71_spill] sm:$0xff]  ;;  %v7255_v57 = vpop.permute.xlu1 %7254 }
 0x39e   : > { %14695 = vst [vmem:[#allocation73_spill] sm:$0xff] %v13500_v2  ;;  %v5083_v61 = vadd.f32 %v5007_v1, %v5005_v7  ;;  %v5762_v17 = vmul.f32 %v13265_v45, %v13008_v44  ;;  %v5009_v19 = vmul.f32 %v13130_v47, %v14698_v11  ;;  %14699 = vst [vmem:[#allocation70_spill] sm:$0xff] %v13510_v14  ;;  %v5810_v10 = vrot.slane %v5809_v34, 1  ;;  %v13516_v2 = vpop.f32.mrf.mxu1 }
 0x39f   : > { %v13514_v48 = vsel %vm3893_vm14, %v7247_v25, %v13430_v42  ;;  %v5815_v4 = vadd.f32 %v5814_v21, %v5813_v55  ;;  %v5822_v3 = vrot.slane %v5821_v59, 4  ;;  %14701 = vst [vmem:[#allocation82_spill] sm:$0xff] %v13516_v2  ;;  %v5760_v1 = vmul.f32 %v13247_v46, %v14702_v58  ;;  %v13522_v11 = vpop.f32.mrf.mxu0  ;;  %v7257_v2 = vpop.permute.xlu0 %7256 }
 0x3a0   : > { %14700 = vst [vmem:[#allocation59_spill] sm:$0xff] %v13514_v48  ;;  %v5091_v7 = vadd.f32 %v5008_v38, %v5006_v54  ;;  %v5084_v32 = vadd.f32 %v5083_v61, %v5009_v19  ;;  %v5010_v44 = vmul.f32 %v13140_v39, %v13026_v52  ;;  %v5058_v40 = vadd.f32 %v5057_v60, %v5056_v0  ;;  %v14703_v48 = vld [vmem:[#allocation20_spill] sm:$0xff]  ;;  %v13526_v21 = vpop.f32.mrf.mxu1  ;;  %v14705_v0 = vld [vmem:[#allocation13_spill] sm:$0xff] }
 0x3a1   : > { %v5072_v14 = vadd.f32 %v5071_v53, %v5070_v50  ;;  %v5079_v25 = vrot.slane %v5078_v43, 2  ;;  %v5763_v55 = vmul.f32 %v13276_v22, %v14703_v48  ;;  %14704 = vst [vmem:[#allocation71_spill] sm:$0xff] %v13526_v21  ;;  %v5828_v20 = vadd.f32 %v5762_v17, %v5760_v1  ;;  %v13530_v38 = vpop.f32.mrf.mxu0 }
 0x3a2   : > { %v5085_v16 = vrot.slane %v5084_v32, 4  ;;  %v5092_v58 = vadd.f32 %v5091_v7, %v5010_v44  ;;  %v5764_v19 = vmul.f32 %v13281_v31, %v13034_v37  ;;  %v5811_v52 = vadd.f32 %v5810_v10, %v5809_v34  ;;  %v13536_v17 = vpop.f32.mrf.mxu1  ;;  %v14711_v44 = vld [vmem:[#allocation53_spill] sm:$0xff] }
 0x3a3   : > { %v5816_v54 = vrot.slane %v5815_v4, 2  ;;  %v5823_v61 = vadd.f32 %v5822_v3, %v5821_v59  ;;  %v5761_v50 = vmul.f32 %v13252_v51, %v14705_v0  ;;  %v5765_v21 = vmul.f32 %v13294_v9, %v13047_v28  ;;  %14706 = vst [vmem:[#allocation20_spill] sm:$0xff] %v13536_v17  ;;  %v13538_v1 = vpop.f32.mrf.mxu0  ;;  %v14722_v17 = vld [vmem:[#allocation32_spill] sm:$0xff] }
 0x3a4   : > { %v5086_v60 = vadd.f32 %v5085_v16, %v5084_v32  ;;  %v5093_v53 = vrot.slane %v5092_v58, 4  ;;  %v5829_v48 = vadd.f32 %v5828_v20, %v5764_v19  ;;  %14707 = vst [vmem:[#allocation13_spill] sm:$0xff] %v13538_v1  ;;  %v13542_v37 = vsel %vm3893_vm14, %v13430_v42, %v7251_v63  ;;  %v14712_v19 = vld [vmem:[#allocation50_spill] sm:$0xff] }
 0x3a5   : > { %v13545_v34 = vsel %vm3893_vm14, %v7253_v62, %v7255_v57  ;;  %v13548_v59 = vsel %vm3893_vm14, %v7255_v57, %v7257_v2  ;;  %v5836_v16 = vadd.f32 %v5763_v55, %v5761_v50  ;;  %v13551_v20 = vadd.f32 %v5058_v40, %v13373_v5  ;;  %v13553_v7 = vpop.f32.mrf.mxu0  ;;  %v13562_v5 = vpop.f32.mrf.mxu1  ;;  %v14717_v50 = vld [vmem:[#allocation58_spill] sm:$0xff] }
 0x3a6   : > { %14708 = vst [vmem:[#allocation83_spill] sm:$0xff] %v13545_v34  ;;  %14709 = vst [vmem:[#allocation84_spill] sm:$0xff] %v13548_v59  ;;  %v5073_v10 = vrot.slane %v5072_v14, 1  ;;  %v5080_v28 = vadd.f32 %v5079_v25, %v5078_v43  ;;  %v5094_v3 = vadd.f32 %v5093_v53, %v5092_v58  ;;  %v5830_v32 = vrot.slane %v5829_v48, 4  ;;  %v14716_v58 = vld [vmem:[#allocation26_spill] sm:$0xff]  ;;  %v14718_v53 = vld [vmem:[#allocation27_spill] sm:$0xff] }
 0x3a7   : > { %14710 = vst [vmem:[#allocation85_spill] sm:$0xff] %v13553_v7  ;;  %v5011_v42 = vmul.f32 %v13045_v33, %v14711_v44  ;;  %v5837_v63 = vadd.f32 %v5836_v16, %v5765_v21  ;;  %v5013_v62 = vmul.f32 %v13073_v29, %v14712_v19  ;;  %v13560_v57 = vadd.f32 %v5811_v52, %v13318_v15  ;;  %v13564_v43 = vpop.f32.mrf.mxu0  ;;  %v14725_v1 = vld [vmem:[#allocation42_spill] sm:$0xff] }
 0x3a8   : > { %v5817_v2 = vadd.f32 %v5816_v54, %v5815_v4  ;;  %v5824_v55 = vrot.slane %v5823_v61, 2  ;;  %v5087_v40 = vrot.slane %v5086_v60, 2  ;;  %14714 = vst [vmem:[#allocation50_spill] sm:$0xff] %v13562_v5  ;;  %14715 = vst [vmem:[#allocation86_spill] sm:$0xff] %v13564_v43  ;;  %v5014_v0 = vmul.f32 %v13085_v13, %v14716_v58  ;;  %v14719_v4 = vld [vmem:[#allocation41_spill] sm:$0xff] }
 0x3a9   : > { %14713 = vst [vmem:[#allocation53_spill] sm:$0xff] %v13560_v57  ;;  %v5099_v25 = vadd.f32 %v5013_v62, %v5011_v42  ;;  %v5768_v21 = vmul.f32 %v13265_v45, %v14717_v50  ;;  %v5015_v16 = vmul.f32 %v13130_v47, %v14718_v53  ;;  %v5074_v44 = vadd.f32 %v5073_v10, %v5072_v14  ;;  %v13574_v19 = vpop.f32.mrf.mxu0  ;;  %v14721_v42 = vld [vmem:[#allocation38_spill] sm:$0xff]  ;;  %v13580_v14 = vpop.f32.mrf.mxu1 }
 0x3aa   : > { %v5081_v15 = vrot.slane %v5080_v28, 1  ;;  %v5095_v52 = vrot.slane %v5094_v3, 2  ;;  %v5012_v54 = vmul.f32 %v13052_v27, %v14719_v4  ;;  %14720 = vst [vmem:[#allocation26_spill] sm:$0xff] %v13574_v19  ;;  %v5831_v57 = vadd.f32 %v5830_v32, %v5829_v48  ;;  %14723 = vst [vmem:[#allocation58_spill] sm:$0xff] %v13580_v14  ;;  %v14726_v32 = vld [vmem:[#allocation51_spill] sm:$0xff]  ;;  %v14729_v14 = vld [vmem:[#allocation46_spill] sm:$0xff] }
 0x3ab   : > { %v5838_v43 = vrot.slane %v5837_v63, 4  ;;  %v5766_v62 = vmul.f32 %v13247_v46, %v14721_v42  ;;  %v5100_v58 = vadd.f32 %v5099_v25, %v5015_v16  ;;  %v5825_v7 = vadd.f32 %v5824_v55, %v5823_v61  ;;  %v13582_v10 = vpop.f32.mrf.mxu0  ;;  %v13594_v34 = vpop.f32.mrf.mxu1 }
 0x3ac   : > { %v5088_v5 = vadd.f32 %v5087_v40, %v5086_v60  ;;  %v5107_v50 = vadd.f32 %v5014_v0, %v5012_v54  ;;  %v5769_v53 = vmul.f32 %v13276_v22, %v14722_v17  ;;  %14724 = vst [vmem:[#allocation27_spill] sm:$0xff] %v13582_v10  ;;  %v5016_v48 = vmul.f32 %v13140_v39, %v14725_v1  ;;  %v14727_v60 = vld [vmem:[#allocation40_spill] sm:$0xff] }
 0x3ad   : > { %v5844_v59 = vadd.f32 %v5768_v21, %v5766_v62  ;;  %v5101_v4 = vrot.slane %v5100_v58, 4  ;;  %v5770_v19 = vmul.f32 %v13281_v31, %v14726_v32  ;;  %v5082_v42 = vadd.f32 %v5081_v15, %v5080_v28  ;;  %v13590_v40 = vpop.f32.mrf.mxu0  ;;  %14730 = vst [vmem:[#allocation38_spill] sm:$0xff] %v13594_v34 }
 0x3ae   : > { %v5818_v25 = vrot.slane %v5817_v2, 1  ;;  %v5096_v61 = vadd.f32 %v5095_v52, %v5094_v3  ;;  %v5767_v55 = vmul.f32 %v13252_v51, %v14727_v60  ;;  %14728 = vst [vmem:[#allocation41_spill] sm:$0xff] %v13590_v40  ;;  %v5832_v17 = vrot.slane %v5831_v57, 2  ;;  %v14732_v3 = vld [vmem:[#allocation3_spill] sm:$0xff]  ;;  %v14733_v40 = vld [vmem:[#allocation37_spill] sm:$0xff] }
 0x3af   : > { %v5839_v0 = vadd.f32 %v5838_v43, %v5837_v63  ;;  %v5108_v16 = vadd.f32 %v5107_v50, %v5016_v48  ;;  %v5845_v54 = vadd.f32 %v5844_v59, %v5770_v19  ;;  %v5826_v21 = vrot.slane %v5825_v7, 1  ;;  %v13596_v28 = vpop.f32.mrf.mxu0 }
 0x3b0   : > { %v5102_v62 = vadd.f32 %v5101_v4, %v5100_v58  ;;  %v5852_v10 = vadd.f32 %v5769_v53, %v5767_v55  ;;  %v5771_v1 = vmul.f32 %v13294_v9, %v14729_v14  ;;  %14731 = vst [vmem:[#allocation32_spill] sm:$0xff] %v13596_v28  ;;  %v13599_v15 = vadd.f32 %v5074_v44, %v14732_v3  ;;  %v14735_v55 = vld [vmem:[#allocation34_spill] sm:$0xff] }
 0x3b1   : > { %v5089_v52 = vrot.slane %v5088_v5, 1  ;;  %v5109_v32 = vrot.slane %v5108_v16, 4  ;;  %v5846_v60 = vrot.slane %v5845_v54, 4  ;;  %v13602_v63 = vadd.f32 %v5082_v42, %v14733_v40  ;;  %v13604_v58 = vpop.f32.mrf.mxu0  ;;  %v13612_v40 = vpop.f32.mrf.mxu1  ;;  %v14740_v28 = vld [vmem:[#allocation6_spill] sm:$0xff] }
 0x3b2   : > { %v5819_v59 = vadd.f32 %v5818_v25, %v5817_v2  ;;  %v5097_v43 = vrot.slane %v5096_v61, 1  ;;  %v5853_v19 = vadd.f32 %v5852_v10, %v5771_v1  ;;  %14734 = vst [vmem:[#allocation42_spill] sm:$0xff] %v13604_v58  ;;  %v5833_v50 = vadd.f32 %v5832_v17, %v5831_v57  ;;  %14736 = vst [vmem:[#allocation51_spill] sm:$0xff] %v13612_v40 }
 0x3b3   : > { %v5840_v53 = vrot.slane %v5839_v0, 2  ;;  %v5110_v14 = vadd.f32 %v5109_v32, %v5108_v16  ;;  %v5019_v4 = vmul.f32 %v13073_v29, %v13163_v6  ;;  %v5827_v48 = vadd.f32 %v5826_v21, %v5825_v7  ;;  %v13614_v2 = vpop.f32.mrf.mxu0  ;;  %v14738_v16 = vld [vmem:[#allocation67_spill] sm:$0xff]  ;;  %v14739_v21 = vld [vmem:[#allocation12_spill] sm:$0xff] }
 0x3b4   : > { %v5103_v44 = vrot.slane %v5102_v62, 2  ;;  %v5017_v3 = vmul.f32 %v13045_v33, %v14735_v55  ;;  %v5020_v42 = vmul.f32 %v13085_v13, %v13168_v30  ;;  %14737 = vst [vmem:[#allocation40_spill] sm:$0xff] %v13614_v2  ;;  %v5090_v10 = vadd.f32 %v5089_v52, %v5088_v5 }
 0x3b5   : > { %v5111_v25 = vrot.slane %v5110_v14, 2  ;;  %v5847_v57 = vadd.f32 %v5846_v60, %v5845_v54  ;;  %v5854_v17 = vrot.slane %v5853_v19, 4  ;;  %v5018_v1 = vmul.f32 %v13052_v27, %v14738_v16  ;;  %v14741_v60 = vld [vmem:[#allocation22_spill] sm:$0xff]  ;;  %v13626_v16 = vpop.f32.mrf.mxu1 }
 0x3b6   : > { %v5115_v6 = vadd.f32 %v5019_v4, %v5017_v3  ;;  %v5774_v7 = vmul.f32 %v13265_v45, %v13176_v35  ;;  %v5021_v32 = vmul.f32 %v13130_v47, %v14739_v21  ;;  %v5098_v55 = vadd.f32 %v5097_v43, %v5096_v61  ;;  %v13628_v4 = vpop.f32.mrf.mxu0  ;;  %v14743_v21 = vld [vmem:[#allocation63_spill] sm:$0xff] }
 0x3b7   : > { %v5834_v30 = vrot.slane %v5833_v50, 1  ;;  %v5841_v58 = vadd.f32 %v5840_v53, %v5839_v0  ;;  %v5772_v2 = vmul.f32 %v13247_v46, %v14740_v28  ;;  %v5104_v5 = vadd.f32 %v5103_v44, %v5102_v62  ;;  %14742 = vst [vmem:[#allocation46_spill] sm:$0xff] %v13628_v4  ;;  %v14744_v28 = vld [vmem:[#allocation56_spill] sm:$0xff] }
 0x3b8   : > { %v5123_v52 = vadd.f32 %v5020_v42, %v5018_v1  ;;  %v5116_v54 = vadd.f32 %v5115_v6, %v5021_v32  ;;  %v5022_v40 = vmul.f32 %v13140_v39, %v14741_v60  ;;  %v5112_v35 = vadd.f32 %v5111_v25, %v5110_v14  ;;  %v14746_v1 = vld [vmem:[#allocation39_spill] sm:$0xff]  ;;  %v14747_v32 = vld [vmem:[#allocation8_spill] sm:$0xff] }
 0x3b9   : > { %v5848_v3 = vrot.slane %v5847_v57, 2  ;;  %v5855_v34 = vadd.f32 %v5854_v17, %v5853_v19  ;;  %v5775_v61 = vmul.f32 %v13276_v22, %v14743_v21  ;;  %v5860_v0 = vadd.f32 %v5774_v7, %v5772_v2  ;;  %v13641_v2 = vpop.f32.mrf.mxu1  ;;  %v14752_v21 = vld [vmem:[#allocation16_spill] sm:$0xff] }
 0x3ba   : > { %v5117_v43 = vrot.slane %v5116_v54, 4  ;;  %v5124_v53 = vadd.f32 %v5123_v52, %v5022_v40  ;;  %v5776_v62 = vmul.f32 %v13281_v31, %v14744_v28  ;;  %v13635_v44 = vadd.f32 %v5819_v59, %v13551_v20  ;;  %14748 = vst [vmem:[#allocation37_spill] sm:$0xff] %v13641_v2  ;;  %v13643_v40 = vpop.f32.mrf.mxu0  ;;  %v14763_v2 = vld [vmem:[#allocation76_spill] sm:$0xff] }
 0x3bb   : > { %v5835_v42 = vadd.f32 %v5834_v30, %v5833_v50  ;;  %v5773_v6 = vmul.f32 %v13252_v51, %v14746_v1  ;;  %v5777_v14 = vmul.f32 %v13294_v9, %v14747_v32  ;;  %v5842_v19 = vrot.slane %v5841_v58, 1  ;;  %14749 = vst [vmem:[#allocation34_spill] sm:$0xff] %v13643_v40  ;;  %v14751_v30 = vld [vmem:[#allocation54_spill] sm:$0xff] }
 0x3bc   : > { %14745 = vst [vmem:[#allocation3_spill] sm:$0xff] %v13635_v44  ;;  %v5118_v25 = vadd.f32 %v5117_v43, %v5116_v54  ;;  %v5125_v17 = vrot.slane %v5124_v53, 4  ;;  %v5861_v60 = vadd.f32 %v5860_v0, %v5776_v62  ;;  %v13646_v7 = vadd.f32 %v5827_v48, %v13450_v12  ;;  %v14754_v62 = vld [vmem:[#allocation2_spill] sm:$0xff]  ;;  %v14771_v44 = vld [vmem:[#allocation25_spill] sm:$0xff] }
 0x3bd   : > { %v5105_v20 = vrot.slane %v5104_v5, 1  ;;  %v5849_v59 = vadd.f32 %v5848_v3, %v5847_v57  ;;  %v5868_v50 = vadd.f32 %v5775_v61, %v5773_v6  ;;  %v5169_v52 = vadd.f32 %v5090_v10, %v14751_v30  ;;  %v14755_v57 = vld [vmem:[#allocation44_spill] sm:$0xff]  ;;  %v13659_v10 = vpop.f32.mrf.mxu1  ;;  %v14758_v30 = vld [vmem:[#allocation47_spill] sm:$0xff] }
 0x3be   : > { %14750 = vst [vmem:[#allocation67_spill] sm:$0xff] %v13646_v7  ;;  %v13650_v28 = vadd.f32 %v5098_v55, %v14752_v21  ;;  %v5113_v1 = vrot.slane %v5112_v35, 1  ;;  %v5856_v32 = vrot.slane %v5855_v34, 2  ;;  %v13653_v54 = vadd.f32 %v5835_v42, %v13599_v15  ;;  %14756 = vst [vmem:[#allocation6_spill] sm:$0xff] %v13659_v10  ;;  %v13661_v55 = vpop.f32.mrf.mxu0  ;;  %v14759_v42 = vld [vmem:[#allocation29_spill] sm:$0xff] }
 0x3bf   : > { %v5862_v0 = vrot.slane %v5861_v60, 4  ;;  %v5869_v43 = vadd.f32 %v5868_v50, %v5777_v14  ;;  %v5025_v40 = vmul.f32 %v13073_v29, %v14754_v62  ;;  %v5843_v12 = vadd.f32 %v5842_v19, %v5841_v58  ;;  %14757 = vst [vmem:[#allocation22_spill] sm:$0xff] %v13661_v55  ;;  %v14760_v19 = vld [vmem:[#allocation75_spill] sm:$0xff]  ;;  %v14762_v55 = vld [vmem:[#allocation52_spill] sm:$0xff] }
 0x3c0   : > { %14753 = vst [vmem:[#allocation12_spill] sm:$0xff] %v13653_v54  ;;  %v5119_v48 = vrot.slane %v5118_v25, 2  ;;  %v5126_v4 = vadd.f32 %v5125_v17, %v5124_v53  ;;  %v5023_v3 = vmul.f32 %v13045_v33, %v14755_v57  ;;  %v5106_v61 = vadd.f32 %v5105_v20, %v5104_v5  ;;  %v14761_v57 = vld [vmem:[#allocation74_spill] sm:$0xff] }
 0x3c1   : > { %v5850_v6 = vrot.slane %v5849_v59, 1  ;;  %v5026_v15 = vmul.f32 %v13085_v13, %v14758_v30  ;;  %v5780_v14 = vmul.f32 %v13265_v45, %v14759_v42  ;;  %v5114_v50 = vadd.f32 %v5113_v1, %v5112_v35  ;;  %v13675_v35 = vpop.f32.mrf.mxu1 }
 0x3c2   : > { %v5857_v21 = vadd.f32 %v5856_v32, %v5855_v34  ;;  %v5131_v58 = vadd.f32 %v5025_v40, %v5023_v3  ;;  %v5027_v53 = vmul.f32 %v13130_v47, %v14760_v19  ;;  %v5863_v17 = vadd.f32 %v5862_v0, %v5861_v60  ;;  %14764 = vst [vmem:[#allocation63_spill] sm:$0xff] %v13675_v35  ;;  %v13677_v34 = vpop.f32.mrf.mxu0  ;;  %v14766_v60 = vld [vmem:[#allocation77_spill] sm:$0xff]  ;;  %v14767_v0 = vld [vmem:[#allocation78_spill] sm:$0xff] }
 0x3c3   : > { %v5870_v62 = vrot.slane %v5869_v43, 4  ;;  %v5024_v54 = vmul.f32 %v13052_v27, %v14761_v57  ;;  %v5778_v5 = vmul.f32 %v13247_v46, %v14762_v55  ;;  %v5120_v20 = vadd.f32 %v5119_v48, %v5118_v25  ;;  %14765 = vst [vmem:[#allocation56_spill] sm:$0xff] %v13677_v34  ;;  %v14768_v25 = vld [vmem:[#allocation21_spill] sm:$0xff] }
 0x3c4   : > { %v5127_v10 = vrot.slane %v5126_v4, 2  ;;  %v5132_v30 = vadd.f32 %v5131_v58, %v5027_v53  ;;  %v5781_v42 = vmul.f32 %v13276_v22, %v14763_v2  ;;  %v5028_v32 = vmul.f32 %v13140_v39, %v14766_v60  ;;  %v13690_v60 = vpop.f32.mrf.mxu1 }
 0x3c5   : > { %v5139_v40 = vadd.f32 %v5026_v15, %v5024_v54  ;;  %v5876_v1 = vadd.f32 %v5780_v14, %v5778_v5  ;;  %v5782_v3 = vmul.f32 %v13281_v31, %v14767_v0  ;;  %v5851_v19 = vadd.f32 %v5850_v6, %v5849_v59  ;;  %v14770_v14 = vld [vmem:[#allocation79_spill] sm:$0xff]  ;;  %v13692_v59 = vpop.f32.mrf.mxu0 }
 0x3c6   : > { %v5858_v55 = vrot.slane %v5857_v21, 1  ;;  %v5779_v48 = vmul.f32 %v13252_v51, %v14768_v25  ;;  %v5133_v58 = vrot.slane %v5132_v30, 4  ;;  %v5864_v53 = vrot.slane %v5863_v17, 2 }
 0x3c7   : > { %v5871_v2 = vadd.f32 %v5870_v62, %v5869_v43  ;;  %v5140_v57 = vadd.f32 %v5139_v40, %v5028_v32  ;;  %v5877_v7 = vadd.f32 %v5876_v1, %v5782_v3  ;;  %v13686_v34 = vadd.f32 %v5843_v12, %v13602_v63  ;;  %v14772_v62 = vld [vmem:[#allocation72_spill] sm:$0xff] }
 0x3c8   : > { %v5121_v54 = vrot.slane %v5120_v20, 1  ;;  %v5884_v15 = vadd.f32 %v5781_v42, %v5779_v48  ;;  %v5783_v5 = vmul.f32 %v13294_v9, %v14770_v14  ;;  %v5128_v6 = vadd.f32 %v5127_v10, %v5126_v4  ;;  %v14774_v3 = vld [vmem:[#allocation48_spill] sm:$0xff]  ;;  %v14775_v10 = vld [vmem:[#allocation57_spill] sm:$0xff] }
 0x3c9   : > { %14769 = vst [vmem:[#allocation39_spill] sm:$0xff] %v13686_v34  ;;  %v5134_v0 = vadd.f32 %v5133_v58, %v5132_v30  ;;  %v5141_v25 = vrot.slane %v5140_v57, 4  ;;  %v5878_v35 = vrot.slane %v5877_v7, 4  ;;  %v13695_v43 = vadd.f32 %v5106_v61, %v14771_v44  ;;  %v13706_v44 = vpop.f32.mrf.mxu1  ;;  %v13708_v61 = vpop.f32.mrf.mxu0 }
 0x3ca   : > { %v13698_v40 = vadd.f32 %v5114_v50, %v14772_v62  ;;  %v13700_v63 = vadd.f32 %v5851_v19, %v5169_v52  ;;  %v5885_v12 = vadd.f32 %v5884_v15, %v5783_v5  ;;  %v5859_v42 = vadd.f32 %v5858_v55, %v5857_v21  ;;  %14776 = vst [vmem:[#allocation54_spill] sm:$0xff] %v13708_v61  ;;  %v14777_v15 = vld [vmem:[#allocation68_spill] sm:$0xff]  ;;  %v14781_v62 = vld [vmem:[#allocation65_spill] sm:$0xff] }
 0x3cb   : > { %v5865_v1 = vadd.f32 %v5864_v53, %v5863_v17  ;;  %v5872_v32 = vrot.slane %v5871_v2, 2  ;;  %v5031_v48 = vmul.f32 %v13073_v29, %v14774_v3  ;;  %v5122_v14 = vadd.f32 %v5121_v54, %v5120_v20  ;;  %v14778_v53 = vld [vmem:[#allocation33_spill] sm:$0xff]  ;;  %v14779_v20 = vld [vmem:[#allocation14_spill] sm:$0xff]  ;;  %v14780_v5 = vld [vmem:[#allocation64_spill] sm:$0xff] }
 0x3cc   : > { %14773 = vst [vmem:[#allocation8_spill] sm:$0xff] %v13700_v63  ;;  %v5142_v4 = vadd.f32 %v5141_v25, %v5140_v57  ;;  %v5029_v30 = vmul.f32 %v13045_v33, %v14775_v10  ;;  %v5886_v58 = vrot.slane %v5885_v12, 4  ;;  %v5129_v50 = vrot.slane %v5128_v6, 1  ;;  %v14782_v10 = vld [vmem:[#allocation55_spill] sm:$0xff] }
 0x3cd   : > { %v5135_v52 = vrot.slane %v5134_v0, 2  ;;  %v5879_v19 = vadd.f32 %v5878_v35, %v5877_v7  ;;  %v5786_v21 = vmul.f32 %v13265_v45, %v14777_v15  ;;  %v5032_v29 = vmul.f32 %v13085_v13, %v14778_v53  ;;  %v13724_v13 = vpop.f32.mrf.mxu1  ;;  %v14786_v15 = vld [vmem:[#allocation49_spill] sm:$0xff] }
 0x3ce   : > { %v5887_v17 = vadd.f32 %v5886_v58, %v5885_v12  ;;  %v5147_v55 = vadd.f32 %v5031_v48, %v5029_v30  ;;  %v5033_v57 = vmul.f32 %v13130_v47, %v14779_v20  ;;  %v5866_v33 = vrot.slane %v5865_v1, 1  ;;  %v14783_v48 = vld [vmem:[#allocation28_spill] sm:$0xff]  ;;  %v13726_v58 = vpop.f32.mrf.mxu0 }
 0x3cf   : > { %v5873_v54 = vadd.f32 %v5872_v32, %v5871_v2  ;;  %v5030_v25 = vmul.f32 %v13052_v27, %v14780_v5  ;;  %v5784_v3 = vmul.f32 %v13247_v46, %v14781_v62  ;;  %v5143_v7 = vrot.slane %v5142_v4, 2  ;;  %14784 = vst [vmem:[#allocation16_spill] sm:$0xff] %v13726_v58  ;;  %v14785_v2 = vld [vmem:[#allocation31_spill] sm:$0xff] }
 0x3d0   : > { %v5148_v35 = vadd.f32 %v5147_v55, %v5033_v57  ;;  %v5787_v12 = vmul.f32 %v13276_v22, %v14782_v10  ;;  %v5034_v30 = vmul.f32 %v13140_v39, %v14783_v48  ;;  %v5136_v47 = vadd.f32 %v5135_v52, %v5134_v0  ;;  %v14788_v52 = vld [vmem:[#allocation17_spill] sm:$0xff]  ;;  %v14789_v58 = vld [vmem:[#allocation7_spill] sm:$0xff] }
 0x3d1   : > { %v5785_v32 = vmul.f32 %v13252_v51, %v14785_v2  ;;  %v5892_v27 = vadd.f32 %v5786_v21, %v5784_v3  ;;  %v5788_v53 = vmul.f32 %v13281_v31, %v14786_v15  ;;  %v5880_v20 = vrot.slane %v5879_v19, 2  ;;  %v13737_v21 = vpop.f32.mrf.mxu1  ;;  %v13739_v3 = vpop.f32.mrf.mxu0 }
 0x3d2   : > { %v5888_v55 = vrot.slane %v5887_v17, 2  ;;  %v5155_v57 = vadd.f32 %v5032_v29, %v5030_v25  ;;  %v5149_v5 = vrot.slane %v5148_v35, 4  ;;  %v13733_v62 = vadd.f32 %v5859_v42, %v13650_v28 }
 0x3d3   : > { %v5130_v39 = vadd.f32 %v5129_v50, %v5128_v6  ;;  %v5874_v10 = vrot.slane %v5873_v54, 1  ;;  %v5893_v48 = vadd.f32 %v5892_v27, %v5788_v53  ;;  %v5144_v63 = vadd.f32 %v5143_v7, %v5142_v4  ;;  %v14790_v27 = vld [vmem:[#allocation60_spill] sm:$0xff] }
 0x3d4   : > { %14787 = vst [vmem:[#allocation2_spill] sm:$0xff] %v13733_v62  ;;  %v5900_v34 = vadd.f32 %v5787_v12, %v5785_v32  ;;  %v5156_v0 = vadd.f32 %v5155_v57, %v5034_v30  ;;  %v5789_v2 = vmul.f32 %v13294_v9, %v14788_v52  ;;  %v5867_v15 = vadd.f32 %v5866_v33, %v5865_v1  ;;  %v14791_v30 = vld [vmem:[#allocation80_spill] sm:$0xff]  ;;  %v14792_v52 = vld [vmem:[#allocation43_spill] sm:$0xff] }
 0x3d5   : > { %v5137_v61 = vrot.slane %v5136_v47, 1  ;;  %v5150_v29 = vadd.f32 %v5149_v5, %v5148_v35  ;;  %v5894_v25 = vrot.slane %v5893_v48, 4  ;;  %v5173_v28 = vadd.f32 %v5122_v14, %v14789_v58  ;;  %v13747_v35 = vpop.f32.mrf.mxu1  ;;  %v13749_v5 = vpop.f32.mrf.mxu0 }
 0x3d6   : > { %v5881_v42 = vadd.f32 %v5880_v20, %v5879_v19  ;;  %v5889_v6 = vadd.f32 %v5888_v55, %v5887_v17  ;;  %v5901_v50 = vadd.f32 %v5900_v34, %v5789_v2  ;;  %v5174_v4 = vadd.f32 %v5130_v39, %v14790_v27  ;;  %v14794_v17 = vld [vmem:[#allocation81_spill] sm:$0xff]  ;;  %v14795_v39 = vld [vmem:[#allocation11_spill] sm:$0xff] }
 0x3d7   : > { %v5875_v7 = vadd.f32 %v5874_v10, %v5873_v54  ;;  %v5895_v12 = vadd.f32 %v5894_v25, %v5893_v48  ;;  %v6511_v32 = vmul.f32 %v13460_v41, %v14791_v30  ;;  %v5145_v53 = vrot.slane %v5144_v63, 1  ;;  %v14796_v25 = vld [vmem:[#allocation61_spill] sm:$0xff]  ;;  %v14797_v30 = vld [vmem:[#allocation62_spill] sm:$0xff] }
 0x3d8   : > { %v5157_v57 = vrot.slane %v5156_v0, 4  ;;  %v6509_v1 = vmul.f32 %v13443_v18, %v14792_v52  ;;  %v5902_v33 = vrot.slane %v5901_v50, 4  ;;  %v13752_v14 = vadd.f32 %v5867_v15, %v13695_v43 }
 0x3d9   : > { %v5138_v34 = vadd.f32 %v5137_v61, %v5136_v47  ;;  %v5151_v19 = vrot.slane %v5150_v29, 2  ;;  %v6512_v54 = vmul.f32 %v13465_v26, %v14794_v17  ;;  %v5882_v58 = vrot.slane %v5881_v42, 1  ;;  %v14798_v47 = vld [vmem:[#allocation30_spill] sm:$0xff] }
 0x3da   : > { %14793 = vst [vmem:[#allocation44_spill] sm:$0xff] %v13752_v14  ;;  %v5890_v20 = vrot.slane %v5889_v6, 1  ;;  %v6557_v55 = vadd.f32 %v6511_v32, %v6509_v1  ;;  %v6513_v10 = vmul.f32 %v13477_v49, %v14795_v39  ;;  %v5896_v48 = vrot.slane %v5895_v12, 2  ;;  %v13764_v14 = vpop.f32.mrf.mxu1  ;;  %v13766_v32 = vpop.f32.mrf.mxu0 }
 0x3db   : > { %v5903_v2 = vadd.f32 %v5902_v33, %v5901_v50  ;;  %v6510_v27 = vmul.f32 %v13448_v24, %v14796_v25  ;;  %v5792_v43 = vmul.f32 %v13265_v45, %v14797_v30  ;;  %v5146_v15 = vadd.f32 %v5145_v53, %v5144_v63  ;;  %v14800_v25 = vld [vmem:[#allocation10_spill] sm:$0xff] }
 0x3dc   : > { %v5158_v61 = vadd.f32 %v5157_v57, %v5156_v0  ;;  %v5790_v52 = vmul.f32 %v13247_v46, %v14798_v47  ;;  %v6558_v17 = vadd.f32 %v6557_v55, %v6513_v10  ;;  %v5152_v1 = vadd.f32 %v5151_v19, %v5150_v29  ;;  %v14801_v29 = vld [vmem:[#allocation4_spill] sm:$0xff]  ;;  %v14808_v47 = vld [vmem:[#allocation18_spill] sm:$0xff] }
 0x3dd   : > { %v6565_v39 = vadd.f32 %v6512_v54, %v6510_v27  ;;  %v6514_v50 = vmul.f32 %v13484_v8, %v13428_v23  ;;  %v5794_v33 = vmul.f32 %v13281_v31, %v13434_v36  ;;  %v13773_v45 = vadd.f32 %v5875_v7, %v13698_v40  ;;  %v14803_v23 = vld [vmem:[#allocation9_spill] sm:$0xff]  ;;  %v13781_v31 = vpop.f32.mrf.mxu1  ;;  %v13783_v36 = vpop.f32.mrf.mxu0 }
 0x3de   : > { %v5883_v63 = vadd.f32 %v5882_v58, %v5881_v42  ;;  %v5891_v0 = vadd.f32 %v5890_v20, %v5889_v6  ;;  %v6559_v53 = vrot.slane %v6558_v17, 4  ;;  %v5897_v46 = vadd.f32 %v5896_v48, %v5895_v12  ;;  %14804 = vst [vmem:[#allocation75_spill] sm:$0xff] %v13783_v36  ;;  %v14837_v36 = vld [vmem:[#allocation27_spill] sm:$0xff] }
 0x3df   : > { %14799 = vst [vmem:[#allocation47_spill] sm:$0xff] %v13773_v45  ;;  %v5904_v57 = vrot.slane %v5903_v2, 2  ;;  %v5908_v55 = vadd.f32 %v5792_v43, %v5790_v52  ;;  %v6566_v10 = vadd.f32 %v6565_v39, %v6514_v50  ;;  %v5175_v30 = vadd.f32 %v5138_v34, %v14800_v25  ;;  %v14807_v34 = vld [vmem:[#allocation15_spill] sm:$0xff]  ;;  %v14810_v50 = vld [vmem:[#allocation36_spill] sm:$0xff] }
 0x3e0   : > { %v13777_v19 = vadd.f32 %v5146_v15, %v14801_v29  ;;  %v5159_v54 = vrot.slane %v5158_v61, 2  ;;  %v5793_v27 = vmul.f32 %v13276_v22, %v14803_v23  ;;  %v5153_v40 = vrot.slane %v5152_v1, 1  ;;  %v14817_v29 = vld [vmem:[#allocation82_spill] sm:$0xff] }
 0x3e1   : > { %v6560_v42 = vadd.f32 %v6559_v53, %v6558_v17  ;;  %v6567_v6 = vrot.slane %v6566_v10, 4  ;;  %v5909_v7 = vadd.f32 %v5908_v55, %v5794_v33  ;;  %v13785_v12 = vadd.f32 %v5883_v63, %v5173_v28  ;;  %v13801_v63 = vpop.f32.mrf.mxu1  ;;  %v14815_v53 = vld [vmem:[#allocation59_spill] sm:$0xff]  ;;  %v14816_v55 = vld [vmem:[#allocation45_spill] sm:$0xff] }
 0x3e2   : > { %14802 = vst [vmem:[#allocation29_spill] sm:$0xff] %v13777_v19  ;;  %v13787_v58 = vadd.f32 %v5891_v0, %v5174_v4  ;;  %v5791_v20 = vmul.f32 %v13252_v51, %v14807_v34  ;;  %v5795_v48 = vmul.f32 %v13294_v9, %v13452_v56  ;;  %v5898_v43 = vrot.slane %v5897_v46, 1  ;;  %v14811_v4 = vld [vmem:[#allocation66_spill] sm:$0xff]  ;;  %v13803_v51 = vpop.f32.mrf.mxu0  ;;  %v14818_v34 = vld [vmem:[#allocation5_spill] sm:$0xff] }
 0x3e3   : > { %14805 = vst [vmem:[#allocation74_spill] sm:$0xff] %v13785_v12  ;;  %v5905_v22 = vadd.f32 %v5904_v57, %v5903_v2  ;;  %v6568_v15 = vadd.f32 %v6567_v6, %v6566_v10  ;;  %v6517_v52 = vmul.f32 %v13460_v41, %v14808_v47  ;;  %v13795_v39 = vadd.f32 %v5159_v54, %v5158_v61  ;;  %v14814_v0 = vld [vmem:[#allocation70_spill] sm:$0xff] }
 0x3e4   : > { %14806 = vst [vmem:[#allocation52_spill] sm:$0xff] %v13787_v58  ;;  %v5916_v17 = vadd.f32 %v5793_v27, %v5791_v20  ;;  %v6515_v28 = vmul.f32 %v13443_v18, %v14810_v50  ;;  %v6518_v33 = vmul.f32 %v13465_v26, %v14811_v4  ;;  %14812 = vst [vmem:[#allocation77_spill] sm:$0xff] %v13803_v51  ;;  %v6561_v56 = vrot.slane %v6560_v42, 2  ;;  %v14819_v20 = vld [vmem:[#allocation24_spill] sm:$0xff]  ;;  %v14820_v4 = vld [vmem:[#allocation71_spill] sm:$0xff] }
 0x3e5   : > { %14809 = vst [vmem:[#allocation76_spill] sm:$0xff] %v13795_v39  ;;  %v13805_v9 = vadd.f32 %v5153_v40, %v5152_v1  ;;  %v5910_v2 = vrot.slane %v5909_v7, 4  ;;  %v7272_v57 = vmul.f32 %v14815_v53, %v14814_v0  ;;  %v6516_v10 = vmul.f32 %v13448_v24, %v14816_v55  ;;  %v14836_v51 = vld [vmem:[#allocation85_spill] sm:$0xff] }
 0x3e6   : > { %v5917_v61 = vadd.f32 %v5916_v17, %v5795_v48  ;;  %v6573_v25 = vadd.f32 %v6517_v52, %v6515_v28  ;;  %v6519_v54 = vmul.f32 %v13477_v49, %v14817_v29  ;;  %v5899_v23 = vadd.f32 %v5898_v43, %v5897_v46  ;;  %v13819_v17 = vpop.f32.mrf.mxu1  ;;  %v13821_v52 = vpop.f32.mrf.mxu0  ;;  %v14821_v43 = vld [vmem:[#allocation83_spill] sm:$0xff] }
 0x3e7   : > { %14813 = vst [vmem:[#allocation78_spill] sm:$0xff] %v13805_v9  ;;  %v5906_v27 = vrot.slane %v5905_v22, 1  ;;  %v6569_v6 = vrot.slane %v6568_v15, 2  ;;  %v7270_v1 = vmul.f32 %v14819_v20, %v14818_v34  ;;  %v6581_v40 = vadd.f32 %v6518_v33, %v6516_v10  ;;  %v14822_v34 = vld [vmem:[#allocation69_spill] sm:$0xff] }
 0x3e8   : > { %v6574_v47 = vadd.f32 %v6573_v25, %v6519_v54  ;;  %v7273_v50 = vmul.f32 %v13542_v37, %v13522_v11  ;;  %v6520_v48 = vmul.f32 %v13484_v8, %v14820_v4  ;;  %v6562_v28 = vadd.f32 %v6561_v56, %v6560_v42  ;;  %v14823_v33 = vld [vmem:[#allocation73_spill] sm:$0xff]  ;;  %v14826_v56 = vld [vmem:[#allocation84_spill] sm:$0xff] }
 0x3e9   : > { %v5911_v0 = vadd.f32 %v5910_v2, %v5909_v7  ;;  %v7318_v46 = vadd.f32 %v7272_v57, %v7270_v1  ;;  %v7274_v55 = vmul.f32 %v14821_v43, %v13530_v38  ;;  %v5918_v29 = vrot.slane %v5917_v61, 4  ;;  %v14825_v7 = vld [vmem:[#allocation13_spill] sm:$0xff]  ;;  %v13832_v57 = vpop.f32.mrf.mxu1  ;;  %v13834_v38 = vpop.f32.mrf.mxu0 }
 0x3ea   : > { %v7271_v10 = vmul.f32 %v14823_v33, %v14822_v34  ;;  %v6575_v25 = vrot.slane %v6574_v47, 4  ;;  %v6582_v54 = vadd.f32 %v6581_v40, %v6520_v48  ;;  %v13828_v9 = vadd.f32 %v5899_v23, %v5175_v30  ;;  %14827 = vst [vmem:[#allocation79_spill] sm:$0xff] %v13834_v38 }
 0x3eb   : > { %v6570_v4 = vadd.f32 %v6569_v6, %v6568_v15  ;;  %v7319_v19 = vadd.f32 %v7318_v46, %v7274_v55  ;;  %v7275_v2 = vmul.f32 %v14826_v56, %v14825_v7  ;;  %v13836_v1 = vadd.f32 %v5906_v27, %v5905_v22  ;;  %v14830_v55 = vld [vmem:[#allocation58_spill] sm:$0xff] }
 0x3ec   : > { %14824 = vst [vmem:[#allocation21_spill] sm:$0xff] %v13828_v9  ;;  %v6576_v58 = vadd.f32 %v6575_v25, %v6574_v47  ;;  %v7326_v12 = vadd.f32 %v7273_v50, %v7271_v10  ;;  %v6583_v42 = vrot.slane %v6582_v54, 4  ;;  %v6563_v34 = vrot.slane %v6562_v28, 1  ;;  %v14829_v50 = vld [vmem:[#allocation20_spill] sm:$0xff]  ;;  %v14831_v27 = vld [vmem:[#allocation50_spill] sm:$0xff]  ;;  %v13846_v9 = vpop.f32.mrf.mxu1 }
 0x3ed   : > { %14828 = vst [vmem:[#allocation25_spill] sm:$0xff] %v13836_v1  ;;  %v5912_v40 = vrot.slane %v5911_v0, 2  ;;  %v7320_v48 = vrot.slane %v7319_v19, 4  ;;  %v13838_v11 = vadd.f32 %v5918_v29, %v5917_v61  ;;  %v6571_v6 = vrot.slane %v6570_v4, 1  ;;  %v13848_v61 = vpop.f32.mrf.mxu0 }
 0x3ee   : > { %v6577_v30 = vrot.slane %v6576_v58, 2  ;;  %v6584_v15 = vadd.f32 %v6583_v42, %v6582_v54  ;;  %v7327_v23 = vadd.f32 %v7326_v12, %v7275_v2  ;;  %v6521_v46 = vmul.f32 %v13443_v18, %v14829_v50  ;;  %14832 = vst [vmem:[#allocation72_spill] sm:$0xff] %v13848_v61  ;;  %v14833_v54 = vld [vmem:[#allocation38_spill] sm:$0xff]  ;;  %v13860_v62 = vpop.f32.mrf.mxu1 }
 0x3ef   : > { %v7321_v47 = vadd.f32 %v7320_v48, %v7319_v19  ;;  %v6523_v10 = vmul.f32 %v13460_v41, %v14830_v55  ;;  %v6522_v39 = vmul.f32 %v13448_v24, %v14831_v27  ;;  %v6524_v19 = vmul.f32 %v13465_v26, %v14833_v54  ;;  %v14834_v42 = vld [vmem:[#allocation26_spill] sm:$0xff] }
 0x3f0   : > { %v6578_v25 = vadd.f32 %v6577_v30, %v6576_v58  ;;  %v6585_v7 = vrot.slane %v6584_v15, 2  ;;  %v7328_v22 = vrot.slane %v7327_v23, 4  ;;  %v7278_v2 = vmul.f32 %v14815_v53, %v14834_v42  ;;  %v14835_v30 = vld [vmem:[#allocation51_spill] sm:$0xff]  ;;  %v13862_v42 = vpop.f32.mrf.mxu0 }
 0x3f1   : > { %v7322_v29 = vrot.slane %v7321_v47, 2  ;;  %v6589_v12 = vadd.f32 %v6523_v10, %v6521_v46  ;;  %v6525_v55 = vmul.f32 %v13477_v49, %v14835_v30  ;;  %v6564_v1 = vadd.f32 %v6563_v34, %v6562_v28  ;;  %14838 = vst [vmem:[#allocation48_spill] sm:$0xff] %v13862_v42 }
 0x3f2   : > { %v6579_v48 = vrot.slane %v6578_v25, 1  ;;  %v6586_v50 = vadd.f32 %v6585_v7, %v6584_v15  ;;  %v7329_v58 = vadd.f32 %v7328_v22, %v7327_v23  ;;  %v6572_v27 = vadd.f32 %v6571_v6, %v6570_v4  ;;  %v14839_v4 = vld [vmem:[#allocation41_spill] sm:$0xff] }
 0x3f3   : > { %v7323_v45 = vadd.f32 %v7322_v29, %v7321_v47  ;;  %v7276_v61 = vmul.f32 %v14819_v20, %v14836_v51  ;;  %v6597_v46 = vadd.f32 %v6524_v19, %v6522_v39  ;;  %v6590_v10 = vadd.f32 %v6589_v12, %v6525_v55  ;;  %v14840_v47 = vld [vmem:[#allocation86_spill] sm:$0xff]  ;;  %v14842_v19 = vld [vmem:[#allocation19_spill] sm:$0xff]  ;;  %v13874_v55 = vpop.f32.mrf.mxu1 }
 0x3f4   : > { %v6587_v38 = vrot.slane %v6586_v50, 1  ;;  %v7279_v54 = vmul.f32 %v13542_v37, %v14837_v36  ;;  %v7330_v15 = vrot.slane %v7329_v58, 2  ;;  %v6526_v28 = vmul.f32 %v13484_v8, %v13626_v16  ;;  %v14846_v36 = vld [vmem:[#allocation3_spill] sm:$0xff] }
 0x3f5   : > { %v7334_v23 = vadd.f32 %v7278_v2, %v7276_v61  ;;  %v7280_v34 = vmul.f32 %v14821_v43, %v14839_v4  ;;  %v6580_v6 = vadd.f32 %v6579_v48, %v6578_v25  ;;  %v7324_v51 = vrot.slane %v7323_v45, 1  ;;  %v13876_v4 = vpop.f32.mrf.mxu0 }
 0x3f6   : > { %v7277_v39 = vmul.f32 %v14823_v33, %v14840_v47  ;;  %v6591_v7 = vrot.slane %v6590_v10, 4  ;;  %v13870_v22 = vadd.f32 %v5912_v40, %v5911_v0  ;;  %v6598_v29 = vadd.f32 %v6597_v46, %v6526_v28  ;;  %14843 = vst [vmem:[#allocation68_spill] sm:$0xff] %v13876_v4  ;;  %v14844_v47 = vld [vmem:[#allocation32_spill] sm:$0xff]  ;;  %v14845_v40 = vld [vmem:[#allocation53_spill] sm:$0xff] }
 0x3f7   : > { %v7335_v12 = vadd.f32 %v7334_v23, %v7280_v34  ;;  %v6685_v61 = vadd.f32 %v6564_v1, %v14842_v19  ;;  %v6588_v2 = vadd.f32 %v6587_v38, %v6586_v50  ;;  %v7331_v25 = vadd.f32 %v7330_v15, %v7329_v58  ;;  %v14848_v34 = vld [vmem:[#allocation67_spill] sm:$0xff]  ;;  %v14849_v15 = vld [vmem:[#allocation37_spill] sm:$0xff]  ;;  %v13889_v19 = vpop.f32.mrf.mxu1 }
 0x3f8   : > { %14841 = vst [vmem:[#allocation57_spill] sm:$0xff] %v13870_v22  ;;  %v6592_v30 = vadd.f32 %v6591_v7, %v6590_v10  ;;  %v7342_v16 = vadd.f32 %v7279_v54, %v7277_v39  ;;  %v6599_v48 = vrot.slane %v6598_v29, 4  ;;  %v7281_v0 = vmul.f32 %v14826_v56, %v14844_v47  ;;  %v14847_v10 = vld [vmem:[#allocation63_spill] sm:$0xff]  ;;  %14850 = vst [vmem:[#allocation33_spill] sm:$0xff] %v13889_v19 }
 0x3f9   : > { %v7336_v42 = vrot.slane %v7335_v12, 4  ;;  %v6686_v22 = vadd.f32 %v6572_v27, %v14845_v40  ;;  %v6687_v46 = vadd.f32 %v6580_v6, %v14846_v36  ;;  %v7325_v23 = vadd.f32 %v7324_v51, %v7323_v45  ;;  %v13891_v45 = vpop.f32.mrf.mxu0  ;;  %v14854_v40 = vld [vmem:[#allocation42_spill] sm:$0xff] }
 0x3fa   : > { %v6593_v28 = vrot.slane %v6592_v30, 2  ;;  %v6600_v1 = vadd.f32 %v6599_v48, %v6598_v29  ;;  %v7343_v50 = vadd.f32 %v7342_v16, %v7281_v0  ;;  %v6529_v54 = vmul.f32 %v13460_v41, %v14847_v10  ;;  %14851 = vst [vmem:[#allocation14_spill] sm:$0xff] %v13891_v45  ;;  %v14852_v29 = vld [vmem:[#allocation6_spill] sm:$0xff] }
 0x3fb   : > { %v7337_v38 = vadd.f32 %v7336_v42, %v7335_v12  ;;  %v6688_v39 = vadd.f32 %v6588_v2, %v14848_v34  ;;  %v6527_v7 = vmul.f32 %v13443_v18, %v14849_v15  ;;  %v6530_v27 = vmul.f32 %v13465_v26, %v13690_v60 }
 0x3fc   : > { %v6594_v58 = vadd.f32 %v6593_v28, %v6592_v30  ;;  %v7332_v6 = vrot.slane %v7331_v25, 1  ;;  %v6601_v42 = vrot.slane %v6600_v1, 2  ;;  %v7344_v36 = vrot.slane %v7343_v50, 4  ;;  %v14853_v30 = vld [vmem:[#allocation46_spill] sm:$0xff] }
 0x3fd   : > { %v7338_v51 = vrot.slane %v7337_v38, 2  ;;  %v6528_v12 = vmul.f32 %v13448_v24, %v14852_v29  ;;  %v6605_v2 = vadd.f32 %v6529_v54, %v6527_v7  ;;  %v7284_v16 = vmul.f32 %v14815_v53, %v14853_v30  ;;  %v13903_v29 = vpop.f32.mrf.mxu1  ;;  %v13905_v54 = vpop.f32.mrf.mxu0 }
 0x3fe   : > { %v6531_v48 = vmul.f32 %v13477_v49, %v13706_v44  ;;  %v7446_v47 = vadd.f32 %v7325_v23, %v6685_v61  ;;  %v7345_v0 = vadd.f32 %v7344_v36, %v7343_v50  ;;  %v7282_v28 = vmul.f32 %v14819_v20, %v14854_v40  ;;  %14855 = vst [vmem:[#allocation64_spill] sm:$0xff] %v13903_v29  ;;  %v14857_v44 = vld [vmem:[#allocation34_spill] sm:$0xff] }
 0x3ff   : > { %v7339_v60 = vadd.f32 %v7338_v51, %v7337_v38  ;;  %v6595_v10 = vrot.slane %v6594_v58, 1  ;;  %v6613_v34 = vadd.f32 %v6530_v27, %v6528_v12  ;;  %v6532_v45 = vmul.f32 %v13484_v8, %v13724_v13  ;;  %14856 = vst [vmem:[#allocation65_spill] sm:$0xff] %v13905_v54  ;;  %v14858_v51 = vld [vmem:[#allocation22_spill] sm:$0xff]  ;;  %v14859_v13 = vld [vmem:[#allocation40_spill] sm:$0xff]  ;;  %v13913_v29 = vpop.f32.mrf.mxu1  ;;  %v13915_v19 = vpop.f32.mrf.mxu0 }
 0x400   : > { %v6606_v15 = vadd.f32 %v6605_v2, %v6531_v48  ;;  %v6602_v7 = vadd.f32 %v6601_v42, %v6600_v1  ;;  %v7346_v4 = vrot.slane %v7345_v0, 2  ;;  %v7285_v61 = vmul.f32 %v13542_v37, %v14857_v44 }
 0x401   : > { %v7340_v30 = vrot.slane %v7339_v60, 1  ;;  %v7350_v23 = vadd.f32 %v7284_v16, %v7282_v28  ;;  %v6614_v50 = vadd.f32 %v6613_v34, %v6532_v45  ;;  %v7286_v27 = vmul.f32 %v14821_v43, %v14858_v51  ;;  %v14860_v34 = vld [vmem:[#allocation56_spill] sm:$0xff] }
 0x402   : > { %v6607_v38 = vrot.slane %v6606_v15, 4  ;;  %v7333_v36 = vadd.f32 %v7332_v6, %v7331_v25  ;;  %v7347_v2 = vadd.f32 %v7346_v4, %v7345_v0  ;;  %v7283_v48 = vmul.f32 %v14823_v33, %v14859_v13 }
 0x403   : > { %v7341_v12 = vadd.f32 %v7340_v30, %v7339_v60  ;;  %v6596_v40 = vadd.f32 %v6595_v10, %v6594_v58  ;;  %v6615_v1 = vrot.slane %v6614_v50, 4  ;;  %v7351_v42 = vadd.f32 %v7350_v23, %v7286_v27  ;;  %v14861_v30 = vld [vmem:[#allocation12_spill] sm:$0xff]  ;;  %v13925_v27 = vpop.f32.mrf.mxu0 }
 0x404   : > { %v6608_v54 = vadd.f32 %v6607_v38, %v6606_v15  ;;  %v7348_v28 = vrot.slane %v7347_v2, 1  ;;  %v7358_v45 = vadd.f32 %v7285_v61, %v7283_v48  ;;  %v7287_v44 = vmul.f32 %v14826_v56, %v14860_v34  ;;  %v13923_v61 = vpop.f32.mrf.mxu1 }
 0x405   : > { %v7448_v16 = vadd.f32 %v7341_v12, %v6687_v46  ;;  %v6603_v25 = vrot.slane %v6602_v7, 1  ;;  %v6616_v4 = vadd.f32 %v6615_v1, %v6614_v50  ;;  %v7352_v60 = vrot.slane %v7351_v42, 4 }
 0x406   : > { %v6609_v6 = vrot.slane %v6608_v54, 2  ;;  %v7447_v0 = vadd.f32 %v7333_v36, %v6686_v22  ;;  %v7349_v10 = vadd.f32 %v7348_v28, %v7347_v2  ;;  %v7359_v15 = vadd.f32 %v7358_v45, %v7287_v44  ;;  %v13940_v28 = vpop.f32.mrf.mxu1 }
 0x407   : > { %v7479_v58 = vsel %vm7478_vm11, %v7448_v16, %v7446_v47  ;;  %v6689_v23 = vadd.f32 %v6596_v40, %v14861_v30  ;;  %v7353_v51 = vadd.f32 %v7352_v60, %v7351_v42  ;;  %v6535_v46 = vmul.f32 %v13460_v41, %v13764_v14 }
 0x408   : > { %v6610_v38 = vadd.f32 %v6609_v6, %v6608_v54  ;;  %v7449_v12 = vadd.f32 %v7349_v10, %v6688_v39  ;;  %v6617_v13 = vrot.slane %v6616_v4, 2  ;;  %v7360_v50 = vrot.slane %v7359_v15, 4  ;;  %v14862_v39 = vld [vmem:[#allocation16_spill] sm:$0xff] }
 0x409   : > { %v6536_v22 = vmul.f32 %v13465_v26, %v13781_v31  ;;  %v6604_v47 = vadd.f32 %v6603_v25, %v6602_v7  ;;  %v7354_v36 = vrot.slane %v7353_v51, 2  ;;  %v6533_v2 = vmul.f32 %v13443_v18, %v13737_v21  ;;  %v13942_v21 = vpop.f32.mrf.mxu0 }
 0x40a   : > { %v6534_v54 = vmul.f32 %v13448_v24, %v13747_v35  ;;  %v7492_v14 = vsel %vm7478_vm11, %v7449_v12, %v7447_v0  ;;  %v7361_v48 = vadd.f32 %v7360_v50, %v7359_v15  ;;  %v7288_v40 = vmul.f32 %v14819_v20, %v13692_v59  ;;  %v13952_v12 = vpop.f32.mrf.mxu1 }
 0x40b   : > { %v7290_v1 = vmul.f32 %v14815_v53, %v14862_v39  ;;  %v6611_v42 = vrot.slane %v6610_v38, 1  ;;  %v7355_v16 = vadd.f32 %v7354_v36, %v7353_v51  ;;  %v6621_v31 = vadd.f32 %v6535_v46, %v6533_v2 }
 0x40c   : > { %v6537_v7 = vmul.f32 %v13477_v49, %v13801_v63  ;;  %v6618_v35 = vadd.f32 %v6617_v13, %v6616_v4  ;;  %v7362_v45 = vrot.slane %v7361_v48, 2  ;;  %v6629_v34 = vadd.f32 %v6536_v22, %v6534_v54  ;;  %v14863_v4 = vld [vmem:[#allocation54_spill] sm:$0xff] }
 0x40d   : > { %v6538_v44 = vmul.f32 %v13484_v8, %v13819_v17  ;;  %v7356_v59 = vrot.slane %v7355_v16, 1  ;;  %v7291_v6 = vmul.f32 %v13542_v37, %v13739_v3  ;;  %v7366_v0 = vadd.f32 %v7290_v1, %v7288_v40  ;;  %v13954_v17 = vpop.f32.mrf.mxu0  ;;  %v14865_v40 = vld [vmem:[#allocation39_spill] sm:$0xff] }
 0x40e   : > { %v6622_v25 = vadd.f32 %v6621_v31, %v6537_v7  ;;  %v7363_v60 = vadd.f32 %v7362_v45, %v7361_v48  ;;  %v7292_v63 = vmul.f32 %v14821_v43, %v13749_v5  ;;  %v6612_v15 = vadd.f32 %v6611_v42, %v6610_v38  ;;  %v13967_v45 = vpop.f32.mrf.mxu1 }
 0x40f   : > { %v6630_v10 = vadd.f32 %v6629_v34, %v6538_v44  ;;  %v7357_v30 = vadd.f32 %v7356_v59, %v7355_v16  ;;  %v7289_v51 = vmul.f32 %v14823_v33, %v14863_v4  ;;  %v6619_v13 = vrot.slane %v6618_v35, 1  ;;  %v13969_v34 = vpop.f32.mrf.mxu0 }
 0x410   : > { %v6623_v46 = vrot.slane %v6622_v25, 4  ;;  %v7364_v50 = vrot.slane %v7363_v60, 1  ;;  %v7367_v3 = vadd.f32 %v7366_v0, %v7292_v63  ;;  %v7293_v5 = vmul.f32 %v14826_v56, %v13766_v32 }
 0x411   : > { %v6631_v22 = vrot.slane %v6630_v10, 4  ;;  %v7450_v36 = vadd.f32 %v7357_v30, %v6689_v23  ;;  %v7374_v54 = vadd.f32 %v7291_v6, %v7289_v51  ;;  %v14864_v38 = vrot.slane %v13838_v11, 2 }
 0x412   : > { %v6624_v2 = vadd.f32 %v6623_v46, %v6622_v25  ;;  %v6690_v39 = vadd.f32 %v6604_v47, %v14865_v40  ;;  %v7365_v1 = vadd.f32 %v7364_v50, %v7363_v60  ;;  %v7368_v42 = vrot.slane %v7367_v3, 4  ;;  %v14866_v25 = vld [vmem:[#allocation8_spill] sm:$0xff]  ;;  %v13985_v46 = vpop.f32.mrf.mxu0 }
 0x413   : > { %v13961_v48 = vadd.f32 %v14864_v38, %v13838_v11  ;;  %v7481_v16 = vsel %vm7480_vm15, %v7450_v36, %v7479_v58  ;;  %v6632_v31 = vadd.f32 %v6631_v22, %v6630_v10  ;;  %v7375_v7 = vadd.f32 %v7374_v54, %v7293_v5  ;;  %v14869_v22 = vld [vmem:[#allocation75_spill] sm:$0xff]  ;;  %v14870_v54 = vld [vmem:[#allocation64_spill] sm:$0xff] }
 0x414   : > { %v6541_v23 = vmul.f32 %v13460_v41, %v13860_v62  ;;  %v6620_v32 = vadd.f32 %v6619_v13, %v6618_v35  ;;  %v7451_v44 = vadd.f32 %v7365_v1, %v6690_v39  ;;  %v6625_v59 = vrot.slane %v6624_v2, 2  ;;  %v14871_v39 = vld [vmem:[#allocation79_spill] sm:$0xff] }
 0x415   : > { %v7369_v11 = vadd.f32 %v7368_v42, %v7367_v3  ;;  %v6691_v6 = vadd.f32 %v6612_v15, %v14866_v25  ;;  %v6539_v47 = vmul.f32 %v13443_v18, %v13832_v57  ;;  %v7376_v60 = vrot.slane %v7375_v7, 4  ;;  %v14867_v15 = vld [vmem:[#allocation33_spill] sm:$0xff]  ;;  %v13983_v57 = vpop.f32.mrf.mxu1  ;;  %v14872_v42 = vld [vmem:[#allocation72_spill] sm:$0xff] }
 0x416   : > { %v6542_v58 = vmul.f32 %v13465_v26, %v13874_v55  ;;  %v7493_v0 = vsel %vm7480_vm15, %v7451_v44, %v7492_v14  ;;  %v6540_v10 = vmul.f32 %v13448_v24, %v13846_v9  ;;  %v7296_v35 = vmul.f32 %v14815_v53, %v13821_v52  ;;  %v14868_v55 = vld [vmem:[#allocation2_spill] sm:$0xff] }
 0x417   : > { %v7370_v62 = vrot.slane %v7369_v11, 2  ;;  %v6633_v63 = vrot.slane %v6632_v31, 2  ;;  %v7377_v30 = vadd.f32 %v7376_v60, %v7375_v7  ;;  %v6637_v4 = vadd.f32 %v6541_v23, %v6539_v47  ;;  %v14873_v47 = vld [vmem:[#allocation77_spill] sm:$0xff] }
 0x418   : > { %v6543_v51 = vmul.f32 %v13477_v49, %v14867_v15  ;;  %v6692_v13 = vadd.f32 %v6620_v32, %v14868_v55  ;;  %v6626_v14 = vadd.f32 %v6625_v59, %v6624_v2  ;;  %v7294_v9 = vmul.f32 %v14819_v20, %v14869_v22  ;;  %v13996_v59 = vpop.f32.mrf.mxu1 }
 0x419   : > { %v7371_v50 = vadd.f32 %v7370_v62, %v7369_v11  ;;  %v7378_v3 = vrot.slane %v7377_v30, 2  ;;  %v6645_v36 = vadd.f32 %v6542_v58, %v6540_v10  ;;  %v6544_v5 = vmul.f32 %v13484_v8, %v14870_v54  ;;  %v13998_v11 = vpop.f32.mrf.mxu0 }
 0x41a   : > { %v6638_v52 = vadd.f32 %v6637_v4, %v6543_v51  ;;  %v7382_v40 = vadd.f32 %v7296_v35, %v7294_v9  ;;  %v7297_v1 = vmul.f32 %v13542_v37, %v14871_v39  ;;  %v7298_v7 = vmul.f32 %v14821_v43, %v14872_v42 }
 0x41b   : > { %v7372_v38 = vrot.slane %v7371_v50, 1  ;;  %v6634_v23 = vadd.f32 %v6633_v63, %v6632_v31  ;;  %v7379_v2 = vadd.f32 %v7378_v3, %v7377_v30  ;;  %v6646_v44 = vadd.f32 %v6645_v36, %v6544_v5  ;;  %v14874_v63 = vld [vmem:[#allocation48_spill] sm:$0xff]  ;;  %v14006_v36 = vpop.f32.mrf.mxu0 }
 0x41c   : > { %v6639_v32 = vrot.slane %v6638_v52, 4  ;;  %v7295_v60 = vmul.f32 %v14823_v33, %v14873_v47  ;;  %v7383_v58 = vadd.f32 %v7382_v40, %v7298_v7  ;;  %v6627_v62 = vrot.slane %v6626_v14, 1  ;;  %v14875_v47 = vld [vmem:[#allocation65_spill] sm:$0xff] }
 0x41d   : > { %v7373_v25 = vadd.f32 %v7372_v38, %v7371_v50  ;;  %v7380_v10 = vrot.slane %v7379_v2, 1  ;;  %v6647_v4 = vrot.slane %v6646_v44, 4  ;;  %v7299_v30 = vmul.f32 %v14826_v56, %v14874_v63  ;;  %v14004_v50 = vpop.f32.mrf.mxu1 }
 0x41e   : > { %v6640_v35 = vadd.f32 %v6639_v32, %v6638_v52  ;;  %v7390_v51 = vadd.f32 %v7297_v1, %v7295_v60  ;;  %v7384_v31 = vrot.slane %v7383_v58, 4  ;;  %v6635_v55 = vrot.slane %v6634_v23, 1 }
 0x41f   : > { %v7452_v15 = vadd.f32 %v7373_v25, %v6691_v6  ;;  %v7381_v22 = vadd.f32 %v7380_v10, %v7379_v2  ;;  %v6648_v3 = vadd.f32 %v6647_v4, %v6646_v44  ;;  %v6547_v6 = vmul.f32 %v13460_v41, %v13940_v28 }
 0x420   : > { %v6641_v9 = vrot.slane %v6640_v35, 2  ;;  %v7385_v5 = vadd.f32 %v7384_v31, %v7383_v58  ;;  %v7391_v38 = vadd.f32 %v7390_v51, %v7299_v30  ;;  %v6628_v52 = vadd.f32 %v6627_v62, %v6626_v14  ;;  %v14020_v14 = vpop.f32.mrf.mxu0  ;;  %v14877_v31 = vld [vmem:[#allocation44_spill] sm:$0xff] }
 0x421   : > { %v7483_v54 = vsel %vm7482_vm13, %v7452_v15, %v7481_v16  ;;  %v7453_v40 = vadd.f32 %v7381_v22, %v6692_v13  ;;  %v6649_v1 = vrot.slane %v6648_v3, 2  ;;  %v6545_v7 = vmul.f32 %v13443_v18, %v13913_v29  ;;  %v6459_v13 = vpop.f32.mrf.mxu1 }
 0x422   : > { %v6642_v39 = vadd.f32 %v6641_v9, %v6640_v35  ;;  %v7386_v42 = vrot.slane %v7385_v5, 2  ;;  %v7392_v2 = vrot.slane %v7391_v38, 4  ;;  %v6548_v32 = vmul.f32 %v13465_v26, %v13952_v12  ;;  %v14033_v9 = vpop.f32.mrf.mxu0 }
 0x423   : > { %v6636_v44 = vadd.f32 %v6635_v55, %v6634_v23  ;;  %v7494_v16 = vsel %vm7482_vm13, %v7453_v40, %v7493_v0  ;;  %v6546_v25 = vmul.f32 %v13448_v24, %v13923_v61  ;;  %v7302_v28 = vmul.f32 %v14815_v53, %v14875_v47  ;;  %v14876_v23 = vld [vmem:[#allocation68_spill] sm:$0xff]  ;;  %v6461_v22 = vpop.f32.mrf.mxu1 }
 0x424   : > { %v7387_v60 = vadd.f32 %v7386_v42, %v7385_v5  ;;  %v7393_v58 = vadd.f32 %v7392_v2, %v7391_v38  ;;  %v6653_v62 = vadd.f32 %v6547_v6, %v6545_v7  ;;  %v6549_v29 = vmul.f32 %v13477_v49, %v13967_v45 }
 0x425   : > { %v6643_v10 = vrot.slane %v6642_v39, 1  ;;  %v6650_v12 = vadd.f32 %v6649_v1, %v6648_v3  ;;  %v7300_v0 = vmul.f32 %v14819_v20, %v14876_v23  ;;  %v6661_v35 = vadd.f32 %v6548_v32, %v6546_v25  ;;  %v14878_v1 = vld [vmem:[#allocation14_spill] sm:$0xff]  ;;  %v14879_v32 = vld [vmem:[#allocation47_spill] sm:$0xff] }
 0x426   : > { %v7388_v4 = vrot.slane %v7387_v60, 1  ;;  %v7394_v61 = vrot.slane %v7393_v58, 2  ;;  %v6654_v15 = vadd.f32 %v6653_v62, %v6549_v29  ;;  %v6550_v51 = vmul.f32 %v13484_v8, %v13983_v57  ;;  %v14880_v23 = vld [vmem:[#allocation74_spill] sm:$0xff] }
 0x427   : > { %v6693_v63 = vadd.f32 %v6628_v52, %v14877_v31  ;;  %v7398_v30 = vadd.f32 %v7302_v28, %v7300_v0  ;;  %v7303_v55 = vmul.f32 %v13542_v37, %v13915_v19  ;;  %v7304_v45 = vmul.f32 %v14821_v43, %v13925_v27 }
 0x428   : > { %v7389_v3 = vadd.f32 %v7388_v4, %v7387_v60  ;;  %v7395_v5 = vadd.f32 %v7394_v61, %v7393_v58  ;;  %v6655_v38 = vrot.slane %v6654_v15, 4  ;;  %v6662_v6 = vadd.f32 %v6661_v35, %v6550_v51  ;;  %v6465_v60 = vpop.f32.mrf.mxu1  ;;  %v14040_v58 = vpop.f32.mrf.mxu0 }
 0x429   : > { %v6644_v40 = vadd.f32 %v6643_v10, %v6642_v39  ;;  %vm7484_vm14 = vcmask 1044484   ;;  %v7301_v57 = vmul.f32 %v14823_v33, %v14878_v1  ;;  %v7399_v52 = vadd.f32 %v7398_v30, %v7304_v45 }
 0x42a   : > { %v6651_v42 = vrot.slane %v6650_v12, 1  ;;  %v7454_v7 = vadd.f32 %v7389_v3, %v6693_v63  ;;  %v7396_v2 = vrot.slane %v7395_v5, 1  ;;  %v6663_v19 = vrot.slane %v6662_v6, 4  ;;  %v7220_v45 = vpop.f32.mrf.mxu0 }
 0x42b   : > { %v6694_v25 = vadd.f32 %v6636_v44, %v14879_v32  ;;  %v7406_v27 = vadd.f32 %v7303_v55, %v7301_v57  ;;  %v7400_v47 = vrot.slane %v7399_v52, 4  ;;  %v7305_v28 = vmul.f32 %v14826_v56, %v13942_v21  ;;  %v6467_v55 = vpop.f32.mrf.mxu1 }
 0x42c   : > { %v7485_v39 = vsel %vm7484_vm14, %v7454_v7, %v7483_v54  ;;  %v7397_v62 = vadd.f32 %v7396_v2, %v7395_v5  ;;  %v6656_v29 = vadd.f32 %v6655_v38, %v6654_v15  ;;  %v6664_v10 = vadd.f32 %v6663_v19, %v6662_v6  ;;  %v7222_v1 = vpop.f32.mrf.mxu0 }
 0x42d   : > { %v6695_v0 = vadd.f32 %v6644_v40, %v14880_v23  ;;  %v7401_v35 = vadd.f32 %v7400_v47, %v7399_v52  ;;  %v7407_v4 = vadd.f32 %v7406_v27, %v7305_v28  ;;  %v6553_v61 = vmul.f32 %v13460_v41, %v6459_v13 }
 0x42e   : > { %v6652_v44 = vadd.f32 %v6651_v42, %v6650_v12  ;;  %v7455_v51 = vadd.f32 %v7397_v62, %v6694_v25  ;;  %v6551_v31 = vmul.f32 %v13443_v18, %v13996_v59  ;;  %v6554_v21 = vmul.f32 %v13465_v26, %v6461_v22  ;;  %v7226_v28 = vpop.f32.mrf.mxu0 }
 0x42f   : > { %v7402_v63 = vrot.slane %v7401_v35, 2  ;;  %v7408_v30 = vrot.slane %v7407_v4, 4  ;;  %v6552_v54 = vmul.f32 %v13448_v24, %v14004_v50  ;;  %v7308_v15 = vmul.f32 %v14815_v53, %v13985_v46 }
 0x430   : > { %v7495_v3 = vsel %vm7484_vm14, %v7455_v51, %v7494_v16  ;;  %v6657_v41 = vrot.slane %v6656_v29, 2  ;;  %v6665_v13 = vrot.slane %v6664_v10, 2  ;;  %v7306_v12 = vmul.f32 %v14819_v20, %v13954_v17 }
 0x431   : > { %v7403_v18 = vadd.f32 %v7402_v63, %v7401_v35  ;;  %v7409_v59 = vadd.f32 %v7408_v30, %v7407_v4  ;;  %v6669_v26 = vadd.f32 %v6553_v61, %v6551_v31  ;;  %v6555_v22 = vmul.f32 %v13477_v49, %v6465_v60  ;;  %v14881_v60 = vld [vmem:[#allocation52_spill] sm:$0xff] }
 0x432   : > { %v6677_v5 = vadd.f32 %v6554_v21, %v6552_v54  ;;  %v7414_v38 = vadd.f32 %v7308_v15, %v7306_v12  ;;  %v7309_v24 = vmul.f32 %v13542_v37, %v13998_v11  ;;  %v6556_v46 = vmul.f32 %v13484_v8, %v6467_v55  ;;  %v7228_v54 = vpop.f32.mrf.mxu0 }
 0x433   : > { %v7404_v50 = vrot.slane %v7403_v18, 1  ;;  %v7410_v6 = vrot.slane %v7409_v59, 2  ;;  %v6670_v16 = vadd.f32 %v6669_v26, %v6555_v22  ;;  %v7310_v40 = vmul.f32 %v14821_v43, %v14006_v36  ;;  %v14883_v26 = vld [vmem:[#allocation25_spill] sm:$0xff] }
 0x434   : > { %v6658_v17 = vadd.f32 %v6657_v41, %v6656_v29  ;;  %v7307_v57 = vmul.f32 %v14823_v33, %v13969_v34  ;;  %v6678_v49 = vadd.f32 %v6677_v5, %v6556_v46  ;;  %v6666_v11 = vadd.f32 %v6665_v13, %v6664_v10  ;;  %v14884_v22 = vld [vmem:[#allocation57_spill] sm:$0xff] }
 0x435   : > { %v7405_v52 = vadd.f32 %v7404_v50, %v7403_v18  ;;  %v7411_v42 = vadd.f32 %v7410_v6, %v7409_v59  ;;  %v6671_v7 = vrot.slane %v6670_v16, 4  ;;  %v7415_v2 = vadd.f32 %v7414_v38, %v7310_v40  ;;  %v14882_v59 = vld [vmem:[#allocation29_spill] sm:$0xff] }
 0x436   : > { %v7422_v19 = vadd.f32 %v7309_v24, %v7307_v57  ;;  %v6679_v8 = vrot.slane %v6678_v49, 4  ;;  %v7311_v32 = vmul.f32 %v14826_v56, %v14020_v14  ;;  %v6696_v62 = vadd.f32 %v6652_v44, %v14881_v60  ;;  %v14885_v6 = vld [vmem:[#allocation21_spill] sm:$0xff] }
 0x437   : > { %v7456_v25 = vadd.f32 %v7405_v52, %v6695_v0  ;;  %v7412_v27 = vrot.slane %v7411_v42, 1  ;;  %v6672_v36 = vadd.f32 %v6671_v7, %v6670_v16  ;;  %v7416_v47 = vrot.slane %v7415_v2, 4 }
 0x438   : > { %v6659_v29 = vrot.slane %v6658_v17, 1  ;;  %v6680_v34 = vadd.f32 %v6679_v8, %v6678_v49  ;;  %v7423_v23 = vadd.f32 %v7422_v19, %v7311_v32  ;;  %v7312_v31 = vmul.f32 %v14819_v20, %v14033_v9  ;;  %v14886_v49 = vld [vmem:[#allocation76_spill] sm:$0xff] }
 0x439   : > { %v7487_v35 = vsel %vm7486_vm2, %v7456_v25, %v7485_v39  ;;  %v7413_v4 = vadd.f32 %v7412_v27, %v7411_v42  ;;  %v6673_v61 = vrot.slane %v6672_v36, 2  ;;  %v7417_v10 = vadd.f32 %v7416_v47, %v7415_v2  ;;  %v14888_v27 = vld [vmem:[#allocation23_spill] sm:$0xff] }
 0x43a   : > { %v7424_v51 = vrot.slane %v7423_v23, 4  ;;  %v7314_v14 = vmul.f32 %v14815_v53, %v7220_v45  ;;  %v7315_v0 = vmul.f32 %v13542_v37, %v7222_v1  ;;  %v6667_v21 = vrot.slane %v6666_v11, 1 }
 0x43b   : > { %v7457_v63 = vadd.f32 %v7413_v4, %v6696_v62  ;;  %v7418_v30 = vrot.slane %v7417_v10, 2  ;;  %v7316_v44 = vmul.f32 %v14821_v43, %v7226_v28  ;;  %v6681_v15 = vrot.slane %v6680_v34, 2  ;;  %v14890_v4 = vld [vmem:[#allocation35_spill] sm:$0xff] }
 0x43c   : > { %v7425_v55 = vadd.f32 %v7424_v51, %v7423_v23  ;;  %v7313_v39 = vmul.f32 %v14823_v33, %v14040_v58  ;;  %v7430_v41 = vadd.f32 %v7314_v14, %v7312_v31  ;;  %v6660_v13 = vadd.f32 %v6659_v29, %v6658_v17 }
 0x43d   : > { %v7496_v12 = vsel %vm7486_vm2, %v7457_v63, %v7495_v3  ;;  %v6674_v20 = vadd.f32 %v6673_v61, %v6672_v36  ;;  %v7419_v9 = vadd.f32 %v7418_v30, %v7417_v10  ;;  %v7317_v18 = vmul.f32 %v14826_v56, %v7228_v54  ;;  %v14889_v36 = vld [vmem:[#allocation78_spill] sm:$0xff] }
 0x43e   : > { %v7426_v53 = vrot.slane %v7425_v55, 2  ;;  %v7438_v45 = vadd.f32 %v7315_v0, %v7313_v39  ;;  %v7431_v37 = vadd.f32 %v7430_v41, %v7316_v44  ;;  %v5937_v43 = vadd.f32 %v14883_v26, %v14882_v59 }
 0x43f   : > { %v5914_v5 = vrot.slane %v14884_v22, 1  ;;  %v6668_v38 = vadd.f32 %v6667_v21, %v6666_v11  ;;  %v7420_v24 = vrot.slane %v7419_v9, 1  ;;  %v6682_v46 = vadd.f32 %v6681_v15, %v6680_v34 }
 0x440   : > { %v7427_v33 = vadd.f32 %v7426_v53, %v7425_v55  ;;  %v7432_v58 = vrot.slane %v7431_v37, 4  ;;  %v7439_v50 = vadd.f32 %v7438_v45, %v7317_v18  ;;  %v5922_v3 = vrot.slane %v13961_v48, 1 }
 0x441   : > { %v6697_v16 = vadd.f32 %v6660_v13, %v14885_v6  ;;  %v7421_v40 = vadd.f32 %v7420_v24, %v7419_v9  ;;  %v6675_v1 = vrot.slane %v6674_v20, 1  ;;  %v14887_v52 = vrot.slane %v14886_v49, 1 }
 0x442   : > { %v7428_v17 = vrot.slane %v7427_v33, 1  ;;  %v7433_v56 = vadd.f32 %v7432_v58, %v7431_v37  ;;  %v7440_v57 = vrot.slane %v7439_v50, 4  ;;  %v5915_v7 = vadd.f32 %v5914_v5, %v14884_v22 }
 0x443   : > { %v5162_v42 = vadd.f32 %v14887_v52, %v14886_v49  ;;  %v6698_v2 = vadd.f32 %v6668_v38, %v5937_v43  ;;  %v7458_v11 = vadd.f32 %v7421_v40, %v6697_v16  ;;  %v6683_v19 = vrot.slane %v6682_v46, 1 }
 0x444   : > { %v7429_v8 = vadd.f32 %v7428_v17, %v7427_v33  ;;  %v7434_v32 = vrot.slane %v7433_v56, 2  ;;  %v7441_v25 = vadd.f32 %v7440_v57, %v7439_v50  ;;  %v5177_v47 = vadd.f32 %v14889_v36, %v14888_v27 }
 0x445   : > { %v5923_v28 = vadd.f32 %v5922_v3, %v13961_v48  ;;  %v7489_v60 = vsel %vm7488_vm3, %v7458_v11, %v7487_v35  ;;  %v6676_v62 = vadd.f32 %v6675_v1, %v6674_v20  ;;  %v5178_v61 = vadd.f32 %v5162_v42, %v14890_v4 }
 0x446   : > { %v7459_v29 = vadd.f32 %v7429_v8, %v6698_v2  ;;  %v7435_v34 = vadd.f32 %v7434_v32, %v7433_v56  ;;  %v7442_v23 = vrot.slane %v7441_v25, 2  ;;  %v5938_v10 = vadd.f32 %v5915_v7, %v5177_v47 }
 0x447   : > { %v6684_v51 = vadd.f32 %v6683_v19, %v6682_v46  ;;  %v5939_v21 = vadd.f32 %v5923_v28, %v5178_v61 }
 0x448   : > { %v7497_v31 = vsel %vm7488_vm3, %v7459_v29, %v7496_v12  ;;  %v7436_v14 = vrot.slane %v7435_v34, 1  ;;  %v7443_v0 = vadd.f32 %v7442_v23, %v7441_v25  ;;  %v6699_v63 = vadd.f32 %v6676_v62, %v5938_v10 }
 0x449   : > { %v6700_v48 = vadd.f32 %v6684_v51, %v5939_v21 }
 0x44a   : > { %v7437_v30 = vadd.f32 %v7436_v14, %v7435_v34  ;;  %v7444_v44 = vrot.slane %v7443_v0, 1 }
 0x44c   : > { %v7460_v35 = vadd.f32 %v7437_v30, %v6699_v63  ;;  %v7445_v54 = vadd.f32 %v7444_v44, %v7443_v0 }
 0x44e   : > { %v7491_v15 = vsel %vm7490_vm4, %v7460_v35, %v7489_v60  ;;  %v7461_v55 = vadd.f32 %v7445_v54, %v6700_v48 }
 0x44f   : > { %7501 = vst [vmem:[%s300_s26] sm:$0xff] %v7491_v15 }
 0x450   : > { %v7498_v39 = vsel %vm7490_vm4, %v7461_v55, %v7497_v31 }
 0x451   : > { %7502 = vst [vmem:[%s300_s26 + $0x8] sm:$0xff] %v7498_v39 }
 0x452 PF: > { %s15_s20 = sadd.s32 1, %s8001_s20   ;;  %s14891_s18 = smov %s7997_s19 }
 0x453   : > { %p12_p5 = scmp.ge.s32.totalorder %s15_s20, 4   ;;  %s14892_s19 = smov %s14894_s21 }
 0x455   :  { %14 = sbr.rel (!%p12_p5) target bundleno = 2 (0x2), region = 76 }

</bundles_post_ra>
